<compile_context>
chip_gen: v7x
topology: tpu7x:2x2x1
jax: 0.10.0
libtpu: 0.0.40
codegen_flags: <defaults>
</compile_context>

<pallas_src>
from functools import partial

import jax
import jax.numpy as jnp
import numpy as np
from jax.experimental import pallas as pl
from jax.experimental.pallas import tpu as pltpu


def _cc_attention_kernel(x_ref, wqT_ref, wkT_ref, wvT_ref,
                         bq_ref, bk_ref, bv_ref, gamma_ref, out_ref, *, H, W):
    """Fused criss-cross attention for a block of `Bt` images.

    x_ref/out_ref blocks are channels-major: (Bt, C, H*W).
    """
    Bt, C, HW = x_ref.shape
    Cq = wqT_ref.shape[1]
    f32 = jnp.float32
    bf16 = jnp.bfloat16

    # Hoisted once per grid step (weights stay resident: constant index_map).
    wqT = wqT_ref[...]          # (C, Cq)
    wkT = wkT_ref[...]          # (C, Cq)
    wvT = wvT_ref[...]          # (C, C)
    bq = bq_ref[...]            # (1, Cq)
    bk = bk_ref[...]            # (1, Cq)
    bv = bv_ref[...]            # (1, C)
    gamma = gamma_ref[0, 0]     # scalar from SMEM

    # -inf additive mask on the h' == i diagonal of the height branch, built
    # once from small (H, H) iotas and broadcast over W (and the batch loop).
    ii = jax.lax.broadcasted_iota(jnp.int32, (H, H), 0)
    hh = jax.lax.broadcasted_iota(jnp.int32, (H, H), 1)
    diag_mask = jnp.where(ii == hh, -jnp.inf, 0.0).astype(f32)      # (H, H)

    for b in range(Bt):  # static unroll; Bt is small (VMEM-budgeted)
        x_cm = x_ref[b]                      # (C, H*W)  channels-major
        x_px = jnp.transpose(x_cm)           # (H*W, C)  one pixel per row

        # 1x1-conv projections == per-pixel matmuls (f32 accumulate).
        q = jnp.dot(x_px, wqT, preferred_element_type=f32) + bq     # (HW, Cq)
        k = jnp.dot(x_px, wkT, preferred_element_type=f32) + bk     # (HW, Cq)
        v = jnp.dot(x_px, wvT, preferred_element_type=f32) + bv     # (HW, C)

        q_row = q.reshape(H, W, Cq)                  # [i, j, c]
        k_row = k.reshape(H, W, Cq)
        v_row = v.reshape(H, W, C)
        q_col = jnp.transpose(q_row, (1, 0, 2))      # (W, H, Cq) [j, i, c]
        k_col = jnp.transpose(k_row, (1, 0, 2))
        v_col = jnp.transpose(v_row, (1, 0, 2))      # (W, H, C)

        # Energies: bf16 MXU operands, f32 accumulation.
        # e_h[j, i, h'] = q(i, j) . k(h', j)   (height / column branch)
        e_h = jnp.einsum('jic,jhc->jih',
                         q_col.astype(bf16), k_col.astype(bf16),
                         preferred_element_type=f32)                # (W, H, H)
        e_h = e_h + diag_mask[None, :, :]
        # e_w[i, j, w'] = q(i, j) . k(i, w')   (width / row branch)
        e_w = jnp.einsum('ijc,iwc->ijw',
                         q_row.astype(bf16), k_row.astype(bf16),
                         preferred_element_type=f32)                # (H, W, W)

        # Joint softmax over the concatenated (H + W) axis, f32 math, without
        # materializing the concatenation; each transposed coupling tensor is
        # materialized exactly once.
        m_h = jnp.max(e_h, axis=-1)                        # (W, H)
        m_w = jnp.max(e_w, axis=-1)                        # (H, W)
        m_row = jnp.maximum(jnp.transpose(m_h), m_w)       # (H, W)
        m_col = jnp.transpose(m_row)                       # (W, H)
        p_h = jnp.exp(e_h - m_col[:, :, None])             # (W, H, H)
        p_w = jnp.exp(e_w - m_row[:, :, None])             # (H, W, W)
        s_h = jnp.sum(p_h, axis=-1)                        # (W, H)
        s_w = jnp.sum(p_w, axis=-1)                        # (H, W)
        inv_row = pl.reciprocal(jnp.transpose(s_h) + s_w, approx=True)  # (H, W)
        inv_col = jnp.transpose(inv_row)                               # (W, H)
        att_h = (p_h * inv_col[:, :, None]).astype(bf16)   # (W, H, H)
        att_w = (p_w * inv_row[:, :, None]).astype(bf16)   # (H, W, W)

        # Attention-weighted values (bf16 operands, f32 accumulation).
        oh_col = jnp.einsum('jih,jhc->jic', att_h, v_col.astype(bf16),
                            preferred_element_type=f32)    # (W, H, C)
        ow_row = jnp.einsum('ijw,iwc->ijc', att_w, v_row.astype(bf16),
                            preferred_element_type=f32)    # (H, W, C)
        oh_row = jnp.transpose(oh_col, (1, 0, 2))          # (H, W, C)

        # Fused epilogue: gamma * (out_H + out_W) + x, emitted channels-major
        # so the stored last dim is H*W (lane-dense) rather than C.
        attn = (gamma * (oh_row + ow_row)).reshape(HW, C)  # (HW, C)
        out_ref[b] = (jnp.transpose(attn) + x_cm).astype(out_ref.dtype)


def _pick_block_b(B, C, Cq, H, W, vmem_budget_bytes=6 * 1024 * 1024):
    """Images per grid step: amortize per-step overhead, stay within a
    conservative VMEM budget, and keep >= 2 grid steps (v7x has 2 TCs)."""
    per_image = 4 * (4 * H * W * C + 6 * H * W * Cq
                     + 3 * W * H * H + 3 * H * W * W)
    bb = max(1, vmem_budget_bytes // max(per_image, 1))
    bb = min(bb, max(1, B // 2))
    while B % bb:
        bb -= 1
    return max(1, bb)


def criss_cross_attention(x_nchw, params, *, block_b=None):
    """Pallas-backed forward pass.  x_nchw: (B, C, H, W) float32."""
    wq, bq = params['wq'], params['bq']      # wq: (Cq, C)
    wk, bk = params['wk'], params['bk']
    wv, bv = params['wv'], params['bv']      # wv: (C, C)
    gamma = params['gamma']

    B, C, H, W = x_nchw.shape
    Cq = wq.shape[0]
    HW = H * W

    if block_b is None:
        block_b = _pick_block_b(B, C, Cq, H, W)
    assert B % block_b == 0

    # Parameter / glue prep (free reshapes, tiny transposes).
    x_flat = x_nchw.reshape(B, C, HW)                     # channels-major
    wqT, wkT, wvT = wq.T, wk.T, wv.T                      # (C, Cq), (C, Cq), (C, C)
    bq2 = bq.reshape(1, Cq)
    bk2 = bk.reshape(1, Cq)
    bv2 = bv.reshape(1, C)
    gamma2 = jnp.asarray(gamma, jnp.float32).reshape(1, 1)

    const2d = lambda shape: pl.BlockSpec(shape, lambda b: (0, 0))

    out_flat = pl.pallas_call(
        partial(_cc_attention_kernel, H=H, W=W),
        grid=(B // block_b,),
        in_specs=[
            pl.BlockSpec((block_b, C, HW), lambda b: (b, 0, 0)),   # x
            const2d((C, Cq)),                                      # wqT
            const2d((C, Cq)),                                      # wkT
            const2d((C, C)),                                       # wvT
            const2d((1, Cq)),                                      # bq
            const2d((1, Cq)),                                      # bk
            const2d((1, C)),                                       # bv
            pl.BlockSpec(memory_space=pltpu.MemorySpace.SMEM),     # gamma
        ],
        out_specs=pl.BlockSpec((block_b, C, HW), lambda b: (b, 0, 0)),
        out_shape=jax.ShapeDtypeStruct((B, C, HW), x_nchw.dtype),
        compiler_params=pltpu.CompilerParams(
            dimension_semantics=("parallel",),
            vmem_limit_bytes=32 * 1024 * 1024),
    )(x_flat, wqT, wkT, wvT, bq2, bk2, bv2, gamma2)

    return out_flat.reshape(B, C, H, W)                   # already NCHW


def criss_cross_reference(x, params):
    """Pure-JAX mirror of the PyTorch forward (for verification)."""
    wq, bq = params['wq'], params['bq']
    wk, bk = params['wk'], params['bk']
    wv, bv = params['wv'], params['bv']
    gamma = params['gamma']
    B, C, H, W = x.shape

    q = jnp.einsum('bchw,dc->bdhw', x, wq) + bq[None, :, None, None]
    k = jnp.einsum('bchw,dc->bdhw', x, wk) + bk[None, :, None, None]
    v = jnp.einsum('bchw,dc->bdhw', x, wv) + bv[None, :, None, None]

    e_h = jnp.einsum('bcij,bchj->bijh', q, k)              # (B, H, W, H)
    diag = jnp.eye(H, dtype=bool)[None, :, None, :]
    e_h = jnp.where(diag, -jnp.inf, e_h)
    e_w = jnp.einsum('bcij,bciw->bijw', q, k)              # (B, H, W, W)

    att = jax.nn.softmax(jnp.concatenate([e_h, e_w], axis=-1), axis=-1)
    att_h, att_w = att[..., :H], att[..., H:]

    out_h = jnp.einsum('bijh,bchj->bcij', att_h, v)
    out_w = jnp.einsum('bijw,bciw->bcij', att_w, v)
    return gamma * (out_h + out_w) + x


if __name__ == "__main__":
    B, C, H, W = 2, 64, 16, 24          # in_dim must be >= 8 (Cq = C // 8)
    Cq = C // 8

    key = jax.random.PRNGKey(0)
    k_x, k_q, k_k, k_v = jax.random.split(key, 4)
    x = jax.random.normal(k_x, (B, C, H, W), jnp.float32)

    params = {
        # Conv2d(in_dim, in_dim//8, 1) weights -> (out, in) matrices, zero bias.
        'wq': 0.1 * jax.random.normal(k_q, (Cq, C), jnp.float32),
        'bq': jnp.zeros((Cq,), jnp.float32),
        'wk': 0.1 * jax.random.normal(k_k, (Cq, C), jnp.float32),
        'bk': jnp.zeros((Cq,), jnp.float32),
        'wv': 0.1 * jax.random.normal(k_v, (C, C), jnp.float32),
        'bv': jnp.zeros((C,), jnp.float32),
        # PyTorch initializes gamma to 0 (output == x); use a nonzero value so
        # the attention path is numerically exercised and verified.
        'gamma': jnp.float32(0.5),
    }

    out = jax.block_until_ready(criss_cross_attention(x, params))
    ref = jax.block_until_ready(criss_cross_reference(x, params))
    # bf16 matmul operands + approximate reciprocal cost ~1e-3 relative vs the
    # all-f32 reference; 2e-2 keeps a comfortable margin.
    np.testing.assert_allclose(np.asarray(out), np.asarray(ref),
                               rtol=2e-2, atol=2e-2)
    print("KERNEL_OK")
</pallas_src>

<mosaic_0001>
module attributes {stable_mosaic.version = 11 : i64} {
  func.func @_cc_attention_kernel(%arg0: i32, %arg1: memref<1x64x384xf32, #tpu.memory_space<vmem>>, %arg2: memref<64x8xf32, #tpu.memory_space<vmem>>, %arg3: memref<64x8xf32, #tpu.memory_space<vmem>>, %arg4: memref<64x64xf32, #tpu.memory_space<vmem>>, %arg5: memref<1x8xf32, #tpu.memory_space<vmem>>, %arg6: memref<1x8xf32, #tpu.memory_space<vmem>>, %arg7: memref<1x64xf32, #tpu.memory_space<vmem>>, %arg8: memref<1x1xf32, #tpu.memory_space<smem>>, %arg9: memref<1x64x384xf32, #tpu.memory_space<vmem>>) attributes {dimension_semantics = [#tpu.dimension_semantics<parallel>], iteration_bounds = array<i64: 2>, scalar_prefetch = 0 : i64, scratch_operands = 0 : i64, tpu.core_type = #tpu.core_type<tc>, window_params = [{transform_indices = @transform_0, window_bounds = array<i64: 1, 64, 384>}, {pipeline_mode = #tpu.pipeline_mode<synchronous>, transform_indices = @transform_1, window_bounds = array<i64: 64, 8>}, {pipeline_mode = #tpu.pipeline_mode<synchronous>, transform_indices = @transform_2, window_bounds = array<i64: 64, 8>}, {pipeline_mode = #tpu.pipeline_mode<synchronous>, transform_indices = @transform_3, window_bounds = array<i64: 64, 64>}, {pipeline_mode = #tpu.pipeline_mode<synchronous>, transform_indices = @transform_4, window_bounds = array<i64: 1, 8>}, {pipeline_mode = #tpu.pipeline_mode<synchronous>, transform_indices = @transform_5, window_bounds = array<i64: 1, 8>}, {pipeline_mode = #tpu.pipeline_mode<synchronous>, transform_indices = @transform_6, window_bounds = array<i64: 1, 64>}, {transform_indices = @transform_7, window_bounds = array<i64: 1, 1>}, {transform_indices = @transform_8, window_bounds = array<i64: 1, 64, 384>}]} {
    %c0 = arith.constant 0 : index
    %c0_0 = arith.constant 0 : index
    %0 = vector.load %arg2[%c0, %c0_0] : memref<64x8xf32, #tpu.memory_space<vmem>>, vector<64x8xf32>
    %c0_1 = arith.constant 0 : index
    %c0_2 = arith.constant 0 : index
    %1 = vector.load %arg3[%c0_1, %c0_2] : memref<64x8xf32, #tpu.memory_space<vmem>>, vector<64x8xf32>
    %c0_3 = arith.constant 0 : index
    %c0_4 = arith.constant 0 : index
    %2 = vector.load %arg4[%c0_3, %c0_4] : memref<64x64xf32, #tpu.memory_space<vmem>>, vector<64x64xf32>
    %c0_5 = arith.constant 0 : index
    %c0_6 = arith.constant 0 : index
    %3 = vector.load %arg5[%c0_5, %c0_6] : memref<1x8xf32, #tpu.memory_space<vmem>>, vector<1x8xf32>
    %c0_7 = arith.constant 0 : index
    %c0_8 = arith.constant 0 : index
    %4 = vector.load %arg6[%c0_7, %c0_8] : memref<1x8xf32, #tpu.memory_space<vmem>>, vector<1x8xf32>
    %c0_9 = arith.constant 0 : index
    %c0_10 = arith.constant 0 : index
    %5 = vector.load %arg7[%c0_9, %c0_10] : memref<1x64xf32, #tpu.memory_space<vmem>>, vector<1x64xf32>
    %c0_11 = arith.constant 0 : index
    %c0_12 = arith.constant 0 : index
    %6 = memref.load %arg8[%c0_11, %c0_12] : memref<1x1xf32, #tpu.memory_space<smem>>
    %7 = tpu.iota {dimensions = array<i32: 0>} : vector<16x16xi32>
    %8 = tpu.iota {dimensions = array<i32: 1>} : vector<16x16xi32>
    %9 = arith.cmpi eq, %7, %8 : vector<16x16xi32>
    %cst = arith.constant 0xFF800000 : f32
    %cst_13 = arith.constant 0.000000e+00 : f32
    %10 = vector.broadcast %cst : f32 to vector<16x16xf32>
    %11 = vector.broadcast %cst_13 : f32 to vector<16x16xf32>
    %12 = arith.select %9, %10, %11 : vector<16x16xi1>, vector<16x16xf32>
    %c0_14 = arith.constant 0 : index
    %c0_15 = arith.constant 0 : index
    %c0_16 = arith.constant 0 : index
    %13 = vector.load %arg1[%c0_14, %c0_15, %c0_16] : memref<1x64x384xf32, #tpu.memory_space<vmem>>, vector<1x64x384xf32>
    %14 = vector.shape_cast %13 : vector<1x64x384xf32> to vector<64x384xf32>
    %15 = tpu.transpose %14, [1, 0] : vector<64x384xf32> -> vector<384x64xf32>
    %cst_17 = arith.constant dense<0.000000e+00> : vector<384x8xf32>
    %16 = tpu.matmul %15, %0, %cst_17 {dimension_numbers = #tpu.dot_dimension_numbers<[1], [0], [0], [1], [0, 0, 1, 1], [], []>} : vector<384x64xf32>, vector<64x8xf32>, vector<384x8xf32> -> vector<384x8xf32>
    %17 = vector.broadcast %3 : vector<1x8xf32> to vector<384x8xf32>
    %18 = arith.addf %16, %17 : vector<384x8xf32>
    %cst_18 = arith.constant dense<0.000000e+00> : vector<384x8xf32>
    %19 = tpu.matmul %15, %1, %cst_18 {dimension_numbers = #tpu.dot_dimension_numbers<[1], [0], [0], [1], [0, 0, 1, 1], [], []>} : vector<384x64xf32>, vector<64x8xf32>, vector<384x8xf32> -> vector<384x8xf32>
    %20 = vector.broadcast %4 : vector<1x8xf32> to vector<384x8xf32>
    %21 = arith.addf %19, %20 : vector<384x8xf32>
    %cst_19 = arith.constant dense<0.000000e+00> : vector<384x64xf32>
    %22 = tpu.matmul %15, %2, %cst_19 {dimension_numbers = #tpu.dot_dimension_numbers<[1], [0], [0], [1], [0, 0, 1, 1], [], []>} : vector<384x64xf32>, vector<64x64xf32>, vector<384x64xf32> -> vector<384x64xf32>
    %23 = vector.broadcast %5 : vector<1x64xf32> to vector<384x64xf32>
    %24 = arith.addf %22, %23 : vector<384x64xf32>
    %25 = vector.shape_cast %18 : vector<384x8xf32> to vector<16x24x8xf32>
    %26 = vector.shape_cast %21 : vector<384x8xf32> to vector<16x24x8xf32>
    %27 = vector.shape_cast %24 : vector<384x64xf32> to vector<16x24x64xf32>
    %28 = tpu.transpose %25, [1, 0, 2] : vector<16x24x8xf32> -> vector<24x16x8xf32>
    %29 = tpu.transpose %26, [1, 0, 2] : vector<16x24x8xf32> -> vector<24x16x8xf32>
    %30 = tpu.transpose %27, [1, 0, 2] : vector<16x24x64xf32> -> vector<24x16x64xf32>
    %31 = arith.truncf %28 : vector<24x16x8xf32> to vector<24x16x8xbf16>
    %32 = arith.truncf %29 : vector<24x16x8xf32> to vector<24x16x8xbf16>
    "tpu.trace_start"() <{level = 10 : i32, message = "jic,jhc->jih"}> : () -> ()
    %cst_20 = arith.constant dense<0.000000e+00> : vector<24x16x16xf32>
    %33 = tpu.matmul %31, %32, %cst_20 {dimension_numbers = #tpu.dot_dimension_numbers<[2], [2], [1], [1], [0, 0, 0, 1, 1, 1], [0], [0]>} : vector<24x16x8xbf16>, vector<24x16x8xbf16>, vector<24x16x16xf32> -> vector<24x16x16xf32>
    "tpu.trace_stop"() : () -> ()
    %34 = vector.shape_cast %12 : vector<16x16xf32> to vector<1x16x16xf32>
    %35 = vector.broadcast %34 : vector<1x16x16xf32> to vector<24x16x16xf32>
    %36 = arith.addf %33, %35 : vector<24x16x16xf32>
    %37 = arith.truncf %25 : vector<16x24x8xf32> to vector<16x24x8xbf16>
    %38 = arith.truncf %26 : vector<16x24x8xf32> to vector<16x24x8xbf16>
    "tpu.trace_start"() <{level = 10 : i32, message = "ijc,iwc->ijw"}> : () -> ()
    %cst_21 = arith.constant dense<0.000000e+00> : vector<16x24x24xf32>
    %39 = tpu.matmul %37, %38, %cst_21 {dimension_numbers = #tpu.dot_dimension_numbers<[2], [2], [1], [1], [0, 0, 0, 1, 1, 1], [0], [0]>} : vector<16x24x8xbf16>, vector<16x24x8xbf16>, vector<16x24x24xf32> -> vector<16x24x24xf32>
    "tpu.trace_stop"() : () -> ()
    %cst_22 = arith.constant dense<0xFF800000> : vector<24x16xf32>
    %40 = vector.multi_reduction <maximumf>, %36, %cst_22 [2] : vector<24x16x16xf32> to vector<24x16xf32>
    %cst_23 = arith.constant dense<0xFF800000> : vector<16x24xf32>
    %41 = vector.multi_reduction <maximumf>, %39, %cst_23 [2] : vector<16x24x24xf32> to vector<16x24xf32>
    %42 = tpu.transpose %40, [1, 0] : vector<24x16xf32> -> vector<16x24xf32>
    %43 = arith.maximumf %42, %41 : vector<16x24xf32>
    %44 = tpu.transpose %43, [1, 0] : vector<16x24xf32> -> vector<24x16xf32>
    %45 = vector.shape_cast %44 : vector<24x16xf32> to vector<24x16x1xf32>
    %46 = vector.broadcast %45 : vector<24x16x1xf32> to vector<24x16x16xf32>
    %47 = arith.subf %36, %46 : vector<24x16x16xf32>
    %48 = math.exp %47 : vector<24x16x16xf32>
    %49 = vector.shape_cast %43 : vector<16x24xf32> to vector<16x24x1xf32>
    %50 = vector.broadcast %49 : vector<16x24x1xf32> to vector<16x24x24xf32>
    %51 = arith.subf %39, %50 : vector<16x24x24xf32>
    %52 = math.exp %51 : vector<16x24x24xf32>
    %cst_24 = arith.constant dense<0.000000e+00> : vector<24x16xf32>
    %53 = vector.multi_reduction <add>, %48, %cst_24 [2] : vector<24x16x16xf32> to vector<24x16xf32>
    %cst_25 = arith.constant dense<0.000000e+00> : vector<16x24xf32>
    %54 = vector.multi_reduction <add>, %52, %cst_25 [2] : vector<16x24x24xf32> to vector<16x24xf32>
    %55 = tpu.transpose %53, [1, 0] : vector<24x16xf32> -> vector<16x24xf32>
    %56 = arith.addf %55, %54 : vector<16x24xf32>
    %57 = tpu.reciprocal %56 {approx = true} : vector<16x24xf32> -> vector<16x24xf32>
    %58 = tpu.transpose %57, [1, 0] : vector<16x24xf32> -> vector<24x16xf32>
    %59 = vector.shape_cast %58 : vector<24x16xf32> to vector<24x16x1xf32>
    %60 = vector.broadcast %59 : vector<24x16x1xf32> to vector<24x16x16xf32>
    %61 = arith.mulf %48, %60 : vector<24x16x16xf32>
    %62 = arith.truncf %61 : vector<24x16x16xf32> to vector<24x16x16xbf16>
    %63 = vector.shape_cast %57 : vector<16x24xf32> to vector<16x24x1xf32>
    %64 = vector.broadcast %63 : vector<16x24x1xf32> to vector<16x24x24xf32>
    %65 = arith.mulf %52, %64 : vector<16x24x24xf32>
    %66 = arith.truncf %65 : vector<16x24x24xf32> to vector<16x24x24xbf16>
    %67 = arith.truncf %30 : vector<24x16x64xf32> to vector<24x16x64xbf16>
    "tpu.trace_start"() <{level = 10 : i32, message = "jih,jhc->jic"}> : () -> ()
    %cst_26 = arith.constant dense<0.000000e+00> : vector<24x16x64xf32>
    %68 = tpu.matmul %62, %67, %cst_26 {dimension_numbers = #tpu.dot_dimension_numbers<[2], [1], [1], [2], [0, 0, 0, 1, 1, 2], [0], [0]>} : vector<24x16x16xbf16>, vector<24x16x64xbf16>, vector<24x16x64xf32> -> vector<24x16x64xf32>
    "tpu.trace_stop"() : () -> ()
    %69 = arith.truncf %27 : vector<16x24x64xf32> to vector<16x24x64xbf16>
    "tpu.trace_start"() <{level = 10 : i32, message = "ijw,iwc->ijc"}> : () -> ()
    %cst_27 = arith.constant dense<0.000000e+00> : vector<16x24x64xf32>
    %70 = tpu.matmul %66, %69, %cst_27 {dimension_numbers = #tpu.dot_dimension_numbers<[2], [1], [1], [2], [0, 0, 0, 1, 1, 2], [0], [0]>} : vector<16x24x24xbf16>, vector<16x24x64xbf16>, vector<16x24x64xf32> -> vector<16x24x64xf32>
    "tpu.trace_stop"() : () -> ()
    %71 = tpu.transpose %68, [1, 0, 2] : vector<24x16x64xf32> -> vector<16x24x64xf32>
    %72 = arith.addf %71, %70 : vector<16x24x64xf32>
    %73 = vector.broadcast %6 : f32 to vector<16x24x64xf32>
    %74 = arith.mulf %73, %72 : vector<16x24x64xf32>
    %75 = vector.shape_cast %74 : vector<16x24x64xf32> to vector<384x64xf32>
    %76 = tpu.transpose %75, [1, 0] : vector<384x64xf32> -> vector<64x384xf32>
    %77 = arith.addf %76, %14 : vector<64x384xf32>
    %c0_28 = arith.constant 0 : index
    %c0_29 = arith.constant 0 : index
    %c0_30 = arith.constant 0 : index
    %78 = vector.load %arg9[%c0_28, %c0_29, %c0_30] : memref<1x64x384xf32, #tpu.memory_space<vmem>>, vector<1x64x384xf32>
    %79 = vector.shape_cast %78 : vector<1x64x384xf32> to vector<64x384xf32>
    %80 = vector.shape_cast %77 : vector<64x384xf32> to vector<1x64x384xf32>
    tpu.vector_store %arg9[%c0_28, %c0_29, %c0_30], %80 {strides = array<i32>} : memref<1x64x384xf32, #tpu.memory_space<vmem>>, vector<1x64x384xf32>,
    return
  }
  func.func @transform_0(%arg0: i32) -> (i32, i32, i32) {
    %c0_i32 = arith.constant 0 : i32
    %c0_i32_0 = arith.constant 0 : i32
    %c0_i32_1 = arith.constant 0 : i32
    return %arg0, %c0_i32, %c0_i32_0 : i32, i32, i32
  }
  func.func @transform_1(%arg0: i32) -> (i32, i32) {
    %c0_i32 = arith.constant 0 : i32
    %c0_i32_0 = arith.constant 0 : i32
    %c0_i32_1 = arith.constant 0 : i32
    return %c0_i32, %c0_i32_0 : i32, i32
  }
  func.func @transform_2(%arg0: i32) -> (i32, i32) {
    %c0_i32 = arith.constant 0 : i32
    %c0_i32_0 = arith.constant 0 : i32
    %c0_i32_1 = arith.constant 0 : i32
    return %c0_i32, %c0_i32_0 : i32, i32
  }
  func.func @transform_3(%arg0: i32) -> (i32, i32) {
    %c0_i32 = arith.constant 0 : i32
    %c0_i32_0 = arith.constant 0 : i32
    %c0_i32_1 = arith.constant 0 : i32
    return %c0_i32, %c0_i32_0 : i32, i32
  }
  func.func @transform_4(%arg0: i32) -> (i32, i32) {
    %c0_i32 = arith.constant 0 : i32
    %c0_i32_0 = arith.constant 0 : i32
    %c0_i32_1 = arith.constant 0 : i32
    return %c0_i32, %c0_i32_0 : i32, i32
  }
  func.func @transform_5(%arg0: i32) -> (i32, i32) {
    %c0_i32 = arith.constant 0 : i32
    %c0_i32_0 = arith.constant 0 : i32
    %c0_i32_1 = arith.constant 0 : i32
    return %c0_i32, %c0_i32_0 : i32, i32
  }
  func.func @transform_6(%arg0: i32) -> (i32, i32) {
    %c0_i32 = arith.constant 0 : i32
    %c0_i32_0 = arith.constant 0 : i32
    %c0_i32_1 = arith.constant 0 : i32
    return %c0_i32, %c0_i32_0 : i32, i32
  }
  func.func @transform_7(%arg0: i32) -> (i32, i32) {
    %c0_i32 = arith.constant 0 : i32
    %c0_i32_0 = arith.constant 0 : i32
    %c0_i32_1 = arith.constant 0 : i32
    return %c0_i32, %c0_i32_0 : i32, i32
  }
  func.func @transform_8(%arg0: i32) -> (i32, i32, i32) {
    %c0_i32 = arith.constant 0 : i32
    %c0_i32_0 = arith.constant 0 : i32
    %c0_i32_1 = arith.constant 0 : i32
    return %arg0, %c0_i32, %c0_i32_0 : i32, i32, i32
  }
}

</mosaic_0001>

<bundles_post_ra>
// kernel: tpu_custom_call.1
= control target key start
LH: loop header
LB: loop body
LE: loop exit
PB: predicated region body
PF: predicated region fallthrough
CT: control target
= control target key end

     0   :  { %s21497_s0 = inlined_call_operand.hbm [shape: f32[2,64,384], index: 0, kind: input, shape index: {}]   ;;  %s21498_s1 = inlined_call_operand.vmem [shape: f32[64,8], index: 1, kind: input, shape index: {}]   ;;  %s21499_s2 = inlined_call_operand.vmem [shape: f32[64,8], index: 2, kind: input, shape index: {}]   ;;  %s21500_s3 = inlined_call_operand.vmem [shape: f32[64,64], index: 3, kind: input, shape index: {}]   ;;  %s21501_s4 = inlined_call_operand.vmem [shape: f32[1,8], index: 4, kind: input, shape index: {}]   ;;  %s21502_s5 = inlined_call_operand.vmem [shape: f32[1,8], index: 5, kind: input, shape index: {}]   ;;  %s21503_s6 = inlined_call_operand.vmem [shape: f32[1,64], index: 6, kind: input, shape index: {}]   ;;  %s21504_s7 = inlined_call_operand.<no memory space> [shape: f32[1,1], index: 7, kind: input, shape index: {}]   ;;  %s21505_s8 = inlined_call_operand.hbm [shape: f32[2,64,384], index: 8, kind: output, shape index: {}]  }
   0x1   :  { %13 = sst [smem:[#allocation2]] %s21504_s7 }
   0x2   :  { %14 = vsyncpa [#allocation4], 0 }
   0x3   :  { %16 = vsyncpa [#allocation4 + $0x1], 0 }
   0x4   :  { %17 = vsyncpa [#allocation5], 0 }
   0x5   :  { %19 = vsyncpa [#allocation5 + $0x1], 0  ;;  %s14702_s29 = smov 0   ;;  %s14704_s30 = smov 0  }
   0x6   :  { %s14706_s9 = smov 0   ;;  %s14708_s10 = smov 0  }
   0x7 LB: > { %s14723_s7 = sadd.s32 4294967295, %s14642_s10   ;;  %s12702_s11 = sadd.s32 4294967294, %s14642_s10   ;;  %s14642_s10 = sphi %s14708_s10, %s23274_s10   ;;  %s14638_s9 = sphi %s14706_s9, %s23273_s9   ;;  %s14634_s30 = sphi %s14704_s30, %s23272_s30   ;;  %s14630_s29 = sphi %s14702_s29, %s23271_s29  }
   0x8   : > { %s14727_s12 = sadd.s32 1, %s14642_s10   ;;  %s32_s13 = sadd.s32 1, %s14638_s9 }
   0x9   : > { %s29_s14 = ssub.s32 %s14642_s10, %s14727_s12  ;;  %p39_p0 = scmp.ne.s32.totalorder %s14638_s9, %s14634_s30 }
   0xa   : > { %p30_p1 = scmp.eq.s32.totalorder %s29_s14, 0  ;;  %p40_p2 = scmp.eq.s32.totalorder %s14642_s10, 0 }
   0xb   : > { %p45_p3 = scmp.ne.s32.totalorder %s14634_s30, %s14630_s29  ;;  %p46_p4 = scmp.eq.s32.totalorder %s14723_s7, 0 }
   0xc   : > { %s14739_s15 = scalar_select %p30_p1, %s14638_s9, %s32_s13  }
   0xd   : > { %p41_p5 = por %p40_p2, %p39_p0  ;;  %p14741_p6 = por %p46_p4, %p45_p3 }
   0xe   : > { %p216_p7 = scmp.eq.s32.totalorder %s14723_s7, 1  ;;  %p222_p8 = scmp.eq.s32.totalorder %s12702_s11, 1 }
   0xf   : > { %p14281_p10 = scmp.lt.s32.totalorder %s14642_s10, 2  ;;  %s263_s19 = sand.u32 1, %s14638_s9  }
  0x10   : > { %p14748_p11 = por %p216_p7, %p39_p0  ;;  %p14752_p12 = por %p222_p8, %p45_p3 }
  0x11   : > { %s14266_s20 = smul.u32 3072, %s14642_s10  ;;  %p14763_p13 = pnand %p14281_p10, %p41_p5 }
  0x12   : > { %s22081_s17 = scalar_select %p14748_p11, 1, 0 }
  0x13   : > { %s22082_s18 = scalar_select %p14752_p12, 1, 0 }
  0x14   : > { %s14265_s21 = smul.u32 192, %s263_s19  ;;  %s14761_s24 = scalar_lea.hbm %s21497_s0, %s14266_s20 }
  0x15   : > { %s14769_s28 = scalar_lea.sflag [#allocation4], %s263_s19  ;;  %s14546_s11 = scalar_lea.hbm %s14761_s24, 3072 }
  0x16   : > { %s267_s26 = scalar_lea.vmem [#allocation3], %s14265_s21  ;;  %p14547_p0 = scmp.ne.s32.totalorder %s14761_s24, %s14546_s11 }
  0x17   : > { %s274_s27 = sshll.u32 %s267_s26, 4  ;;  %p14548_p1 = pneg %p14763_p13  ;;  %s14767_s27 = int_to_ptr.vmem [resolvable:$true] %s274_s27 }
  0x18   : > { %s14551_s20 = scalar_lea.hbm %s21497_s0, 6144  ;;  %p14552_p4 = scmp.lt.u32.totalorder %s14761_s24, %s21497_s0 }
  0x19   : > { %p14549_p2 = pnand %p14548_p1, %p14547_p0  ;;  %p14553_p5 = scmp.lt.u32.totalorder %s14551_s20, %s14546_s11 }
  0x1a   : > { %p14555_p8 = scmp.lt.u32.totalorder %s14546_s11, %s14761_s24 }
  0x1b   : > { %p14550_p3 = pneg %p14549_p2  ;;  %p14554_p7 = por %p14553_p5, %p14552_p4 }
  0x1d   : > { %p14556_p10 = por %p14555_p8, %p14554_p7 }
  0x1f   : > { %p14557_p9 = pnand %p14556_p10, %p14550_p3 }
  0x21   : > { %14560 = shalt.err (!%p14557_p9)
}
  0x22   : > { %s14561_s19 = scalar_lea.vmem %s14767_s27, 3072  ;;  %s14644_s21 = smov [#allocation3]  }
  0x23   : > { %p14562_p0 = scmp.ne.s32.totalorder %s14767_s27, %s14561_s19  ;;  %s14566_s26 = sshll.u32 %s14644_s21, 4  ;;  %s14567_s26 = int_to_ptr.vmem [resolvable:$false] %s14566_s26 }
  0x24   : > { %s14568_s13 = scalar_lea.vmem %s14567_s26, 6144  ;;  %p14569_p11 = scmp.lt.s32.totalorder %s14767_s27, %s14567_s26 }
  0x25   : > { %p14564_p2 = pnand %p14562_p0, %p14548_p1  ;;  %p14570_p4 = scmp.lt.s32.totalorder %s14568_s13, %s14561_s19 }
  0x27   : > { %p14565_p12 = pneg %p14564_p2  ;;  %p14571_p5 = por %p14570_p4, %p14569_p11 }
  0x29   : > { %p14572_p7 = pnand %p14571_p5, %p14565_p12 }
  0x2b   : > { %14575 = shalt.err (!%p14572_p7)
}
  0x2c   : > { %s14645_s11 = smov 384   ;;  %s14646_s14 = smov 24  }
  0x2d   : > { %14276 = dma.hbm_to_vmem [thread:$0]  (!%p14763_p13), %s14761_s24, 3072, %s14767_s27, %s14769_s28, %s14645_s11, %s14645_s11, %s14646_s14  }
  0x2e   : > { %p12706_p9 = scmp.ge.s32.totalorder %s14642_s10, 1  ;;  %p282_p1 = scmp.lt.s32.totalorder %s14642_s10, 3 }
  0x30   : > { %p283_p3 = pnand %p12706_p9, %p282_p1 }
  0x32   : > { %286 = sbr.rel (%p283_p3) target bundleno = 2944 (0xb80), region = 52 }
  0x39   : > { %s14800_s20 = sand.u32 1, %s14634_s30  }
  0x3a   : > { %s14267_s22 = smul.u32 192, %s14800_s20  ;;  %s289_s23 = scalar_lea.sflag [#allocation4], %s14800_s20 }
  0x3c   : > { %s14806_s19 = scalar_lea.vmem [#allocation3], %s14267_s22 }
  0x3d   : > { %14621 = dma.done.wait (%p14741_p6), %s289_s23, 3072  }
  0x3e   : > { %14623 = vsyncadd (%p14741_p6), %s289_s23, 4294964224  ;;  %v363_v0 = vld [vmem:[%s14806_s19] sm:$0xff]  ;;  %v366_v1 = vld [vmem:[%s14806_s19 + $0x18] sm:$0xff]  ;;  %vm489_vm0 = vcmask 523264   ;;  %vm14650_vm1 = vmmov 0   ;;  %vm4057_vm2 = vcmask 64512  }
  0x3f   : > { %387 = vxpose.xlu0.b32.start [1/8] (short) %v363_v0, 128  ;;  %v364_v2 = vld [vmem:[%s14806_s19 + $0x8] sm:$0xff]  ;;  %v367_v3 = vld [vmem:[%s14806_s19 + $0x20] sm:$0xff]  ;;  %v369_v4 = vld [vmem:[%s14806_s19 + $0x30] sm:$0xff]  ;;  %vm6210_vm5 = vcmask 130048   ;;  %vm6355_vm6 = vcmask 195584   ;;  %vm6557_vm7 = vcmask 130112  }
  0x40   : > { %419 = vxpose.xlu1.b32.start [1/8] (short) %v364_v2, 128  ;;  %v370_v5 = vld [vmem:[%s14806_s19 + $0x38] sm:$0xff]  ;;  %v372_v6 = vld [vmem:[%s14806_s19 + $0x48] sm:$0xff]  ;;  %v326_v7 = vld [vmem:[%s21498_s1] sm:$0xff]  ;;  %vm6766_vm8 = vcmask 1041409   ;;  %vm6768_vm9 = vcmask 1042434   ;;  %vm6770_vm10 = vcmask 1043459  }
  0x41   : > { %v327_v8 = vld [vmem:[%s21498_s1 + $0x8] sm:$0xff]  ;;  %v334_v9 = vld [vmem:[%s21499_s2] sm:$0xff]  ;;  %v328_v12 = vld [vmem:[%s21498_s1 + $0x10] sm:$0xff]  ;;  %vm6772_vm11 = vcmask 1044484   ;;  %vm6774_vm12 = vcmask 1045509   ;;  %vm6776_vm13 = vcmask 1046534  }
  0x42   : > { %v14169_v10 = vpack.c.bf16 %v327_v8, %v326_v7  ;;  %v335_v11 = vld [vmem:[%s21499_s2 + $0x8] sm:$0xff]  ;;  %v329_v13 = vld [vmem:[%s21498_s1 + $0x18] sm:$0xff]  ;;  %v336_v16 = vld [vmem:[%s21499_s2 + $0x10] sm:$0xff]  ;;  %vm6778_vm14 = vcmask 1047559   ;;  %vm6891_vm15 = vcmask 195712   ;;  %s353_s21 = sld [smem:[#allocation2]] }
  0x43   : > { %388 = vxpose.xlu0.b32.cont [2/8] (short) %v366_v1, 128  ;;  %v14185_v14 = vpack.c.bf16 %v335_v11, %v334_v9  ;;  %v14173_v15 = vpack.c.bf16 %v329_v13, %v328_v12  ;;  %v337_v17 = vld [vmem:[%s21499_s2 + $0x18] sm:$0xff]  ;;  %v330_v18 = vld [vmem:[%s21498_s1 + $0x20] sm:$0xff]  ;;  %v331_v20 = vld [vmem:[%s21498_s1 + $0x28] sm:$0xff]  ;;  %s21397_s26 = scalar_lea.vmem [#allocation6], %s14267_s22  ;;  %s14268_s22 = smul.u32 3072, %s14723_s7 }
  0x44   : > { %420 = vxpose.xlu1.b32.cont [2/8] (short) %v367_v3, 128  ;;  %14170 = vmatprep.subr.bf16.mxu0 %v14169_v10  ;;  %v14189_v19 = vpack.c.bf16 %v337_v17, %v336_v16  ;;  %v338_v21 = vld [vmem:[%s21499_s2 + $0x20] sm:$0xff]  ;;  %v339_v22 = vld [vmem:[%s21499_s2 + $0x28] sm:$0xff]  ;;  %v373_v23 = vld [vmem:[%s14806_s19 + $0x50] sm:$0xff]  ;;  %v14177_v25 = vpack.c.bf16 %v331_v20, %v330_v18  ;;  %s12629_s13 = sshll.u32 %s21397_s26, 4  ;;  %s12616_s16 = scalar_lea.sflag [#allocation5], %s14800_s20  ;;  %s21452_s13 = int_to_ptr.vmem [resolvable:$true] %s12629_s13 }
  0x45   : > { %14186 = vmatprep.subr.bf16.mxu1 %v14185_v14  ;;  %14172 = vmatpush3.bf16.msra.mxu0 %v14169_v10  ;;  %v375_v24 = vld [vmem:[%s14806_s19 + $0x60] sm:$0xff]  ;;  %v14193_v26 = vpack.c.bf16 %v339_v22, %v338_v21  ;;  %v332_v27 = vld [vmem:[%s21498_s1 + $0x30] sm:$0xff]  ;;  %v333_v28 = vld [vmem:[%s21498_s1 + $0x38] sm:$0xff]  ;;  %s21449_s23 = scalar_lea.hbm %s21505_s8, %s14268_s22  ;;  %s14576_s7 = scalar_lea.vmem %s21452_s13, 3072 }
  0x46   : > { %14188 = vmatpush3.bf16.msra.mxu1 %v14185_v14  ;;  %14174 = vmatprep.subr.bf16.mxu0 %v14173_v15  ;;  %v340_v29 = vld [vmem:[%s21499_s2 + $0x30] sm:$0xff]  ;;  %v341_v30 = vld [vmem:[%s21499_s2 + $0x38] sm:$0xff]  ;;  %v376_v31 = vld [vmem:[%s14806_s19 + $0x68] sm:$0xff]  ;;  %v14181_v33 = vpack.c.bf16 %v333_v28, %v332_v27  ;;  %p14577_p6 = scmp.ne.s32.totalorder %s21452_s13, %s14576_s7  ;;  %p23268_p11 = scmp.ne.s32.totalorder %s22081_s17, 0 }
  0x47   : > { %389 = vxpose.xlu0.b32.cont [3/8] (short) %v369_v4, 128  ;;  %14190 = vmatprep.subr.bf16.mxu1 %v14189_v19  ;;  %v378_v32 = vld [vmem:[%s14806_s19 + $0x78] sm:$0xff]  ;;  %v14197_v34 = vpack.c.bf16 %v341_v30, %v340_v29  ;;  %v379_v35 = vld [vmem:[%s14806_s19 + $0x80] sm:$0xff]  ;;  %v381_v36 = vld [vmem:[%s14806_s19 + $0x90] sm:$0xff]  ;;  %s14651_s24 = smov [#allocation6]  }
  0x48   : > { %421 = vxpose.xlu1.b32.cont [3/8] (short) %v370_v5, 128  ;;  %v382_v37 = vld [vmem:[%s14806_s19 + $0x98] sm:$0xff]  ;;  %v384_v38 = vld [vmem:[%s14806_s19 + $0xa8] sm:$0xff]  ;;  %v385_v39 = vld [vmem:[%s14806_s19 + $0xb0] sm:$0xff]  ;;  %p14578_p12 = pnand %p14577_p6, %p23268_p11  ;;  %s14580_s25 = sshll.u32 %s14651_s24, 4  ;;  %s14581_s25 = int_to_ptr.vmem [resolvable:$false] %s14580_s25 }
  0x49   : > { %14176 = vmatpush3.bf16.msra.mxu0 %v14173_v15  ;;  %v365_v40 = vld [vmem:[%s14806_s19 + $0x10] sm:$0xff]  ;;  %v368_v41 = vld [vmem:[%s14806_s19 + $0x28] sm:$0xff]  ;;  %v371_v42 = vld [vmem:[%s14806_s19 + $0x40] sm:$0xff]  ;;  %s14582_s27 = scalar_lea.vmem %s14581_s25, 6144  ;;  %p14583_p8 = scmp.lt.s32.totalorder %s21452_s13, %s14581_s25 }
  0x4a   : > { %14192 = vmatpush3.bf16.msra.mxu1 %v14189_v19  ;;  %14178 = vmatprep.subr.bf16.mxu0 %v14177_v25  ;;  %v374_v43 = vld [vmem:[%s14806_s19 + $0x58] sm:$0xff]  ;;  %v377_v44 = vld [vmem:[%s14806_s19 + $0x70] sm:$0xff]  ;;  %v380_v45 = vld [vmem:[%s14806_s19 + $0x88] sm:$0xff]  ;;  %p14579_p13 = pneg %p14578_p12  ;;  %p14584_p10 = scmp.lt.s32.totalorder %s14582_s27, %s14576_s7 }
  0x4b   : > { %390 = vxpose.xlu0.b32.cont [4/8] (short) %v372_v6, 128  ;;  %14194 = vmatprep.subr.bf16.mxu1 %v14193_v26  ;;  %v383_v46 = vld [vmem:[%s14806_s19 + $0xa0] sm:$0xff]  ;;  %v386_v47 = vld [vmem:[%s14806_s19 + $0xb8] sm:$0xff]  ;;  %v343_v49 = vld [vmem:[%s21500_s3 + $0x8] sm:$0xff] }
  0x4c   : > { %422 = vxpose.xlu1.b32.cont [4/8] (short) %v373_v23, 128  ;;  %v342_v48 = vld [vmem:[%s21500_s3] sm:$0xff]  ;;  %v344_v52 = vld [vmem:[%s21500_s3 + $0x10] sm:$0xff]  ;;  %v345_v53 = vld [vmem:[%s21500_s3 + $0x18] sm:$0xff]  ;;  %p14585_p0 = por %p14584_p10, %p14583_p8 }
  0x4d   : > { %14180 = vmatpush3.bf16.msra.mxu0 %v14177_v25  ;;  %v14201_v50 = vpack.c.bf16 %v343_v49, %v342_v48  ;;  %v14205_v55 = vpack.c.bf16 %v345_v53, %v344_v52  ;;  %v346_v57 = vld [vmem:[%s21500_s3 + $0x20] sm:$0xff]  ;;  %v347_v58 = vld [vmem:[%s21500_s3 + $0x28] sm:$0xff]  ;;  %v348_v62 = vld [vmem:[%s21500_s3 + $0x30] sm:$0xff] }
  0x4e   : > { %14196 = vmatpush3.bf16.msra.mxu1 %v14193_v26  ;;  %14182 = vmatprep.subr.bf16.mxu0 %v14181_v33  ;;  %v14209_v60 = vpack.c.bf16 %v347_v58, %v346_v57  ;;  %v349_v63 = vld [vmem:[%s21500_s3 + $0x38] sm:$0xff]  ;;  %p14586_p2 = pnand %p14585_p0, %p14579_p13 }
  0x4f   : > { %391 = vxpose.xlu0.b32.cont [5/8] (short) %v375_v24, 128  ;;  %14198 = vmatprep.subr.bf16.mxu1 %v14197_v34  ;;  %v14213_v0 = vpack.c.bf16 %v349_v63, %v348_v62 }
  0x50   : > { %423 = vxpose.xlu1.b32.cont [5/8] (short) %v376_v31, 128 }
  0x51   : > { %14184 = vmatpush3.bf16.msra.mxu0 %v14181_v33 }
  0x52   : > { %14200 = vmatpush3.bf16.msra.mxu1 %v14197_v34  ;;  %14202 = vmatprep.subr.bf16.mxu0 %v14201_v50 }
  0x53   : > { %392 = vxpose.xlu0.b32.cont [6/8] (short) %v378_v32, 128 }
  0x54   : > { %424 = vxpose.xlu1.b32.cont [6/8] (short) %v379_v35, 128 }
  0x57   : > { %393 = vxpose.xlu0.b32.cont [7/8] (short) %v381_v36, 128 }
  0x58   : > { %425 = vxpose.xlu1.b32.cont [7/8] (short) %v382_v37, 128 }
  0x5b   : > { %394 = vxpose.xlu0.b32.end [8/8] (short) %v384_v38, 128 }
  0x5c   : > { %426 = vxpose.xlu1.b32.end [8/8] (short) %v385_v39, 128 }
  0x7c   : > { %451 = vxpose.xlu0.b32.start [1/8] (short) %v365_v40, 128 }
  0x80   : > { %452 = vxpose.xlu0.b32.cont [2/8] (short) %v368_v41, 128 }
  0x84   : > { %453 = vxpose.xlu0.b32.cont [3/8] (short) %v371_v42, 128 }
  0x88   : > { %454 = vxpose.xlu0.b32.cont [4/8] (short) %v374_v43, 128 }
  0x8c   : > { %455 = vxpose.xlu0.b32.cont [5/8] (short) %v377_v44, 128  ;;  %v15280_v44 = vld [vmem:[%s21501_s4] ss:$0 sm:$0xff] }
  0x90   : > { %456 = vxpose.xlu0.b32.cont [6/8] (short) %v380_v45, 128  ;;  %v15285_v45 = vld [vmem:[%s21502_s5] ss:$0 sm:$0xff] }
  0x94   : > { %457 = vxpose.xlu0.b32.cont [7/8] (short) %v383_v46, 128 }
  0x98   : > { %458 = vxpose.xlu0.b32.end [8/8] (short) %v386_v47, 128 }
  0xbf   : > { %v14890_v51 = vpop.trf.xlu0 }
  0xc0   : > { %13377 = vmatprep.mubr.msk.f32.mxu0 %vm489_vm0, %v14890_v51  ;;  %13465 = vmatprep.mubr.msk.f32.mxu1 %vm489_vm0, %v14890_v51  ;;  %v14902_v54 = vpop.trf.xlu1 }
  0xc3   : > { %v14904_v56 = vpop.trf.xlu0 }
  0xc4   : > { %13378 = vmatmul.mubr.msk.f32.vlgmr.msra.gmra.mrb[0].mxu0 %vm489_vm0, %v14904_v56  ;;  %13466 = vmatmul.mubr.msk.f32.vlgmr.msra.gmra.mrb[0].mxu1 %vm489_vm0, %v14904_v56  ;;  %v14916_v59 = vpop.trf.xlu1 }
  0xc5   : > { %14204 = vmatpush3.bf16.msra.mxu0 %v14201_v50 }
  0xc6   : > { %14206 = vmatprep.subr.bf16.mxu0 %v14205_v55 }
  0xc7   : > { %v14918_v61 = vpop.trf.xlu0 }
  0xc8   : > { %13380 = vmatprep.mubr.msk.f32.mxu0 %vm489_vm0, %v14918_v61  ;;  %13468 = vmatprep.mubr.msk.f32.mxu1 %vm489_vm0, %v14918_v61  ;;  %v14932_v2 = vpop.trf.xlu1 }
  0xc9   : > { %14208 = vmatpush3.bf16.msra.mxu0 %v14205_v55 }
  0xca   : > { %14210 = vmatprep.subr.bf16.mxu0 %v14209_v60 }
  0xcb   : > { %v14930_v1 = vpop.trf.xlu0 }
  0xcc   : > { %13381 = vmatmul.mubr.msk.f32.gmra.mrb[2].mxu0 %vm489_vm0, %v14930_v1  ;;  %13469 = vmatmul.mubr.msk.f32.gmra.mrb[2].mxu1 %vm489_vm0, %v14930_v1  ;;  %v14944_v4 = vpop.trf.xlu1 }
  0xcd   : > { %14212 = vmatpush3.bf16.msra.mxu0 %v14209_v60 }
  0xce   : > { %14214 = vmatprep.subr.bf16.mxu0 %v14213_v0 }
  0xcf   : > { %v14938_v3 = vpop.trf.xlu0 }
  0xd0   : > { %13383 = vmatprep.mubr.msk.f32.mxu0 %vm489_vm0, %v14938_v3  ;;  %13471 = vmatprep.mubr.msk.f32.mxu1 %vm489_vm0, %v14938_v3  ;;  %v14954_v7 = vpop.trf.xlu1 }
  0xd1   : > { %14216 = vmatpush3.bf16.msra.mxu0 %v14213_v0 }
  0xd3   : > { %v14946_v5 = vpop.trf.xlu0 }
  0xd4   : > { %13384 = vmatmul.mubr.msk.f32.gmra.mrb[4].mxu0 %vm489_vm0, %v14946_v5  ;;  %13472 = vmatmul.mubr.msk.f32.gmra.mrb[4].mxu1 %vm489_vm0, %v14946_v5  ;;  %v14966_v9 = vpop.trf.xlu1 }
  0xd7   : > { %v14952_v6 = vpop.trf.xlu0 }
  0xd8   : > { %13386 = vmatprep.mubr.msk.f32.mxu0 %vm489_vm0, %v14952_v6  ;;  %13474 = vmatprep.mubr.msk.f32.mxu1 %vm489_vm0, %v14952_v6  ;;  %v14976_v12 = vpop.trf.xlu1 }
  0xdb   : > { %v14960_v8 = vpop.trf.xlu0 }
  0xdc   : > { %13387 = vmatmul.mubr.msk.f32.gmra.mrb[6].mxu0 %vm489_vm0, %v14960_v8  ;;  %13475 = vmatmul.mubr.msk.f32.gmra.mrb[6].mxu1 %vm489_vm0, %v14960_v8  ;;  %v14988_v14 = vpop.trf.xlu1 }
  0xdf   : > { %v14968_v10 = vpop.trf.xlu0 }
  0xe0   : > { %13389 = vmatprep.mubr.msk.f32.mxu0 %vm489_vm0, %v14968_v10  ;;  %13477 = vmatprep.mubr.msk.f32.mxu1 %vm489_vm0, %v14968_v10  ;;  %v14998_v17 = vpop.trf.xlu1 }
  0xe3   : > { %v14974_v11 = vpop.trf.xlu0 }
  0xe4   : > { %13390 = vmatmul.mubr.msk.f32.gmra.mrb[8].mxu0 %vm489_vm0, %v14974_v11  ;;  %13478 = vmatmul.mubr.msk.f32.gmra.mrb[8].mxu1 %vm489_vm0, %v14974_v11  ;;  %v15010_v19 = vpop.trf.xlu1 }
  0xe7   : > { %v14982_v13 = vpop.trf.xlu0 }
  0xe8   : > { %13392 = vmatprep.mubr.msk.f32.mxu0 %vm489_vm0, %v14982_v13  ;;  %13480 = vmatprep.mubr.msk.f32.mxu1 %vm489_vm0, %v14982_v13  ;;  %v15020_v22 = vpop.trf.xlu1 }
  0xeb   : > { %v14990_v15 = vpop.trf.xlu0 }
  0xec   : > { %13393 = vmatmul.mubr.msk.f32.gmra.mrb[10].mxu0 %vm489_vm0, %v14990_v15  ;;  %13481 = vmatmul.mubr.msk.f32.gmra.mrb[10].mxu1 %vm489_vm0, %v14990_v15  ;;  %v15040_v24 = vpop.trf.xlu1 }
  0xef   : > { %v14996_v16 = vpop.trf.xlu0 }
  0xf0   : > { %13395 = vmatprep.mubr.msk.f32.mxu0 %vm489_vm0, %v14996_v16  ;;  %13483 = vmatprep.mubr.msk.f32.mxu1 %vm489_vm0, %v14996_v16  ;;  %v15054_v27 = vpop.trf.xlu1 }
  0xf3   : > { %v15004_v18 = vpop.trf.xlu0 }
  0xf4   : > { %13396 = vmatmul.mubr.msk.f32.gmra.mrb[12].mxu0 %vm489_vm0, %v15004_v18  ;;  %13484 = vmatmul.mubr.msk.f32.gmra.mrb[12].mxu1 %vm489_vm0, %v15004_v18  ;;  %v15074_v29 = vpop.trf.xlu1 }
  0xf7   : > { %v15012_v20 = vpop.trf.xlu0 }
  0xf8   : > { %13398 = vmatprep.mubr.msk.f32.mxu0 %vm489_vm0, %v15012_v20  ;;  %13486 = vmatprep.mubr.msk.f32.mxu1 %vm489_vm0, %v15012_v20  ;;  %v15088_v32 = vpop.trf.xlu1 }
  0xfb   : > { %v15018_v21 = vpop.trf.xlu0 }
  0xfc   : > { %13399 = vmatmul.mubr.msk.f32.gmra.mrb[14].mxu0 %vm489_vm0, %v15018_v21  ;;  %13487 = vmatmul.mubr.msk.f32.gmra.mrb[14].mxu1 %vm489_vm0, %v15018_v21  ;;  %v15108_v34 = vpop.trf.xlu1 }
  0xfd   : > { %13401 = vmatprep.mubr.msk.f32.mxu0 %vm489_vm0, %v14902_v54  ;;  %13489 = vmatprep.mubr.msk.f32.mxu1 %vm489_vm0, %v14902_v54 }
  0xff   : > { %v15030_v23 = vpop.trf.xlu0 }
 0x100   : > { %13402 = vmatmul.mubr.msk.f32.gmra.mrb[16].mxu0 %vm489_vm0, %v14916_v59  ;;  %13490 = vmatmul.mubr.msk.f32.gmra.mrb[16].mxu1 %vm489_vm0, %v14916_v59 }
 0x101   : > { %13404 = vmatprep.mubr.msk.f32.mxu0 %vm489_vm0, %v14932_v2  ;;  %13492 = vmatprep.mubr.msk.f32.mxu1 %vm489_vm0, %v14932_v2 }
 0x103   : > { %v15042_v25 = vpop.trf.xlu0 }
 0x104   : > { %13405 = vmatmul.mubr.msk.f32.gmra.mrb[18].mxu0 %vm489_vm0, %v14944_v4  ;;  %13493 = vmatmul.mubr.msk.f32.gmra.mrb[18].mxu1 %vm489_vm0, %v14944_v4 }
 0x105   : > { %13407 = vmatprep.mubr.msk.f32.mxu0 %vm489_vm0, %v14954_v7  ;;  %13495 = vmatprep.mubr.msk.f32.mxu1 %vm489_vm0, %v14954_v7 }
 0x107   : > { %v15052_v26 = vpop.trf.xlu0 }
 0x108   : > { %13408 = vmatmul.mubr.msk.f32.gmra.mrb[20].mxu0 %vm489_vm0, %v14966_v9  ;;  %13496 = vmatmul.mubr.msk.f32.gmra.mrb[20].mxu1 %vm489_vm0, %v14966_v9 }
 0x109   : > { %13410 = vmatprep.mubr.msk.f32.mxu0 %vm489_vm0, %v14976_v12  ;;  %13498 = vmatprep.mubr.msk.f32.mxu1 %vm489_vm0, %v14976_v12 }
 0x10b   : > { %v15064_v28 = vpop.trf.xlu0 }
 0x10c   : > { %13411 = vmatmul.mubr.msk.f32.gmra.mrb[22].mxu0 %vm489_vm0, %v14988_v14  ;;  %13499 = vmatmul.mubr.msk.f32.gmra.mrb[22].mxu1 %vm489_vm0, %v14988_v14 }
 0x10d   : > { %13413 = vmatprep.mubr.msk.f32.mxu0 %vm489_vm0, %v14998_v17  ;;  %13501 = vmatprep.mubr.msk.f32.mxu1 %vm489_vm0, %v14998_v17 }
 0x10f   : > { %v15076_v30 = vpop.trf.xlu0 }
 0x110   : > { %13414 = vmatmul.mubr.msk.f32.gmra.mrb[24].mxu0 %vm489_vm0, %v15010_v19  ;;  %13502 = vmatmul.mubr.msk.f32.gmra.mrb[24].mxu1 %vm489_vm0, %v15010_v19 }
 0x111   : > { %13416 = vmatprep.mubr.msk.f32.mxu0 %vm489_vm0, %v15020_v22  ;;  %13504 = vmatprep.mubr.msk.f32.mxu1 %vm489_vm0, %v15020_v22 }
 0x113   : > { %v15086_v31 = vpop.trf.xlu0 }
 0x114   : > { %13417 = vmatmul.mubr.msk.f32.gmra.mrb[26].mxu0 %vm489_vm0, %v15040_v24  ;;  %13505 = vmatmul.mubr.msk.f32.gmra.mrb[26].mxu1 %vm489_vm0, %v15040_v24 }
 0x115   : > { %13419 = vmatprep.mubr.msk.f32.mxu0 %vm489_vm0, %v15054_v27  ;;  %13507 = vmatprep.mubr.msk.f32.mxu1 %vm489_vm0, %v15054_v27 }
 0x117   : > { %v15098_v33 = vpop.trf.xlu0 }
 0x118   : > { %13420 = vmatmul.mubr.msk.f32.gmra.mrb[28].mxu0 %vm489_vm0, %v15074_v29  ;;  %13508 = vmatmul.mubr.msk.f32.gmra.mrb[28].mxu1 %vm489_vm0, %v15074_v29 }
 0x119   : > { %13422 = vmatprep.mubr.msk.f32.mxu0 %vm489_vm0, %v15088_v32  ;;  %13510 = vmatprep.mubr.msk.f32.mxu1 %vm489_vm0, %v15088_v32 }
 0x11b   : > { %v15110_v35 = vpop.trf.xlu0 }
 0x11c   : > { %13423 = vmatmul.mubr.msk.f32.gmra.mrb[30].mxu0 %vm489_vm0, %v15108_v34  ;;  %13511 = vmatmul.mubr.msk.f32.gmra.mrb[30].mxu1 %vm489_vm0, %v15108_v34 }
 0x11d   : > { %13425 = vmatprep.mubr.msk.f32.mxu0 %vm489_vm0, %v15030_v23  ;;  %13513 = vmatprep.mubr.msk.f32.mxu1 %vm489_vm0, %v15030_v23 }
 0x11f   : > { %v15120_v36 = vpop.trf.xlu0 }
 0x120   : > { %13426 = vmatmul.mubr.msk.f32.gmra.mrb[32].mxu0 %vm489_vm0, %v15042_v25  ;;  %13514 = vmatmul.mubr.msk.f32.gmra.mrb[32].mxu1 %vm489_vm0, %v15042_v25 }
 0x121   : > { %13428 = vmatprep.mubr.msk.f32.mxu0 %vm489_vm0, %v15052_v26  ;;  %13516 = vmatprep.mubr.msk.f32.mxu1 %vm489_vm0, %v15052_v26 }
 0x123   : > { %v15130_v37 = vpop.trf.xlu0 }
 0x124   : > { %13429 = vmatmul.mubr.msk.f32.gmra.mrb[34].mxu0 %vm489_vm0, %v15064_v28  ;;  %13517 = vmatmul.mubr.msk.f32.gmra.mrb[34].mxu1 %vm489_vm0, %v15064_v28 }
 0x125   : > { %13431 = vmatprep.mubr.msk.f32.mxu0 %vm489_vm0, %v15076_v30  ;;  %13519 = vmatprep.mubr.msk.f32.mxu1 %vm489_vm0, %v15076_v30 }
 0x127   : > { %v15140_v38 = vpop.trf.xlu0 }
 0x128   : > { %13432 = vmatmul.mubr.msk.f32.gmra.mrb[36].mxu0 %vm489_vm0, %v15086_v31  ;;  %13520 = vmatmul.mubr.msk.f32.gmra.mrb[36].mxu1 %vm489_vm0, %v15086_v31 }
 0x129   : > { %13434 = vmatprep.mubr.msk.f32.mxu0 %vm489_vm0, %v15098_v33  ;;  %13522 = vmatprep.mubr.msk.f32.mxu1 %vm489_vm0, %v15098_v33 }
 0x12b   : > { %v15150_v39 = vpop.trf.xlu0 }
 0x12c   : > { %13435 = vmatmul.mubr.msk.f32.gmra.mrb[38].mxu0 %vm489_vm0, %v15110_v35  ;;  %13523 = vmatmul.mubr.msk.f32.gmra.mrb[38].mxu1 %vm489_vm0, %v15110_v35 }
 0x12d   : > { %13437 = vmatprep.mubr.msk.f32.mxu0 %vm489_vm0, %v15120_v36  ;;  %13525 = vmatprep.mubr.msk.f32.mxu1 %vm489_vm0, %v15120_v36 }
 0x12f   : > { %v479_v40 = vpop.trf.xlu0 }
 0x130   : > { %13438 = vmatmul.mubr.msk.f32.gmra.mrb[40].mxu0 %vm489_vm0, %v15130_v37  ;;  %13526 = vmatmul.mubr.msk.f32.gmra.mrb[40].mxu1 %vm489_vm0, %v15130_v37 }
 0x131   : > { %13440 = vmatprep.mubr.msk.f32.mxu0 %vm489_vm0, %v15140_v38  ;;  %13528 = vmatprep.mubr.msk.f32.mxu1 %vm489_vm0, %v15140_v38 }
 0x133   : > { %v15168_v41 = vpop.trf.xlu0 }
 0x134   : > { %13441 = vmatmul.mubr.msk.f32.gmra.mrb[42].mxu0 %vm489_vm0, %v15150_v39  ;;  %13529 = vmatmul.mubr.msk.f32.gmra.mrb[42].mxu1 %vm489_vm0, %v15150_v39 }
 0x135   : > { %13443 = vmatprep.mubr.msk.f32.mxu0 %vm489_vm0, %v479_v40  ;;  %13531 = vmatprep.mubr.msk.f32.mxu1 %vm489_vm0, %v479_v40 }
 0x137   : > { %v15176_v42 = vpop.trf.xlu0 }
 0x138   : > { %13444 = vmatmul.mubr.msk.f32.gmra.mrb[44].mxu0 %vm489_vm0, %v15168_v41  ;;  %13532 = vmatmul.mubr.msk.f32.gmra.mrb[44].mxu1 %vm489_vm0, %v15168_v41 }
 0x139   : > { %13446 = vmatprep.mubr.msk.f32.mxu0 %vm489_vm0, %v15176_v42  ;;  %13534 = vmatprep.mubr.msk.f32.mxu1 %vm489_vm0, %v15176_v42 }
 0x13b   : > { %v482_v43 = vpop.trf.xlu0 }
 0x13c   : > { %13447 = vmatmul.mubr.msk.f32.gmra.mrb[46].mxu0 %vm489_vm0, %v482_v43  ;;  %13535 = vmatmul.mubr.msk.f32.gmra.mrb[46].mxu1 %vm489_vm0, %v482_v43 }
 0x13d   : > { %13553 = vmatprep.mubr.msk.f32.mxu0 %vm489_vm0, %v14890_v51 }
 0x140   : > { %13554 = vmatmul.mubr.msk.f32.vlgmr.msra.gmra.mrb[48].mxu0 %vm489_vm0, %v14904_v56 }
 0x141   : > { %13556 = vmatprep.mubr.msk.f32.mxu0 %vm489_vm0, %v14918_v61 }
 0x144   : > { %13557 = vmatmul.mubr.msk.f32.gmra.mrb[50].mxu0 %vm489_vm0, %v14930_v1 }
 0x145   : > { %13559 = vmatprep.mubr.msk.f32.mxu0 %vm489_vm0, %v14938_v3 }
 0x148   : > { %13560 = vmatmul.mubr.msk.f32.gmra.mrb[52].mxu0 %vm489_vm0, %v14946_v5 }
 0x149   : > { %13562 = vmatprep.mubr.msk.f32.mxu0 %vm489_vm0, %v14952_v6  ;;  %v21507_v6 = vlaneseq }
 0x14c   : > { %13563 = vmatmul.mubr.msk.f32.gmra.mrb[54].mxu0 %vm489_vm0, %v14960_v8 }
 0x14d   : > { %13565 = vmatprep.mubr.msk.f32.mxu0 %vm489_vm0, %v14968_v10 }
 0x150   : > { %13566 = vmatmul.mubr.msk.f32.gmra.mrb[56].mxu0 %vm489_vm0, %v14974_v11 }
 0x151   : > { %13568 = vmatprep.mubr.msk.f32.mxu0 %vm489_vm0, %v14982_v13 }
 0x154   : > { %13569 = vmatmul.mubr.msk.f32.gmra.mrb[58].mxu0 %vm489_vm0, %v14990_v15  ;;  %v15336_v15 = vshrl.u32 %v21507_v6, 7 }
 0x155   : > { %13571 = vmatprep.mubr.msk.f32.mxu0 %vm489_vm0, %v14996_v16 }
 0x156   : > { %22091 = vst [vmem:[#allocation16_spill] sm:$0xff] %v15336_v15 }
 0x158   : > { %13572 = vmatmul.mubr.msk.f32.gmra.mrb[60].mxu0 %vm489_vm0, %v15004_v18 }
 0x159   : > { %13574 = vmatprep.mubr.msk.f32.mxu0 %vm489_vm0, %v15012_v20 }
 0x15c   : > { %13575 = vmatmul.mubr.msk.f32.gmra.mrb[62].mxu0 %vm489_vm0, %v15018_v21 }
 0x15d   : > { %13577 = vmatprep.mubr.msk.f32.mxu0 %vm489_vm0, %v14902_v54 }
 0x160   : > { %13578 = vmatmul.mubr.msk.f32.gmra.mrb[64].mxu0 %vm489_vm0, %v14916_v59 }
 0x161   : > { %13580 = vmatprep.mubr.msk.f32.mxu0 %vm489_vm0, %v14932_v2 }
 0x164   : > { %13581 = vmatmul.mubr.msk.f32.gmra.mrb[66].mxu0 %vm489_vm0, %v14944_v4 }
 0x165   : > { %13583 = vmatprep.mubr.msk.f32.mxu0 %vm489_vm0, %v14954_v7  ;;  %v14647_v7 = vmov 1983009808  }
 0x166   : > { %v1564_v8 = vunpack.c.l.s4 %v14647_v7 }
 0x168   : > { %13584 = vmatmul.mubr.msk.f32.gmra.mrb[68].mxu0 %vm489_vm0, %v14966_v9  ;;  %v1565_v16 = vunpack.c.0.s8 %v1564_v8  ;;  %v14649_v8 = vmov 1934713408  }
 0x169   : > { %13586 = vmatprep.mubr.msk.f32.mxu0 %vm489_vm0, %v14976_v12  ;;  %v1628_v7 = vunpack.c.l.s4 %v14649_v8 }
 0x16c   : > { %13587 = vmatmul.mubr.msk.f32.gmra.mrb[70].mxu0 %vm489_vm0, %v14988_v14 }
 0x16d   : > { %13589 = vmatprep.mubr.msk.f32.mxu0 %vm489_vm0, %v14998_v17 }
 0x170   : > { %13590 = vmatmul.mubr.msk.f32.gmra.mrb[72].mxu0 %vm489_vm0, %v15010_v19 }
 0x171   : > { %13592 = vmatprep.mubr.msk.f32.mxu0 %vm489_vm0, %v15020_v22 }
 0x174   : > { %13593 = vmatmul.mubr.msk.f32.gmra.mrb[74].mxu0 %vm489_vm0, %v15040_v24 }
 0x175   : > { %13595 = vmatprep.mubr.msk.f32.mxu0 %vm489_vm0, %v15054_v27  ;;  %v15358_v27 = vsub.s32 %v1565_v16, %v15336_v15 }
 0x177   : > { %22093 = vst [vmem:[#allocation18_spill] sm:$0xff] %v15358_v27 }
 0x178   : > { %13596 = vmatmul.mubr.msk.f32.gmra.mrb[76].mxu0 %vm489_vm0, %v15074_v29 }
 0x179   : > { %13598 = vmatprep.mubr.msk.f32.mxu0 %vm489_vm0, %v15088_v32 }
 0x17c   : > { %13599 = vmatmul.mubr.msk.f32.gmra.mrb[78].mxu0 %vm489_vm0, %v15108_v34 }
 0x17d   : > { %13601 = vmatprep.mubr.msk.f32.mxu0 %vm489_vm0, %v15030_v23 }
 0x180   : > { %13602 = vmatmul.mubr.msk.f32.gmra.mrb[80].mxu0 %vm489_vm0, %v15042_v25 }
 0x181   : > { %13604 = vmatprep.mubr.msk.f32.mxu0 %vm489_vm0, %v15052_v26 }
 0x184   : > { %13605 = vmatmul.mubr.msk.f32.gmra.mrb[82].mxu0 %vm489_vm0, %v15064_v28 }
 0x185   : > { %13607 = vmatprep.mubr.msk.f32.mxu0 %vm489_vm0, %v15076_v30 }
 0x188   : > { %13608 = vmatmul.mubr.msk.f32.gmra.mrb[84].mxu0 %vm489_vm0, %v15086_v31 }
 0x189   : > { %13610 = vmatprep.mubr.msk.f32.mxu0 %vm489_vm0, %v15098_v33 }
 0x18c   : > { %13611 = vmatmul.mubr.msk.f32.gmra.mrb[86].mxu0 %vm489_vm0, %v15110_v35 }
 0x18d   : > { %13613 = vmatprep.mubr.msk.f32.mxu0 %vm489_vm0, %v15120_v36 }
 0x190   : > { %13614 = vmatmul.mubr.msk.f32.gmra.mrb[88].mxu0 %vm489_vm0, %v15130_v37 }
 0x191   : > { %13616 = vmatprep.mubr.msk.f32.mxu0 %vm489_vm0, %v15140_v38 }
 0x194   : > { %13617 = vmatmul.mubr.msk.f32.gmra.mrb[90].mxu0 %vm489_vm0, %v15150_v39 }
 0x195   : > { %13619 = vmatprep.mubr.msk.f32.mxu0 %vm489_vm0, %v479_v40 }
 0x197   : > { %v13379_v46 = vpop.f32.mrb[0].mxu0  ;;  %v13467_v47 = vpop.f32.mrb[0].mxu1 }
 0x198   : > { %v15288_v48 = vadd.f32 %v13379_v46, %v15280_v44  ;;  %v15291_v49 = vadd.f32 %v13467_v47, %v15285_v45  ;;  %v700_v50 = vpop.f32.mrb[1].mxu0  ;;  %v1011_v51 = vpop.f32.mrb[1].mxu1  ;;  %13620 = vmatmul.mubr.msk.f32.gmra.mrb[92].mxu0 %vm489_vm0, %v15168_v41 }
 0x199   : > { %v15296_v52 = vadd.f32 %v15280_v44, %v700_v50  ;;  %v15299_v53 = vadd.f32 %v15285_v45, %v1011_v51  ;;  %13622 = vmatprep.mubr.msk.f32.mxu0 %vm489_vm0, %v15176_v42 }
 0x19a   : > { %22084 = vst [vmem:[#allocation9_spill] sm:$0xff] %v15288_v48 }
 0x19b   : > { %22085 = vst [vmem:[#allocation10_spill] sm:$0xff] %v15296_v52  ;;  %v15307_v55 = vpack.c.bf16 %v15291_v49, %v15299_v53 }
 0x19c   : > { %13623 = vmatmul.mubr.msk.f32.gmra.mrb[94].mxu0 %vm489_vm0, %v482_v43  ;;  %vm10651_vm0 = vcmask 1043456  }
 0x19d   : > { %22086 = vst [vmem:[#allocation11_spill] sm:$0xff] %v15307_v55 }
 0x19f   : > { %v13382_v56 = vpop.f32.mrb[2].mxu0  ;;  %v13470_v57 = vpop.f32.mrb[2].mxu1 }
 0x1a0   : > { %v710_v58 = vpop.f32.mrb[3].mxu0  ;;  %v1021_v59 = vpop.f32.mrb[3].mxu1  ;;  %v15315_v0 = vadd.f32 %v13382_v56, %v15280_v44  ;;  %v1027_v1 = vadd.f32 %v13470_v57, %v15285_v45 }
 0x1a1   : > { %v15365_v32 = vadd.f32 %v15280_v44, %v710_v58  ;;  %v15374_v37 = vadd.f32 %v15285_v45, %v1021_v59 }
 0x1a2   : > { %22087 = vst [vmem:[#allocation12_spill] sm:$0xff] %v15315_v0 }
 0x1a3   : > { %22095 = vst [vmem:[#allocation20_spill] sm:$0xff] %v15365_v32  ;;  %22097 = vst [vmem:[#allocation22_spill] sm:$0xff] %v15374_v37 }
 0x1a7   : > { %v15310_v60 = vpop.f32.mrb[4].mxu0  ;;  %v15312_v61 = vpop.f32.mrb[4].mxu1 }
 0x1a8   : > { %v720_v62 = vpop.f32.mrb[5].mxu0  ;;  %v1031_v63 = vpop.f32.mrb[5].mxu1 }
 0x1a9   : > { %v15319_v2 = vadd.f32 %v15280_v44, %v720_v62  ;;  %v15322_v3 = vadd.f32 %v15285_v45, %v1031_v63 }
 0x1ab   : > { %22088 = vst [vmem:[#allocation13_spill] sm:$0xff] %v15319_v2  ;;  %v15327_v5 = vpack.c.bf16 %v15322_v3, %v1027_v1 }
 0x1ad   : > { %22089 = vst [vmem:[#allocation14_spill] sm:$0xff] %v15327_v5 }
 0x1af   : > { %v13388_v9 = vpop.f32.mrb[6].mxu0  ;;  %v13476_v10 = vpop.f32.mrb[6].mxu1 }
 0x1b0   : > { %v15330_v11 = vadd.f32 %v13388_v9, %v15280_v44  ;;  %v15333_v12 = vadd.f32 %v13476_v10, %v15285_v45  ;;  %v730_v13 = vpop.f32.mrb[7].mxu0  ;;  %v1041_v14 = vpop.f32.mrb[7].mxu1 }
 0x1b1   : > { %v15339_v17 = vadd.f32 %v15280_v44, %v730_v13  ;;  %v1042_v18 = vadd.f32 %v15285_v45, %v1041_v14 }
 0x1b2   : > { %22090 = vst [vmem:[#allocation15_spill] sm:$0xff] %v15330_v11  ;;  %v1833_v19 = vcombine.low %v15288_v48, %v15330_v11  ;;  %v1834_v20 = vcombine.high %v15288_v48, %v15330_v11  ;;  %v2649_v21 = vcombine.low %v15291_v49, %v15333_v12  ;;  %v2650_v22 = vcombine.high %v15291_v49, %v15333_v12 }
 0x1b3   : > { %22092 = vst [vmem:[#allocation17_spill] sm:$0xff] %v15339_v17  ;;  %v1561_v23 = vcombine.low %v15296_v52, %v15339_v17  ;;  %v1562_v24 = vcombine.high %v15296_v52, %v15339_v17  ;;  %v2377_v26 = vcombine.low %v15299_v53, %v1042_v18  ;;  %v2378_v28 = vcombine.high %v15299_v53, %v1042_v18 }
 0x1b4   : > { %v15362_v29 = vpack.c.bf16 %v15333_v12, %v1042_v18 }
 0x1b5   : > { %v15377_v38 = vrot.slane %v1561_v23, %v15358_v27  ;;  %v15392_v47 = vrot.slane %v1562_v24, %v15358_v27  ;;  %v15413_v62 = vrot.slane %v2377_v26, %v15358_v27  ;;  %v15416_v63 = vrot.slane %v2378_v28, %v15358_v27 }
 0x1b6   : > { %22094 = vst [vmem:[#allocation19_spill] sm:$0xff] %v15362_v29  ;;  %v15438_v26 = vadd.f32 %v15310_v60, %v15280_v44  ;;  %v15442_v28 = vadd.f32 %v15312_v61, %v15285_v45 }
 0x1b7   : > { %v13391_v30 = vpop.f32.mrb[8].mxu0  ;;  %v13479_v31 = vpop.f32.mrb[8].mxu1  ;;  %22101 = vst [vmem:[#allocation26_spill] sm:$0xff] %v15416_v63 }
 0x1b8   : > { %v15368_v33 = vadd.f32 %v13391_v30, %v15280_v44  ;;  %v15371_v34 = vadd.f32 %v13479_v31, %v15285_v45  ;;  %v740_v35 = vpop.f32.mrb[9].mxu0  ;;  %v1051_v36 = vpop.f32.mrb[9].mxu1  ;;  %22102 = vst [vmem:[#allocation27_spill] sm:$0xff] %v15438_v26  ;;  %22103 = vst [vmem:[#allocation28_spill] sm:$0xff] %v15442_v28  ;;  %v15445_v30 = vrot.slane %v1833_v19, %v15358_v27 }
 0x1b9   : > { %v15380_v39 = vadd.f32 %v15280_v44, %v740_v35  ;;  %v15383_v40 = vadd.f32 %v15285_v45, %v1051_v36  ;;  %v15448_v36 = vrot.slane %v1834_v20, %v15358_v27 }
 0x1ba   : > { %22096 = vst [vmem:[#allocation21_spill] sm:$0xff] %v15368_v33  ;;  %v1577_v41 = vcombine.low %v15315_v0, %v15368_v33  ;;  %v1578_v42 = vcombine.high %v15315_v0, %v15368_v33  ;;  %v2393_v43 = vcombine.low %v1027_v1, %v15371_v34  ;;  %v2394_v46 = vcombine.high %v1027_v1, %v15371_v34 }
 0x1bb   : > { %22098 = vst [vmem:[#allocation23_spill] sm:$0xff] %v15380_v39  ;;  %22099 = vst [vmem:[#allocation24_spill] sm:$0xff] %v15383_v40  ;;  %v2105_v50 = vcombine.low %v15365_v32, %v15380_v39  ;;  %v2106_v51 = vcombine.high %v15365_v32, %v15380_v39  ;;  %v2921_v53 = vcombine.low %v15374_v37, %v15383_v40 }
 0x1bc   : > { %v15401_v56 = vrot.slane %v1577_v41, %v15358_v27  ;;  %v15404_v57 = vrot.slane %v1578_v42, %v15358_v27  ;;  %v15407_v58 = vrot.slane %v2393_v43, %v15358_v27  ;;  %v15410_v59 = vrot.slane %v2394_v46, %v15358_v27 }
 0x1bd   : > { %v2922_v1 = vcombine.high %v15374_v37, %v15383_v40  ;;  %v15451_v41 = vrot.slane %v2105_v50, %v15358_v27  ;;  %v15460_v61 = vrot.slane %v2106_v51, %v15358_v27  ;;  %v15467_v20 = vrot.slane %v2921_v53, %v15358_v27 }
 0x1be   : > { %22100 = vst [vmem:[#allocation25_spill] sm:$0xff] %v15410_v59 }
 0x1bf   : > { %v13394_v23 = vpop.f32.mrb[10].mxu0  ;;  %v13482_v24 = vpop.f32.mrb[10].mxu1  ;;  %22107 = vst [vmem:[#allocation32_spill] sm:$0xff] %v15467_v20  ;;  %v15477_v51 = vrot.slane %v2922_v1, %v15358_v27 }
 0x1c0   : > { %v750_v31 = vpop.f32.mrb[11].mxu0  ;;  %v1061_v35 = vpop.f32.mrb[11].mxu1  ;;  %v15454_v42 = vadd.f32 %v13394_v23, %v15280_v44  ;;  %v15457_v60 = vadd.f32 %v13482_v24, %v15285_v45  ;;  %v21508_v24 = vmov 0.0  }
 0x1c1   : > { %v15463_v19 = vadd.f32 %v15280_v44, %v750_v31  ;;  %v1062_v43 = vadd.f32 %v15285_v45, %v1061_v35  ;;  %13625 = vmatprep.subr.bf16.mxu1 %v21508_v24  ;;  %22108 = vst [vmem:[#allocation33_spill] sm:$0xff] %v15477_v51  ;;  %13697 = vmatprep.subr.bf16.mxu0 %v21508_v24 }
 0x1c2   : > { %22104 = vst [vmem:[#allocation29_spill] sm:$0xff] %v15454_v42  ;;  %22105 = vst [vmem:[#allocation30_spill] sm:$0xff] %v15457_v60  ;;  %v2121_v46 = vcombine.low %v15438_v26, %v15454_v42  ;;  %v2122_v50 = vcombine.high %v15438_v26, %v15454_v42  ;;  %v2937_v23 = vcombine.low %v15442_v28, %v15457_v60 }
 0x1c3   : > { %22106 = vst [vmem:[#allocation31_spill] sm:$0xff] %v15463_v19  ;;  %v2938_v31 = vcombine.high %v15442_v28, %v15457_v60  ;;  %v1849_v53 = vcombine.low %v15319_v2, %v15463_v19  ;;  %v1850_v35 = vcombine.high %v15319_v2, %v15463_v19  ;;  %v2666_v8 = vcombine.high %v15322_v3, %v1062_v43 }
 0x1c4   : > { %v15487_v6 = vrot.slane %v2121_v46, %v15358_v27  ;;  %v15490_v4 = vrot.slane %v2122_v50, %v15358_v27  ;;  %v15493_v1 = vrot.slane %v2937_v23, %v15358_v27  ;;  %v2665_v46 = vcombine.low %v15322_v3, %v1062_v43 }
 0x1c5   : > { %v15498_v54 = vrot.slane %v2938_v31, %v15358_v27  ;;  %v15501_v18 = vrot.slane %v1849_v53, %v15358_v27  ;;  %v15504_v16 = vrot.slane %v1850_v35, %v15358_v27  ;;  %v15542_v24 = vpack.c.bf16 %v1062_v43, %v15371_v34 }
 0x1c6   : > { %22109 = vst [vmem:[#allocation34_spill] sm:$0xff] %v15493_v1  ;;  %v2169_v50 = vcombine.low %v15451_v41, %v15487_v6  ;;  %v2170_v23 = vcombine.high %v15451_v41, %v15487_v6  ;;  %v2185_v25 = vcombine.low %v15460_v61, %v15490_v4  ;;  %v2186_v31 = vcombine.high %v15460_v61, %v15490_v4 }
 0x1c7   : > { %22110 = vst [vmem:[#allocation35_spill] sm:$0xff] %v15498_v54  ;;  %v13397_v14 = vpop.f32.mrb[12].mxu0  ;;  %v13485_v53 = vpop.f32.mrb[12].mxu1  ;;  %v1897_v4 = vcombine.low %v15445_v30, %v15501_v18  ;;  %v1898_v61 = vcombine.high %v15445_v30, %v15501_v18  ;;  %v15535_v6 = vrot.slane %v2649_v21, %v15358_v27  ;;  %v15539_v10 = vrot.slane %v2665_v46, %v15358_v27 }
 0x1c8   : > { %v760_v41 = vpop.f32.mrb[13].mxu0  ;;  %v1071_v9 = vpop.f32.mrb[13].mxu1  ;;  %22113 = vst [vmem:[#allocation38_spill] sm:$0xff] %v15542_v24  ;;  %v15548_v18 = vrot.slane %v2650_v22, %v15358_v27  ;;  %v15551_v30 = vadd.f32 %v13397_v14, %v15280_v44  ;;  %v15554_v21 = vrot.slane %v2666_v8, %v15358_v27  ;;  %v15561_v34 = vadd.f32 %v13485_v53, %v15285_v45 }
 0x1c9   : > { %22111 = vst [vmem:[#allocation36_spill] sm:$0xff] %v15535_v6  ;;  %22112 = vst [vmem:[#allocation37_spill] sm:$0xff] %v15539_v10  ;;  %v1629_v43 = vunpack.c.0.s8 %v1628_v7  ;;  %v15564_v49 = vadd.f32 %v15280_v44, %v760_v41  ;;  %v15567_v12 = vadd.f32 %v15285_v45, %v1071_v9  ;;  %v22118_v46 = vmov 0.0  }
 0x1ca   : > { %22114 = vst [vmem:[#allocation39_spill] sm:$0xff] %v15548_v18  ;;  %22115 = vst [vmem:[#allocation40_spill] sm:$0xff] %v15551_v30  ;;  %13627 = vmatprep.mubr.msk.bf16.mxu1 %vm14650_vm1, %v22118_v46  ;;  %13699 = vmatprep.mubr.msk.bf16.mxu0 %vm14650_vm1, %v22118_v46 }
 0x1cb   : > { %22116 = vst [vmem:[#allocation41_spill] sm:$0xff] %v15554_v21  ;;  %22117 = vst [vmem:[#allocation42_spill] sm:$0xff] %v15564_v49  ;;  %v15581_v9 = vpack.c.bf16 %v15561_v34, %v15567_v12  ;;  %v15584_v14 = vsub.s32 %v1629_v43, %v15336_v15  ;;  %v22123_v43 = vcombine.low %v15377_v38, %v15401_v56 }
 0x1cd   : > { %22119 = vst [vmem:[#allocation43_spill] sm:$0xff] %v15581_v9  ;;  %22120 = vst [vmem:[#allocation44_spill] sm:$0xff] %v15584_v14  ;;  %v15602_v15 = vrot.slane %v22123_v43, %v15584_v14  ;;  %v15623_v43 = vrot.slane %v2169_v50, %v15584_v14  ;;  %v15626_v0 = vrot.slane %v2170_v23, %v15584_v14 }
 0x1ce   : > { %v15635_v2 = vrot.slane %v2185_v25, %v15584_v14 }
 0x1cf   : > { %v13400_v8 = vpop.f32.mrb[14].mxu0  ;;  %v13488_v3 = vpop.f32.mrb[14].mxu1  ;;  %22130 = vst [vmem:[#allocation50_spill] sm:$0xff] %v15623_v43  ;;  %22131 = vst [vmem:[#allocation51_spill] sm:$0xff] %v15626_v0 }
 0x1d0   : > { %v770_v53 = vpop.f32.mrb[15].mxu0  ;;  %v1081_v41 = vpop.f32.mrb[15].mxu1  ;;  %v15587_v33 = vadd.f32 %v13400_v8, %v15280_v44  ;;  %v15590_v19 = vadd.f32 %v13488_v3, %v15285_v45  ;;  %v22124_v8 = vcombine.high %v15377_v38, %v15401_v56  ;;  %22133 = vst [vmem:[#allocation53_spill] sm:$0xff] %v15635_v2  ;;  %v15645_v38 = vrot.slane %v1897_v4, %v15584_v14 }
 0x1d2   : > { %22121 = vst [vmem:[#allocation45_spill] sm:$0xff] %v15587_v33  ;;  %v15608_v26 = vrot.slane %v22124_v8, %v15584_v14  ;;  %22136 = vst [vmem:[#allocation56_spill] sm:$0xff] %v15645_v38 }
 0x1d3   : > { %v13403_v22 = vpop.f32.mrb[16].mxu0  ;;  %v13491_v13 = vpop.f32.mrb[16].mxu1 }
 0x1d4   : > { %v780_v35 = vpop.f32.mrb[17].mxu0  ;;  %v1091_v42 = vpop.f32.mrb[17].mxu1  ;;  %22125 = vst [vmem:[#allocation47_spill] sm:$0xff] %v15608_v26  ;;  %v15686_v40 = vadd.f32 %v13403_v22, %v15280_v44 }
 0x1d5   : > { %v15593_v7 = vadd.f32 %v15280_v44, %v780_v35  ;;  %v15596_v60 = vadd.f32 %v15285_v45, %v1091_v42  ;;  %v22126_v35 = vcombine.low %v15392_v47, %v15404_v57  ;;  %v22128_v42 = vcombine.high %v15392_v47, %v15404_v57 }
 0x1d6   : > { %v15638_v47 = vrot.slane %v2186_v31, %v15584_v14  ;;  %22145 = vst [vmem:[#allocation63_spill] sm:$0xff] %v15686_v40 }
 0x1d7   : > { %22122 = vst [vmem:[#allocation46_spill] sm:$0xff] %v15593_v7  ;;  %v15614_v3 = vrot.slane %v22126_v35, %v15584_v14  ;;  %v15620_v24 = vrot.slane %v22128_v42, %v15584_v14  ;;  %v15632_v56 = vpack.c.bf16 %v15596_v60, %v15590_v19  ;;  %v13406_v8 = vpop.f32.mrb[18].mxu0  ;;  %v13494_v35 = vpop.f32.mrb[18].mxu1 }
 0x1d8   : > { %22134 = vst [vmem:[#allocation54_spill] sm:$0xff] %v15638_v47  ;;  %v15641_v57 = vadd.f32 %v13406_v8, %v15280_v44  ;;  %v1107_v50 = vadd.f32 %v13494_v35, %v15285_v45  ;;  %v790_v23 = vpop.f32.mrb[19].mxu0  ;;  %v1101_v42 = vpop.f32.mrb[19].mxu1 }
 0x1d9   : > { %22127 = vst [vmem:[#allocation48_spill] sm:$0xff] %v15614_v3  ;;  %22129 = vst [vmem:[#allocation49_spill] sm:$0xff] %v15620_v24  ;;  %v15651_v28 = vadd.f32 %v15280_v44, %v790_v23  ;;  %v1102_v25 = vadd.f32 %v15285_v45, %v1101_v42  ;;  %v15683_v23 = vadd.f32 %v15285_v45, %v1081_v41 }
 0x1da   : > { %22132 = vst [vmem:[#allocation52_spill] sm:$0xff] %v15632_v56  ;;  %22135 = vst [vmem:[#allocation55_spill] sm:$0xff] %v15641_v57  ;;  %v15648_v56 = vrot.slane %v1898_v61, %v15584_v14  ;;  %v1865_v31 = vcombine.low %v15551_v30, %v15641_v57  ;;  %v1866_v8 = vcombine.high %v15551_v30, %v15641_v57 }
 0x1db   : > { %22138 = vst [vmem:[#allocation58_spill] sm:$0xff] %v15651_v28  ;;  %v2681_v35 = vcombine.low %v15561_v34, %v1107_v50  ;;  %v2682_v5 = vcombine.high %v15561_v34, %v1107_v50  ;;  %v1593_v4 = vcombine.low %v15564_v49, %v15651_v28  ;;  %v1594_v61 = vcombine.high %v15564_v49, %v15651_v28  ;;  %v13409_v39 = vpop.f32.mrb[20].mxu0  ;;  %v13497_v9 = vpop.f32.mrb[20].mxu1 }
 0x1dc   : > { %22137 = vst [vmem:[#allocation57_spill] sm:$0xff] %v15648_v56  ;;  %v2409_v42 = vcombine.low %v15567_v12, %v1102_v25  ;;  %v22139_v30 = vcombine.low %v15448_v36, %v15504_v16  ;;  %v22141_v34 = vcombine.high %v15448_v36, %v15504_v16  ;;  %v15680_v49 = vadd.f32 %v15280_v44, %v770_v53  ;;  %v800_v28 = vpop.f32.mrb[21].mxu0  ;;  %v1111_v57 = vpop.f32.mrb[21].mxu1 }
 0x1dd   : > { %22144 = vst [vmem:[#allocation62_spill] sm:$0xff] %v15683_v23  ;;  %v15692_v29 = vrot.slane %v1865_v31, %v15358_v27  ;;  %v2410_v16 = vcombine.high %v15567_v12, %v1102_v25  ;;  %v15695_v36 = vpack.c.bf16 %v1107_v50, %v1102_v25  ;;  %v15698_v53 = vadd.f32 %v13409_v39, %v15280_v44 }
 0x1de   : > { %v15671_v17 = vrot.slane %v22139_v30, %v15584_v14  ;;  %v15677_v11 = vrot.slane %v22141_v34, %v15584_v14  ;;  %22143 = vst [vmem:[#allocation61_spill] sm:$0xff] %v15680_v49  ;;  %v15689_v30 = vadd.f32 %v13491_v13, %v15285_v45  ;;  %v15701_v41 = vadd.f32 %v13497_v9, %v15285_v45 }
 0x1df   : > { %22147 = vst [vmem:[#allocation65_spill] sm:$0xff] %v15695_v36  ;;  %22148 = vst [vmem:[#allocation66_spill] sm:$0xff] %v15698_v53  ;;  %v15704_v34 = vadd.f32 %v15280_v44, %v800_v28  ;;  %v15707_v22 = vrot.slane %v1866_v8, %v15358_v27  ;;  %v15710_v13 = vrot.slane %v2681_v35, %v15358_v27  ;;  %v13412_v50 = vpop.f32.mrb[22].mxu0  ;;  %v13500_v39 = vpop.f32.mrb[22].mxu1 }
 0x1e0   : > { %22140 = vst [vmem:[#allocation59_spill] sm:$0xff] %v15671_v17  ;;  %22142 = vst [vmem:[#allocation60_spill] sm:$0xff] %v15677_v11  ;;  %v1601_v31 = vrot.slane %v1593_v4, %v15358_v27  ;;  %v15714_v12 = vadd.f32 %v15285_v45, %v1111_v57  ;;  %v1609_v9 = vcombine.low %v15587_v33, %v15698_v53  ;;  %v810_v35 = vpop.f32.mrb[23].mxu0  ;;  %v1121_v36 = vpop.f32.mrb[23].mxu1 }
 0x1e1   : > { %22146 = vst [vmem:[#allocation64_spill] sm:$0xff] %v15689_v30  ;;  %22149 = vst [vmem:[#allocation67_spill] sm:$0xff] %v15704_v34  ;;  %v1610_v28 = vcombine.high %v15587_v33, %v15698_v53  ;;  %v2425_v25 = vcombine.low %v15590_v19, %v15701_v41  ;;  %v2426_v8 = vcombine.high %v15590_v19, %v15701_v41 }
 0x1e2   : > { %22150 = vst [vmem:[#allocation68_spill] sm:$0xff] %v15710_v13  ;;  %22151 = vst [vmem:[#allocation69_spill] sm:$0xff] %v15714_v12  ;;  %v1608_v4 = vrot.slane %v1594_v61, %v15358_v27  ;;  %v2137_v57 = vcombine.low %v15680_v49, %v15704_v34  ;;  %v2138_v32 = vcombine.high %v15680_v49, %v15704_v34 }
 0x1e3   : > { %v2953_v10 = vcombine.low %v15683_v23, %v15714_v12  ;;  %v1617_v33 = vrot.slane %v1609_v9, %v15358_v27  ;;  %v1624_v6 = vrot.slane %v1610_v28, %v15358_v27  ;;  %v15734_v52 = vrot.slane %v2425_v25, %v15358_v27  ;;  %v13415_v49 = vpop.f32.mrb[24].mxu0  ;;  %v15750_v28 = vpop.f32.mrb[24].mxu1 }
 0x1e4   : > { %v15737_v19 = vrot.slane %v2426_v8, %v15358_v27  ;;  %v15740_v61 = vrot.slane %v2682_v5, %v15358_v27  ;;  %v15743_v48 = vrot.slane %v2409_v42, %v15358_v27  ;;  %v15746_v34 = vrot.slane %v2410_v16, %v15358_v27  ;;  %v15752_v54 = vpop.f32.mrb[25].mxu0  ;;  %v15754_v5 = vpop.f32.mrb[25].mxu1 }
 0x1e5   : > { %22152 = vst [vmem:[#allocation70_spill] sm:$0xff] %v15734_v52  ;;  %v2954_v9 = vcombine.high %v15683_v23, %v15714_v12  ;;  %v1657_v25 = vcombine.low %v1601_v31, %v1617_v33  ;;  %v1658_v37 = vcombine.high %v1601_v31, %v1617_v33  ;;  %v1673_v55 = vcombine.low %v1608_v4, %v1624_v6 }
 0x1e6   : > { %22153 = vst [vmem:[#allocation71_spill] sm:$0xff] %v15737_v19  ;;  %22154 = vst [vmem:[#allocation72_spill] sm:$0xff] %v15740_v61  ;;  %v1674_v8 = vcombine.high %v1608_v4, %v1624_v6  ;;  %v2145_v16 = vrot.slane %v2137_v57, %v15358_v27  ;;  %v2152_v42 = vrot.slane %v2138_v32, %v15358_v27 }
 0x1e7   : > { %22155 = vst [vmem:[#allocation73_spill] sm:$0xff] %v15743_v48  ;;  %22156 = vst [vmem:[#allocation74_spill] sm:$0xff] %v15746_v34  ;;  %v15765_v33 = vrot.slane %v1657_v25, %v15584_v14  ;;  %v15768_v6 = vrot.slane %v1658_v37, %v15584_v14  ;;  %v15771_v31 = vrot.slane %v1673_v55, %v15584_v14  ;;  %v15784_v25 = vpop.f32.mrb[26].mxu0  ;;  %v15786_v37 = vpop.f32.mrb[26].mxu1 }
 0x1e8   : > { %v15774_v4 = vrot.slane %v1674_v8, %v15584_v14  ;;  %v15779_v12 = vadd.f32 %v13412_v50, %v15280_v44  ;;  %v15782_v23 = vadd.f32 %v13500_v39, %v15285_v45  ;;  %v15796_v50 = vpop.f32.mrb[27].mxu0  ;;  %v15798_v39 = vpop.f32.mrb[27].mxu1  ;;  %v15809_v57 = vrot.slane %v2953_v10, %v15358_v27 }
 0x1e9   : > { %22157 = vst [vmem:[#allocation75_spill] sm:$0xff] %v15768_v6  ;;  %22158 = vst [vmem:[#allocation76_spill] sm:$0xff] %v15771_v31  ;;  %v15818_v19 = vrot.slane %v2954_v9, %v15358_v27  ;;  %v15823_v8 = vadd.f32 %v15280_v44, %v810_v35  ;;  %v1122_v10 = vadd.f32 %v15285_v45, %v1121_v36 }
 0x1ea   : > { %22159 = vst [vmem:[#allocation77_spill] sm:$0xff] %v15774_v4  ;;  %22160 = vst [vmem:[#allocation78_spill] sm:$0xff] %v15779_v12  ;;  %v2153_v32 = vcombine.low %v15686_v40, %v15779_v12  ;;  %v2154_v34 = vcombine.high %v15686_v40, %v15779_v12  ;;  %v2969_v51 = vcombine.low %v15689_v30, %v15782_v23 }
 0x1eb   : > { %22161 = vst [vmem:[#allocation79_spill] sm:$0xff] %v15782_v23  ;;  %22162 = vst [vmem:[#allocation80_spill] sm:$0xff] %v15809_v57  ;;  %v2970_v55 = vcombine.high %v15689_v30, %v15782_v23  ;;  %v15826_v4 = vpop.f32.mrb[28].mxu0  ;;  %v15828_v24 = vpop.f32.mrb[28].mxu1  ;;  %v15836_v9 = vadd.f32 %v13415_v49, %v15280_v44  ;;  %v1881_v30 = vcombine.low %v15593_v7, %v15823_v8 }
 0x1ec   : > { %22163 = vst [vmem:[#allocation81_spill] sm:$0xff] %v15818_v19  ;;  %22164 = vst [vmem:[#allocation82_spill] sm:$0xff] %v15823_v8  ;;  %v2161_v12 = vrot.slane %v2153_v32, %v15358_v27  ;;  %v2168_v40 = vrot.slane %v2154_v34, %v15358_v27  ;;  %v15833_v31 = vrot.slane %v2969_v51, %v15358_v27  ;;  %v15838_v23 = vpop.f32.mrb[29].mxu0  ;;  %v15840_v35 = vpop.f32.mrb[29].mxu1 }
 0x1ed   : > { %22166 = vst [vmem:[#allocation84_spill] sm:$0xff] %v15836_v9  ;;  %v15843_v36 = vrot.slane %v2970_v55, %v15358_v27  ;;  %v1882_v32 = vcombine.high %v15593_v7, %v15823_v8  ;;  %v1889_v26 = vrot.slane %v1881_v30, %v15358_v27  ;;  %v2697_v63 = vcombine.low %v15596_v60, %v1122_v10 }
 0x1ee   : > { %22165 = vst [vmem:[#allocation83_spill] sm:$0xff] %v15833_v31  ;;  %v2201_v34 = vcombine.low %v2145_v16, %v2161_v12  ;;  %v2202_v3 = vcombine.high %v2145_v16, %v2161_v12  ;;  %v2217_v49 = vcombine.low %v2152_v42, %v2168_v40  ;;  %v2218_v59 = vcombine.high %v2152_v42, %v2168_v40 }
 0x1ef   : > { %22167 = vst [vmem:[#allocation85_spill] sm:$0xff] %v15843_v36  ;;  %v15859_v7 = vpop.f32.mrb[30].mxu0  ;;  %v15861_v1 = vpop.f32.mrb[30].mxu1  ;;  %v1896_v55 = vrot.slane %v1882_v32, %v15358_v27  ;;  %v1929_v36 = vcombine.low %v15692_v29, %v1889_v26  ;;  %v15904_v32 = vrot.slane %v2697_v63, %v15358_v27 }
 0x1f0   : > { %v15864_v12 = vrot.slane %v2201_v34, %v15584_v14  ;;  %v15867_v40 = vrot.slane %v2202_v3, %v15584_v14  ;;  %v15870_v42 = vrot.slane %v2217_v49, %v15584_v14  ;;  %v15873_v16 = vrot.slane %v2218_v59, %v15584_v14  ;;  %v850_v51 = vpop.f32.mrb[31].mxu0  ;;  %v1161_v6 = vpop.f32.mrb[31].mxu1 }
 0x1f1   : > { %v2698_v34 = vcombine.high %v15596_v60, %v1122_v10  ;;  %v1930_v59 = vcombine.high %v15692_v29, %v1889_v26  ;;  %v1945_v53 = vcombine.low %v15707_v22, %v1896_v55  ;;  %v1946_v19 = vcombine.high %v15707_v22, %v1896_v55  ;;  %22172 = vst [vmem:[#allocation90_spill] sm:$0xff] %v15904_v32 }
 0x1f2   : > { %22168 = vst [vmem:[#allocation86_spill] sm:$0xff] %v15864_v12  ;;  %22169 = vst [vmem:[#allocation87_spill] sm:$0xff] %v15867_v40  ;;  %v15910_v3 = vpack.c.bf16 %v1122_v10, %v15701_v41  ;;  %v15914_v29 = vadd.f32 %v15750_v28, %v15285_v45  ;;  %v15917_v26 = vrot.slane %v1929_v36, %v15584_v14 }
 0x1f3   : > { %22170 = vst [vmem:[#allocation88_spill] sm:$0xff] %v15870_v42  ;;  %22171 = vst [vmem:[#allocation89_spill] sm:$0xff] %v15873_v16  ;;  %v13427_v8 = vpop.f32.mrb[32].mxu0  ;;  %v13515_v49 = vpop.f32.mrb[32].mxu1  ;;  %v15907_v60 = vrot.slane %v2698_v34, %v15358_v27  ;;  %v15920_v22 = vrot.slane %v1930_v59, %v15584_v14  ;;  %v15923_v55 = vrot.slane %v1945_v53, %v15584_v14 }
 0x1f4   : > { %v15899_v30 = vpop.f32.mrb[33].mxu0  ;;  %v15901_v40 = vpop.f32.mrb[33].mxu1  ;;  %22174 = vst [vmem:[#allocation92_spill] sm:$0xff] %v15910_v3  ;;  %22175 = vst [vmem:[#allocation93_spill] sm:$0xff] %v15917_v26  ;;  %v15926_v63 = vrot.slane %v1946_v19, %v15584_v14  ;;  %v15962_v41 = vadd.f32 %v15280_v44, %v15752_v54  ;;  %v1132_v10 = vadd.f32 %v15285_v45, %v15754_v5 }
 0x1f5   : > { %22173 = vst [vmem:[#allocation91_spill] sm:$0xff] %v15907_v60  ;;  %22176 = vst [vmem:[#allocation94_spill] sm:$0xff] %v15920_v22  ;;  %v15968_v22 = vadd.f32 %v15784_v25, %v15280_v44  ;;  %v1147_v32 = vadd.f32 %v15786_v37, %v15285_v45  ;;  %v15983_v5 = vadd.f32 %v15280_v44, %v15838_v23 }
 0x1f6   : > { %22177 = vst [vmem:[#allocation95_spill] sm:$0xff] %v15923_v55  ;;  %22178 = vst [vmem:[#allocation96_spill] sm:$0xff] %v15926_v63  ;;  %v15979_v54 = vpack.c.bf16 %v15914_v29, %v1132_v10  ;;  %v15987_v25 = vadd.f32 %v15285_v45, %v15840_v35  ;;  %v16004_v23 = vadd.f32 %v15861_v1, %v15285_v45 }
 0x1f7   : > { %v15936_v34 = vpop.f32.mrb[34].mxu0  ;;  %v15938_v59 = vpop.f32.mrb[34].mxu1  ;;  %22179 = vst [vmem:[#allocation97_spill] sm:$0xff] %v15962_v41  ;;  %22180 = vst [vmem:[#allocation98_spill] sm:$0xff] %v15968_v22  ;;  %v16007_v35 = vadd.f32 %v15280_v44, %v850_v51  ;;  %v1162_v38 = vadd.f32 %v15285_v45, %v1161_v6  ;;  %v16011_v13 = vadd.f32 %v13427_v8, %v15280_v44 }
 0x1f8   : > { %v15948_v28 = vpop.f32.mrb[35].mxu0  ;;  %v15950_v3 = vpop.f32.mrb[35].mxu1  ;;  %22181 = vst [vmem:[#allocation99_spill] sm:$0xff] %v15979_v54  ;;  %22182 = vst [vmem:[#allocation100_spill] sm:$0xff] %v15983_v5  ;;  %v15996_v19 = vpack.c.bf16 %v15987_v25, %v1147_v32  ;;  %v16000_v54 = vadd.f32 %v15859_v7, %v15280_v44  ;;  %v16014_v26 = vadd.f32 %v13515_v49, %v15285_v45 }
 0x1f9   : > { %22185 = vst [vmem:[#allocation103_spill] sm:$0xff] %v16007_v35  ;;  %22186 = vst [vmem:[#allocation104_spill] sm:$0xff] %v16011_v13  ;;  %v1697_v47 = vcombine.low %v15962_v41, %v16007_v35  ;;  %v1698_v42 = vcombine.high %v15962_v41, %v16007_v35  ;;  %v2513_v1 = vcombine.low %v1132_v10, %v1162_v38 }
 0x1fa   : > { %22183 = vst [vmem:[#allocation101_spill] sm:$0xff] %v15996_v19  ;;  %22184 = vst [vmem:[#allocation102_spill] sm:$0xff] %v16000_v54  ;;  %v16040_v51 = vadd.f32 %v15280_v44, %v15796_v50  ;;  %v16044_v6 = vadd.f32 %v15285_v45, %v15798_v39  ;;  %v2514_v12 = vcombine.high %v1132_v10, %v1162_v38 }
 0x1fb   : > { %v15972_v36 = vpop.f32.mrb[36].mxu0  ;;  %v15974_v53 = vpop.f32.mrb[36].mxu1  ;;  %v16047_v2 = vrot.slane %v1697_v47, %v15358_v27  ;;  %v16050_v0 = vrot.slane %v1698_v42, %v15358_v27  ;;  %v16057_v7 = vpack.c.bf16 %v16004_v23, %v1162_v38  ;;  %v1713_v50 = vcombine.low %v15968_v22, %v16011_v13 }
 0x1fc   : > { %v15989_v56 = vpop.f32.mrb[37].mxu0  ;;  %v15991_v37 = vpop.f32.mrb[37].mxu1  ;;  %22187 = vst [vmem:[#allocation105_spill] sm:$0xff] %v16040_v51  ;;  %22188 = vst [vmem:[#allocation106_spill] sm:$0xff] %v16044_v6  ;;  %v1714_v39 = vcombine.high %v15968_v22, %v16011_v13  ;;  %v2529_v47 = vcombine.low %v1147_v32, %v16014_v26  ;;  %v16069_v10 = vrot.slane %v2513_v1, %v15358_v27 }
 0x1fd   : > { %22189 = vst [vmem:[#allocation107_spill] sm:$0xff] %v16057_v7  ;;  %v16072_v31 = vrot.slane %v2514_v12, %v15358_v27  ;;  %v2530_v38 = vcombine.high %v1147_v32, %v16014_v26  ;;  %v16077_v7 = vadd.f32 %v15280_v44, %v15899_v30  ;;  %v16080_v22 = vrot.slane %v1713_v50, %v15358_v27 }
 0x1fe   : > { %22190 = vst [vmem:[#allocation108_spill] sm:$0xff] %v16069_v10  ;;  %v16083_v57 = vrot.slane %v1714_v39, %v15358_v27  ;;  %v16086_v20 = vrot.slane %v2529_v47, %v15358_v27  ;;  %v16090_v1 = vadd.f32 %v15285_v45, %v15901_v40  ;;  %v16101_v50 = vadd.f32 %v15936_v34, %v15280_v44 }
 0x1ff   : > { %v16016_v19 = vpop.f32.mrb[38].mxu0  ;;  %v16018_v16 = vpop.f32.mrb[38].mxu1  ;;  %22191 = vst [vmem:[#allocation109_spill] sm:$0xff] %v16072_v31  ;;  %22192 = vst [vmem:[#allocation110_spill] sm:$0xff] %v16077_v7  ;;  %v16093_v12 = vrot.slane %v2530_v38, %v15358_v27  ;;  %v2241_v30 = vcombine.low %v16040_v51, %v16077_v7  ;;  %v2242_v32 = vcombine.high %v16040_v51, %v16077_v7 }
 0x200   : > { %v16028_v8 = vpop.f32.mrb[39].mxu0  ;;  %v16030_v49 = vpop.f32.mrb[39].mxu1  ;;  %22193 = vst [vmem:[#allocation111_spill] sm:$0xff] %v16086_v20  ;;  %22194 = vst [vmem:[#allocation112_spill] sm:$0xff] %v16090_v1  ;;  %v16129_v63 = vadd.f32 %v15826_v4, %v15280_v44  ;;  %v3057_v7 = vcombine.low %v16044_v6, %v16090_v1  ;;  %v3058_v21 = vcombine.high %v16044_v6, %v16090_v1 }
 0x201   : > { %22195 = vst [vmem:[#allocation113_spill] sm:$0xff] %v16093_v12  ;;  %22196 = vst [vmem:[#allocation114_spill] sm:$0xff] %v16101_v50  ;;  %v16141_v40 = vadd.f32 %v15828_v24, %v15285_v45  ;;  %v16152_v1 = vrot.slane %v2241_v30, %v15358_v27  ;;  %v16155_v6 = vrot.slane %v2242_v32, %v15358_v27 }
 0x202   : > { %22197 = vst [vmem:[#allocation115_spill] sm:$0xff] %v16129_v63  ;;  %v2257_v38 = vcombine.low %v16129_v63, %v16101_v50  ;;  %v2258_v4 = vcombine.high %v16129_v63, %v16101_v50  ;;  %v16159_v24 = vadd.f32 %v15938_v59, %v15285_v45  ;;  %v16163_v31 = vadd.f32 %v15280_v44, %v15948_v28 }
 0x203   : > { %v16052_v41 = vpop.f32.mrb[40].mxu0  ;;  %v16054_v43 = vpop.f32.mrb[40].mxu1  ;;  %22198 = vst [vmem:[#allocation116_spill] sm:$0xff] %v16141_v40  ;;  %v16166_v50 = vrot.slane %v3057_v7, %v15358_v27  ;;  %v16169_v63 = vrot.slane %v3058_v21, %v15358_v27  ;;  %v1182_v7 = vadd.f32 %v15285_v45, %v15950_v3  ;;  %v16264_v55 = vadd.f32 %v15972_v36, %v15280_v44 }
 0x204   : > { %v16064_v35 = vpop.f32.mrb[41].mxu0  ;;  %v16066_v42 = vpop.f32.mrb[41].mxu1  ;;  %22199 = vst [vmem:[#allocation117_spill] sm:$0xff] %v16159_v24  ;;  %22200 = vst [vmem:[#allocation118_spill] sm:$0xff] %v16163_v31  ;;  %v2265_v30 = vrot.slane %v2257_v38, %v15358_v27  ;;  %v16173_v60 = vrot.slane %v2258_v4, %v15358_v27  ;;  %v3073_v32 = vcombine.low %v16141_v40, %v16159_v24 }
 0x205   : > { %22201 = vst [vmem:[#allocation119_spill] sm:$0xff] %v16166_v50  ;;  %22202 = vst [vmem:[#allocation120_spill] sm:$0xff] %v16169_v63  ;;  %v3074_v59 = vcombine.high %v16141_v40, %v16159_v24  ;;  %v1985_v28 = vcombine.low %v15983_v5, %v16163_v31  ;;  %v1986_v48 = vcombine.high %v15983_v5, %v16163_v31 }
 0x206   : > { %v2305_v38 = vcombine.low %v16152_v1, %v2265_v30  ;;  %v2306_v4 = vcombine.high %v16152_v1, %v2265_v30  ;;  %v2321_v20 = vcombine.low %v16155_v6, %v16173_v60  ;;  %v2322_v24 = vcombine.high %v16155_v6, %v16173_v60  ;;  %22212 = vst [vmem:[#allocation126_spill] sm:$0xff] %v16264_v55 }
 0x207   : > { %v16103_v39 = vpop.f32.mrb[42].mxu0  ;;  %v16105_v47 = vpop.f32.mrb[42].mxu1  ;;  %v16198_v3 = vrot.slane %v3073_v32, %v15358_v27  ;;  %v16201_v52 = vrot.slane %v3074_v59, %v15358_v27  ;;  %v16206_v1 = vrot.slane %v1985_v28, %v15358_v27  ;;  %v22205_v60 = vcombine.low %v15836_v9, %v16000_v54 }
 0x208   : > { %v16115_v51 = vpop.f32.mrb[43].mxu0  ;;  %v16117_v34 = vpop.f32.mrb[43].mxu1  ;;  %v22206_v30 = vcombine.high %v15836_v9, %v16000_v54  ;;  %v22207_v59 = vcombine.low %v15914_v29, %v16004_v23  ;;  %v16237_v9 = vrot.slane %v1986_v48, %v15358_v27  ;;  %v22210_v54 = vcombine.high %v15914_v29, %v16004_v23 }
 0x209   : > { %22203 = vst [vmem:[#allocation121_spill] sm:$0xff] %v16198_v3  ;;  %22204 = vst [vmem:[#allocation122_spill] sm:$0xff] %v16201_v52  ;;  %v16212_v6 = vrot.slane %v22205_v60, %v15358_v27  ;;  %v2801_v48 = vcombine.low %v15987_v25, %v1182_v7  ;;  %v16256_v52 = vpack.c.bf16 %v1182_v7, %v16014_v26 }
 0x20a   : > { %v16218_v32 = vrot.slane %v22206_v30, %v15358_v27  ;;  %v16224_v5 = vrot.slane %v22207_v59, %v15358_v27  ;;  %v16251_v60 = vrot.slane %v22210_v54, %v15358_v27  ;;  %v16268_v29 = vadd.f32 %v15974_v53, %v15285_v45 }
 0x20b   : > { %v16135_v11 = vpop.f32.mrb[44].mxu0  ;;  %v16137_v18 = vpop.f32.mrb[44].mxu1  ;;  %v2033_v59 = vcombine.low %v16212_v6, %v16206_v1  ;;  %v2034_v28 = vcombine.high %v16212_v6, %v16206_v1  ;;  %22211 = vst [vmem:[#allocation125_spill] sm:$0xff] %v16256_v52  ;;  %v16271_v54 = vrot.slane %v2801_v48, %v15358_v27  ;;  %v16282_v23 = vadd.f32 %v15285_v45, %v15991_v37 }
 0x20c   : > { %v16147_v46 = vpop.f32.mrb[45].mxu0  ;;  %v16149_v12 = vpop.f32.mrb[45].mxu1  ;;  %22208 = vst [vmem:[#allocation123_spill] sm:$0xff] %v16224_v5  ;;  %v2049_v1 = vcombine.low %v16218_v32, %v16237_v9  ;;  %v22215_v53 = vcombine.low %v16047_v2, %v16080_v22  ;;  %v16331_v31 = vadd.f32 %v16016_v19, %v15280_v44  ;;  %v16349_v13 = vrot.slane %v2321_v20, %v15584_v14 }
 0x20d   : > { %22213 = vst [vmem:[#allocation127_spill] sm:$0xff] %v16271_v54  ;;  %v16353_v19 = vadd.f32 %v16103_v39, %v15280_v44  ;;  %v16365_v52 = vrot.slane %v2033_v59, %v15584_v14  ;;  %v16382_v59 = vadd.f32 %v15280_v44, %v16115_v51  ;;  %v1222_v20 = vadd.f32 %v15285_v45, %v16117_v34  ;;  %v16389_v39 = vld [vmem:[%s21501_s4] ss:$0 sm:$0xff] }
 0x20e   : > { %22224 = vst [vmem:[#allocation134_spill] sm:$0xff] %v16331_v31  ;;  %22228 = vst [vmem:[#allocation138_spill] sm:$0xff] %v16349_v13  ;;  %v16410_v34 = vrot.slane %v2049_v1, %v15584_v14  ;;  %v16439_v5 = vadd.f32 %v16389_v39, %v16052_v41 }
 0x20f   : > { %v16183_v61 = vpop.f32.mrb[46].mxu0  ;;  %v16185_v21 = vpop.f32.mrb[46].mxu1  ;;  %22229 = vst [vmem:[#allocation139_spill] sm:$0xff] %v16353_v19  ;;  %22232 = vst [vmem:[#allocation142_spill] sm:$0xff] %v16365_v52 }
 0x210   : > { %v16193_v40 = vpop.f32.mrb[47].mxu0  ;;  %v16195_v10 = vpop.f32.mrb[47].mxu1  ;;  %22234 = vst [vmem:[#allocation144_spill] sm:$0xff] %v16382_v59  ;;  %22238 = vst [vmem:[#allocation148_spill] sm:$0xff] %v16410_v34 }
 0x211   : > { %22242 = vst [vmem:[#allocation152_spill] sm:$0xff] %v16439_v5 }
 0x213   : > { %v16234_v30 = vpop.f32.mrb[48].mxu0 }
 0x214   : > { %22209 = vst [vmem:[#allocation124_spill] sm:$0xff] %v16234_v30  ;;  %v16245_v3 = vpop.f32.mrb[49].mxu0  ;;  %v2802_v30 = vcombine.high %v15987_v25, %v1182_v7  ;;  %v16278_v25 = vadd.f32 %v15280_v44, %v15989_v56  ;;  %v16290_v7 = vrot.slane %v22215_v53, %v15584_v14  ;;  %v22217_v56 = vcombine.low %v16050_v0, %v16083_v57 }
 0x215   : > { %v16327_v53 = vpack.c.bf16 %v16268_v29, %v16282_v23 }
 0x216   : > { %v16274_v26 = vrot.slane %v2802_v30, %v15358_v27  ;;  %22214 = vst [vmem:[#allocation128_spill] sm:$0xff] %v16278_v25  ;;  %v22216_v30 = vcombine.high %v16047_v2, %v16080_v22  ;;  %v16302_v37 = vrot.slane %v22217_v56, %v15584_v14  ;;  %v22220_v22 = vcombine.high %v16050_v0, %v16083_v57 }
 0x217   : > { %v16284_v36 = vpop.f32.mrb[50].mxu0  ;;  %v16321_v56 = vrot.slane %v2305_v38, %v15584_v14  ;;  %22223 = vst [vmem:[#allocation133_spill] sm:$0xff] %v16327_v53  ;;  %v1207_v2 = vadd.f32 %v16018_v16, %v15285_v45  ;;  %v16337_v0 = vadd.f32 %v15280_v44, %v16064_v35  ;;  %v16341_v57 = vadd.f32 %v15285_v45, %v16066_v42 }
 0x218   : > { %v16296_v48 = vrot.slane %v22216_v30, %v15584_v14  ;;  %22218 = vst [vmem:[#allocation129_spill] sm:$0xff] %v16302_v37  ;;  %v16304_v6 = vpop.f32.mrb[51].mxu0  ;;  %v16318_v30 = vrot.slane %v22220_v22, %v15584_v14  ;;  %v16346_v22 = vrot.slane %v2306_v4, %v15584_v14  ;;  %v16357_v16 = vadd.f32 %v16105_v47, %v15285_v45 }
 0x219   : > { %22219 = vst [vmem:[#allocation130_spill] sm:$0xff] %v16304_v6  ;;  %22222 = vst [vmem:[#allocation132_spill] sm:$0xff] %v16321_v56  ;;  %v16362_v42 = vrot.slane %v2322_v24, %v15584_v14  ;;  %v16370_v4 = vpack.c.bf16 %v16341_v57, %v1207_v2  ;;  %v16393_v47 = vadd.f32 %v16389_v39, %v16135_v11  ;;  %v16398_v24 = vld [vmem:[%s21502_s5] ss:$0 sm:$0xff] }
 0x21a   : > { %22221 = vst [vmem:[#allocation131_spill] sm:$0xff] %v16318_v30  ;;  %22225 = vst [vmem:[#allocation135_spill] sm:$0xff] %v16337_v0  ;;  %v16402_v44 = vadd.f32 %v16398_v24, %v16137_v18  ;;  %v16407_v45 = vrot.slane %v2034_v28, %v15584_v14  ;;  %v16414_v11 = vadd.f32 %v16389_v39, %v16028_v8 }
 0x21b   : > { %v16343_v38 = vpop.f32.mrb[52].mxu0  ;;  %22227 = vst [vmem:[#allocation137_spill] sm:$0xff] %v16346_v22  ;;  %22231 = vst [vmem:[#allocation141_spill] sm:$0xff] %v16362_v42  ;;  %v1729_v18 = vcombine.low %v16278_v25, %v16382_v59  ;;  %v1730_v28 = vcombine.high %v16278_v25, %v16382_v59  ;;  %v2546_v8 = vcombine.high %v16282_v23, %v1222_v20  ;;  %v22296_v42 = vld [vmem:[#allocation41_spill] sm:$0xff] }
 0x21c   : > { %22226 = vst [vmem:[#allocation136_spill] sm:$0xff] %v16343_v38  ;;  %v16359_v35 = vpop.f32.mrb[53].mxu0  ;;  %22233 = vst [vmem:[#allocation143_spill] sm:$0xff] %v16370_v4  ;;  %v16431_v53 = vpack.c.bf16 %v16357_v16, %v1222_v20  ;;  %v1746_v54 = vcombine.high %v16331_v31, %v16393_v47  ;;  %v2561_v59 = vcombine.low %v1207_v2, %v16402_v44 }
 0x21d   : > { %22230 = vst [vmem:[#allocation140_spill] sm:$0xff] %v16359_v35  ;;  %22235 = vst [vmem:[#allocation145_spill] sm:$0xff] %v16393_v47  ;;  %v16418_v35 = vadd.f32 %v16398_v24, %v16030_v49  ;;  %v1745_v49 = vcombine.low %v16331_v31, %v16393_v47  ;;  %v1737_v25 = vrot.slane %v1729_v18, %v15358_v27  ;;  %v22279_v47 = vld [vmem:[#allocation95_spill] sm:$0xff] }
 0x21e   : > { %22237 = vst [vmem:[#allocation147_spill] sm:$0xff] %v16407_v45  ;;  %22239 = vst [vmem:[#allocation149_spill] sm:$0xff] %v16414_v11  ;;  %v1744_v1 = vrot.slane %v1730_v28, %v15358_v27  ;;  %v1760_v63 = vrot.slane %v1746_v54, %v15358_v27  ;;  %v2562_v31 = vcombine.high %v1207_v2, %v16402_v44 }
 0x21f   : > { %v16404_v51 = vpop.f32.mrb[54].mxu0  ;;  %22240 = vst [vmem:[#allocation150_spill] sm:$0xff] %v16418_v35  ;;  %22241 = vst [vmem:[#allocation151_spill] sm:$0xff] %v16431_v53  ;;  %v1753_v53 = vrot.slane %v1745_v49, %v15358_v27  ;;  %v16455_v41 = vrot.slane %v2546_v8, %v15358_v27  ;;  %v16458_v18 = vrot.slane %v2561_v59, %v15358_v27 }
 0x220   : > { %22236 = vst [vmem:[#allocation146_spill] sm:$0xff] %v16404_v51  ;;  %v16420_v4 = vpop.f32.mrb[55].mxu0  ;;  %v2545_v51 = vcombine.low %v16282_v23, %v1222_v20  ;;  %v16462_v28 = vadd.f32 %v16389_v39, %v16147_v46  ;;  %v1809_v38 = vcombine.low %v1744_v1, %v1760_v63  ;;  %v1810_v2 = vcombine.high %v1744_v1, %v1760_v63 }
 0x221   : > { %v1793_v49 = vcombine.low %v1737_v25, %v1753_v53  ;;  %v1794_v54 = vcombine.high %v1737_v25, %v1753_v53  ;;  %v16523_v8 = vadd.f32 %v16398_v24, %v16054_v43  ;;  %v22253_v1 = vcombine.low %v16264_v55, %v16353_v19 }
 0x222   : > { %v16447_v20 = vrot.slane %v2545_v51, %v15358_v27  ;;  %22244 = vst [vmem:[#allocation154_spill] sm:$0xff] %v16462_v28  ;;  %v16466_v51 = vadd.f32 %v16398_v24, %v16149_v12  ;;  %v2273_v46 = vcombine.low %v16414_v11, %v16462_v28  ;;  %v16489_v63 = vrot.slane %v1810_v2, %v15584_v14 }
 0x223   : > { %v16444_v23 = vpop.f32.mrb[56].mxu0  ;;  %v16480_v12 = vrot.slane %v1793_v49, %v15584_v14  ;;  %v16483_v25 = vrot.slane %v1794_v54, %v15584_v14  ;;  %v2274_v49 = vcombine.high %v16414_v11, %v16462_v28  ;;  %v16501_v54 = vadd.f32 %v16389_v39, %v16183_v61  ;;  %22252 = vst [vmem:[#allocation162_spill] sm:$0xff] %v16523_v8 }
 0x224   : > { %v16452_v50 = vpop.f32.mrb[57].mxu0  ;;  %22245 = vst [vmem:[#allocation155_spill] sm:$0xff] %v16466_v51  ;;  %22248 = vst [vmem:[#allocation158_spill] sm:$0xff] %v16489_v63  ;;  %v2009_v59 = vrot.slane %v22253_v1, %v15358_v27  ;;  %v3089_v61 = vcombine.low %v16418_v35, %v16466_v51  ;;  %v22255_v43 = vcombine.high %v16264_v55, %v16353_v19 }
 0x225   : > { %22243 = vst [vmem:[#allocation153_spill] sm:$0xff] %v16452_v50  ;;  %v16469_v50 = vrot.slane %v2562_v31, %v15358_v27  ;;  %v16486_v31 = vrot.slane %v1809_v38, %v15584_v14  ;;  %22250 = vst [vmem:[#allocation160_spill] sm:$0xff] %v16501_v54  ;;  %v1825_v38 = vcombine.low %v16290_v7, %v16480_v12 }
 0x226   : > { %v3090_v63 = vcombine.high %v16418_v35, %v16466_v51  ;;  %v2289_v1 = vcombine.low %v16439_v5, %v16501_v54  ;;  %v2288_v30 = vrot.slane %v2274_v49, %v15358_v27  ;;  %v16561_v19 = vrot.slane %v3089_v61, %v15358_v27 }
 0x227   : > { %22246 = vst [vmem:[#allocation156_spill] sm:$0xff] %v16469_v50  ;;  %v16477_v6 = vpop.f32.mrb[58].mxu0  ;;  %22247 = vst [vmem:[#allocation157_spill] sm:$0xff] %v16486_v31  ;;  %v16554_v31 = vadd.f32 %v16398_v24, %v16185_v21 }
 0x228   : > { %v16491_v53 = vpop.f32.mrb[59].mxu0  ;;  %v16564_v51 = vrot.slane %v3090_v63, %v15358_v27 }
 0x229   : > { %22249 = vst [vmem:[#allocation159_spill] sm:$0xff] %v16491_v53  ;;  %v22254_v53 = vcombine.low %v15602_v15, %v15765_v33  ;;  %22256 = vst [vmem:[#allocation163_spill] sm:$0xff] %v16554_v31  ;;  %v3105_v21 = vcombine.low %v16523_v8, %v16554_v31  ;;  %v3106_v49 = vcombine.high %v16523_v8, %v16554_v31 }
 0x22a   : > { %22258 = vst [vmem:[#allocation165_spill] sm:$0xff] %v16564_v51 }
 0x22b   : > { %v16519_v11 = vpop.f32.mrb[60].mxu0  ;;  %v16532_v2 = vpack.c.bf16 %v1825_v38, %v22254_v53  ;;  %v2290_v53 = vcombine.high %v16439_v5, %v16501_v54  ;;  %v2281_v38 = vrot.slane %v2273_v46, %v15358_v27  ;;  %v2297_v54 = vrot.slane %v2289_v1, %v15358_v27 }
 0x22c   : > { %22251 = vst [vmem:[#allocation161_spill] sm:$0xff] %v16519_v11  ;;  %v16536_v28 = vpop.f32.mrb[61].mxu0  ;;  %v16542_v11 = vrot.slane %v22255_v43, %v15358_v27  ;;  %v16558_v43 = vadd.f32 %v16389_v39, %v16193_v40  ;;  %v1242_v39 = vadd.f32 %v16398_v24, %v16195_v10  ;;  %v16581_v35 = vrot.slane %v3105_v21, %v15358_v27 }
 0x22d   : > { %v2304_v46 = vrot.slane %v2290_v53, %v15358_v27  ;;  %v2337_v61 = vcombine.low %v2281_v38, %v2297_v54  ;;  %v2338_v1 = vcombine.high %v2281_v38, %v2297_v54  ;;  %v16584_v37 = vrot.slane %v3106_v49, %v15358_v27 }
 0x22e   : > { %22257 = vst [vmem:[#allocation164_spill] sm:$0xff] %v16558_v43  ;;  %v2017_v40 = vcombine.low %v16337_v0, %v16558_v43  ;;  %v2018_v31 = vcombine.high %v16337_v0, %v16558_v43  ;;  %v22267_v21 = vcombine.high %v16218_v32, %v16237_v9  ;;  %v2834_v0 = vcombine.high %v16341_v57, %v1242_v39 }
 0x22f   : > { %v16568_v5 = vpop.f32.mrb[62].mxu0  ;;  %v2353_v55 = vcombine.low %v2288_v30, %v2304_v46  ;;  %v2354_v53 = vcombine.high %v2288_v30, %v2304_v46  ;;  %22259 = vst [vmem:[#allocation166_spill] sm:$0xff] %v16584_v37  ;;  %v16590_v50 = vrot.slane %v2337_v61, %v15584_v14  ;;  %v16593_v10 = vrot.slane %v2338_v1, %v15584_v14 }
 0x230   : > { %v16578_v63 = vpop.f32.mrb[63].mxu0  ;;  %v2025_v8 = vrot.slane %v2017_v40, %v15358_v27  ;;  %v2032_v61 = vrot.slane %v2018_v31, %v15358_v27  ;;  %v16638_v49 = vrot.slane %v22267_v21, %v15584_v14  ;;  %v2833_v46 = vcombine.low %v16341_v57, %v1242_v39 }
 0x231   : > { %22260 = vst [vmem:[#allocation167_spill] sm:$0xff] %v16590_v50  ;;  %22261 = vst [vmem:[#allocation168_spill] sm:$0xff] %v16593_v10  ;;  %v16596_v24 = vrot.slane %v2353_v55, %v15584_v14  ;;  %v16599_v30 = vrot.slane %v2354_v53, %v15584_v14  ;;  %v16643_v55 = vpack.c.bf16 %v1242_v39, %v16402_v44 }
 0x232   : > { %v2065_v38 = vcombine.low %v2009_v59, %v2025_v8  ;;  %22268 = vst [vmem:[#allocation174_spill] sm:$0xff] %v16638_v49  ;;  %v2081_v1 = vcombine.low %v16542_v11, %v2032_v61  ;;  %v2082_v9 = vcombine.high %v16542_v11, %v2032_v61  ;;  %v22272_v32 = vcombine.low %v16268_v29, %v16357_v16 }
 0x233   : > { %22262 = vst [vmem:[#allocation169_spill] sm:$0xff] %v16596_v24  ;;  %22263 = vst [vmem:[#allocation170_spill] sm:$0xff] %v16599_v30  ;;  %v16601_v54 = vpop.f32.mrb[64].mxu0  ;;  %v22274_v44 = vcombine.high %v16268_v29, %v16357_v16  ;;  %v16671_v21 = vrot.slane %v2834_v0, %v15358_v27  ;;  %v22280_v29 = vcombine.low %v15671_v17, %v22279_v47  ;;  %v16719_v0 = vld [vmem:[%s21503_s6] ss:$0 sm:$0xff] }
 0x234   : > { %22264 = vst [vmem:[#allocation171_spill] sm:$0xff] %v16601_v54  ;;  %v16611_v40 = vpop.f32.mrb[65].mxu0  ;;  %22269 = vst [vmem:[#allocation175_spill] sm:$0xff] %v16643_v55  ;;  %v16659_v57 = vrot.slane %v22272_v32, %v15358_v27  ;;  %v16674_v11 = vrot.slane %v2081_v1, %v15584_v14  ;;  %v22278_v1 = vcombine.low %v15413_v62, %v15407_v58  ;;  %v22282_v55 = vld [vmem:[#allocation70_spill] sm:$0xff] }
 0x235   : > { %22265 = vst [vmem:[#allocation172_spill] sm:$0xff] %v16611_v40  ;;  %v2066_v40 = vcombine.high %v2009_v59, %v2025_v8  ;;  %v16648_v8 = vrot.slane %v2065_v38, %v15584_v14  ;;  %v16665_v39 = vrot.slane %v22274_v44, %v15358_v27  ;;  %v16668_v38 = vrot.slane %v2833_v46, %v15358_v27  ;;  %v22281_v46 = vld [vmem:[#allocation73_spill] sm:$0xff] }
 0x236   : > { %22273 = vst [vmem:[#allocation178_spill] sm:$0xff] %v16659_v57  ;;  %22276 = vst [vmem:[#allocation180_spill] sm:$0xff] %v16674_v11  ;;  %v2101_v44 = vcombine.low %v16410_v34, %v16674_v11  ;;  %v22283_v11 = vcombine.low %v22281_v46, %v22282_v55  ;;  %v22285_v34 = vld [vmem:[#allocation111_spill] sm:$0xff]  ;;  %v16739_v52 = vadd.f32 %v16719_v0, %v16420_v4 }
 0x237   : > { %v16632_v53 = vpop.f32.mrb[66].mxu0  ;;  %22270 = vst [vmem:[#allocation176_spill] sm:$0xff] %v16648_v8  ;;  %v16651_v59 = vrot.slane %v2066_v40, %v15584_v14  ;;  %22275 = vst [vmem:[#allocation179_spill] sm:$0xff] %v16668_v38  ;;  %v16677_v40 = vrot.slane %v2082_v9, %v15584_v14  ;;  %v2897_v61 = vcombine.low %v16665_v39, %v16671_v21  ;;  %v22291_v38 = vld [vmem:[#allocation91_spill] sm:$0xff] }
 0x238   : > { %22266 = vst [vmem:[#allocation173_spill] sm:$0xff] %v16632_v53  ;;  %v16645_v31 = vpop.f32.mrb[67].mxu0  ;;  %v2898_v9 = vcombine.high %v16665_v39, %v16671_v21  ;;  %v2449_v53 = vrot.slane %v22278_v1, %v15584_v14  ;;  %v16714_v43 = vpack.c.bf16 %v2101_v44, %v22280_v29  ;;  %v2481_v39 = vrot.slane %v22283_v11, %v15584_v14  ;;  %v22284_v21 = vld [vmem:[#allocation108_spill] sm:$0xff] }
 0x239   : > { %22271 = vst [vmem:[#allocation177_spill] sm:$0xff] %v16651_v59  ;;  %22277 = vst [vmem:[#allocation181_spill] sm:$0xff] %v16677_v40  ;;  %v22286_v59 = vcombine.low %v22284_v21, %v22285_v34  ;;  %v22287_v29 = vcombine.low %v16447_v20, %v16458_v18  ;;  %v22290_v11 = vld [vmem:[#allocation72_spill] sm:$0xff]  ;;  %v16749_v30 = vadd.f32 %v16719_v0, %v16245_v3 }
 0x23a   : > { %v2505_v45 = vcombine.low %v2449_v53, %v2481_v39  ;;  %22289 = vst [vmem:[#allocation70_spill] sm:$0xff] %v16739_v52  ;;  %v22292_v57 = vcombine.low %v22290_v11, %v22291_v38  ;;  %v22299_v4 = vcombine.low %v16251_v60, %v16274_v26  ;;  %v16764_v37 = vrot.slane %v2897_v61, %v15584_v14 }
 0x23b   : > { %v16683_v16 = vpop.f32.mrb[68].mxu0  ;;  %v2585_v1 = vrot.slane %v22286_v59, %v15584_v14  ;;  %v2617_v44 = vrot.slane %v22287_v29, %v15584_v14  ;;  %22294 = vst [vmem:[#allocation111_spill] sm:$0xff] %v16749_v30  ;;  %v22295_v29 = vld [vmem:[#allocation39_spill] sm:$0xff]  ;;  %v16780_v61 = vadd.f32 %v16444_v23, %v16719_v0  ;;  %v22309_v23 = vmov 0.0  }
 0x23c   : > { %v16693_v32 = vpop.f32.mrb[69].mxu0  ;;  %v16745_v59 = vrot.slane %v22292_v57, %v15584_v14  ;;  %v16761_v13 = vrot.slane %v22299_v4, %v15584_v14  ;;  %22301 = vst [vmem:[#allocation39_spill] sm:$0xff] %v16764_v37  ;;  %v16768_v57 = vadd.f32 %v16284_v36, %v16719_v0 }
 0x23d   : > { %v2641_v8 = vcombine.low %v2585_v1, %v2617_v44  ;;  %22304 = vst [vmem:[#allocation183_spill] sm:$0xff] %v16780_v61 }
 0x23e   : > { %22293 = vst [vmem:[#allocation108_spill] sm:$0xff] %v16745_v59  ;;  %22300 = vst [vmem:[#allocation91_spill] sm:$0xff] %v16761_v13  ;;  %v2917_v4 = vcombine.low %v16761_v13, %v16764_v37  ;;  %v22310_v37 = vld [vmem:[#allocation153_spill] sm:$0xff] }
 0x23f   : > { %v16733_v47 = vpop.f32.mrb[70].mxu0  ;;  %22302 = vst [vmem:[#allocation41_spill] sm:$0xff] %v16768_v57  ;;  %v4033_v3 = vpack.c.bf16 %v2641_v8, %v2505_v45  ;;  %v2506_v45 = vcombine.high %v2449_v53, %v2481_v39 }
 0x240   : > { %v16735_v17 = vpop.f32.mrb[71].mxu0 }
 0x241   : > { %22288 = vst [vmem:[#allocation73_spill] sm:$0xff] %v16735_v17  ;;  %v22297_v17 = vcombine.low %v22295_v29, %v22296_v42  ;;  %v4062_v36 = vsel %vm4057_vm2, %v4033_v3, 0  ;;  %v16798_v3 = vadd.f32 %v16719_v0, %v22310_v37 }
 0x242   : > { %13626 = vmatpush3.bf16.xpose.msra.mxu1 %v4062_v36 }
 0x243   : > { %v16755_v24 = vrot.slane %v22297_v17, %v15584_v14  ;;  %v16770_v51 = vpop.f32.mrb[72].mxu0  ;;  %v3193_v17 = vcombine.low %v16749_v30, %v16739_v52  ;;  %v3209_v30 = vcombine.low %v16768_v57, %v16780_v61  ;;  %v2642_v52 = vcombine.high %v2585_v1, %v2617_v44  ;;  %13631 = vmatprep.subr.bf16.mxu1 %v22309_v23  ;;  %v22351_v61 = vld [vmem:[#allocation47_spill] sm:$0xff] }
 0x244   : > { %22303 = vst [vmem:[#allocation182_spill] sm:$0xff] %v16770_v51  ;;  %v16782_v10 = vpop.f32.mrb[73].mxu0  ;;  %v22305_v51 = vld [vmem:[#allocation130_spill] sm:$0xff]  ;;  %22311 = vst [vmem:[#allocation153_spill] sm:$0xff] %v16798_v3 }
 0x245   : > { %22298 = vst [vmem:[#allocation72_spill] sm:$0xff] %v16755_v24  ;;  %v2781_v54 = vcombine.low %v16755_v24, %v16745_v59  ;;  %v16789_v24 = vadd.f32 %v16719_v0, %v22305_v51  ;;  %v22307_v59 = vld [vmem:[#allocation136_spill] sm:$0xff]  ;;  %v16807_v39 = vrot.slane %v3193_v17, %v15358_v27  ;;  %v16811_v1 = vrot.slane %v3209_v30, %v15358_v27 }
 0x246   : > { %v16793_v13 = vadd.f32 %v22307_v59, %v16719_v0  ;;  %v4034_v44 = vpack.c.bf16 %v2642_v52, %v2506_v45  ;;  %v22315_v45 = vcombine.high %v22290_v11, %v22291_v38  ;;  %v22321_v38 = vcombine.high %v22295_v29, %v22296_v42 }
 0x247   : > { %v4045_v8 = vpack.c.bf16 %v2917_v4, %v2781_v54  ;;  %22306 = vst [vmem:[#allocation130_spill] sm:$0xff] %v16789_v24  ;;  %v16802_v54 = vadd.f32 %v16477_v6, %v16719_v0  ;;  %v16804_v53 = vpop.f32.mrb[74].mxu0  ;;  %22313 = vst [vmem:[#allocation185_spill] sm:$0xff] %v16807_v39  ;;  %v3737_v37 = vcombine.low %v16789_v24, %v16798_v3 }
 0x248   : > { %22308 = vst [vmem:[#allocation136_spill] sm:$0xff] %v16793_v13  ;;  %22314 = vst [vmem:[#allocation186_spill] sm:$0xff] %v16811_v1  ;;  %v16813_v59 = vpop.f32.mrb[75].mxu0  ;;  %v3738_v6 = vcombine.high %v16789_v24, %v16798_v3  ;;  %v4109_v36 = vsel %vm4057_vm2, %v4034_v44, 0  ;;  %v16855_v11 = vrot.slane %v22321_v38, %v15584_v14  ;;  %v22329_v29 = vcombine.high %v15413_v62, %v15407_v58 }
 0x249   : > { %22312 = vst [vmem:[#allocation184_spill] sm:$0xff] %v16802_v54  ;;  %v4626_v51 = vsel %vm4057_vm2, %v4045_v8, 0  ;;  %v3753_v4 = vcombine.low %v16793_v13, %v16802_v54  ;;  %v3754_v52 = vcombine.high %v16793_v13, %v16802_v54  ;;  %v16833_v8 = vrot.slane %v22315_v45, %v15584_v14  ;;  %13628 = vmatmul.mubr.msk.bf16.vlgmr.msra.gmra.mrb[48].mxu1 %vm4057_vm2, %v16532_v2 }
 0x24a   : > { %13698 = vmatpush3.bf16.xpose.msra.mxu0 %v4626_v51  ;;  %v16840_v17 = vrot.slane %v3737_v37, %v15358_v27  ;;  %v16843_v54 = vrot.slane %v3738_v6, %v15358_v27  ;;  %13632 = vmatpush3.bf16.xpose.msra.mxu1 %v4109_v36  ;;  %22322 = vst [vmem:[#allocation192_spill] sm:$0xff] %v16855_v11 }
 0x24b   : > { %13709 = vmatprep.subr.bf16.mxu0 %v22309_v23  ;;  %v16826_v30 = vpop.f32.mrb[76].mxu0  ;;  %22316 = vst [vmem:[#allocation187_spill] sm:$0xff] %v16833_v8  ;;  %v16846_v3 = vrot.slane %v3753_v4, %v15358_v27  ;;  %v16849_v44 = vrot.slane %v3754_v52, %v15358_v27  ;;  %v22323_v2 = vcombine.high %v16251_v60, %v16274_v26  ;;  %v22338_v52 = vld [vmem:[#allocation34_spill] sm:$0xff] }
 0x24c   : > { %v16835_v51 = vpop.f32.mrb[77].mxu0  ;;  %22317 = vst [vmem:[#allocation188_spill] sm:$0xff] %v16840_v17  ;;  %22318 = vst [vmem:[#allocation189_spill] sm:$0xff] %v16843_v54  ;;  %v16864_v6 = vrot.slane %v2898_v9, %v15584_v14  ;;  %13633 = vmatprep.mubr.msk.bf16.mxu1 %vm14650_vm1, %v22309_v23  ;;  %v22327_v9 = vcombine.high %v15602_v15, %v15765_v33  ;;  %v22328_v36 = vcombine.high %v16290_v7, %v16480_v12 }
 0x24d   : > { %22319 = vst [vmem:[#allocation190_spill] sm:$0xff] %v16846_v3  ;;  %22320 = vst [vmem:[#allocation191_spill] sm:$0xff] %v16849_v44  ;;  %v16861_v37 = vrot.slane %v22323_v2, %v15584_v14  ;;  %v2783_v2 = vcombine.low %v16855_v11, %v16833_v8  ;;  %13637 = vmatprep.subr.bf16.mxu1 %v22309_v23  ;;  %v2456_v15 = vrot.slane %v22329_v29, %v15584_v14  ;;  %v22334_v29 = vld [vmem:[#allocation96_spill] sm:$0xff] }
 0x24e   : > { %22325 = vst [vmem:[#allocation194_spill] sm:$0xff] %v16864_v6  ;;  %v4010_v45 = vpack.c.bf16 %v22328_v36, %v22327_v9  ;;  %v22330_v33 = vcombine.high %v22281_v46, %v22282_v55  ;;  %v22332_v62 = vcombine.high %v16447_v20, %v16458_v18  ;;  %v22333_v46 = vld [vmem:[#allocation60_spill] sm:$0xff] }
 0x24f   : > { %22324 = vst [vmem:[#allocation193_spill] sm:$0xff] %v16861_v37  ;;  %v16876_v60 = vpop.f32.mrb[78].mxu0  ;;  %v2919_v26 = vcombine.low %v16861_v37, %v16864_v6  ;;  %v22355_v37 = vld [vmem:[#allocation50_spill] sm:$0xff] }
 0x250   : > { %22326 = vst [vmem:[#allocation195_spill] sm:$0xff] %v16876_v60  ;;  %v16888_v38 = vpop.f32.mrb[79].mxu0  ;;  %v2488_v7 = vrot.slane %v22330_v33, %v15584_v14  ;;  %v2624_v55 = vrot.slane %v22332_v62, %v15584_v14  ;;  %v22346_v62 = vld [vmem:[#allocation121_spill] sm:$0xff]  ;;  %v22352_v60 = vld [vmem:[#allocation75_spill] sm:$0xff]  ;;  %v22356_v6 = vld [vmem:[#allocation86_spill] sm:$0xff] }
 0x251   : > { %13700 = vmatmul.mubr.msk.bf16.vlgmr.msra.gmra.mrb[96].mxu0 %vm4057_vm2, %v16714_v43  ;;  %v4047_v43 = vpack.c.bf16 %v2919_v26, %v2783_v2  ;;  %13634 = vmatmul.mubr.msk.bf16.vlgmr.msra.gmra.mrb[52].mxu1 %vm4057_vm2, %v4010_v45  ;;  %v22331_v26 = vcombine.high %v22284_v21, %v22285_v34  ;;  %v22335_v2 = vcombine.low %v22333_v46, %v22334_v29  ;;  %v22337_v45 = vld [vmem:[#allocation32_spill] sm:$0xff]  ;;  %v22342_v21 = vld [vmem:[#allocation83_spill] sm:$0xff] }
 0x252   : > { %13711 = vmatprep.mubr.msk.bf16.mxu0 %vm14650_vm1, %v22309_v23  ;;  %v2507_v42 = vcombine.low %v2456_v15, %v2488_v7  ;;  %v22339_v4 = vcombine.low %v22337_v45, %v22338_v52  ;;  %v22341_v34 = vld [vmem:[#allocation80_spill] sm:$0xff]  ;;  %13639 = vmatprep.mubr.msk.bf16.mxu1 %vm14650_vm1, %v22309_v23  ;;  %v22353_v44 = vcombine.low %v22351_v61, %v22352_v60 }
 0x253   : > { %v16903_v12 = vpop.f32.mrb[80].mxu0  ;;  %v4720_v36 = vsel %vm4057_vm2, %v4047_v43, 0  ;;  %v2592_v58 = vrot.slane %v22331_v26, %v15584_v14  ;;  %v22336_v43 = vcombine.low %v16638_v49, %v16677_v40  ;;  %v22343_v26 = vcombine.low %v22341_v34, %v22342_v21 }
 0x254   : > { %v16905_v9 = vpop.f32.mrb[81].mxu0  ;;  %13710 = vmatpush3.bf16.xpose.msra.mxu0 %v4720_v36  ;;  %v16927_v13 = vrot.slane %v22339_v4, %v15584_v14  ;;  %v22345_v36 = vld [vmem:[#allocation119_spill] sm:$0xff]  ;;  %v22349_v4 = vcombine.low %v16561_v19, %v16581_v35  ;;  %v2508_v11 = vcombine.high %v2456_v15, %v2488_v7  ;;  %v22357_v39 = vcombine.low %v22355_v37, %v22356_v6  ;;  %v22421_v37 = vld [vmem:[#allocation88_spill] sm:$0xff] }
 0x255   : > { %v4023_v33 = vpack.c.bf16 %v22336_v43, %v22335_v2  ;;  %v16933_v20 = vrot.slane %v22343_v26, %v15584_v14  ;;  %v2643_v18 = vcombine.low %v2592_v58, %v2624_v55  ;;  %13721 = vmatprep.subr.bf16.mxu0 %v22309_v23  ;;  %v22347_v24 = vcombine.low %v22345_v36, %v22346_v62 }
 0x256   : > { %22340 = vst [vmem:[#allocation32_spill] sm:$0xff] %v16927_v13  ;;  %v16946_v43 = vrot.slane %v22349_v4, %v15584_v14  ;;  %v2644_v8 = vcombine.high %v2592_v58, %v2624_v55  ;;  %v22360_v15 = vcombine.high %v22341_v34, %v22342_v21  ;;  %v22374_v34 = vcombine.high %v22351_v61, %v22352_v60 }
 0x257   : > { %22344 = vst [vmem:[#allocation34_spill] sm:$0xff] %v16933_v20  ;;  %v16940_v2 = vrot.slane %v22347_v24, %v15584_v14  ;;  %v16950_v26 = vpop.f32.mrb[82].mxu0  ;;  %v3049_v57 = vcombine.low %v16927_v13, %v16933_v20  ;;  %v22354_v24 = vcombine.low %v16296_v48, %v16483_v25  ;;  %v4035_v17 = vpack.c.bf16 %v2643_v18, %v2507_v42 }
 0x258   : > { %22350 = vst [vmem:[#allocation83_spill] sm:$0xff] %v16946_v43  ;;  %v16960_v3 = vpop.f32.mrb[83].mxu0  ;;  %v22358_v13 = vcombine.low %v16321_v56, %v16590_v50  ;;  %v4036_v49 = vpack.c.bf16 %v2644_v8, %v2508_v11  ;;  %v16981_v7 = vrot.slane %v22360_v15, %v15584_v14  ;;  %v22375_v21 = vcombine.high %v16296_v48, %v16483_v25  ;;  %v22383_v48 = vld [vmem:[#allocation156_spill] sm:$0xff]  ;;  %v22418_v50 = vld [vmem:[#allocation157_spill] sm:$0xff] }
 0x259   : > { %22348 = vst [vmem:[#allocation80_spill] sm:$0xff] %v16940_v2  ;;  %v4011_v54 = vpack.c.bf16 %v22354_v24, %v22353_v44  ;;  %v3185_v4 = vcombine.low %v16940_v2, %v16946_v43  ;;  %v4156_v1 = vsel %vm4057_vm2, %v4035_v17, 0  ;;  %v16973_v44 = vadd.f32 %v16719_v0, %v16645_v31  ;;  %v22366_v17 = vld [vmem:[#allocation25_spill] sm:$0xff]  ;;  %v22377_v24 = vld [vmem:[#allocation74_spill] sm:$0xff] }
 0x25a   : > { %v4025_v20 = vpack.c.bf16 %v22358_v13, %v22357_v39  ;;  %13638 = vmatpush3.bf16.xpose.msra.mxu1 %v4156_v1  ;;  %22361 = vst [vmem:[#allocation121_spill] sm:$0xff] %v16981_v7  ;;  %v16987_v13 = vadd.f32 %v16719_v0, %v16536_v28  ;;  %v22365_v1 = vld [vmem:[#allocation26_spill] sm:$0xff]  ;;  %v17006_v28 = vadd.f32 %v16568_v5, %v16719_v0  ;;  %v22404_v2 = vld [vmem:[#allocation85_spill] sm:$0xff] }
 0x25b   : > { %v4049_v40 = vpack.c.bf16 %v3185_v4, %v3049_v57  ;;  %22359 = vst [vmem:[#allocation119_spill] sm:$0xff] %v16973_v44  ;;  %v16975_v42 = vpop.f32.mrb[84].mxu0  ;;  %13712 = vmatmul.mubr.msk.bf16.vlgmr.msra.gmra.mrb[100].mxu0 %vm4057_vm2, %v4023_v33  ;;  %13643 = vmatprep.subr.bf16.mxu1 %v22309_v23  ;;  %v22363_v57 = vcombine.high %v22337_v45, %v22338_v52  ;;  %v22378_v4 = vld [vmem:[#allocation71_spill] sm:$0xff] }
 0x25c   : > { %v16983_v58 = vpop.f32.mrb[85].mxu0  ;;  %22362 = vst [vmem:[#allocation47_spill] sm:$0xff] %v16987_v13  ;;  %v22367_v8 = vcombine.low %v22365_v1, %v22366_v17  ;;  %22368 = vst [vmem:[#allocation26_spill] sm:$0xff] %v17006_v28  ;;  %13723 = vmatprep.mubr.msk.bf16.mxu0 %vm14650_vm1, %v22309_v23  ;;  %v22370_v52 = vcombine.high %v22345_v36, %v22346_v62  ;;  %v3225_v5 = vcombine.low %v16987_v13, %v16973_v44  ;;  %v22392_v44 = vld [vmem:[#allocation171_spill] sm:$0xff] }
 0x25d   : > { %v4814_v31 = vsel %vm4057_vm2, %v4049_v40, 0  ;;  %v16996_v39 = vrot.slane %v22363_v57, %v15584_v14  ;;  %v17010_v40 = vadd.f32 %v16719_v0, %v16578_v63  ;;  %v22372_v63 = vcombine.high %v16561_v19, %v16581_v35  ;;  %v22380_v35 = vld [vmem:[#allocation109_spill] sm:$0xff] }
 0x25e   : > { %v17002_v11 = vrot.slane %v22367_v8, %v15584_v14  ;;  %13722 = vmatpush3.bf16.xpose.msra.mxu0 %v4814_v31  ;;  %v17018_v55 = vrot.slane %v22370_v52, %v15584_v14  ;;  %v4012_v18 = vpack.c.bf16 %v22375_v21, %v22374_v34  ;;  %v17041_v62 = vadd.f32 %v16683_v16, %v16719_v0  ;;  %v22381_v31 = vld [vmem:[#allocation113_spill] sm:$0xff]  ;;  %v22387_v34 = vld [vmem:[#allocation51_spill] sm:$0xff] }
 0x25f   : > { %22364 = vst [vmem:[#allocation75_spill] sm:$0xff] %v16996_v39  ;;  %22369 = vst [vmem:[#allocation25_spill] sm:$0xff] %v17010_v40  ;;  %13733 = vmatprep.subr.bf16.mxu0 %v22309_v23  ;;  %v3051_v33 = vcombine.low %v16996_v39, %v16981_v7  ;;  %v17029_v45 = vrot.slane %v22372_v63, %v15584_v14  ;;  %v17037_v36 = vpop.f32.mrb[86].mxu0  ;;  %v22379_v15 = vcombine.low %v22377_v24, %v22378_v4  ;;  %v22388_v21 = vld [vmem:[#allocation87_spill] sm:$0xff] }
 0x260   : > { %22371 = vst [vmem:[#allocation196_spill] sm:$0xff] %v17018_v55  ;;  %22376 = vst [vmem:[#allocation198_spill] sm:$0xff] %v17041_v62  ;;  %v22382_v61 = vcombine.low %v22380_v35, %v22381_v31  ;;  %v22384_v25 = vcombine.low %v16455_v41, %v22383_v48  ;;  %v17061_v16 = vpop.f32.mrb[87].mxu0  ;;  %v17067_v52 = vadd.f32 %v16719_v0, %v16693_v32 }
 0x261   : > { %22373 = vst [vmem:[#allocation197_spill] sm:$0xff] %v17029_v45  ;;  %v17047_v19 = vrot.slane %v22379_v15, %v15584_v14  ;;  %v3187_v8 = vcombine.low %v17018_v55, %v17029_v45  ;;  %v17071_v63 = vadd.f32 %v16733_v47, %v16719_v0  ;;  %v22389_v15 = vcombine.low %v22387_v34, %v22388_v21  ;;  %v22414_v34 = vld [vmem:[#allocation48_spill] sm:$0xff] }
 0x262   : > { %v17053_v60 = vrot.slane %v22382_v61, %v15584_v14  ;;  %v17059_v57 = vrot.slane %v22384_v25, %v15584_v14  ;;  %22385 = vst [vmem:[#allocation74_spill] sm:$0xff] %v17067_v52  ;;  %v22390_v61 = vld [vmem:[#allocation168_spill] sm:$0xff]  ;;  %v17081_v39 = vadd.f32 %v22392_v44, %v16719_v0  ;;  %v3241_v7 = vcombine.low %v17006_v28, %v17041_v62  ;;  %v22403_v62 = vld [vmem:[#allocation81_spill] sm:$0xff] }
 0x263   : > { %22386 = vst [vmem:[#allocation71_spill] sm:$0xff] %v17071_v63  ;;  %v22391_v25 = vcombine.low %v16346_v22, %v22390_v61  ;;  %v2509_v32 = vcombine.low %v17002_v11, %v17047_v19  ;;  %13640 = vmatmul.mubr.msk.bf16.vlgmr.msra.gmra.mrb[56].mxu1 %vm4057_vm2, %v4011_v54  ;;  %v4203_v55 = vsel %vm4057_vm2, %v4036_v49, 0  ;;  %v4051_v45 = vpack.c.bf16 %v3187_v8, %v3051_v33  ;;  %v22411_v22 = vld [vmem:[#allocation166_spill] sm:$0xff] }
 0x264   : > { %22393 = vst [vmem:[#allocation109_spill] sm:$0xff] %v17081_v39  ;;  %v2645_v47 = vcombine.low %v17053_v60, %v17059_v57  ;;  %v3770_v44 = vcombine.high %v17010_v40, %v17067_v52  ;;  %13644 = vmatpush3.bf16.xpose.msra.mxu1 %v4203_v55  ;;  %v17098_v28 = vrot.slane %v3225_v5, %v15358_v27 }
 0x265   : > { %v4027_v13 = vpack.c.bf16 %v22391_v25, %v22389_v15  ;;  %v3769_v15 = vcombine.low %v17010_v40, %v17067_v52  ;;  %v17095_v25 = vpop.f32.mrb[88].mxu0  ;;  %13645 = vmatprep.mubr.msk.bf16.mxu1 %vm14650_vm1, %v22309_v23  ;;  %v17103_v54 = vrot.slane %v3241_v7, %v15358_v27  ;;  %13724 = vmatmul.mubr.msk.bf16.vlgmr.msra.gmra.mrb[104].mxu0 %vm4057_vm2, %v4025_v20  ;;  %v4908_v8 = vsel %vm4057_vm2, %v4051_v45, 0 }
 0x266   : > { %22394 = vst [vmem:[#allocation113_spill] sm:$0xff] %v17098_v28  ;;  %v4037_v49 = vpack.c.bf16 %v2645_v47, %v2509_v32  ;;  %v17105_v33 = vpop.f32.mrb[89].mxu0  ;;  %13649 = vmatprep.subr.bf16.mxu1 %v22309_v23  ;;  %v3785_v55 = vcombine.low %v17081_v39, %v17071_v63  ;;  %13734 = vmatpush3.bf16.xpose.msra.mxu0 %v4908_v8  ;;  %v22398_v32 = vld [vmem:[#allocation33_spill] sm:$0xff]  ;;  %v22399_v47 = vld [vmem:[#allocation35_spill] sm:$0xff]  ;;  %v22406_v28 = vld [vmem:[#allocation120_spill] sm:$0xff] }
 0x267   : > { %22395 = vst [vmem:[#allocation156_spill] sm:$0xff] %v17103_v54  ;;  %v17115_v52 = vrot.slane %v3769_v15, %v15358_v27  ;;  %13735 = vmatprep.mubr.msk.bf16.mxu0 %vm14650_vm1, %v22309_v23  ;;  %v3786_v20 = vcombine.high %v17081_v39, %v17071_v63  ;;  %13745 = vmatprep.subr.bf16.mxu0 %v22309_v23  ;;  %v17125_v45 = vpop.f32.mrb[90].mxu0  ;;  %v22407_v54 = vld [vmem:[#allocation122_spill] sm:$0xff]  ;;  %v22415_v39 = vld [vmem:[#allocation76_spill] sm:$0xff] }
 0x268   : > { %v17122_v7 = vrot.slane %v3785_v55, %v15358_v27  ;;  %v22400_v8 = vcombine.low %v22398_v32, %v22399_v47  ;;  %v17133_v15 = vpop.f32.mrb[91].mxu0  ;;  %v17136_v40 = vrot.slane %v3770_v44, %v15358_v27  ;;  %v22405_v43 = vcombine.low %v22403_v62, %v22404_v2 }
 0x269   : > { %22396 = vst [vmem:[#allocation171_spill] sm:$0xff] %v17115_v52  ;;  %v17139_v63 = vrot.slane %v3786_v20, %v15358_v27  ;;  %v22408_v44 = vcombine.low %v22406_v28, %v22407_v54  ;;  %v22410_v20 = vld [vmem:[#allocation165_spill] sm:$0xff]  ;;  %v4250_v6 = vsel %vm4057_vm2, %v4037_v49, 0  ;;  %v2510_v49 = vcombine.high %v17002_v11, %v17047_v19 }
 0x26a   : > { %22397 = vst [vmem:[#allocation199_spill] sm:$0xff] %v17122_v7  ;;  %v17131_v5 = vrot.slane %v22400_v8, %v15584_v14  ;;  %22401 = vst [vmem:[#allocation33_spill] sm:$0xff] %v17136_v40  ;;  %v17149_v8 = vrot.slane %v22405_v43, %v15584_v14  ;;  %v22412_v21 = vcombine.low %v22410_v20, %v22411_v22  ;;  %v22417_v52 = vld [vmem:[#allocation129_spill] sm:$0xff] }
 0x26b   : > { %22402 = vst [vmem:[#allocation35_spill] sm:$0xff] %v17139_v63  ;;  %v17155_v61 = vrot.slane %v22408_v44, %v15584_v14  ;;  %v22416_v7 = vcombine.low %v22414_v34, %v22415_v39  ;;  %v22419_v56 = vcombine.low %v22417_v52, %v22418_v50  ;;  %13646 = vmatmul.mubr.msk.bf16.vlgmr.msra.gmra.mrb[60].mxu1 %vm4057_vm2, %v4012_v18  ;;  %v17175_v29 = vpop.f32.mrb[92].mxu0  ;;  %v22423_v63 = vld [vmem:[#allocation138_spill] sm:$0xff] }
 0x26c   : > { %v17161_v55 = vrot.slane %v22412_v21, %v15584_v14  ;;  %13650 = vmatpush3.bf16.xpose.msra.mxu1 %v4250_v6  ;;  %v3053_v21 = vcombine.low %v17131_v5, %v17149_v8  ;;  %13651 = vmatprep.mubr.msk.bf16.mxu1 %vm14650_vm1, %v22309_v23  ;;  %v2646_v6 = vcombine.high %v17053_v60, %v17059_v57 }
 0x26d   : > { %22409 = vst [vmem:[#allocation81_spill] sm:$0xff] %v17155_v61  ;;  %v4013_v43 = vpack.c.bf16 %v22419_v56, %v22416_v7  ;;  %v17181_v56 = vpop.f32.mrb[93].mxu0  ;;  %13736 = vmatmul.mubr.msk.bf16.vlgmr.msra.gmra.mrb[108].mxu0 %vm4057_vm2, %v4027_v13  ;;  %13655 = vmatprep.subr.bf16.mxu1 %v22309_v23  ;;  %v22420_v7 = vld [vmem:[#allocation53_spill] sm:$0xff]  ;;  %v22426_v19 = vcombine.high %v22398_v32, %v22399_v47 }
 0x26e   : > { %22413 = vst [vmem:[#allocation85_spill] sm:$0xff] %v17161_v55  ;;  %v3189_v46 = vcombine.low %v17155_v61, %v17161_v55  ;;  %13747 = vmatprep.mubr.msk.bf16.mxu0 %vm14650_vm1, %v22309_v23  ;;  %v22422_v44 = vcombine.low %v22420_v7, %v22421_v37  ;;  %v22424_v13 = vld [vmem:[#allocation169_spill] sm:$0xff]  ;;  %v4038_v11 = vpack.c.bf16 %v2646_v6, %v2510_v49 }
 0x26f   : > { %v22425_v40 = vcombine.low %v22423_v63, %v22424_v13  ;;  %v17199_v55 = vpop.f32.mrb[94].mxu0  ;;  %v17208_v60 = vrot.slane %v22426_v19, %v15584_v14  ;;  %v22427_v57 = vcombine.high %v22403_v62, %v22404_v2  ;;  %v22428_v32 = vcombine.high %v22406_v28, %v22407_v54 }
 0x270   : > { %v4053_v18 = vpack.c.bf16 %v3189_v46, %v3053_v21  ;;  %v17201_v46 = vpop.f32.mrb[95].mxu0  ;;  %v22429_v2 = vcombine.high %v22410_v20, %v22411_v22  ;;  %v22432_v28 = vcombine.high %v22365_v1, %v22366_v17  ;;  %v22433_v22 = vcombine.high %v22377_v24, %v22378_v4  ;;  %v22437_v17 = vld [vmem:[#allocation54_spill] sm:$0xff]  ;;  %v22438_v24 = vld [vmem:[#allocation89_spill] sm:$0xff] }
 0x271   : > { %v4029_v61 = vpack.c.bf16 %v22425_v40, %v22422_v44  ;;  %v17214_v37 = vrot.slane %v22427_v57, %v15584_v14  ;;  %v4297_v40 = vsel %vm4057_vm2, %v4038_v11, 0  ;;  %v17225_v47 = vrot.slane %v22428_v32, %v15584_v14  ;;  %v22441_v11 = vld [vmem:[#allocation170_spill] sm:$0xff]  ;;  %v22447_v32 = vld [vmem:[#allocation131_spill] sm:$0xff] }
 0x272   : > { %v5002_v21 = vsel %vm4057_vm2, %v4053_v18, 0  ;;  %v17231_v62 = vrot.slane %v22429_v2, %v15584_v14  ;;  %v22431_v18 = vcombine.high %v22417_v52, %v22418_v50  ;;  %v2472_v54 = vrot.slane %v22432_v28, %v15584_v14  ;;  %v22448_v2 = vld [vmem:[#allocation158_spill] sm:$0xff] }
 0x273   : > { %13746 = vmatpush3.bf16.xpose.msra.mxu0 %v5002_v21  ;;  %13652 = vmatmul.mubr.msk.bf16.vlgmr.msra.gmra.mrb[64].mxu1 %vm4057_vm2, %v4013_v43  ;;  %v3055_v44 = vcombine.low %v17208_v60, %v17214_v37  ;;  %v22430_v43 = vcombine.high %v22414_v34, %v22415_v39  ;;  %v2504_v20 = vrot.slane %v22433_v22, %v15584_v14  ;;  %v22440_v21 = vld [vmem:[#allocation141_spill] sm:$0xff] }
 0x274   : > { %13757 = vmatprep.subr.bf16.mxu0 %v22309_v23  ;;  %13656 = vmatpush3.bf16.xpose.msra.mxu1 %v4297_v40  ;;  %v22434_v39 = vcombine.high %v22380_v35, %v22381_v31  ;;  %v22435_v50 = vcombine.high %v16455_v41, %v22383_v48  ;;  %v17260_v6 = vadd.f32 %v16719_v0, %v16782_v10  ;;  %v22444_v48 = vld [vmem:[#allocation49_spill] sm:$0xff] }
 0x275   : > { %13657 = vmatprep.mubr.msk.bf16.mxu1 %vm14650_vm1, %v22309_v23  ;;  %v4014_v49 = vpack.c.bf16 %v22431_v18, %v22430_v43  ;;  %13661 = vmatprep.subr.bf16.mxu1 %v22309_v23  ;;  %v3191_v1 = vcombine.low %v17225_v47, %v17231_v62  ;;  %v22439_v4 = vcombine.low %v22437_v17, %v22438_v24  ;;  %v22445_v40 = vld [vmem:[#allocation77_spill] sm:$0xff] }
 0x276   : > { %v2608_v34 = vrot.slane %v22434_v39, %v15584_v14  ;;  %v2640_v52 = vrot.slane %v22435_v50, %v15584_v14  ;;  %22436 = vst [vmem:[#allocation120_spill] sm:$0xff] %v17260_v6  ;;  %v22442_v19 = vcombine.low %v22440_v21, %v22441_v11  ;;  %v2511_v31 = vcombine.low %v2472_v54, %v2504_v20 }
 0x277   : > { %v17272_v41 = vadd.f32 %v16719_v0, %v16888_v38  ;;  %v22446_v10 = vcombine.low %v22444_v48, %v22445_v40  ;;  %v22449_v43 = vcombine.low %v22447_v32, %v22448_v2  ;;  %v17282_v28 = vadd.f32 %v16804_v53, %v16719_v0 }
 0x278   : > { %v4031_v35 = vpack.c.bf16 %v22442_v19, %v22439_v4  ;;  %v2647_v57 = vcombine.low %v2608_v34, %v2640_v52  ;;  %v4055_v22 = vpack.c.bf16 %v3191_v1, %v3055_v44  ;;  %v17286_v39 = vadd.f32 %v16903_v12, %v16719_v0 }
 0x279   : > { %22443 = vst [vmem:[#allocation122_spill] sm:$0xff] %v17272_v41  ;;  %v4015_v18 = vpack.c.bf16 %v22449_v43, %v22446_v10  ;;  %v3329_v50 = vcombine.low %v17260_v6, %v17272_v41  ;;  %v3330_v4 = vcombine.high %v17260_v6, %v17272_v41  ;;  %v2512_v19 = vcombine.high %v2472_v54, %v2504_v20  ;;  %v22452_v20 = vld [vmem:[#allocation11_spill] sm:$0xff]  ;;  %v22483_v6 = vld [vmem:[#allocation142_spill] sm:$0xff] }
 0x27a   : > { %22450 = vst [vmem:[#allocation165_spill] sm:$0xff] %v17286_v39  ;;  %13748 = vmatmul.mubr.msk.bf16.vlgmr.msra.gmra.mrb[112].mxu0 %vm4057_vm2, %v4029_v61  ;;  %v4039_v38 = vpack.c.bf16 %v2647_v57, %v2511_v31  ;;  %v17295_v10 = vadd.f32 %v16719_v0, %v16813_v59  ;;  %v5096_v53 = vsel %vm4057_vm2, %v4055_v22, 0  ;;  %v3345_v12 = vcombine.low %v17282_v28, %v17286_v39 }
 0x27b   : > { %13759 = vmatprep.mubr.msk.bf16.mxu0 %vm14650_vm1, %v22309_v23  ;;  %13758 = vmatpush3.bf16.xpose.msra.mxu0 %v5096_v53  ;;  %v17305_v44 = vrot.slane %v3329_v50, %v15358_v27  ;;  %v17308_v54 = vrot.slane %v3330_v4, %v15358_v27  ;;  %v3346_v59 = vcombine.high %v17282_v28, %v17286_v39 }
 0x27c   : > { %22451 = vst [vmem:[#allocation166_spill] sm:$0xff] %v17295_v10  ;;  %13658 = vmatmul.mubr.msk.bf16.vlgmr.msra.gmra.mrb[68].mxu1 %vm4057_vm2, %v4014_v49  ;;  %v4344_v61 = vsel %vm4057_vm2, %v4039_v38, 0  ;;  %14217 = vmatprep.subr.msk.bf16.mxu0 %vm4057_vm2, %v22452_v20  ;;  %v17315_v1 = vrot.slane %v3345_v12, %v15358_v27  ;;  %v2648_v31 = vcombine.high %v2608_v34, %v2640_v52 }
 0x27d   : > { %13662 = vmatpush3.bf16.xpose.msra.mxu1 %v4344_v61  ;;  %v17319_v49 = vadd.f32 %v16719_v0, %v16905_v9  ;;  %13663 = vmatprep.mubr.msk.bf16.mxu1 %vm14650_vm1, %v22309_v23  ;;  %v17325_v57 = vrot.slane %v3346_v59, %v15358_v27  ;;  %v17329_v43 = vadd.f32 %v16950_v26, %v16719_v0  ;;  %v5257_v61 = vsel %vm4057_vm2, %v22452_v20, 0 }
 0x27e   : > { %13667 = vmatprep.subr.bf16.mxu1 %v22309_v23  ;;  %v17333_v22 = vadd.f32 %v16719_v0, %v16960_v3  ;;  %v4040_v52 = vpack.c.bf16 %v2648_v31, %v2512_v19  ;;  %v17343_v50 = vadd.f32 %v16826_v30, %v16719_v0  ;;  %v17353_v53 = vadd.f32 %v16719_v0, %v16835_v51  ;;  %v22457_v19 = vld [vmem:[#allocation22_spill] sm:$0xff]  ;;  %v22458_v3 = vld [vmem:[#allocation9_spill] sm:$0xff] }
 0x27f   : > { %22453 = vst [vmem:[#allocation48_spill] sm:$0xff] %v17319_v49  ;;  %22454 = vst [vmem:[#allocation76_spill] sm:$0xff] %v17329_v43  ;;  %v3873_v38 = vcombine.low %v17295_v10, %v17319_v49  ;;  %v3874_v4 = vcombine.high %v17295_v10, %v17319_v49  ;;  %v5219_v12 = vpack.c.bf16 %v22457_v19, %v22457_v19  ;;  %v22459_v19 = vld [vmem:[#allocation10_spill] sm:$0xff]  ;;  %v22479_v49 = vld [vmem:[#allocation20_spill] sm:$0xff] }
 0x280   : > { %22455 = vst [vmem:[#allocation129_spill] sm:$0xff] %v17333_v22  ;;  %22456 = vst [vmem:[#allocation157_spill] sm:$0xff] %v17343_v50  ;;  %v3889_v30 = vcombine.low %v17343_v50, %v17329_v43  ;;  %v3890_v59 = vcombine.high %v17343_v50, %v17329_v43  ;;  %v22460_v26 = vpack.c.bf16 %v22458_v3, %v22459_v19  ;;  %v4391_v3 = vsel %vm4057_vm2, %v4040_v52, 0  ;;  %v22476_v52 = vld [vmem:[#allocation178_spill] sm:$0xff]  ;;  %v22477_v43 = vld [vmem:[#allocation179_spill] sm:$0xff] }
 0x281   : > { %v22463_v34 = vcombine.high %v22444_v48, %v22445_v40  ;;  %v22464_v31 = vcombine.high %v22447_v32, %v22448_v2  ;;  %v22467_v32 = vld [vmem:[#allocation68_spill] sm:$0xff]  ;;  %v22468_v2 = vld [vmem:[#allocation90_spill] sm:$0xff]  ;;  %v22473_v40 = vld [vmem:[#allocation123_spill] sm:$0xff]  ;;  %v22478_v39 = vcombine.low %v22476_v52, %v22477_v43  ;;  %v5187_v41 = vpack.c.bf16 %v22479_v49, %v22479_v49 }
 0x282   : > { %13760 = vmatmul.mubr.msk.bf16.vlgmr.msra.gmra.mrb[116].mxu0 %vm4057_vm2, %v4031_v35  ;;  %v17373_v35 = vrot.slane %v3873_v38, %v15358_v27  ;;  %v17376_v20 = vrot.slane %v3889_v30, %v15358_v27  ;;  %v17391_v38 = vrot.slane %v3890_v59, %v15358_v27  ;;  %v22470_v30 = vld [vmem:[#allocation36_spill] sm:$0xff]  ;;  %v22474_v48 = vld [vmem:[#allocation127_spill] sm:$0xff]  ;;  %v22481_v10 = vld [vmem:[#allocation93_spill] sm:$0xff] }
 0x283   : > { %13770 = vmatpush3.bf16.xpose.msra.mxu0 %v5257_v61  ;;  %13773 = vmatprep.mubr.msk.bf16.mxu0 %vm4057_vm2, %v22460_v26  ;;  %v4016_v9 = vpack.c.bf16 %v22464_v31, %v22463_v34  ;;  %v17388_v26 = vrot.slane %v3874_v4, %v15358_v27  ;;  %v22471_v61 = vld [vmem:[#allocation37_spill] sm:$0xff]  ;;  %v2889_v4 = vrot.slane %v22478_v39, %v15584_v14  ;;  %v22480_v50 = vld [vmem:[#allocation56_spill] sm:$0xff] }
 0x284   : > { %22461 = vst [vmem:[#allocation53_spill] sm:$0xff] %v17373_v35  ;;  %22462 = vst [vmem:[#allocation138_spill] sm:$0xff] %v17376_v20  ;;  %14218 = vmatprep.subr.msk.bf16.mxu0 %vm4057_vm2, %v5219_v12  ;;  %13664 = vmatmul.mubr.msk.bf16.vlgmr.msra.gmra.mrb[72].mxu1 %vm4057_vm2, %v4015_v18  ;;  %v22469_v18 = vcombine.low %v22467_v32, %v22468_v2  ;;  %v22472_v59 = vcombine.low %v22470_v30, %v22471_v61  ;;  %v22486_v35 = vld [vmem:[#allocation19_spill] sm:$0xff] }
 0x285   : > { %22465 = vst [vmem:[#allocation169_spill] sm:$0xff] %v17388_v26  ;;  %22466 = vst [vmem:[#allocation54_spill] sm:$0xff] %v17391_v38  ;;  %13668 = vmatpush3.bf16.xpose.msra.mxu1 %v4391_v3  ;;  %13669 = vmatprep.mubr.msk.bf16.mxu1 %vm14650_vm1, %v22309_v23  ;;  %v5260_v3 = vsel %vm4057_vm2, %v5219_v12, 0  ;;  %v22484_v38 = vld [vmem:[#allocation176_spill] sm:$0xff]  ;;  %v17434_v39 = vadd.f32 %v16975_v42, %v16719_v0  ;;  %v22487_v42 = vcombine.high %v22480_v50, %v22481_v10 }
 0x286   : > { %v2753_v34 = vrot.slane %v22469_v18, %v15584_v14  ;;  %13673 = vmatprep.subr.bf16.mxu1 %v22309_v23  ;;  %v2721_v31 = vrot.slane %v22472_v59, %v15584_v14  ;;  %v22475_v18 = vcombine.low %v22473_v40, %v22474_v48  ;;  %v22482_v59 = vcombine.low %v22480_v50, %v22481_v10 }
 0x287   : > { %v22485_v12 = vcombine.low %v22483_v6, %v22484_v38 }
 0x288   : > { %v2777_v19 = vcombine.low %v2721_v31, %v2753_v34  ;;  %v2857_v51 = vrot.slane %v22475_v18, %v15584_v14  ;;  %v2778_v20 = vcombine.high %v2721_v31, %v2753_v34  ;;  %v17444_v34 = vadd.f32 %v17125_v45, %v16719_v0 }
 0x289   : > { %v4017_v26 = vpack.c.bf16 %v22485_v12, %v22482_v59  ;;  %v17460_v31 = vadd.f32 %v17037_v36, %v16719_v0  ;;  %v17464_v45 = vadd.f32 %v17175_v29, %v16719_v0  ;;  %v17483_v12 = vadd.f32 %v16719_v0, %v17061_v16 }
 0x28a   : > { %v2913_v18 = vcombine.low %v2857_v51, %v2889_v4  ;;  %v2914_v49 = vcombine.high %v2857_v51, %v2889_v4  ;;  %v22488_v51 = vcombine.high %v22483_v6, %v22484_v38  ;;  %v3634_v10 = vcombine.high %v17434_v39, %v17444_v34  ;;  %v22490_v38 = vld [vmem:[#allocation24_spill] sm:$0xff] }
 0x28b   : > { %13772 = vmatpush3.bf16.xpose.msra.mxu0 %v5260_v3  ;;  %v17438_v3 = vadd.f32 %v16719_v0, %v16983_v58  ;;  %22489 = vst [vmem:[#allocation89_spill] sm:$0xff] %v17464_v45  ;;  %v5223_v36 = vpack.c.bf16 %v22490_v38, %v22490_v38  ;;  %v3377_v29 = vcombine.low %v17460_v31, %v17464_v45  ;;  %22491 = vst [vmem:[#allocation141_spill] sm:$0xff] %v17483_v12 }
 0x28c   : > { %14221 = vmatprep.subr.msk.bf16.mxu0 %vm4057_vm2, %v22486_v35  ;;  %13670 = vmatmul.mubr.msk.bf16.vlgmr.msra.gmra.mrb[76].mxu1 %vm4057_vm2, %v4016_v9  ;;  %v17448_v9 = vadd.f32 %v16719_v0, %v17133_v15  ;;  %v17456_v4 = vpack.c.bf16 %v22488_v51, %v22487_v42  ;;  %v4041_v58 = vpack.c.bf16 %v2913_v18, %v2777_v19 }
 0x28d   : > { %13675 = vmatprep.mubr.msk.bf16.mxu1 %vm14650_vm1, %v22309_v23  ;;  %v4042_v59 = vpack.c.bf16 %v2914_v49, %v2778_v20  ;;  %v3633_v15 = vcombine.low %v17434_v39, %v17444_v34  ;;  %v3378_v19 = vcombine.high %v17460_v31, %v17464_v45  ;;  %v22492_v42 = vcombine.high %v22470_v30, %v22471_v61  ;;  %v22494_v30 = vld [vmem:[#allocation15_spill] sm:$0xff]  ;;  %v22495_v61 = vld [vmem:[#allocation17_spill] sm:$0xff] }
 0x28e   : > { %v3361_v6 = vcombine.low %v17438_v3, %v17448_v9  ;;  %v3362_v50 = vcombine.high %v17438_v3, %v17448_v9  ;;  %v4438_v20 = vsel %vm4057_vm2, %v4041_v58, 0  ;;  %v5377_v58 = vsel %vm4057_vm2, %v22486_v35, 0 }
 0x28f   : > { %13674 = vmatpush3.bf16.xpose.msra.mxu1 %v4438_v20  ;;  %v2728_v51 = vrot.slane %v22492_v42, %v15584_v14  ;;  %v17500_v16 = vrot.slane %v3377_v29, %v15358_v27  ;;  %v22497_v35 = vcombine.high %v22473_v40, %v22474_v48  ;;  %v22498_v29 = vcombine.high %v22476_v52, %v22477_v43  ;;  %v22503_v40 = vld [vmem:[#allocation57_spill] sm:$0xff]  ;;  %v22506_v42 = vld [vmem:[#allocation147_spill] sm:$0xff] }
 0x290   : > { %v17486_v18 = vrot.slane %v3361_v6, %v15358_v27  ;;  %v17489_v49 = vrot.slane %v3362_v50, %v15358_v27  ;;  %13679 = vmatprep.subr.bf16.mxu1 %v22309_v23  ;;  %v17503_v6 = vrot.slane %v3378_v19, %v15358_v27  ;;  %v22493_v50 = vcombine.high %v22467_v32, %v22468_v2 }
 0x291   : > { %v2864_v20 = vrot.slane %v22497_v35, %v15584_v14  ;;  %v2896_v19 = vrot.slane %v22498_v29, %v15584_v14  ;;  %v17523_v32 = vadd.f32 %v16719_v0, %v17181_v56  ;;  %v17550_v35 = vadd.f32 %v17199_v55, %v16719_v0 }
 0x292   : > { %13774 = vmatmul.mubr.msk.bf16.vlgmr.msra.gmra.mrb[120].mxu0 %vm4057_vm2, %v5187_v41  ;;  %v2760_v38 = vrot.slane %v22493_v50, %v15584_v14  ;;  %v22496_v41 = vpack.c.bf16 %v22494_v30, %v22495_v61  ;;  %v3425_v2 = vcombine.low %v17486_v18, %v17500_v16  ;;  %v17540_v50 = vadd.f32 %v17095_v25, %v16719_v0  ;;  %v22504_v25 = vld [vmem:[#allocation94_spill] sm:$0xff] }
 0x293   : > { %13786 = vmatpush3.bf16.xpose.msra.mxu0 %v5377_v58  ;;  %22499 = vst [vmem:[#allocation170_spill] sm:$0xff] %v17523_v32  ;;  %v2915_v52 = vcombine.low %v2864_v20, %v2896_v19  ;;  %v3905_v56 = vcombine.low %v17483_v12, %v17523_v32  ;;  %v3906_v58 = vcombine.high %v17483_v12, %v17523_v32  ;;  %v4485_v30 = vsel %vm4057_vm2, %v4042_v59, 0  ;;  %v22507_v59 = vld [vmem:[#allocation177_spill] sm:$0xff]  ;;  %v22535_v12 = vld [vmem:[#allocation167_spill] sm:$0xff] }
 0x294   : > { %13789 = vmatprep.mubr.msk.bf16.mxu0 %vm4057_vm2, %v22496_v41  ;;  %14222 = vmatprep.subr.msk.bf16.mxu0 %vm4057_vm2, %v5223_v36  ;;  %v2779_v43 = vcombine.low %v2728_v51, %v2760_v38  ;;  %22500 = vst [vmem:[#allocation49_spill] sm:$0xff] %v17540_v50  ;;  %v17545_v61 = vadd.f32 %v16719_v0, %v17105_v33  ;;  %22501 = vst [vmem:[#allocation77_spill] sm:$0xff] %v17550_v35 }
 0x295   : > { %v17554_v29 = vadd.f32 %v16719_v0, %v17201_v46  ;;  %v22505_v48 = vcombine.low %v22503_v40, %v22504_v25  ;;  %v22508_v32 = vcombine.low %v22506_v42, %v22507_v59  ;;  %v2780_v33 = vcombine.high %v2728_v51, %v2760_v38 }
 0x296   : > { %v4043_v41 = vpack.c.bf16 %v2915_v52, %v2779_v43  ;;  %13676 = vmatmul.mubr.msk.bf16.vlgmr.msra.gmra.mrb[80].mxu1 %vm4057_vm2, %v4017_v26  ;;  %v2916_v26 = vcombine.high %v2864_v20, %v2896_v19  ;;  %v22509_v55 = vcombine.high %v22503_v40, %v22504_v25  ;;  %v22510_v46 = vcombine.high %v22506_v42, %v22507_v59  ;;  %v22515_v25 = vld [vmem:[#allocation180_spill] sm:$0xff] }
 0x297   : > { %22502 = vst [vmem:[#allocation131_spill] sm:$0xff] %v17554_v29  ;;  %v4019_v45 = vpack.c.bf16 %v22508_v32, %v22505_v48  ;;  %13680 = vmatpush3.bf16.xpose.msra.mxu1 %v4485_v30  ;;  %13681 = vmatprep.mubr.msk.bf16.mxu1 %vm14650_vm1, %v22309_v23  ;;  %v5380_v52 = vsel %vm4057_vm2, %v5223_v36, 0  ;;  %v3921_v51 = vcombine.low %v17540_v50, %v17550_v35  ;;  %v22511_v36 = vld [vmem:[#allocation59_spill] sm:$0xff]  ;;  %v22514_v30 = vld [vmem:[#allocation148_spill] sm:$0xff] }
 0x298   : > { %v17570_v43 = vpack.c.bf16 %v22510_v46, %v22509_v55  ;;  %13685 = vmatprep.subr.bf16.mxu1 %v22309_v23  ;;  %v3922_v38 = vcombine.high %v17540_v50, %v17550_v35  ;;  %v3649_v20 = vcombine.low %v17545_v61, %v17554_v29  ;;  %v17581_v19 = vrot.slane %v3905_v56, %v15358_v27  ;;  %v22512_v48 = vld [vmem:[#allocation95_spill] sm:$0xff]  ;;  %v22534_v50 = vld [vmem:[#allocation132_spill] sm:$0xff] }
 0x299   : > { %v3650_v32 = vcombine.high %v17545_v61, %v17554_v29  ;;  %v4044_v42 = vpack.c.bf16 %v2916_v26, %v2780_v33  ;;  %v22513_v40 = vcombine.high %v22511_v36, %v22512_v48  ;;  %v22516_v59 = vcombine.high %v22514_v30, %v22515_v25  ;;  %v22517_v46 = vld [vmem:[#allocation43_spill] sm:$0xff]  ;;  %v22532_v29 = vld [vmem:[#allocation86_spill] sm:$0xff] }
 0x29a   : > { %v17599_v56 = vrot.slane %v3921_v51, %v15358_v27  ;;  %v17602_v35 = vrot.slane %v3922_v38, %v15358_v27  ;;  %v17605_v33 = vrot.slane %v3649_v20, %v15358_v27  ;;  %v17608_v26 = vrot.slane %v3633_v15, %v15358_v27  ;;  %v22520_v30 = vld [vmem:[#allocation23_spill] sm:$0xff]  ;;  %v22521_v20 = vld [vmem:[#allocation62_spill] sm:$0xff]  ;;  %v22526_v51 = vld [vmem:[#allocation181_spill] sm:$0xff] }
 0x29b   : > { %13788 = vmatpush3.bf16.xpose.msra.mxu0 %v5380_v52  ;;  %v17591_v55 = vpack.c.bf16 %v22516_v59, %v22513_v40  ;;  %v17596_v52 = vrot.slane %v3906_v58, %v15358_v27  ;;  %v17611_v36 = vrot.slane %v3634_v10, %v15358_v27  ;;  %v17614_v48 = vrot.slane %v3650_v32, %v15358_v27  ;;  %v22522_v40 = vld [vmem:[#allocation60_spill] sm:$0xff]  ;;  %v22525_v15 = vld [vmem:[#allocation174_spill] sm:$0xff] }
 0x29c   : > { %14225 = vmatprep.subr.msk.bf16.mxu0 %vm4057_vm2, %v22517_v46  ;;  %22519 = vst [vmem:[#allocation11_spill] sm:$0xff] %v17602_v35  ;;  %v5191_v25 = vpack.c.bf16 %v22520_v30, %v22520_v30  ;;  %v4532_v59 = vsel %vm4057_vm2, %v4043_v41, 0  ;;  %v5227_v38 = vpack.c.bf16 %v22521_v20, %v22521_v20  ;;  %v5497_v32 = vsel %vm4057_vm2, %v22517_v46, 0  ;;  %v22523_v10 = vld [vmem:[#allocation96_spill] sm:$0xff] }
 0x29d   : > { %22518 = vst [vmem:[#allocation158_spill] sm:$0xff] %v17596_v52  ;;  %v22524_v30 = vcombine.high %v22522_v40, %v22523_v10  ;;  %v22528_v41 = vld [vmem:[#allocation40_spill] sm:$0xff]  ;;  %v22536_v35 = vcombine.high %v22534_v50, %v22535_v12  ;;  %v17665_v10 = vrot.slane %v3425_v2, %v15584_v14  ;;  %v22540_v40 = vld [vmem:[#allocation137_spill] sm:$0xff]  ;;  %v3054_v12 = vcombine.high %v17131_v5, %v17149_v8 }
 0x29e   : > { %13682 = vmatmul.mubr.msk.bf16.vlgmr.msra.gmra.mrb[84].mxu1 %vm4057_vm2, %v17456_v4  ;;  %v22527_v4 = vcombine.high %v22525_v15, %v22526_v51  ;;  %v22537_v51 = vld [vmem:[#allocation51_spill] sm:$0xff]  ;;  %v22543_v50 = vld [vmem:[#allocation85_spill] sm:$0xff]  ;;  %v22545_v2 = vld [vmem:[#allocation88_spill] sm:$0xff]  ;;  %v3192_v5 = vcombine.high %v17225_v47, %v17231_v62  ;;  %v22549_v8 = vcombine.high %v22437_v17, %v22438_v24 }
 0x29f   : > { %13686 = vmatpush3.bf16.xpose.msra.mxu1 %v4532_v59  ;;  %13687 = vmatprep.mubr.msk.bf16.mxu1 %vm14650_vm1, %v22309_v23  ;;  %v22529_v59 = vld [vmem:[#allocation42_spill] sm:$0xff]  ;;  %v22538_v15 = vld [vmem:[#allocation87_spill] sm:$0xff] }
 0x2a0   : > { %v17650_v58 = vpack.c.bf16 %v22527_v4, %v22524_v30  ;;  %v22530_v20 = vpack.c.bf16 %v22528_v41, %v22529_v59  ;;  %13691 = vmatprep.subr.bf16.mxu1 %v22309_v23  ;;  %v22541_v30 = vld [vmem:[#allocation168_spill] sm:$0xff]  ;;  %v22546_v59 = vcombine.high %v22420_v7, %v22545_v2  ;;  %v22555_v24 = vld [vmem:[#allocation186_spill] sm:$0xff] }
 0x2a1   : > { %v22542_v4 = vcombine.high %v22540_v40, %v22541_v30  ;;  %v4579_v40 = vsel %vm4057_vm2, %v4044_v42, 0  ;;  %v22553_v30 = vld [vmem:[#allocation39_spill] sm:$0xff]  ;;  %v22558_v42 = vld [vmem:[#allocation72_spill] sm:$0xff] }
 0x2a2   : > { %13790 = vmatmul.mubr.msk.bf16.vlgmr.msra.gmra.mrb[124].mxu0 %vm4057_vm2, %v5191_v25  ;;  %v22531_v25 = vld [vmem:[#allocation50_spill] sm:$0xff] }
 0x2a3   : > { %13802 = vmatpush3.bf16.xpose.msra.mxu0 %v5497_v32  ;;  %13805 = vmatprep.mubr.msk.bf16.mxu0 %vm4057_vm2, %v22530_v20  ;;  %v22533_v46 = vcombine.high %v22531_v25, %v22532_v29  ;;  %v22539_v32 = vcombine.high %v22537_v51, %v22538_v15  ;;  %v22547_v20 = vcombine.high %v22423_v63, %v22424_v13  ;;  %v22551_v13 = vld [vmem:[#allocation156_spill] sm:$0xff] }
 0x2a4   : > { %14226 = vmatprep.subr.msk.bf16.mxu0 %vm4057_vm2, %v5227_v38  ;;  %v22548_v51 = vcombine.low %v17305_v44, %v17315_v1  ;;  %v22550_v63 = vcombine.high %v22440_v21, %v22441_v11  ;;  %v22556_v21 = vld [vmem:[#allocation185_spill] sm:$0xff] }
 0x2a5   : > { %v17662_v52 = vpack.c.bf16 %v22536_v35, %v22533_v46  ;;  %v17675_v41 = vpack.c.bf16 %v22542_v4, %v22539_v32  ;;  %v22544_v35 = vld [vmem:[#allocation81_spill] sm:$0xff]  ;;  %v17687_v25 = vpack.c.bf16 %v22547_v20, %v22546_v59  ;;  %v3056_v46 = vcombine.high %v17208_v60, %v17214_v37  ;;  %v22554_v4 = vld [vmem:[#allocation91_spill] sm:$0xff] }
 0x2a6   : > { %v3190_v29 = vcombine.high %v22544_v35, %v22543_v50  ;;  %v17695_v15 = vrot.slane %v22548_v51, %v15584_v14  ;;  %v17705_v7 = vpack.c.bf16 %v22550_v63, %v22549_v8  ;;  %v22552_v32 = vld [vmem:[#allocation113_spill] sm:$0xff]  ;;  %13688 = vmatmul.mubr.msk.bf16.vlgmr.msra.gmra.mrb[88].mxu1 %vm4057_vm2, %v4019_v45  ;;  %v2918_v47 = vcombine.high %v22554_v4, %v22553_v30  ;;  %v22557_v45 = vld [vmem:[#allocation108_spill] sm:$0xff]  ;;  %v22565_v4 = vld [vmem:[#allocation171_spill] sm:$0xff] }
 0x2a7   : > { %v3289_v37 = vcombine.low %v22552_v32, %v22551_v13  ;;  %v17715_v62 = vpack.c.bf16 %v3192_v5, %v3056_v46  ;;  %v3257_v11 = vcombine.low %v22556_v21, %v22555_v24  ;;  %13692 = vmatpush3.bf16.xpose.msra.mxu1 %v4579_v40  ;;  %13693 = vmatprep.mubr.msk.bf16.mxu1 %vm14650_vm1, %v22309_v23  ;;  %v22560_v59 = vld [vmem:[#allocation65_spill] sm:$0xff]  ;;  %v22562_v5 = vld [vmem:[#allocation194_spill] sm:$0xff] }
 0x2a8   : > { %v17709_v60 = vpack.c.bf16 %v3190_v29, %v3054_v12  ;;  %v5500_v12 = vsel %vm4057_vm2, %v5227_v38, 0  ;;  %13703 = vmatprep.subr.bf16.mxu1 %v22309_v23  ;;  %v2782_v50 = vcombine.high %v22558_v42, %v22557_v45  ;;  %v22559_v29 = vcombine.high %v22552_v32, %v22551_v13  ;;  %v22563_v8 = vld [vmem:[#allocation193_spill] sm:$0xff] }
 0x2a9   : > { %v17728_v35 = vrot.slane %v3289_v37, %v15584_v14  ;;  %v17739_v38 = vrot.slane %v3257_v11, %v15584_v14  ;;  %v22561_v46 = vcombine.high %v22556_v21, %v22555_v24  ;;  %v2920_v63 = vcombine.high %v22563_v8, %v22562_v5  ;;  %v22564_v40 = vld [vmem:[#allocation61_spill] sm:$0xff] }
 0x2aa   : > { %v17734_v2 = vrot.slane %v22559_v29, %v15584_v14  ;;  %v4046_v20 = vpack.c.bf16 %v2918_v47, %v2782_v50  ;;  %v5195_v30 = vpack.c.bf16 %v22564_v40, %v22564_v40  ;;  %v22566_v47 = vld [vmem:[#allocation199_spill] sm:$0xff]  ;;  %v22569_v42 = vld [vmem:[#allocation33_spill] sm:$0xff] }
 0x2ab   : > { %13804 = vmatpush3.bf16.xpose.msra.mxu0 %v5500_v12  ;;  %v17745_v51 = vrot.slane %v22561_v46, %v15584_v14  ;;  %v3322_v13 = vcombine.high %v17739_v38, %v17728_v35  ;;  %v22567_v24 = vcombine.low %v22565_v4, %v22566_v47  ;;  %v22568_v11 = vcombine.high %v22565_v4, %v22566_v47  ;;  %v22570_v50 = vld [vmem:[#allocation35_spill] sm:$0xff] }
 0x2ac   : > { %14229 = vmatprep.subr.msk.bf16.mxu0 %vm4057_vm2, %v22560_v59  ;;  %v4673_v45 = vsel %vm4057_vm2, %v4046_v20, 0  ;;  %v22571_v29 = vcombine.low %v22569_v42, %v22570_v50  ;;  %v22572_v5 = vcombine.high %v22569_v42, %v22570_v50  ;;  %v22573_v40 = vld [vmem:[#allocation187_spill] sm:$0xff]  ;;  %v22575_v20 = vld [vmem:[#allocation69_spill] sm:$0xff]  ;;  %v5617_v50 = vsel %vm4057_vm2, %v22560_v59, 0 }
 0x2ad   : > { %v3323_v32 = vcombine.low %v17745_v51, %v17734_v2  ;;  %v17761_v21 = vrot.slane %v22567_v24, %v15584_v14  ;;  %v17767_v12 = vrot.slane %v22568_v11, %v15584_v14  ;;  %v5231_v47 = vpack.c.bf16 %v22575_v20, %v22575_v20  ;;  %v22576_v24 = vld [vmem:[#allocation188_spill] sm:$0xff]  ;;  %v22577_v11 = vld [vmem:[#allocation190_spill] sm:$0xff] }
 0x2ae   : > { %13694 = vmatmul.mubr.msk.bf16.vlgmr.msra.gmra.mrb[92].mxu1 %vm4057_vm2, %v17570_v43  ;;  %v17776_v46 = vrot.slane %v22571_v29, %v15584_v14  ;;  %v17782_v8 = vrot.slane %v22572_v5, %v15584_v14  ;;  %v22574_v43 = vld [vmem:[#allocation192_spill] sm:$0xff]  ;;  %v22578_v29 = vcombine.low %v22576_v24, %v22577_v11  ;;  %v22579_v42 = vcombine.high %v22576_v24, %v22577_v11  ;;  %v22580_v5 = vld [vmem:[#allocation189_spill] sm:$0xff]  ;;  %v22584_v11 = vld [vmem:[#allocation55_spill] sm:$0xff] }
 0x2af   : > { %13704 = vmatpush3.bf16.xpose.msra.mxu1 %v4673_v45  ;;  %13705 = vmatprep.mubr.msk.bf16.mxu1 %vm14650_vm1, %v22309_v23  ;;  %v2784_v4 = vcombine.high %v22574_v43, %v22573_v40  ;;  %v22581_v40 = vld [vmem:[#allocation191_spill] sm:$0xff] }
 0x2b0   : > { %v17794_v17 = vrot.slane %v22578_v29, %v15584_v14  ;;  %v17800_v45 = vrot.slane %v22579_v42, %v15584_v14  ;;  %13715 = vmatprep.subr.bf16.mxu1 %v22309_v23  ;;  %v22582_v43 = vcombine.low %v22580_v5, %v22581_v40  ;;  %v22583_v29 = vcombine.high %v22580_v5, %v22581_v40  ;;  %v22591_v40 = vld [vmem:[#allocation32_spill] sm:$0xff]  ;;  %v22594_v5 = vld [vmem:[#allocation197_spill] sm:$0xff] }
 0x2b1   : > { %v4048_v59 = vpack.c.bf16 %v2920_v63, %v2784_v4  ;;  %v17848_v63 = vpack.c.bf16 %v17353_v53, %v17282_v28  ;;  %v5620_v4 = vsel %vm4057_vm2, %v5231_v47, 0 }
 0x2b2   : > { %13806 = vmatmul.mubr.msk.bf16.vlgmr.msra.gmra.mrb[128].mxu0 %vm4057_vm2, %v5195_v30  ;;  %v17810_v20 = vrot.slane %v22582_v43, %v15584_v14  ;;  %v17816_v24 = vrot.slane %v22583_v29, %v15584_v14  ;;  %v22585_v30 = vld [vmem:[#allocation58_spill] sm:$0xff]  ;;  %v3865_v37 = vcombine.low %v17794_v17, %v17761_v21 }
 0x2b3   : > { %13818 = vmatpush3.bf16.xpose.msra.mxu0 %v5617_v50  ;;  %v22586_v42 = vpack.c.bf16 %v22584_v11, %v22585_v30  ;;  %v4767_v11 = vsel %vm4057_vm2, %v4048_v59, 0  ;;  %v22587_v30 = vld [vmem:[#allocation83_spill] sm:$0xff]  ;;  %22589 = vst [vmem:[#allocation22_spill] sm:$0xff] %v17848_v63  ;;  %v22590_v29 = vld [vmem:[#allocation34_spill] sm:$0xff]  ;;  %v22750_v63 = vld [vmem:[#allocation145_spill] sm:$0xff] }
 0x2b4   : > { %14230 = vmatprep.subr.msk.bf16.mxu0 %vm4057_vm2, %v5231_v47  ;;  %v22592_v59 = vld [vmem:[#allocation99_spill] sm:$0xff]  ;;  %v22595_v47 = vld [vmem:[#allocation196_spill] sm:$0xff] }
 0x2b5   : > { %13821 = vmatprep.mubr.msk.bf16.mxu0 %vm4057_vm2, %v22586_v42  ;;  %v22588_v42 = vld [vmem:[#allocation80_spill] sm:$0xff]  ;;  %v3188_v43 = vcombine.high %v22595_v47, %v22594_v5  ;;  %v22599_v5 = vld [vmem:[#allocation75_spill] sm:$0xff]  ;;  %v17893_v47 = vpack.c.bf16 %v17545_v61, %v17460_v31 }
 0x2b6   : > { %13706 = vmatmul.mubr.msk.bf16.vlgmr.msra.gmra.mrb[96].mxu1 %vm4057_vm2, %v17591_v55  ;;  %v3186_v50 = vcombine.high %v22588_v42, %v22587_v30  ;;  %v3050_v55 = vcombine.high %v22591_v40, %v22590_v29  ;;  %v17867_v40 = vpack.c.bf16 %v17434_v39, %v17438_v3  ;;  %v22598_v29 = vld [vmem:[#allocation121_spill] sm:$0xff]  ;;  %v22603_v3 = vld [vmem:[#allocation195_spill] sm:$0xff] }
 0x2b7   : > { %13716 = vmatpush3.bf16.xpose.msra.mxu1 %v4767_v11  ;;  %13717 = vmatprep.mubr.msk.bf16.mxu1 %vm14650_vm1, %v22309_v23  ;;  %v22593_v11 = vld [vmem:[#allocation67_spill] sm:$0xff]  ;;  %22605 = vst [vmem:[#allocation68_spill] sm:$0xff] %v17893_v47 }
 0x2b8   : > { %13727 = vmatprep.subr.bf16.mxu1 %v22309_v23  ;;  %v4050_v30 = vpack.c.bf16 %v3186_v50, %v3050_v55  ;;  %v5199_v42 = vpack.c.bf16 %v22593_v11, %v22593_v11  ;;  %22596 = vst [vmem:[#allocation9_spill] sm:$0xff] %v17867_v40  ;;  %v22597_v50 = vld [vmem:[#allocation106_spill] sm:$0xff]  ;;  %v3052_v55 = vcombine.high %v22599_v5, %v22598_v29  ;;  %v22601_v11 = vld [vmem:[#allocation97_spill] sm:$0xff]  ;;  %v22608_v29 = vld [vmem:[#allocation107_spill] sm:$0xff] }
 0x2b9   : > { %v17907_v5 = vpack.c.bf16 %v17444_v34, %v17448_v9  ;;  %v5049_v34 = vsel %vm4057_vm2, %v17709_v60, 0  ;;  %v22612_v9 = vcombine.high %v17353_v53, %v17333_v22 }
 0x2ba   : > { %v4861_v28 = vsel %vm4057_vm2, %v4050_v30, 0  ;;  %v22600_v30 = vld [vmem:[#allocation84_spill] sm:$0xff]  ;;  %v4052_v39 = vpack.c.bf16 %v3188_v43, %v3052_v55 }
 0x2bb   : > { %13820 = vmatpush3.bf16.xpose.msra.mxu0 %v5620_v4  ;;  %v5235_v4 = vpack.c.bf16 %v22597_v50, %v22597_v50  ;;  %v22606_v50 = vld [vmem:[#allocation182_spill] sm:$0xff]  ;;  %22609 = vst [vmem:[#allocation36_spill] sm:$0xff] %v17907_v5 }
 0x2bc   : > { %14233 = vmatprep.subr.msk.bf16.mxu0 %vm4057_vm2, %v22592_v59  ;;  %v17897_v43 = vadd.f32 %v22606_v50, %v16719_v0  ;;  %v22615_v50 = vcombine.low %v17308_v54, %v17325_v57 }
 0x2be   : > { %13718 = vmatmul.mubr.msk.bf16.vlgmr.msra.gmra.mrb[100].mxu1 %vm4057_vm2, %v17650_v58  ;;  %v5737_v58 = vsel %vm4057_vm2, %v22592_v59, 0  ;;  %v4955_v59 = vsel %vm4057_vm2, %v4052_v39, 0  ;;  %22607 = vst [vmem:[#allocation90_spill] sm:$0xff] %v17897_v43 }
 0x2bf   : > { %13728 = vmatpush3.bf16.xpose.msra.mxu1 %v4861_v28  ;;  %13729 = vmatprep.mubr.msk.bf16.mxu1 %vm14650_vm1, %v22309_v23  ;;  %v22602_v28 = vpack.c.bf16 %v22600_v30, %v22601_v11  ;;  %v3632_v11 = vrot.slane %v22612_v9, %v15358_v27 }
 0x2c0   : > { %13739 = vmatprep.subr.bf16.mxu1 %v22309_v23 }
 0x2c2   : > { %13822 = vmatmul.mubr.msk.bf16.vlgmr.msra.gmra.mrb[132].mxu0 %vm4057_vm2, %v5199_v42  ;;  %v17884_v42 = vadd.f32 %v22603_v3, %v16719_v0  ;;  %v22610_v0 = vcombine.low %v17353_v53, %v17333_v22  ;;  %v22614_v53 = vcombine.high %v17305_v44, %v17315_v1  ;;  %v22622_v1 = vcombine.high %v17486_v18, %v17500_v16 }
 0x2c3   : > { %13834 = vmatpush3.bf16.xpose.msra.mxu0 %v5737_v58  ;;  %13837 = vmatprep.mubr.msk.bf16.mxu0 %vm4057_vm2, %v22602_v28  ;;  %v5740_v58 = vsel %vm4057_vm2, %v5235_v4, 0  ;;  %v22613_v28 = vld [vmem:[#allocation112_spill] sm:$0xff]  ;;  %v22629_v16 = vcombine.high %v17489_v49, %v17503_v6 }
 0x2c4   : > { %14234 = vmatprep.subr.msk.bf16.mxu0 %vm4057_vm2, %v5235_v4  ;;  %22604 = vst [vmem:[#allocation10_spill] sm:$0xff] %v17884_v42  ;;  %v3625_v31 = vrot.slane %v22610_v0, %v15358_v27  ;;  %v3602_v61 = vcombine.high %v17897_v43, %v17884_v42  ;;  %v22611_v4 = vld [vmem:[#allocation105_spill] sm:$0xff]  ;;  %v5239_v39 = vpack.c.bf16 %v22613_v28, %v22613_v28  ;;  %v22618_v0 = vld [vmem:[#allocation103_spill] sm:$0xff] }
 0x2c5   : > { %v5203_v55 = vpack.c.bf16 %v22611_v4, %v22611_v4  ;;  %v22625_v28 = vld [vmem:[#allocation53_spill] sm:$0xff] }
 0x2c6   : > { %13730 = vmatmul.mubr.msk.bf16.vlgmr.msra.gmra.mrb[104].mxu1 %vm4057_vm2, %v17662_v52  ;;  %v3601_v52 = vcombine.low %v17897_v43, %v17884_v42  ;;  %v3616_v60 = vrot.slane %v3602_v61, %v15358_v27 }
 0x2c7   : > { %13740 = vmatpush3.bf16.xpose.msra.mxu1 %v4955_v59  ;;  %13741 = vmatprep.mubr.msk.bf16.mxu1 %vm14650_vm1, %v22309_v23  ;;  %v3408_v59 = vrot.slane %v22614_v53, %v15584_v14  ;;  %v17978_v53 = vrot.slane %v22629_v16, %v15584_v14 }
 0x2c8   : > { %13751 = vmatprep.subr.bf16.mxu1 %v22309_v23  ;;  %v3609_v30 = vrot.slane %v3601_v52, %v15358_v27  ;;  %v22617_v52 = vld [vmem:[#allocation102_spill] sm:$0xff]  ;;  %v3681_v18 = vcombine.low %v3616_v60, %v3632_v11 }
 0x2c9   : > { %v22619_v4 = vpack.c.bf16 %v22617_v52, %v22618_v0  ;;  %22630 = vst [vmem:[#allocation178_spill] sm:$0xff] %v17978_v53  ;;  %v3682_v52 = vcombine.high %v3616_v60, %v3632_v11  ;;  %v22632_v0 = vcombine.low %v17581_v19, %v17599_v56  ;;  %v22636_v11 = vcombine.high %v17608_v26, %v17605_v33 }
 0x2ca   : > { %v3665_v3 = vcombine.low %v3609_v30, %v3625_v31  ;;  %v3666_v44 = vcombine.high %v3609_v30, %v3625_v31  ;;  %v22638_v60 = vcombine.low %v17611_v36, %v17614_v48 }
 0x2cb   : > { %13836 = vmatpush3.bf16.xpose.msra.mxu0 %v5740_v58  ;;  %v17943_v58 = vrot.slane %v22615_v50, %v15584_v14 }
 0x2cc   : > { %14237 = vmatprep.subr.msk.bf16.mxu0 %vm4057_vm2, %v22608_v29  ;;  %v17981_v50 = vrot.slane %v3665_v3, %v15584_v14  ;;  %v18001_v3 = vrot.slane %v22636_v11, %v15584_v14  ;;  %v22650_v11 = vld [vmem:[#allocation11_spill] sm:$0xff] }
 0x2cd   : > { %22616 = vst [vmem:[#allocation37_spill] sm:$0xff] %v17943_v58 }
 0x2ce   : > { %13742 = vmatmul.mubr.msk.bf16.vlgmr.msra.gmra.mrb[108].mxu1 %vm4057_vm2, %v17675_v41  ;;  %v5857_v41 = vsel %vm4057_vm2, %v22608_v29, 0  ;;  %v22620_v29 = vcombine.high %v17308_v54, %v17325_v57  ;;  %22631 = vst [vmem:[#allocation179_spill] sm:$0xff] %v17981_v50  ;;  %22637 = vst [vmem:[#allocation56_spill] sm:$0xff] %v18001_v3 }
 0x2cf   : > { %13752 = vmatpush3.bf16.xpose.msra.mxu1 %v5049_v34  ;;  %13753 = vmatprep.mubr.msk.bf16.mxu1 %vm14650_vm1, %v22309_v23  ;;  %v22623_v34 = vcombine.low %v17489_v49, %v17503_v6  ;;  %v22634_v49 = vcombine.low %v17608_v26, %v17605_v33  ;;  %v5860_v26 = vsel %vm4057_vm2, %v5239_v39, 0 }
 0x2d0   : > { %13763 = vmatprep.subr.bf16.mxu1 %v22309_v23  ;;  %v17953_v61 = vrot.slane %v22620_v29, %v15584_v14  ;;  %v22633_v29 = vcombine.high %v17581_v19, %v17599_v56  ;;  %v5143_v19 = vsel %vm4057_vm2, %v17715_v62, 0  ;;  %v3458_v56 = vcombine.high %v17695_v15, %v17665_v10  ;;  %v22738_v62 = vld [vmem:[#allocation134_spill] sm:$0xff] }
 0x2d1   : > { %v17963_v9 = vrot.slane %v22623_v34, %v15584_v14  ;;  %v17995_v6 = vrot.slane %v22634_v49, %v15584_v14  ;;  %v18007_v34 = vrot.slane %v22638_v60, %v15584_v14  ;;  %v18056_v49 = vrot.slane %v3682_v52, %v15584_v14  ;;  %v22657_v52 = vld [vmem:[#allocation169_spill] sm:$0xff] }
 0x2d2   : > { %13838 = vmatmul.mubr.msk.bf16.vlgmr.msra.gmra.mrb[136].mxu0 %vm4057_vm2, %v5203_v55  ;;  %22621 = vst [vmem:[#allocation123_spill] sm:$0xff] %v17953_v61  ;;  %v3440_v55 = vrot.slane %v22622_v1, %v15584_v14  ;;  %v3984_v1 = vrot.slane %v22633_v29, %v15584_v14 }
 0x2d3   : > { %13850 = vmatpush3.bf16.xpose.msra.mxu0 %v5857_v41  ;;  %13853 = vmatprep.mubr.msk.bf16.mxu0 %vm4057_vm2, %v22619_v4  ;;  %22624 = vst [vmem:[#allocation127_spill] sm:$0xff] %v17963_v9  ;;  %v22626_v41 = vld [vmem:[#allocation138_spill] sm:$0xff]  ;;  %v3977_v4 = vrot.slane %v22632_v0, %v15584_v14  ;;  %22635 = vst [vmem:[#allocation20_spill] sm:$0xff] %v17995_v6  ;;  %v22644_v0 = vcombine.high %v17745_v51, %v17734_v2 }
 0x2d4   : > { %14238 = vmatprep.subr.msk.bf16.mxu0 %vm4057_vm2, %v5239_v39  ;;  %v22627_v54 = vcombine.low %v22625_v28, %v22626_v41  ;;  %v22628_v31 = vcombine.high %v22625_v28, %v22626_v41  ;;  %22639 = vst [vmem:[#allocation93_spill] sm:$0xff] %v18007_v34  ;;  %v3459_v28 = vcombine.low %v3408_v59, %v3440_v55  ;;  %22648 = vst [vmem:[#allocation17_spill] sm:$0xff] %v18056_v49 }
 0x2d5   : > { %v3460_v41 = vcombine.high %v3408_v59, %v3440_v55  ;;  %v22640_v59 = vcombine.high %v17611_v36, %v17614_v48  ;;  %v18037_v39 = vpack.c.bf16 %v3458_v56, %v3322_v13  ;;  %v18050_v36 = vrot.slane %v3666_v44, %v15584_v14  ;;  %v22649_v13 = vld [vmem:[#allocation158_spill] sm:$0xff] }
 0x2d6   : > { %v3945_v57 = vrot.slane %v22627_v54, %v15584_v14  ;;  %v3952_v30 = vrot.slane %v22628_v31, %v15584_v14  ;;  %13754 = vmatmul.mubr.msk.bf16.vlgmr.msra.gmra.mrb[112].mxu1 %vm4057_vm2, %v17687_v25  ;;  %v22642_v31 = vld [vmem:[#allocation14_spill] sm:$0xff]  ;;  %v18042_v16 = vpack.c.bf16 %v3459_v28, %v3323_v32  ;;  %v18053_v48 = vrot.slane %v3681_v18, %v15584_v14  ;;  %v22737_v25 = vld [vmem:[#allocation135_spill] sm:$0xff] }
 0x2d7   : > { %13764 = vmatpush3.bf16.xpose.msra.mxu1 %v5143_v19  ;;  %13765 = vmatprep.mubr.msk.bf16.mxu1 %vm14650_vm1, %v22309_v23  ;;  %v18030_v55 = vrot.slane %v22640_v59, %v15584_v14  ;;  %v18047_v29 = vpack.c.bf16 %v3460_v41, %v22644_v0  ;;  %22646 = vst [vmem:[#allocation24_spill] sm:$0xff] %v18050_v36  ;;  %v22652_v19 = vld [vmem:[#allocation133_spill] sm:$0xff]  ;;  %v22654_v0 = vld [vmem:[#allocation110_spill] sm:$0xff] }
 0x2d8   : > { %14219 = vmatprep.subr.msk.bf16.mxu1 %vm4057_vm2, %v22642_v31  ;;  %22643 = vst [vmem:[#allocation176_spill] sm:$0xff] %v18042_v16  ;;  %22647 = vst [vmem:[#allocation15_spill] sm:$0xff] %v18053_v48  ;;  %v22651_v60 = vcombine.low %v22649_v13, %v22650_v11  ;;  %v4001_v2 = vcombine.low %v3945_v57, %v3977_v4  ;;  %v4002_v51 = vcombine.high %v3945_v57, %v3977_v4  ;;  %v22656_v28 = vld [vmem:[#allocation150_spill] sm:$0xff] }
 0x2d9   : > { %22641 = vst [vmem:[#allocation142_spill] sm:$0xff] %v18030_v55  ;;  %22645 = vst [vmem:[#allocation19_spill] sm:$0xff] %v18047_v29  ;;  %v4003_v56 = vcombine.low %v3952_v30, %v3984_v1  ;;  %v4004_v44 = vcombine.high %v3952_v30, %v3984_v1  ;;  %v22653_v1 = vld [vmem:[#allocation28_spill] sm:$0xff]  ;;  %v22655_v41 = vcombine.high %v22649_v13, %v22650_v11  ;;  %v22658_v30 = vld [vmem:[#allocation54_spill] sm:$0xff]  ;;  %v5317_v13 = vsel %vm4057_vm2, %v22642_v31, 0 }
 0x2da   : > { %v3993_v32 = vrot.slane %v22651_v60, %v15584_v14  ;;  %v5221_v59 = vpack.c.bf16 %v22653_v1, %v22653_v1  ;;  %v5207_v60 = vpack.c.bf16 %v22654_v0, %v22654_v0  ;;  %v5243_v57 = vpack.c.bf16 %v22656_v28, %v22656_v28  ;;  %v22661_v11 = vld [vmem:[#allocation13_spill] sm:$0xff] }
 0x2db   : > { %13852 = vmatpush3.bf16.xpose.msra.mxu0 %v5860_v26  ;;  %v4000_v26 = vrot.slane %v22655_v41, %v15584_v14  ;;  %v22659_v18 = vcombine.low %v22657_v52, %v22658_v30  ;;  %v22660_v1 = vcombine.high %v22657_v52, %v22658_v30  ;;  %v22662_v41 = vld [vmem:[#allocation12_spill] sm:$0xff]  ;;  %v22665_v52 = vcombine.high %v17794_v17, %v17761_v21 }
 0x2dc   : > { %14241 = vmatprep.subr.msk.bf16.mxu0 %vm4057_vm2, %v22652_v19  ;;  %v22663_v28 = vpack.c.bf16 %v22661_v11, %v22662_v41  ;;  %v5977_v0 = vsel %vm4057_vm2, %v22652_v19, 0  ;;  %v22674_v19 = vcombine.low %v17810_v20, %v17776_v46  ;;  %v22682_v41 = vld [vmem:[#allocation38_spill] sm:$0xff]  ;;  %v22739_v33 = vpack.c.bf16 %v22737_v25, %v22738_v62 }
 0x2dd   : > { %v3961_v54 = vrot.slane %v22659_v18, %v15584_v14  ;;  %v3968_v4 = vrot.slane %v22660_v1, %v15584_v14  ;;  %v18109_v18 = vpack.c.bf16 %v4001_v2, %v3865_v37  ;;  %v18114_v30 = vpack.c.bf16 %v4002_v51, %v22665_v52  ;;  %v22671_v51 = vld [vmem:[#allocation126_spill] sm:$0xff]  ;;  %v22672_v1 = vld [vmem:[#allocation128_spill] sm:$0xff] }
 0x2de   : > { %13766 = vmatmul.mubr.msk.bf16.vlgmr.msra.gmra.mrb[116].mxu1 %vm4057_vm2, %v17705_v7  ;;  %v22667_v7 = vcombine.low %v17800_v45, %v17767_v12  ;;  %v22669_v37 = vcombine.high %v17800_v45, %v17767_v12  ;;  %v22676_v12 = vcombine.high %v17810_v20, %v17776_v46  ;;  %v5980_v46 = vsel %vm4057_vm2, %v5243_v57, 0  ;;  %v22683_v20 = vld [vmem:[#allocation151_spill] sm:$0xff] }
 0x2df   : > { %13778 = vmatpush3.bf16.xpose.msra.mxu1 %v5317_v13  ;;  %13781 = vmatprep.mubr.msk.bf16.mxu1 %vm4057_vm2, %v22663_v28  ;;  %22664 = vst [vmem:[#allocation57_spill] sm:$0xff] %v18109_v18  ;;  %22666 = vst [vmem:[#allocation94_spill] sm:$0xff] %v18114_v30  ;;  %v4005_v17 = vcombine.low %v3961_v54, %v3993_v32  ;;  %v4006_v21 = vcombine.high %v3961_v54, %v3993_v32  ;;  %v22684_v28 = vld [vmem:[#allocation27_spill] sm:$0xff] }
 0x2e0   : > { %v18119_v31 = vpack.c.bf16 %v4003_v56, %v22667_v7  ;;  %14220 = vmatprep.subr.msk.bf16.mxu1 %vm4057_vm2, %v5221_v59  ;;  %v18128_v2 = vpack.c.bf16 %v4004_v44, %v22669_v37  ;;  %v22673_v13 = vpack.c.bf16 %v22671_v51, %v22672_v1  ;;  %v4007_v56 = vcombine.low %v3968_v4, %v4000_v26  ;;  %v22685_v7 = vld [vmem:[#allocation30_spill] sm:$0xff]  ;;  %v22688_v37 = vld [vmem:[#allocation21_spill] sm:$0xff] }
 0x2e1   : > { %v4008_v11 = vcombine.high %v3968_v4, %v4000_v26  ;;  %v18143_v45 = vpack.c.bf16 %v4006_v21, %v22676_v12  ;;  %v22678_v54 = vcombine.low %v17816_v24, %v17782_v8  ;;  %v22680_v44 = vcombine.high %v17816_v24, %v17782_v8  ;;  %v22686_v24 = vld [vmem:[#allocation149_spill] sm:$0xff]  ;;  %v22690_v21 = vld [vmem:[#allocation155_spill] sm:$0xff]  ;;  %v22694_v12 = vld [vmem:[#allocation52_spill] sm:$0xff] }
 0x2e2   : > { %22668 = vst [vmem:[#allocation147_spill] sm:$0xff] %v18119_v31  ;;  %13854 = vmatmul.mubr.msk.bf16.vlgmr.msra.gmra.mrb[140].mxu0 %vm4057_vm2, %v5207_v60  ;;  %22670 = vst [vmem:[#allocation177_spill] sm:$0xff] %v18128_v2  ;;  %v18138_v60 = vpack.c.bf16 %v4005_v17, %v22674_v19  ;;  %v5320_v4 = vsel %vm4057_vm2, %v5221_v59, 0  ;;  %v5189_v52 = vpack.c.bf16 %v22684_v28, %v22684_v28  ;;  %v5437_v59 = vsel %vm4057_vm2, %v22682_v41, 0  ;;  %v22697_v28 = vld [vmem:[#allocation154_spill] sm:$0xff] }
 0x2e3   : > { %13866 = vmatpush3.bf16.xpose.msra.mxu0 %v5977_v0  ;;  %13869 = vmatprep.mubr.msk.bf16.mxu0 %vm4057_vm2, %v22673_v13  ;;  %22677 = vst [vmem:[#allocation95_spill] sm:$0xff] %v18143_v45  ;;  %v18148_v32 = vpack.c.bf16 %v4007_v56, %v22678_v54  ;;  %v18153_v26 = vpack.c.bf16 %v4008_v11, %v22680_v44  ;;  %v6097_v1 = vsel %vm4057_vm2, %v22683_v20, 0  ;;  %v22691_v13 = vld [vmem:[#allocation139_spill] sm:$0xff]  ;;  %v22692_v56 = vld [vmem:[#allocation144_spill] sm:$0xff]  ;;  %v22695_v44 = vld [vmem:[#allocation29_spill] sm:$0xff] }
 0x2e4   : > { %14242 = vmatprep.subr.msk.bf16.mxu0 %vm4057_vm2, %v5243_v57  ;;  %22675 = vst [vmem:[#allocation59_spill] sm:$0xff] %v18138_v60  ;;  %v5225_v8 = vpack.c.bf16 %v22685_v7, %v22685_v7  ;;  %v5211_v0 = vpack.c.bf16 %v22686_v24, %v22686_v24  ;;  %v22687_v57 = vld [vmem:[#allocation31_spill] sm:$0xff]  ;;  %v5247_v51 = vpack.c.bf16 %v22690_v21, %v22690_v21  ;;  %v5557_v7 = vsel %vm4057_vm2, %v22694_v12, 0  ;;  %v22699_v24 = vld [vmem:[#allocation45_spill] sm:$0xff] }
 0x2e5   : > { %22679 = vst [vmem:[#allocation148_spill] sm:$0xff] %v18148_v32  ;;  %22681 = vst [vmem:[#allocation180_spill] sm:$0xff] %v18153_v26  ;;  %v22689_v17 = vpack.c.bf16 %v22687_v57, %v22688_v37  ;;  %v22693_v11 = vpack.c.bf16 %v22691_v13, %v22692_v56  ;;  %v22702_v57 = vld [vmem:[#allocation92_spill] sm:$0xff]  ;;  %v22703_v37 = vld [vmem:[#allocation63_spill] sm:$0xff]  ;;  %v22708_v56 = vlaneseq }
 0x2e6   : > { %v5440_v19 = vsel %vm4057_vm2, %v5225_v8, 0  ;;  %v6100_v54 = vsel %vm4057_vm2, %v5247_v51, 0  ;;  %v5677_v21 = vsel %vm4057_vm2, %v22702_v57, 0 }
 0x2e7   : > { %13780 = vmatpush3.bf16.xpose.msra.mxu1 %v5320_v4  ;;  %v5193_v4 = vpack.c.bf16 %v22695_v44, %v22695_v44  ;;  %v22710_v44 = vld [vmem:[#allocation101_spill] sm:$0xff] }
 0x2e8   : > { %14223 = vmatprep.subr.msk.bf16.mxu1 %vm4057_vm2, %v22682_v41  ;;  %v3321_v41 = vcombine.low %v17739_v38, %v17728_v35  ;;  %v22701_v35 = vcombine.low %v17695_v15, %v17665_v10  ;;  %v5197_v10 = vpack.c.bf16 %v22703_v37, %v22703_v37  ;;  %v22704_v15 = vld [vmem:[#allocation79_spill] sm:$0xff] }
 0x2ea   : > { %v9533_v38 = vpack.c.bf16 %v22701_v35, %v3321_v41 }
 0x2eb   : > { %13868 = vmatpush3.bf16.xpose.msra.mxu0 %v5980_v46  ;;  %v22696_v46 = vld [vmem:[#allocation64_spill] sm:$0xff] }
 0x2ec   : > { %14245 = vmatprep.subr.msk.bf16.mxu0 %vm4057_vm2, %v22683_v20  ;;  %v5229_v20 = vpack.c.bf16 %v22696_v46, %v22696_v46 }
 0x2ee   : > { %13782 = vmatmul.mubr.msk.bf16.vlgmr.msra.gmra.mrb[120].mxu1 %vm4057_vm2, %v5189_v52  ;;  %v5215_v52 = vpack.c.bf16 %v22697_v28, %v22697_v28 }
 0x2ef   : > { %13794 = vmatpush3.bf16.xpose.msra.mxu1 %v5437_v59  ;;  %13797 = vmatprep.mubr.msk.bf16.mxu1 %vm4057_vm2, %v22689_v17  ;;  %v5560_v59 = vsel %vm4057_vm2, %v5229_v20, 0  ;;  %v5233_v17 = vpack.c.bf16 %v22704_v15, %v22704_v15 }
 0x2f0   : > { %14224 = vmatprep.subr.msk.bf16.mxu1 %vm4057_vm2, %v5225_v8  ;;  %v22698_v8 = vld [vmem:[#allocation46_spill] sm:$0xff] }
 0x2f2   : > { %13870 = vmatmul.mubr.msk.bf16.vlgmr.msra.gmra.mrb[144].mxu0 %vm4057_vm2, %v5211_v0  ;;  %v22700_v0 = vpack.c.bf16 %v22698_v8, %v22699_v24  ;;  %v22713_v24 = vld [vmem:[#allocation100_spill] sm:$0xff] }
 0x2f3   : > { %13882 = vmatpush3.bf16.xpose.msra.mxu0 %v6097_v1  ;;  %13885 = vmatprep.mubr.msk.bf16.mxu0 %vm4057_vm2, %v22693_v11  ;;  %v22706_v1 = vld [vmem:[#allocation66_spill] sm:$0xff]  ;;  %v18229_v11 = vand.u32 127, %v22708_v56 }
 0x2f4   : > { %14246 = vmatprep.subr.msk.bf16.mxu0 %vm4057_vm2, %v5247_v51  ;;  %v22705_v51 = vld [vmem:[#allocation82_spill] sm:$0xff] }
 0x2f5   : > { %v22707_v13 = vpack.c.bf16 %v22705_v51, %v22706_v1 }
 0x2f7   : > { %13796 = vmatpush3.bf16.xpose.msra.mxu1 %v5440_v19  ;;  %v5680_v19 = vsel %vm4057_vm2, %v5233_v17, 0 }
 0x2f8   : > { %14227 = vmatprep.subr.msk.bf16.mxu1 %vm4057_vm2, %v22694_v12  ;;  %v22709_v12 = vld [vmem:[#allocation16_spill] sm:$0xff] }
 0x2f9   : > { %vm359_vm3 = vcmp.eq.s32.totalorder %v22709_v12, %v18229_v11 }
 0x2fa   : > { %v18241_v46 = vsel %vm359_vm3, -inf, %v22309_v23 }
 0x2fb   : > { %13884 = vmatpush3.bf16.xpose.msra.mxu0 %v6100_v54  ;;  %v356_v54 = vadd.s32 8, %v22709_v12 }
 0x2fc   : > { %13897 = vmatprep.subr.bf16.mxu0 %v22309_v23 }
 0x2fd   : > { %vm360_vm4 = vcmp.eq.s32.totalorder %v356_v54, %v18229_v11 }
 0x2fe   : > { %13798 = vmatmul.mubr.msk.bf16.vlgmr.msra.gmra.mrb[124].mxu1 %vm4057_vm2, %v5193_v4  ;;  %v22711_v4 = vld [vmem:[#allocation78_spill] sm:$0xff]  ;;  %v18249_v8 = vsel %vm360_vm4, -inf, %v22309_v23 }
 0x2ff   : > { %13810 = vmatpush3.bf16.xpose.msra.mxu1 %v5557_v7  ;;  %13813 = vmatprep.mubr.msk.bf16.mxu1 %vm4057_vm2, %v22700_v0  ;;  %v5201_v41 = vpack.c.bf16 %v22711_v4, %v22711_v4  ;;  %v22714_v0 = vld [vmem:[#allocation98_spill] sm:$0xff] }
 0x300   : > { %14228 = vmatprep.subr.msk.bf16.mxu1 %vm4057_vm2, %v5229_v20  ;;  %v22712_v20 = vld [vmem:[#allocation116_spill] sm:$0xff]  ;;  %v22715_v35 = vpack.c.bf16 %v22713_v24, %v22714_v0 }
 0x301   : > { %v5237_v28 = vpack.c.bf16 %v22712_v20, %v22712_v20 }
 0x302   : > { %13886 = vmatmul.mubr.msk.bf16.vlgmr.msra.gmra.mrb[148].mxu0 %vm4057_vm2, %v5215_v52  ;;  %v5797_v52 = vsel %vm4057_vm2, %v22710_v44, 0 }
 0x303   : > { %13898 = vmatpush3.bf16.msra.mxu0 %v9533_v38  ;;  %13899 = vmatprep.mubr.msk.bf16.mxu0 %vm14650_vm1, %v22309_v23 }
 0x304   : > { %13909 = vmatprep.subr.bf16.mxu0 %v22309_v23 }
 0x307   : > { %13812 = vmatpush3.bf16.xpose.msra.mxu1 %v5560_v59 }
 0x308   : > { %14231 = vmatprep.subr.msk.bf16.mxu1 %vm4057_vm2, %v22702_v57 }
 0x30e   : > { %13814 = vmatmul.mubr.msk.bf16.vlgmr.msra.gmra.mrb[128].mxu1 %vm4057_vm2, %v5197_v10 }
 0x30f   : > { %13826 = vmatpush3.bf16.xpose.msra.mxu1 %v5677_v21  ;;  %13829 = vmatprep.mubr.msk.bf16.mxu1 %vm4057_vm2, %v22707_v13 }
 0x310   : > { %14232 = vmatprep.subr.msk.bf16.mxu1 %vm4057_vm2, %v5233_v17 }
 0x317   : > { %13828 = vmatpush3.bf16.xpose.msra.mxu1 %v5680_v19 }
 0x318   : > { %14235 = vmatprep.subr.msk.bf16.mxu1 %vm4057_vm2, %v22710_v44  ;;  %v5800_v44 = vsel %vm4057_vm2, %v5237_v28, 0 }
 0x31c   : > { %v4098_v7 = vpop.f32.mrb[48].mxu1 }
 0x31d   : > { %v18256_v38 = vadd.f32 %v4098_v7, %v18241_v46  ;;  %v13629_v59 = vpop.f32.mrb[49].mxu1  ;;  %v22721_v7 = vld [vmem:[#allocation125_spill] sm:$0xff] }
 0x31e   : > { %13830 = vmatmul.mubr.msk.bf16.vlgmr.msra.gmra.mrb[132].mxu1 %vm4057_vm2, %v5201_v41  ;;  %v4101_v57 = vpop.f32.mrb[50].mxu1  ;;  %v22723_v59 = vld [vmem:[#allocation115_spill] sm:$0xff] }
 0x31f   : > { %13842 = vmatpush3.bf16.xpose.msra.mxu1 %v5797_v52  ;;  %13845 = vmatprep.mubr.msk.bf16.mxu1 %vm4057_vm2, %v22715_v35  ;;  %22716 = vst [vmem:[#allocation43_spill] sm:$0xff] %v18256_v38  ;;  %v18260_v37 = vadd.f32 %v4101_v57, %v18249_v8  ;;  %v13630_v10 = vpop.f32.mrb[51].mxu1  ;;  %v6211_v15 = vsel %vm6210_vm5, %v18256_v38, -inf  ;;  %v5205_v57 = vpack.c.bf16 %v22723_v59, %v22723_v59 }
 0x320   : > { %14236 = vmatprep.subr.msk.bf16.mxu1 %vm4057_vm2, %v5237_v28  ;;  %6212 = vmax.xlane.f32.xlu1 %v6211_v15  ;;  %v22724_v15 = vld [vmem:[#allocation117_spill] sm:$0xff] }
 0x321   : > { %22717 = vst [vmem:[#allocation23_spill] sm:$0xff] %v18260_v37  ;;  %v6214_v1 = vsel %vm6210_vm5, %v18260_v37, -inf }
 0x322   : > { %6215 = vmax.xlane.f32.xlu0 %v6214_v1 }
 0x324   : > { %v4662_v17 = vpop.f32.mrb[96].mxu0  ;;  %v4145_v4 = vpop.f32.mrb[52].mxu1 }
 0x325   : > { %v18265_v21 = vadd.f32 %v4662_v17, %v18241_v46  ;;  %v13701_v51 = vpop.f32.mrb[97].mxu0  ;;  %v18278_v20 = vadd.f32 %v4145_v4, %v18241_v46  ;;  %v13635_v52 = vpop.f32.mrb[53].mxu1  ;;  %v5241_v17 = vpack.c.bf16 %v22724_v15, %v22724_v15 }
 0x326   : > { %v4665_v13 = vpop.f32.mrb[98].mxu0  ;;  %v4148_v24 = vpop.f32.mrb[54].mxu1  ;;  %v5917_v51 = vsel %vm4057_vm2, %v22721_v7, 0 }
 0x327   : > { %22718 = vst [vmem:[#allocation62_spill] sm:$0xff] %v18265_v21  ;;  %v18270_v56 = vadd.f32 %v4665_v13, %v18249_v8  ;;  %v13702_v19 = vpop.f32.mrb[99].mxu0  ;;  %v6283_v54 = vsel %vm6210_vm5, %v18265_v21, -inf  ;;  %13844 = vmatpush3.bf16.xpose.msra.mxu1 %v5800_v44  ;;  %22720 = vst [vmem:[#allocation96_spill] sm:$0xff] %v18278_v20  ;;  %v18283_v0 = vadd.f32 %v4148_v24, %v18249_v8  ;;  %v13636_v35 = vpop.f32.mrb[55].mxu1  ;;  %v6217_v28 = vsel %vm6210_vm5, %v18278_v20, -inf }
 0x328   : > { %6284 = vmax.xlane.f32.xlu1 %v6283_v54  ;;  %14239 = vmatprep.subr.msk.bf16.mxu1 %vm4057_vm2, %v22721_v7  ;;  %v22725_v13 = vld [vmem:[#allocation118_spill] sm:$0xff]  ;;  %v22726_v19 = vld [vmem:[#allocation104_spill] sm:$0xff] }
 0x329   : > { %22719 = vst [vmem:[#allocation60_spill] sm:$0xff] %v18270_v56  ;;  %v6286_v41 = vsel %vm6210_vm5, %v18270_v56, -inf  ;;  %22722 = vst [vmem:[#allocation174_spill] sm:$0xff] %v18283_v0  ;;  %v6220_v10 = vsel %vm6210_vm5, %v18283_v0, -inf  ;;  %v22727_v54 = vpack.c.bf16 %v22725_v13, %v22726_v19 }
 0x32a   : > { %6287 = vmax.xlane.f32.xlu0 %v6286_v41 }
 0x32c   : > { %6218 = vmax.xlane.f32.xlu1 %v6217_v28 }
 0x32e   : > { %13846 = vmatmul.mubr.msk.bf16.vlgmr.msra.gmra.mrb[136].mxu1 %vm4057_vm2, %v5205_v57  ;;  %v4756_v1 = vpop.f32.mrb[100].mxu0 }
 0x32f   : > { %13858 = vmatpush3.bf16.xpose.msra.mxu1 %v5917_v51  ;;  %13861 = vmatprep.mubr.msk.bf16.mxu1 %vm4057_vm2, %v22727_v54  ;;  %v18301_v44 = vadd.f32 %v4756_v1, %v18241_v46  ;;  %v13713_v4 = vpop.f32.mrb[101].mxu0 }
 0x330   : > { %6221 = vmax.xlane.f32.xlu1 %v6220_v10  ;;  %14240 = vmatprep.subr.msk.bf16.mxu1 %vm4057_vm2, %v5241_v17  ;;  %v4759_v41 = vpop.f32.mrb[102].mxu0  ;;  %v5920_v10 = vsel %vm4057_vm2, %v5241_v17, 0  ;;  %v22732_v4 = vld [vmem:[#allocation143_spill] sm:$0xff] }
 0x331   : > { %22728 = vst [vmem:[#allocation181_spill] sm:$0xff] %v18301_v44  ;;  %v18305_v52 = vadd.f32 %v4759_v41, %v18249_v8  ;;  %v13714_v24 = vpop.f32.mrb[103].mxu0  ;;  %v6295_v7 = vsel %vm6210_vm5, %v18301_v44, -inf }
 0x333   : > { %22729 = vst [vmem:[#allocation40_spill] sm:$0xff] %v18305_v52  ;;  %v6298_v35 = vsel %vm6210_vm5, %v18305_v52, -inf }
 0x334   : > { %6296 = vmax.xlane.f32.xlu1 %v6295_v7  ;;  %6299 = vmax.xlane.f32.xlu0 %v6298_v35 }
 0x336   : > { %v4192_v28 = vpop.f32.mrb[56].mxu1 }
 0x337   : > { %v18312_v59 = vadd.f32 %v4192_v28, %v18241_v46  ;;  %v13641_v57 = vpop.f32.mrb[57].mxu1  ;;  %13860 = vmatpush3.bf16.xpose.msra.mxu1 %v5920_v10 }
 0x338   : > { %v4195_v15 = vpop.f32.mrb[58].mxu1  ;;  %v4850_v51 = vpop.f32.mrb[104].mxu0  ;;  %14243 = vmatprep.subr.msk.bf16.mxu1 %vm4057_vm2, %v22732_v4  ;;  %v22735_v57 = vld [vmem:[#allocation114_spill] sm:$0xff] }
 0x339   : > { %22730 = vst [vmem:[#allocation42_spill] sm:$0xff] %v18312_v59  ;;  %v18316_v1 = vadd.f32 %v4195_v15, %v18249_v8  ;;  %v13642_v13 = vpop.f32.mrb[59].mxu1  ;;  %v13725_v19 = vpop.f32.mrb[105].mxu0  ;;  %v6223_v54 = vsel %vm6210_vm5, %v18312_v59, -inf  ;;  %v18326_v7 = vadd.f32 %v4850_v51, %v18241_v46  ;;  %v5209_v10 = vpack.c.bf16 %v22735_v57, %v22735_v57 }
 0x33a   : > { %v4853_v41 = vpop.f32.mrb[106].mxu0  ;;  %6224 = vmax.xlane.f32.xlu1 %v6223_v54  ;;  %v22736_v19 = vld [vmem:[#allocation162_spill] sm:$0xff]  ;;  %v6037_v51 = vsel %vm4057_vm2, %v22732_v4, 0 }
 0x33b   : > { %22731 = vst [vmem:[#allocation50_spill] sm:$0xff] %v18316_v1  ;;  %v18323_v24 = vadd.f32 %v4853_v41, %v18249_v8  ;;  %v13726_v17 = vpop.f32.mrb[107].mxu0  ;;  %22734 = vst [vmem:[#allocation132_spill] sm:$0xff] %v18326_v7  ;;  %v6226_v28 = vsel %vm6210_vm5, %v18316_v1, -inf  ;;  %v5245_v54 = vpack.c.bf16 %v22736_v19, %v22736_v19 }
 0x33d   : > { %22733 = vst [vmem:[#allocation86_spill] sm:$0xff] %v18323_v24  ;;  %v6310_v35 = vsel %vm6210_vm5, %v18323_v24, -inf }
 0x33e   : > { %v4239_v15 = vpop.f32.mrb[60].mxu1  ;;  %6311 = vmax.xlane.f32.xlu0 %v6310_v35  ;;  %6227 = vmax.xlane.f32.xlu1 %v6226_v28 }
 0x33f   : > { %v13647_v13 = vpop.f32.mrb[61].mxu1  ;;  %13862 = vmatmul.mubr.msk.bf16.vlgmr.msra.gmra.mrb[140].mxu1 %vm4057_vm2, %v5209_v10  ;;  %v18344_v35 = vadd.f32 %v4239_v15, %v18241_v46 }
 0x340   : > { %v4242_v41 = vpop.f32.mrb[62].mxu1  ;;  %v4944_v17 = vpop.f32.mrb[108].mxu0  ;;  %13874 = vmatpush3.bf16.xpose.msra.mxu1 %v6037_v51  ;;  %13877 = vmatprep.mubr.msk.bf16.mxu1 %vm4057_vm2, %v22739_v33  ;;  %v6307_v13 = vsel %vm6210_vm5, %v18326_v7, -inf }
 0x341   : > { %22740 = vst [vmem:[#allocation167_spill] sm:$0xff] %v18344_v35  ;;  %v13648_v28 = vpop.f32.mrb[63].mxu1  ;;  %v13737_v57 = vpop.f32.mrb[109].mxu0  ;;  %14244 = vmatprep.subr.msk.bf16.mxu1 %vm4057_vm2, %v5245_v54  ;;  %v18353_v62 = vadd.f32 %v4242_v41, %v18249_v8  ;;  %v6229_v25 = vsel %vm6210_vm5, %v18344_v35, -inf }
 0x342   : > { %v4947_v10 = vpop.f32.mrb[110].mxu0  ;;  %6308 = vmax.xlane.f32.xlu1 %v6307_v13  ;;  %v6040_v28 = vsel %vm4057_vm2, %v5245_v54, 0  ;;  %v18361_v13 = vadd.f32 %v4944_v17, %v18241_v46 }
 0x343   : > { %v18350_v4 = vadd.f32 %v4947_v10, %v18249_v8  ;;  %v13738_v19 = vpop.f32.mrb[111].mxu0  ;;  %22742 = vst [vmem:[#allocation87_spill] sm:$0xff] %v18353_v62  ;;  %v6232_v41 = vsel %vm6210_vm5, %v18353_v62, -inf }
 0x344   : > { %22743 = vst [vmem:[#allocation137_spill] sm:$0xff] %v18361_v13  ;;  %v22744_v19 = vld [vmem:[#allocation175_spill] sm:$0xff] }
 0x345   : > { %22741 = vst [vmem:[#allocation51_spill] sm:$0xff] %v18350_v4  ;;  %v6322_v33 = vsel %vm6210_vm5, %v18350_v4, -inf  ;;  %v6157_v42 = vsel %vm4057_vm2, %v22744_v19, 0 }
 0x346   : > { %v4286_v15 = vpop.f32.mrb[64].mxu1  ;;  %6323 = vmax.xlane.f32.xlu0 %v6322_v33  ;;  %6230 = vmax.xlane.f32.xlu1 %v6229_v25  ;;  %v6319_v33 = vsel %vm6210_vm5, %v18361_v13, -inf  ;;  %v22745_v25 = vld [vmem:[#allocation152_spill] sm:$0xff] }
 0x347   : > { %v13653_v51 = vpop.f32.mrb[65].mxu1  ;;  %v5213_v54 = vpack.c.bf16 %v22745_v25, %v22745_v25  ;;  %v18372_v17 = vadd.f32 %v4286_v15, %v18241_v46  ;;  %v22749_v15 = vld [vmem:[#allocation164_spill] sm:$0xff] }
 0x348   : > { %v4289_v57 = vpop.f32.mrb[66].mxu1  ;;  %13876 = vmatpush3.bf16.xpose.msra.mxu1 %v6040_v28  ;;  %v22751_v43 = vpack.c.bf16 %v22749_v15, %v22750_v63 }
 0x349   : > { %v13654_v10 = vpop.f32.mrb[67].mxu1  ;;  %14247 = vmatprep.subr.msk.bf16.mxu1 %vm4057_vm2, %v22744_v19  ;;  %22746 = vst [vmem:[#allocation168_spill] sm:$0xff] %v18372_v17  ;;  %v6235_v19 = vsel %vm6210_vm5, %v18372_v17, -inf }
 0x34a   : > { %6233 = vmax.xlane.f32.xlu1 %v6232_v41  ;;  %v22748_v41 = vld [vmem:[#allocation163_spill] sm:$0xff] }
 0x34d   : > { %v5038_v5 = vpop.f32.mrb[112].mxu0 }
 0x34e   : > { %v13749_v47 = vpop.f32.mrb[113].mxu0  ;;  %6320 = vmax.xlane.f32.xlu1 %v6319_v33 }
 0x34f   : > { %v5041_v51 = vpop.f32.mrb[114].mxu0  ;;  %v4333_v28 = vpop.f32.mrb[68].mxu1  ;;  %v5249_v47 = vpack.c.bf16 %v22748_v41, %v22748_v41  ;;  %13878 = vmatmul.mubr.msk.bf16.vlgmr.msra.gmra.mrb[144].mxu1 %vm4057_vm2, %v5213_v54  ;;  %v18395_v54 = vadd.f32 %v5038_v5, %v18241_v46 }
 0x350   : > { %v18375_v10 = vadd.f32 %v5041_v51, %v18249_v8  ;;  %v13750_v40 = vpop.f32.mrb[115].mxu0  ;;  %v13659_v22 = vpop.f32.mrb[69].mxu1  ;;  %13890 = vmatpush3.bf16.xpose.msra.mxu1 %v6157_v42  ;;  %13893 = vmatprep.mubr.msk.bf16.mxu1 %vm4057_vm2, %v22751_v43  ;;  %v18404_v26 = vadd.f32 %v4333_v28, %v18241_v46 }
 0x351   : > { %v4336_v25 = vpop.f32.mrb[70].mxu1  ;;  %v18389_v22 = vadd.f32 %v4289_v57, %v18249_v8  ;;  %14248 = vmatprep.subr.msk.bf16.mxu1 %vm4057_vm2, %v5249_v47  ;;  %22753 = vst [vmem:[#allocation88_spill] sm:$0xff] %v18395_v54  ;;  %v6160_v57 = vsel %vm4057_vm2, %v5249_v47, 0  ;;  %v22756_v47 = vld [vmem:[#allocation160_spill] sm:$0xff] }
 0x352   : > { %22747 = vst [vmem:[#allocation85_spill] sm:$0xff] %v18375_v10  ;;  %v6334_v33 = vsel %vm6210_vm5, %v18375_v10, -inf  ;;  %v13660_v40 = vpop.f32.mrb[71].mxu1  ;;  %6236 = vmax.xlane.f32.xlu1 %v6235_v19  ;;  %22755 = vst [vmem:[#allocation113_spill] sm:$0xff] %v18404_v26  ;;  %v6241_v28 = vsel %vm6210_vm5, %v18404_v26, -inf }
 0x353   : > { %22752 = vst [vmem:[#allocation81_spill] sm:$0xff] %v18389_v22  ;;  %6335 = vmax.xlane.f32.xlu0 %v6334_v33  ;;  %v6238_v43 = vsel %vm6210_vm5, %v18389_v22, -inf }
 0x355   : > { %v5132_v42 = vpop.f32.mrb[116].mxu0 }
 0x356   : > { %v13761_v63 = vpop.f32.mrb[117].mxu0  ;;  %6239 = vmax.xlane.f32.xlu1 %v6238_v43  ;;  %v6331_v43 = vsel %vm6210_vm5, %v18395_v54, -inf }
 0x357   : > { %v5135_v51 = vpop.f32.mrb[118].mxu0  ;;  %v4380_v41 = vpop.f32.mrb[72].mxu1 }
 0x358   : > { %v18401_v15 = vadd.f32 %v5135_v51, %v18249_v8  ;;  %v13762_v33 = vpop.f32.mrb[119].mxu0  ;;  %v13665_v40 = vpop.f32.mrb[73].mxu1  ;;  %13892 = vmatpush3.bf16.xpose.msra.mxu1 %v6160_v57  ;;  %v5217_v51 = vpack.c.bf16 %v22756_v47, %v22756_v47  ;;  %v18414_v57 = vadd.f32 %v4336_v25, %v18249_v8 }
 0x359   : > { %v4383_v19 = vpop.f32.mrb[74].mxu1  ;;  %13903 = vmatprep.subr.bf16.mxu1 %v22309_v23 }
 0x35a   : > { %22754 = vst [vmem:[#allocation156_spill] sm:$0xff] %v18401_v15  ;;  %v6346_v5 = vsel %vm6210_vm5, %v18401_v15, -inf  ;;  %v13666_v63 = vpop.f32.mrb[75].mxu1  ;;  %6332 = vmax.xlane.f32.xlu1 %v6331_v43  ;;  %22757 = vst [vmem:[#allocation39_spill] sm:$0xff] %v18414_v57  ;;  %v6244_v25 = vsel %vm6210_vm5, %v18414_v57, -inf }
 0x35b   : > { %6347 = vmax.xlane.f32.xlu0 %v6346_v5  ;;  %v18423_v5 = vadd.f32 %v5132_v42, %v18241_v46 }
 0x35d   : > { %22758 = vst [vmem:[#allocation91_spill] sm:$0xff] %v18423_v5 }
 0x35e   : > { %6242 = vmax.xlane.f32.xlu1 %v6241_v28  ;;  %v6343_v28 = vsel %vm6210_vm5, %v18423_v5, -inf }
 0x35f   : > { %v4427_v33 = vpop.f32.mrb[76].mxu1  ;;  %13894 = vmatmul.mubr.msk.bf16.vlgmr.msra.gmra.mrb[148].mxu1 %vm4057_vm2, %v5217_v51  ;;  %v18431_v51 = vadd.f32 %v4380_v41, %v18241_v46 }
 0x360   : > { %v13671_v40 = vpop.f32.mrb[77].mxu1  ;;  %13904 = vmatpush3.bf16.msra.mxu1 %v18037_v39  ;;  %13905 = vmatprep.mubr.msk.bf16.mxu1 %vm14650_vm1, %v22309_v23 }
 0x361   : > { %v4430_v63 = vpop.f32.mrb[78].mxu1  ;;  %13915 = vmatprep.subr.bf16.mxu1 %v22309_v23  ;;  %22760 = vst [vmem:[#allocation185_spill] sm:$0xff] %v18431_v51  ;;  %v6247_v41 = vsel %vm6210_vm5, %v18431_v51, -inf }
 0x362   : > { %v13672_v43 = vpop.f32.mrb[79].mxu1  ;;  %6245 = vmax.xlane.f32.xlu1 %v6244_v25  ;;  %v18442_v25 = vadd.f32 %v4383_v19, %v18249_v8  ;;  %v18452_v31 = vadd.f32 %v4430_v63, %v18249_v8 }
 0x364   : > { %22763 = vst [vmem:[#allocation65_spill] sm:$0xff] %v18442_v25  ;;  %v6250_v2 = vsel %vm6210_vm5, %v18442_v25, -inf  ;;  %22765 = vst [vmem:[#allocation193_spill] sm:$0xff] %v18452_v31 }
 0x365   : > { %v18428_v47 = vpop.f32.mrb[120].mxu0 }
 0x366   : > { %22759 = vst [vmem:[#allocation186_spill] sm:$0xff] %v18428_v47  ;;  %v18433_v39 = vpop.f32.mrb[121].mxu0  ;;  %6344 = vmax.xlane.f32.xlu1 %v6343_v28 }
 0x367   : > { %22761 = vst [vmem:[#allocation108_spill] sm:$0xff] %v18433_v39  ;;  %v13776_v40 = vpop.f32.mrb[122].mxu0 }
 0x368   : > { %v18437_v42 = vpop.f32.mrb[123].mxu0  ;;  %v18447_v40 = vadd.f32 %v4427_v33, %v18241_v46 }
 0x369   : > { %22762 = vst [vmem:[#allocation72_spill] sm:$0xff] %v18437_v42  ;;  %v6359_v43 = vsel %vm6355_vm6, %v18437_v42, -inf  ;;  %v4474_v32 = vpop.f32.mrb[80].mxu1 }
 0x36a   : > { %6360 = vmax.xlane.f32.xlu0 %v6359_v43  ;;  %6248 = vmax.xlane.f32.xlu1 %v6247_v41  ;;  %v13677_v45 = vpop.f32.mrb[81].mxu1  ;;  %22764 = vst [vmem:[#allocation194_spill] sm:$0xff] %v18447_v40  ;;  %v6253_v19 = vsel %vm6210_vm5, %v18447_v40, -inf }
 0x36b   : > { %v4477_v60 = vpop.f32.mrb[82].mxu1 }
 0x36c   : > { %v13678_v28 = vpop.f32.mrb[83].mxu1 }
 0x36e   : > { %6251 = vmax.xlane.f32.xlu1 %v6250_v2  ;;  %v6256_v2 = vsel %vm6210_vm5, %v18452_v31, -inf }
 0x371   : > { %v4521_v43 = vpop.f32.mrb[84].mxu1 }
 0x372   : > { %6254 = vmax.xlane.f32.xlu1 %v6253_v19  ;;  %v13683_v30 = vpop.f32.mrb[85].mxu1  ;;  %v6362_v19 = vsel %vm6355_vm6, %v18428_v47, -inf }
 0x373   : > { %v4524_v41 = vpop.f32.mrb[86].mxu1 }
 0x374   : > { %v18459_v33 = vadd.f32 %v4524_v41, %v18249_v8  ;;  %v13684_v28 = vpop.f32.mrb[87].mxu1 }
 0x375   : > { %v18456_v45 = vpop.f32.mrb[124].mxu0 }
 0x376   : > { %22766 = vst [vmem:[#allocation61_spill] sm:$0xff] %v18456_v45  ;;  %22767 = vst [vmem:[#allocation171_spill] sm:$0xff] %v18459_v33  ;;  %v18461_v18 = vpop.f32.mrb[125].mxu0  ;;  %6257 = vmax.xlane.f32.xlu1 %v6256_v2  ;;  %v6268_v55 = vsel %vm6210_vm5, %v18459_v33, -inf  ;;  %v6380_v9 = vsel %vm6355_vm6, %v18456_v45, -inf }
 0x377   : > { %22768 = vst [vmem:[#allocation199_spill] sm:$0xff] %v18461_v18  ;;  %v13792_v63 = vpop.f32.mrb[126].mxu0  ;;  %6269 = vmax.xlane.f32.xlu0 %v6268_v55  ;;  %v6356_v55 = vsel %vm6355_vm6, %v18433_v39, -inf }
 0x378   : > { %v18467_v49 = vpop.f32.mrb[127].mxu0  ;;  %v18474_v63 = vadd.f32 %v4474_v32, %v18241_v46 }
 0x379   : > { %22769 = vst [vmem:[#allocation33_spill] sm:$0xff] %v18467_v49  ;;  %v6377_v30 = vsel %vm6355_vm6, %v18467_v49, -inf  ;;  %v4568_v41 = vpop.f32.mrb[88].mxu1  ;;  %v18858_v49 = vsub.s32 %v18229_v11, %v22709_v12 }
 0x37a   : > { %6363 = vmax.xlane.f32.xlu1 %v6362_v19  ;;  %v13689_v28 = vpop.f32.mrb[89].mxu1  ;;  %22770 = vst [vmem:[#allocation35_spill] sm:$0xff] %v18474_v63  ;;  %v18484_v19 = vadd.f32 %v4477_v60, %v18249_v8  ;;  %v18516_v58 = vadd.f32 %v4568_v41, %v18241_v46 }
 0x37b   : > { %6378 = vmax.xlane.f32.xlu0 %v6377_v30  ;;  %v4571_v34 = vpop.f32.mrb[90].mxu1  ;;  %v6259_v30 = vsel %vm6210_vm5, %v18474_v63, -inf }
 0x37c   : > { %v18477_v2 = vadd.f32 %v4571_v34, %v18249_v8  ;;  %v13690_v48 = vpop.f32.mrb[91].mxu1  ;;  %22772 = vst [vmem:[#allocation192_spill] sm:$0xff] %v18484_v19  ;;  %v6262_v60 = vsel %vm6210_vm5, %v18484_v19, -inf  ;;  %22779 = vst [vmem:[#allocation58_spill] sm:$0xff] %v18516_v58  ;;  %v6271_v41 = vsel %vm6210_vm5, %v18516_v58, -inf }
 0x37d   : > { %v18491_v48 = vadd.f32 %v4521_v43, %v18241_v46 }
 0x37e   : > { %22771 = vst [vmem:[#allocation187_spill] sm:$0xff] %v18477_v2  ;;  %6357 = vmax.xlane.f32.xlu1 %v6356_v55  ;;  %v6274_v3 = vsel %vm6210_vm5, %v18477_v2, -inf }
 0x37f   : > { %6275 = vmax.xlane.f32.xlu0 %v6274_v3  ;;  %22774 = vst [vmem:[#allocation188_spill] sm:$0xff] %v18491_v48 }
 0x381   : > { %v4615_v32 = vpop.f32.mrb[92].mxu1 }
 0x382   : > { %6260 = vmax.xlane.f32.xlu1 %v6259_v30  ;;  %v13695_v28 = vpop.f32.mrb[93].mxu1 }
 0x383   : > { %v4618_v34 = vpop.f32.mrb[94].mxu1 }
 0x384   : > { %v18494_v55 = vadd.f32 %v4618_v34, %v18249_v8  ;;  %v13696_v6 = vpop.f32.mrb[95].mxu1  ;;  %v6265_v34 = vsel %vm6210_vm5, %v18491_v48, -inf }
 0x385   : > { %v18488_v36 = vpop.f32.mrb[128].mxu0 }
 0x386   : > { %22773 = vst [vmem:[#allocation69_spill] sm:$0xff] %v18488_v36  ;;  %22775 = vst [vmem:[#allocation190_spill] sm:$0xff] %v18494_v55  ;;  %v18496_v3 = vpop.f32.mrb[129].mxu0  ;;  %6263 = vmax.xlane.f32.xlu1 %v6262_v60  ;;  %v6280_v30 = vsel %vm6210_vm5, %v18494_v55, -inf  ;;  %v6398_v15 = vsel %vm6355_vm6, %v18488_v36, -inf }
 0x387   : > { %22776 = vst [vmem:[#allocation189_spill] sm:$0xff] %v18496_v3  ;;  %v13808_v50 = vpop.f32.mrb[130].mxu0  ;;  %6281 = vmax.xlane.f32.xlu0 %v6280_v30 }
 0x388   : > { %v18502_v28 = vpop.f32.mrb[131].mxu0 }
 0x389   : > { %22777 = vst [vmem:[#allocation191_spill] sm:$0xff] %v18502_v28  ;;  %v6395_v43 = vsel %vm6355_vm6, %v18502_v28, -inf  ;;  %v4709_v6 = vpop.f32.mrb[96].mxu1 }
 0x38a   : > { %6266 = vmax.xlane.f32.xlu1 %v6265_v34  ;;  %v13707_v53 = vpop.f32.mrb[97].mxu1 }
 0x38b   : > { %6396 = vmax.xlane.f32.xlu0 %v6395_v43  ;;  %v4712_v61 = vpop.f32.mrb[98].mxu1  ;;  %v6374_v53 = vsel %vm6355_vm6, %v18461_v18, -inf }
 0x38c   : > { %v18509_v50 = vadd.f32 %v4712_v61, %v18249_v8  ;;  %v13708_v60 = vpop.f32.mrb[99].mxu1 }
 0x38d   : > { %v18523_v60 = vadd.f32 %v4615_v32, %v18241_v46 }
 0x38e   : > { %22778 = vst [vmem:[#allocation55_spill] sm:$0xff] %v18509_v50  ;;  %6381 = vmax.xlane.f32.xlu1 %v6380_v9  ;;  %v6292_v30 = vsel %vm6210_vm5, %v18509_v50, -inf }
 0x38f   : > { %6293 = vmax.xlane.f32.xlu0 %v6292_v30  ;;  %22781 = vst [vmem:[#allocation80_spill] sm:$0xff] %v18523_v60  ;;  %v6277_v32 = vsel %vm6210_vm5, %v18523_v60, -inf }
 0x391   : > { %v4803_v43 = vpop.f32.mrb[100].mxu1 }
 0x392   : > { %6375 = vmax.xlane.f32.xlu1 %v6374_v53  ;;  %v13719_v34 = vpop.f32.mrb[101].mxu1 }
 0x393   : > { %v4806_v61 = vpop.f32.mrb[102].mxu1 }
 0x394   : > { %v18526_v9 = vadd.f32 %v4806_v61, %v18249_v8  ;;  %v13720_v14 = vpop.f32.mrb[103].mxu1 }
 0x395   : > { %v18520_v29 = vpop.f32.mrb[132].mxu0 }
 0x396   : > { %22780 = vst [vmem:[#allocation83_spill] sm:$0xff] %v18520_v29  ;;  %22782 = vst [vmem:[#allocation34_spill] sm:$0xff] %v18526_v9  ;;  %v18528_v30 = vpop.f32.mrb[133].mxu0  ;;  %6272 = vmax.xlane.f32.xlu1 %v6271_v41  ;;  %v6304_v53 = vsel %vm6210_vm5, %v18526_v9, -inf }
 0x397   : > { %22783 = vst [vmem:[#allocation32_spill] sm:$0xff] %v18528_v30  ;;  %v13824_v23 = vpop.f32.mrb[134].mxu0  ;;  %6305 = vmax.xlane.f32.xlu0 %v6304_v53  ;;  %v6410_v14 = vsel %vm6355_vm6, %v18528_v30, -inf }
 0x398   : > { %v18534_v34 = vpop.f32.mrb[135].mxu0 }
 0x399   : > { %22784 = vst [vmem:[#allocation99_spill] sm:$0xff] %v18534_v34  ;;  %v4897_v16 = vpop.f32.mrb[104].mxu1 }
 0x39a   : > { %6278 = vmax.xlane.f32.xlu1 %v6277_v32  ;;  %v13731_v61 = vpop.f32.mrb[105].mxu1  ;;  %v18548_v32 = vadd.f32 %v4709_v6, %v18241_v46 }
 0x39b   : > { %6411 = vmax.xlane.f32.xlu0 %v6410_v14  ;;  %v4900_v27 = vpop.f32.mrb[106].mxu1  ;;  %v6392_v61 = vsel %vm6355_vm6, %v18496_v3, -inf }
 0x39c   : > { %v18541_v23 = vadd.f32 %v4900_v27, %v18249_v8  ;;  %v13732_v41 = vpop.f32.mrb[107].mxu1  ;;  %22786 = vst [vmem:[#allocation197_spill] sm:$0xff] %v18548_v32  ;;  %v6289_v6 = vsel %vm6210_vm5, %v18548_v32, -inf }
 0x39d   : > { %v18555_v41 = vadd.f32 %v4803_v43, %v18241_v46 }
 0x39e   : > { %22785 = vst [vmem:[#allocation67_spill] sm:$0xff] %v18541_v23  ;;  %6399 = vmax.xlane.f32.xlu1 %v6398_v15  ;;  %v6316_v53 = vsel %vm6210_vm5, %v18541_v23, -inf }
 0x39f   : > { %6317 = vmax.xlane.f32.xlu0 %v6316_v53  ;;  %22788 = vst [vmem:[#allocation106_spill] sm:$0xff] %v18555_v41  ;;  %v6301_v43 = vsel %vm6210_vm5, %v18555_v41, -inf }
 0x3a1   : > { %v4991_v14 = vpop.f32.mrb[108].mxu1 }
 0x3a2   : > { %6393 = vmax.xlane.f32.xlu1 %v6392_v61  ;;  %v13743_v5 = vpop.f32.mrb[109].mxu1 }
 0x3a3   : > { %v4994_v27 = vpop.f32.mrb[110].mxu1 }
 0x3a4   : > { %v18558_v15 = vadd.f32 %v4994_v27, %v18249_v8  ;;  %v13744_v54 = vpop.f32.mrb[111].mxu1 }
 0x3a5   : > { %v18552_v10 = vpop.f32.mrb[136].mxu0 }
 0x3a6   : > { %22787 = vst [vmem:[#allocation196_spill] sm:$0xff] %v18552_v10  ;;  %22789 = vst [vmem:[#allocation121_spill] sm:$0xff] %v18558_v15  ;;  %v18560_v53 = vpop.f32.mrb[137].mxu0  ;;  %6290 = vmax.xlane.f32.xlu1 %v6289_v6  ;;  %v6328_v5 = vsel %vm6210_vm5, %v18558_v15, -inf  ;;  %v6434_v54 = vsel %vm6355_vm6, %v18552_v10, -inf }
 0x3a7   : > { %22790 = vst [vmem:[#allocation75_spill] sm:$0xff] %v18560_v53  ;;  %v13840_v4 = vpop.f32.mrb[138].mxu0  ;;  %6329 = vmax.xlane.f32.xlu0 %v6328_v5  ;;  %v6428_v5 = vsel %vm6355_vm6, %v18560_v53, -inf }
 0x3a8   : > { %v18566_v61 = vpop.f32.mrb[139].mxu0  ;;  %v6416_v4 = vsel %vm6355_vm6, %v18520_v29, -inf }
 0x3a9   : > { %22791 = vst [vmem:[#allocation84_spill] sm:$0xff] %v18566_v61  ;;  %v5085_v23 = vpop.f32.mrb[112].mxu1 }
 0x3aa   : > { %6302 = vmax.xlane.f32.xlu1 %v6301_v43  ;;  %v13755_v27 = vpop.f32.mrb[113].mxu1  ;;  %v18582_v43 = vadd.f32 %v4897_v16, %v18241_v46 }
 0x3ab   : > { %6435 = vmax.xlane.f32.xlu0 %v6434_v54  ;;  %v5088_v13 = vpop.f32.mrb[114].mxu1  ;;  %v6413_v27 = vsel %vm6355_vm6, %v18534_v34, -inf }
 0x3ac   : > { %v13756_v24 = vpop.f32.mrb[115].mxu1  ;;  %v18575_v6 = vadd.f32 %v5088_v13, %v18249_v8  ;;  %22793 = vst [vmem:[#allocation195_spill] sm:$0xff] %v18582_v43 }
 0x3ad   : > { %v18579_v15 = vpop.xlane.xlu1 %6212 }
 0x3ae   : > { %6417 = vmax.xlane.f32.xlu1 %v6416_v4  ;;  %22792 = vst [vmem:[#allocation97_spill] sm:$0xff] %v18575_v6  ;;  %v6340_v4 = vsel %vm6210_vm5, %v18575_v6, -inf }
 0x3af   : > { %6429 = vmax.xlane.f32.xlu0 %v6428_v5  ;;  %v18591_v5 = vadd.f32 %v4991_v14, %v18241_v46  ;;  %v18732_v35 = vpop.xlane.xlu0 %6215 }
 0x3b1   : > { %v5179_v24 = vpop.f32.mrb[116].mxu1  ;;  %22795 = vst [vmem:[#allocation107_spill] sm:$0xff] %v18591_v5 }
 0x3b2   : > { %6414 = vmax.xlane.f32.xlu1 %v6413_v27  ;;  %v13767_v54 = vpop.f32.mrb[117].mxu1  ;;  %v6313_v27 = vsel %vm6210_vm5, %v18582_v43, -inf }
 0x3b3   : > { %6341 = vmax.xlane.f32.xlu0 %v6340_v4  ;;  %v5182_v13 = vpop.f32.mrb[118].mxu1 }
 0x3b4   : > { %v18594_v9 = vadd.f32 %v5182_v13, %v18249_v8  ;;  %v13768_v16 = vpop.f32.mrb[119].mxu1  ;;  %v6325_v8 = vsel %vm6210_vm5, %v18591_v5, -inf }
 0x3b5   : > { %v18588_v29 = vpop.f32.mrb[140].mxu0  ;;  %v18600_v52 = vpop.xlane.xlu1 %6284  ;;  %v18613_v16 = vadd.f32 %v5085_v23, %v18241_v46 }
 0x3b6   : > { %22794 = vst [vmem:[#allocation182_spill] sm:$0xff] %v18588_v29  ;;  %22796 = vst [vmem:[#allocation105_spill] sm:$0xff] %v18594_v9  ;;  %v18596_v7 = vpop.f32.mrb[141].mxu0  ;;  %6314 = vmax.xlane.f32.xlu1 %v6313_v27  ;;  %v6352_v4 = vsel %vm6210_vm5, %v18594_v9, -inf  ;;  %v6452_v13 = vsel %vm6355_vm6, %v18588_v29, -inf  ;;  %v6431_v27 = vsel %vm6355_vm6, %v18566_v61, -inf }
 0x3b7   : > { %22797 = vst [vmem:[#allocation112_spill] sm:$0xff] %v18596_v7  ;;  %v13856_v54 = vpop.f32.mrb[142].mxu0  ;;  %6353 = vmax.xlane.f32.xlu0 %v6352_v4  ;;  %22799 = vst [vmem:[#allocation103_spill] sm:$0xff] %v18613_v16  ;;  %v6446_v4 = vsel %vm6355_vm6, %v18596_v7, -inf  ;;  %v6337_v9 = vsel %vm6210_vm5, %v18613_v16, -inf  ;;  %v18746_v57 = vpop.xlane.xlu0 %6287 }
 0x3b8   : > { %v18604_v6 = vpop.f32.mrb[143].mxu0 }
 0x3b9   : > { %22798 = vst [vmem:[#allocation102_spill] sm:$0xff] %v18604_v6  ;;  %v18608_v14 = vpop.xlane.xlu1 %6218 }
 0x3ba   : > { %6326 = vmax.xlane.f32.xlu1 %v6325_v8  ;;  %v18622_v8 = vadd.f32 %v5179_v24, %v18241_v46  ;;  %v6562_v53 = vrot.slane %v18608_v14, %v18858_v49 }
 0x3bb   : > { %6453 = vmax.xlane.f32.xlu0 %v6452_v13 }
 0x3bc   : > { %22800 = vst [vmem:[#allocation53_spill] sm:$0xff] %v18622_v8  ;;  %v6349_v24 = vsel %vm6210_vm5, %v18622_v8, -inf }
 0x3bd   : > { %v18617_v54 = vpop.xlane.xlu1 %6221 }
 0x3be   : > { %6432 = vmax.xlane.f32.xlu1 %v6431_v27 }
 0x3bf   : > { %6447 = vmax.xlane.f32.xlu0 %v6446_v4 }
 0x3c1   : > { %v18626_v13 = vpop.f32.mrb[120].mxu1  ;;  %v18632_v5 = vpop.xlane.xlu1 %6296 }
 0x3c2   : > { %22801 = vst [vmem:[#allocation138_spill] sm:$0xff] %v18626_v13  ;;  %6338 = vmax.xlane.f32.xlu1 %v6337_v9  ;;  %v18628_v23 = vpop.f32.mrb[121].mxu1  ;;  %v6371_v27 = vsel %vm6355_vm6, %v18626_v13, -inf  ;;  %v18754_v62 = vpop.xlane.xlu0 %6299 }
 0x3c3   : > { %22802 = vst [vmem:[#allocation14_spill] sm:$0xff] %v18628_v23  ;;  %6372 = vmax.xlane.f32.xlu0 %v6371_v27  ;;  %v13784_v43 = vpop.f32.mrb[122].mxu1  ;;  %v6365_v9 = vsel %vm6355_vm6, %v18628_v23, -inf }
 0x3c4   : > { %v18636_v4 = vpop.f32.mrb[123].mxu1  ;;  %v6449_v43 = vsel %vm6355_vm6, %v18604_v6, -inf }
 0x3c5   : > { %v18634_v41 = vpop.f32.mrb[144].mxu0  ;;  %22804 = vst [vmem:[#allocation11_spill] sm:$0xff] %v18636_v4 }
 0x3c6   : > { %22803 = vst [vmem:[#allocation158_spill] sm:$0xff] %v18634_v41  ;;  %v18638_v46 = vpop.f32.mrb[145].mxu0  ;;  %6350 = vmax.xlane.f32.xlu1 %v6349_v24  ;;  %v6470_v27 = vsel %vm6355_vm6, %v18634_v41, -inf }
 0x3c7   : > { %22805 = vst [vmem:[#allocation133_spill] sm:$0xff] %v18638_v46  ;;  %v13872_v16 = vpop.f32.mrb[146].mxu0  ;;  %v18646_v44 = vpop.xlane.xlu1 %6224  ;;  %6366 = vmax.xlane.f32.xlu0 %v6365_v9  ;;  %v6464_v9 = vsel %vm6355_vm6, %v18638_v46, -inf }
 0x3c8   : > { %v18644_v50 = vpop.f32.mrb[147].mxu0  ;;  %v6368_v16 = vsel %vm6355_vm6, %v18636_v4, -inf }
 0x3c9   : > { %22806 = vst [vmem:[#allocation28_spill] sm:$0xff] %v18644_v50  ;;  %v6467_v24 = vsel %vm6355_vm6, %v18644_v50, -inf }
 0x3ca   : > { %6450 = vmax.xlane.f32.xlu1 %v6449_v43 }
 0x3cb   : > { %v18652_v56 = vpop.xlane.xlu1 %6227  ;;  %6471 = vmax.xlane.f32.xlu0 %v6470_v27 }
 0x3ce   : > { %6369 = vmax.xlane.f32.xlu1 %v6368_v16 }
 0x3cf   : > { %v18658_v8 = vpop.xlane.xlu1 %6308  ;;  %6468 = vmax.xlane.f32.xlu0 %v6467_v24 }
 0x3d1   : > { %v18662_v43 = vpop.f32.mrb[124].mxu1 }
 0x3d2   : > { %22807 = vst [vmem:[#allocation110_spill] sm:$0xff] %v18662_v43  ;;  %6465 = vmax.xlane.f32.xlu1 %v6464_v9  ;;  %v18664_v41 = vpop.f32.mrb[125].mxu1  ;;  %v6389_v27 = vsel %vm6355_vm6, %v18662_v43, -inf }
 0x3d3   : > { %22808 = vst [vmem:[#allocation150_spill] sm:$0xff] %v18664_v41  ;;  %v18668_v32 = vpop.xlane.xlu1 %6230  ;;  %6390 = vmax.xlane.f32.xlu0 %v6389_v27  ;;  %v13800_v16 = vpop.f32.mrb[126].mxu1  ;;  %v6383_v9 = vsel %vm6355_vm6, %v18664_v41, -inf }
 0x3d4   : > { %v18672_v50 = vpop.f32.mrb[127].mxu1  ;;  %v6580_v14 = vrot.slane %v18668_v32, %v18858_v49 }
 0x3d5   : > { %v18670_v55 = vpop.f32.mrb[148].mxu0  ;;  %22810 = vst [vmem:[#allocation54_spill] sm:$0xff] %v18672_v50  ;;  %v6386_v46 = vsel %vm6355_vm6, %v18672_v50, -inf }
 0x3d6   : > { %22809 = vst [vmem:[#allocation169_spill] sm:$0xff] %v18670_v55  ;;  %v18674_v24 = vpop.f32.mrb[149].mxu0  ;;  %6387 = vmax.xlane.f32.xlu1 %v6386_v46  ;;  %v6488_v16 = vsel %vm6355_vm6, %v18670_v55, -inf }
 0x3d7   : > { %22811 = vst [vmem:[#allocation13_spill] sm:$0xff] %v18674_v24  ;;  %v13888_v21 = vpop.f32.mrb[150].mxu0  ;;  %v18682_v60 = vpop.xlane.xlu1 %6233  ;;  %6384 = vmax.xlane.f32.xlu0 %v6383_v9  ;;  %v6482_v33 = vsel %vm6355_vm6, %v18674_v24, -inf }
 0x3d8   : > { %v18680_v2 = vpop.f32.mrb[151].mxu0 }
 0x3d9   : > { %22812 = vst [vmem:[#allocation12_spill] sm:$0xff] %v18680_v2  ;;  %v6485_v27 = vsel %vm6355_vm6, %v18680_v2, -inf }
 0x3da   : > { %6489 = vmax.xlane.f32.xlu1 %v6488_v16 }
 0x3db   : > { %v18688_v21 = vpop.xlane.xlu1 %6320  ;;  %6486 = vmax.xlane.f32.xlu0 %v6485_v27 }
 0x3de   : > { %6483 = vmax.xlane.f32.xlu1 %v6482_v33 }
 0x3df   : > { %v18692_v58 = vpop.xlane.xlu1 %6236 }
 0x3e0   : > { %v6589_v32 = vrot.slane %v18692_v58, %v18858_v49 }
 0x3e1   : > { %v18694_v46 = vpop.f32.mrb[128].mxu1 }
 0x3e2   : > { %22813 = vst [vmem:[#allocation126_spill] sm:$0xff] %v18694_v46  ;;  %v18696_v19 = vpop.f32.mrb[129].mxu1  ;;  %v6407_v9 = vsel %vm6355_vm6, %v18694_v46, -inf }
 0x3e3   : > { %22814 = vst [vmem:[#allocation128_spill] sm:$0xff] %v18696_v19  ;;  %v18700_v2 = vpop.xlane.xlu1 %6239  ;;  %v13816_v55 = vpop.f32.mrb[130].mxu1  ;;  %v6401_v16 = vsel %vm6355_vm6, %v18696_v19, -inf  ;;  %6408 = vmax.xlane.f32.xlu1 %v6407_v9 }
 0x3e4   : > { %6402 = vmax.xlane.f32.xlu0 %v6401_v16  ;;  %v18704_v27 = vpop.f32.mrb[131].mxu1 }
 0x3e5   : > { %22815 = vst [vmem:[#allocation38_spill] sm:$0xff] %v18704_v27  ;;  %v6404_v33 = vsel %vm6355_vm6, %v18704_v27, -inf }
 0x3e7   : > { %v18708_v24 = vpop.xlane.xlu1 %6332  ;;  %6405 = vmax.xlane.f32.xlu1 %v6404_v33 }
 0x3eb   : > { %v18710_v48 = vpop.xlane.xlu1 %6242 }
 0x3ef   : > { %v18712_v63 = vpop.xlane.xlu1 %6245 }
 0x3f1   : > { %v18714_v40 = vpop.f32.mrb[132].mxu1 }
 0x3f2   : > { %22816 = vst [vmem:[#allocation151_spill] sm:$0xff] %v18714_v40  ;;  %v18716_v55 = vpop.f32.mrb[133].mxu1  ;;  %v6425_v9 = vsel %vm6355_vm6, %v18714_v40, -inf }
 0x3f3   : > { %22817 = vst [vmem:[#allocation27_spill] sm:$0xff] %v18716_v55  ;;  %v18720_v16 = vpop.xlane.xlu1 %6344  ;;  %6426 = vmax.xlane.f32.xlu1 %v6425_v9  ;;  %v13832_v51 = vpop.f32.mrb[134].mxu1  ;;  %v6419_v26 = vsel %vm6355_vm6, %v18716_v55, -inf }
 0x3f4   : > { %6420 = vmax.xlane.f32.xlu0 %v6419_v26  ;;  %v18724_v33 = vpop.f32.mrb[135].mxu1 }
 0x3f5   : > { %22818 = vst [vmem:[#allocation30_spill] sm:$0xff] %v18724_v33  ;;  %v6422_v31 = vsel %vm6355_vm6, %v18724_v33, -inf }
 0x3f7   : > { %v18728_v17 = vpop.xlane.xlu1 %6248  ;;  %6423 = vmax.xlane.f32.xlu1 %v6422_v31 }
 0x3fb   : > { %v18730_v25 = vpop.xlane.xlu1 %6251 }
 0x3ff   : > { %v18734_v40 = vpop.xlane.xlu1 %6254 }
 0x401   : > { %v18736_v9 = vpop.f32.mrb[136].mxu1 }
 0x402   : > { %22819 = vst [vmem:[#allocation149_spill] sm:$0xff] %v18736_v9  ;;  %v18738_v51 = vpop.f32.mrb[137].mxu1  ;;  %v6443_v26 = vsel %vm6355_vm6, %v18736_v9, -inf }
 0x403   : > { %22820 = vst [vmem:[#allocation31_spill] sm:$0xff] %v18738_v51  ;;  %v18742_v55 = vpop.xlane.xlu1 %6257  ;;  %6444 = vmax.xlane.f32.xlu1 %v6443_v26  ;;  %v13848_v33 = vpop.f32.mrb[138].mxu1  ;;  %v6437_v31 = vsel %vm6355_vm6, %v18738_v51, -inf }
 0x404   : > { %6438 = vmax.xlane.f32.xlu0 %v6437_v31  ;;  %v18748_v59 = vpop.f32.mrb[139].mxu1  ;;  %v18758_v26 = vpop.xlane.xlu0 %6311 }
 0x405   : > { %22821 = vst [vmem:[#allocation21_spill] sm:$0xff] %v18748_v59  ;;  %v6440_v22 = vsel %vm6355_vm6, %v18748_v59, -inf }
 0x407   : > { %v18752_v37 = vpop.xlane.xlu1 %6363  ;;  %6441 = vmax.xlane.f32.xlu1 %v6440_v22 }
 0x408   : > { %v18762_v7 = vpop.xlane.xlu0 %6323 }
 0x40b   : > { %v18756_v1 = vpop.xlane.xlu1 %6357 }
 0x40c   : > { %v18774_v38 = vpop.xlane.xlu0 %6335 }
 0x40f   : > { %v18760_v33 = vpop.xlane.xlu1 %6260 }
 0x410   : > { %v18782_v9 = vpop.xlane.xlu0 %6347 }
 0x412   : > { %v18764_v0 = vpop.f32.mrb[140].mxu1 }
 0x413   : > { %22822 = vst [vmem:[#allocation155_spill] sm:$0xff] %v18764_v0  ;;  %v18766_v31 = vpop.f32.mrb[141].mxu1  ;;  %v6461_v10 = vsel %vm6355_vm6, %v18764_v0, -inf  ;;  %v18770_v20 = vpop.xlane.xlu1 %6263 }
 0x414   : > { %22823 = vst [vmem:[#allocation139_spill] sm:$0xff] %v18766_v31  ;;  %6462 = vmax.xlane.f32.xlu0 %v6461_v10  ;;  %v13864_v22 = vpop.f32.mrb[142].mxu1  ;;  %v6455_v59 = vsel %vm6355_vm6, %v18766_v31, -inf  ;;  %v18786_v10 = vpop.xlane.xlu0 %6360 }
 0x415   : > { %6456 = vmax.xlane.f32.xlu1 %v6455_v59  ;;  %v18776_v61 = vpop.f32.mrb[143].mxu1 }
 0x416   : > { %22824 = vst [vmem:[#allocation144_spill] sm:$0xff] %v18776_v61  ;;  %v6458_v29 = vsel %vm6355_vm6, %v18776_v61, -inf }
 0x417   : > { %v18780_v6 = vpop.xlane.xlu1 %6266 }
 0x418   : > { %6459 = vmax.xlane.f32.xlu0 %v6458_v29  ;;  %v18790_v31 = vpop.xlane.xlu0 %6269 }
 0x41b   : > { %v18784_v0 = vpop.xlane.xlu1 %6381 }
 0x41c   : > { %v18806_v3 = vpop.xlane.xlu0 %6378 }
 0x41f   : > { %v18788_v22 = vpop.xlane.xlu1 %6375 }
 0x422   : > { %v18792_v51 = vpop.f32.mrb[144].mxu1 }
 0x423   : > { %22825 = vst [vmem:[#allocation52_spill] sm:$0xff] %v18792_v51  ;;  %v18794_v59 = vpop.f32.mrb[145].mxu1  ;;  %v6479_v61 = vsel %vm6355_vm6, %v18792_v51, -inf  ;;  %v18798_v34 = vpop.xlane.xlu1 %6272 }
 0x424   : > { %22826 = vst [vmem:[#allocation29_spill] sm:$0xff] %v18794_v59  ;;  %6480 = vmax.xlane.f32.xlu0 %v6479_v61  ;;  %v13880_v29 = vpop.f32.mrb[146].mxu1  ;;  %v6473_v46 = vsel %vm6355_vm6, %v18794_v59, -inf  ;;  %v18812_v51 = vpop.xlane.xlu0 %6275 }
 0x425   : > { %6474 = vmax.xlane.f32.xlu1 %v6473_v46  ;;  %v18802_v27 = vpop.f32.mrb[147].mxu1 }
 0x426   : > { %22827 = vst [vmem:[#allocation64_spill] sm:$0xff] %v18802_v27  ;;  %v6476_v36 = vsel %vm6355_vm6, %v18802_v27, -inf }
 0x427   : > { %v18808_v50 = vpop.xlane.xlu1 %6278 }
 0x428   : > { %6477 = vmax.xlane.f32.xlu0 %v6476_v36  ;;  %v18814_v61 = vpop.xlane.xlu0 %6281 }
 0x42b   : > { %v18810_v30 = vpop.xlane.xlu1 %6399 }
 0x42c   : > { %22828 = vst [vmem:[#allocation154_spill] sm:$0xff] %v18810_v30  ;;  %v18828_v18 = vpop.xlane.xlu0 %6396 }
 0x42f   : > { %v18816_v29 = vpop.xlane.xlu1 %6393 }
 0x430   : > { %v18834_v43 = vpop.xlane.xlu0 %6293 }
 0x432   : > { %v18818_v59 = vpop.f32.mrb[148].mxu1 }
 0x433   : > { %22829 = vst [vmem:[#allocation46_spill] sm:$0xff] %v18818_v59  ;;  %v18820_v46 = vpop.f32.mrb[149].mxu1  ;;  %v6497_v27 = vsel %vm6355_vm6, %v18818_v59, -inf  ;;  %v18832_v47 = vpop.xlane.xlu1 %6290 }
 0x434   : > { %22830 = vst [vmem:[#allocation45_spill] sm:$0xff] %v18820_v46  ;;  %6498 = vmax.xlane.f32.xlu0 %v6497_v27  ;;  %v13896_v45 = vpop.f32.mrb[150].mxu1  ;;  %v6491_v28 = vsel %vm6355_vm6, %v18820_v46, -inf  ;;  %v18838_v27 = vpop.xlane.xlu0 %6305 }
 0x435   : > { %v18824_v19 = vpop.f32.mrb[151].mxu1 }
 0x436   : > { %22831 = vst [vmem:[#allocation92_spill] sm:$0xff] %v18824_v19  ;;  %v6494_v36 = vsel %vm6355_vm6, %v18824_v19, -inf }
 0x437   : > { %6495 = vmax.xlane.f32.xlu1 %v6494_v36  ;;  %v18836_v23 = vpop.xlane.xlu1 %6302  ;;  %v6552_v36 = vadd.s32 4294967288, %v18229_v11 }
 0x438   : > { %6492 = vmax.xlane.f32.xlu0 %v6491_v28  ;;  %v18842_v59 = vpop.xlane.xlu0 %6411 }
 0x439   : > { %22833 = vst [vmem:[#allocation79_spill] sm:$0xff] %v18842_v59  ;;  %v18852_v28 = vsub.s32 %v6552_v36, %v22709_v12 }
 0x43b   : > { %v18840_v45 = vpop.xlane.xlu1 %6417  ;;  %v6566_v13 = vrot.slane %v18617_v54, %v18852_v28  ;;  %v6575_v4 = vrot.slane %v18652_v56, %v18852_v28  ;;  %v6556_v42 = vrot.slane %v18732_v35, %v18852_v28  ;;  %v6584_v36 = vrot.slane %v18682_v60, %v18852_v28 }
 0x43c   : > { %22832 = vst [vmem:[#allocation63_spill] sm:$0xff] %v18840_v45  ;;  %v18847_v41 = vpop.xlane.xlu0 %6317  ;;  %v6665_v59 = vrot.slane %v18746_v57, %v18852_v28  ;;  %v6571_v54 = vrot.slane %v18646_v44, %v18858_v49  ;;  %v6551_v56 = vrot.slane %v18579_v15, %v18858_v49  ;;  %v6593_v60 = vrot.slane %v18700_v2, %v18852_v28 }
 0x43d   : > { %v6567_v35 = vsel %vm6557_vm7, %v6566_v13, %v6562_v53  ;;  %v6661_v57 = vrot.slane %v18600_v52, %v18858_v49  ;;  %v6697_v44 = vrot.slane %v18658_v8, %v18858_v49  ;;  %v6585_v53 = vsel %vm6557_vm7, %v6584_v36, %v6580_v14 }
 0x43e   : > { %v6558_v15 = vsel %vm6557_vm7, %v6556_v42, %v6551_v56  ;;  %v6701_v52 = vrot.slane %v18758_v26, %v18852_v28  ;;  %v6683_v8 = vrot.slane %v18754_v62, %v18852_v28  ;;  %v6602_v36 = vrot.slane %v18712_v63, %v18852_v28 }
 0x43f   : > { %v18844_v19 = vpop.xlane.xlu1 %6414  ;;  %v18895_v2 = vsel %vm6557_vm7, %v6665_v59, %v6661_v57  ;;  %v6767_v13 = vsel %vm6766_vm8, %v6567_v35, %v6558_v15  ;;  %v6634_v56 = vrot.slane %v18780_v6, %v18858_v49  ;;  %v6598_v35 = vrot.slane %v18710_v48, %v18858_v49 }
 0x440   : > { %22834 = vst [vmem:[#allocation82_spill] sm:$0xff] %v18844_v19  ;;  %v18854_v39 = vpop.xlane.xlu0 %6329  ;;  %v6576_v19 = vsel %vm6557_vm7, %v6575_v4, %v6571_v54  ;;  %v6594_v4 = vsel %vm6557_vm7, %v6593_v60, %v6589_v32  ;;  %v6702_v59 = vsel %vm6557_vm7, %v6701_v52, %v6697_v44  ;;  %v6719_v54 = vrot.slane %v18762_v7, %v18852_v28 }
 0x441   : > { %v6769_v42 = vsel %vm6768_vm9, %v6576_v19, %v6767_v13  ;;  %v6715_v19 = vrot.slane %v18688_v21, %v18858_v49  ;;  %v6629_v63 = vrot.slane %v18770_v20, %v18852_v28  ;;  %v6643_v14 = vrot.slane %v18798_v34, %v18858_v49 }
 0x442   : > { %v6771_v26 = vsel %vm6770_vm10, %v6585_v53, %v6769_v42  ;;  %v6638_v57 = vrot.slane %v18790_v31, %v18852_v28  ;;  %v6652_v6 = vrot.slane %v18808_v50, %v18858_v49  ;;  %v6603_v48 = vsel %vm6557_vm7, %v6602_v36, %v6598_v35 }
 0x443   : > { %v18849_v46 = vpop.xlane.xlu1 %6314  ;;  %v6773_v7 = vsel %vm6772_vm11, %v6594_v4, %v6771_v26  ;;  %v6647_v20 = vrot.slane %v18812_v51, %v18852_v28  ;;  %v6625_v34 = vrot.slane %v18760_v33, %v18858_v49  ;;  %v6611_v44 = vrot.slane %v18730_v25, %v18852_v28 }
 0x444   : > { %v18883_v30 = vpop.xlane.xlu0 %6435  ;;  %v6706_v21 = vrot.slane %v18849_v46, %v18858_v49  ;;  %v6656_v31 = vrot.slane %v18814_v61, %v18852_v28  ;;  %v6639_v50 = vsel %vm6557_vm7, %v6638_v57, %v6634_v56  ;;  %v6710_v46 = vrot.slane %v18847_v41, %v18852_v28 }
 0x445   : > { %v6607_v15 = vrot.slane %v18728_v17, %v18858_v49  ;;  %v6620_v51 = vrot.slane %v18742_v55, %v18852_v28  ;;  %v6630_v33 = vsel %vm6557_vm7, %v6629_v63, %v6625_v34  ;;  %v6648_v53 = vsel %vm6557_vm7, %v6647_v20, %v6643_v14 }
 0x446   : > { %v6657_v25 = vsel %vm6557_vm7, %v6656_v31, %v6652_v6  ;;  %v6670_v61 = vrot.slane %v18832_v47, %v18858_v49  ;;  %v6711_v13 = vsel %vm6557_vm7, %v6710_v46, %v6706_v21  ;;  %v6616_v17 = vrot.slane %v18734_v40, %v18858_v49 }
 0x447   : > { %v18870_v45 = vpop.xlane.xlu1 %6326  ;;  %v6780_v55 = vsel %vm6766_vm8, %v6639_v50, %v6630_v33  ;;  %v6612_v42 = vsel %vm6557_vm7, %v6611_v44, %v6607_v15  ;;  %v6674_v4 = vrot.slane %v18834_v43, %v18852_v28  ;;  %v6728_v36 = vrot.slane %v18854_v39, %v18852_v28 }
 0x448   : > { %v18922_v60 = vpop.xlane.xlu0 %6429  ;;  %v6724_v41 = vrot.slane %v18870_v45, %v18858_v49  ;;  %v6781_v47 = vsel %vm6768_vm9, %v6648_v53, %v6780_v55  ;;  %v6787_v26 = vsel %vm6766_vm8, %v6711_v13, %v6702_v59  ;;  %v6621_v40 = vsel %vm6557_vm7, %v6620_v51, %v6616_v17 }
 0x449   : > { %v6782_v45 = vsel %vm6770_vm10, %v6657_v25, %v6781_v47  ;;  %v6775_v56 = vsel %vm6774_vm12, %v6603_v48, %v6773_v7  ;;  %v6675_v35 = vsel %vm6557_vm7, %v6674_v4, %v6670_v61  ;;  %v6688_v63 = vrot.slane %v18836_v23, %v18858_v49 }
 0x44a   : > { %v6729_v43 = vsel %vm6557_vm7, %v6728_v36, %v6724_v41  ;;  %v6679_v39 = vrot.slane %v18632_v5, %v18858_v49  ;;  %v6720_v57 = vsel %vm6557_vm7, %v6719_v54, %v6715_v19  ;;  %v6733_v59 = vrot.slane %v18708_v24, %v18858_v49 }
 0x44b   : > { %v18906_v58 = vpop.xlane.xlu1 %6432  ;;  %v6777_v7 = vsel %vm6776_vm13, %v6612_v42, %v6775_v56  ;;  %v6692_v21 = vrot.slane %v18838_v27, %v18852_v28  ;;  %v6788_v48 = vsel %vm6768_vm9, %v6720_v57, %v6787_v26  ;;  %v6783_v20 = vsel %vm6772_vm11, %v18895_v2, %v6782_v45 }
 0x44c   : > { %v6342_v52 = vpop.xlane.xlu0 %6341  ;;  %v6737_v5 = vrot.slane %v18774_v38, %v18852_v28  ;;  %v6789_v19 = vsel %vm6770_vm10, %v6729_v43, %v6788_v48  ;;  %v6779_v24 = vsel %vm6778_vm14, %v6621_v40, %v6777_v7  ;;  %v6784_v34 = vsel %vm6774_vm12, %v6675_v35, %v6783_v20 }
 0x44d   : > { %v6746_v23 = vrot.slane %v6342_v52, %v18852_v28  ;;  %v6693_v31 = vsel %vm6557_vm7, %v6692_v21, %v6688_v63  ;;  %v6684_v2 = vsel %vm6557_vm7, %v6683_v8, %v6679_v39  ;;  %v6751_v50 = vrot.slane %v18720_v16, %v18858_v49 }
 0x44e   : > { %v6738_v38 = vsel %vm6557_vm7, %v6737_v5, %v6733_v59  ;;  %v6785_v15 = vsel %vm6776_vm13, %v6684_v2, %v6784_v34  ;;  %v6755_v33 = vrot.slane %v18782_v9, %v18852_v28  ;;  %v6880_v59 = vrot.slane %v18756_v1, %v18858_v49 }
 0x44f   : > { %v6339_v32 = vpop.xlane.xlu1 %6338  ;;  %v6790_v51 = vsel %vm6772_vm11, %v6738_v38, %v6789_v19  ;;  %v6786_v53 = vsel %vm6778_vm14, %v6693_v31, %v6785_v15  ;;  %v6910_v20 = vrot.slane %v18788_v22, %v18858_v49  ;;  %v6938_v38 = vrot.slane %v18816_v29, %v18858_v49 }
 0x450   : > { %v6742_v14 = vrot.slane %v6339_v32, %v18858_v49  ;;  %v6354_v54 = vpop.xlane.xlu0 %6353  ;;  %v6756_v32 = vsel %vm6557_vm7, %v6755_v33, %v6751_v50 }
 0x451   : > { %v6764_v46 = vrot.slane %v6354_v54, %v18852_v28 }
 0x452   : > { %v6747_v44 = vsel %vm6557_vm7, %v6746_v23, %v6742_v14  ;;  %v6886_v14 = vadd.s32 4294967280, %v18229_v11  ;;  %v6884_v23 = vrot.slane %v18786_v10, %v18852_v28 }
 0x453   : > { %v6351_v6 = vpop.xlane.xlu1 %6350  ;;  %v6791_v62 = vsel %vm6774_vm12, %v6747_v44, %v6790_v51  ;;  %v6942_v51 = vrot.slane %v18828_v18, %v18852_v28  ;;  %v22836_v18 = vld [vmem:[#allocation154_spill] sm:$0xff] }
 0x454   : > { %v6760_v27 = vrot.slane %v6351_v6, %v18858_v49  ;;  %v6792_v16 = vsel %vm6776_vm13, %v6756_v32, %v6791_v62  ;;  %v19015_v9 = vpop.xlane.xlu0 %6453  ;;  %v19035_v7 = vsub.s32 %v6886_v14, %v22709_v12  ;;  %v6885_v1 = vsel %vm6557_vm7, %v6884_v23, %v6880_v59  ;;  %v22835_v32 = vld [vmem:[#allocation82_spill] sm:$0xff] }
 0x456   : > { %v6765_v8 = vsel %vm6557_vm7, %v6764_v46, %v6760_v27  ;;  %v6890_v10 = vrot.slane %v18752_v37, %v19035_v7 }
 0x457   : > { %v6793_v25 = vsel %vm6778_vm14, %v6765_v8, %v6792_v16  ;;  %v19011_v61 = vpop.xlane.xlu1 %6450  ;;  %v6970_v16 = vrot.slane %v22835_v32, %v18852_v28 }
 0x458   : > { %v19017_v55 = vpop.xlane.xlu0 %6447  ;;  %v6892_v31 = vsel %vm6891_vm15, %v6890_v10, %v6885_v1  ;;  %v7026_v32 = vrot.slane %v19011_v61, %v18852_v28  ;;  %v7003_v61 = vrot.slane %v18883_v30, %v19035_v7 }
 0x45b   : > { %v6370_v13 = vpop.xlane.xlu1 %6369 }
 0x45c   : > { %v6373_v42 = vpop.xlane.xlu0 %6372  ;;  %v6900_v39 = vrot.slane %v6370_v13, %v18852_v28 }
 0x45d   : > { %v6905_v5 = vrot.slane %v6373_v42, %v19035_v7 }
 0x45f   : > { %v19013_v41 = vpop.xlane.xlu1 %6465 }
 0x460   : > { %v6367_v47 = vpop.xlane.xlu0 %6366 }
 0x461   : > { %v6896_v6 = vrot.slane %v6367_v47, %v18858_v49 }
 0x463   : > { %v6388_v17 = vpop.xlane.xlu1 %6387  ;;  %v6901_v48 = vsel %vm6557_vm7, %v6900_v39, %v6896_v6 }
 0x464   : > { %v19023_v45 = vpop.xlane.xlu0 %6471  ;;  %v6928_v11 = vrot.slane %v6388_v17, %v18852_v28  ;;  %v6906_v34 = vsel %vm6891_vm15, %v6905_v5, %v6901_v48  ;;  %v6947_v17 = vrot.slane %v22836_v18, %v19035_v7  ;;  %v22838_v48 = vld [vmem:[#allocation63_spill] sm:$0xff] }
 0x465   : > { %v7103_v37 = vsel %vm6766_vm8, %v6906_v34, %v6892_v31  ;;  %v19102_v34 = vsub.s32 0, %v22709_v12  ;;  %v19110_v31 = vsub.s32 1, %v22709_v12 }
 0x467   : > { %v19019_v52 = vpop.xlane.xlu1 %6489 }
 0x468   : > { %v19025_v40 = vpop.xlane.xlu0 %6468 }
 0x46a   : > { %6797 = vxpose.xlu1.b32.start [1/3] (short) (narrow) %v6779_v24, 16  ;;  %v6914_v24 = vrot.slane %v18806_v3, %v18852_v28  ;;  %v6919_v3 = vrot.slane %v18784_v0, %v19035_v7  ;;  %v6943_v0 = vsel %vm6557_vm7, %v6942_v51, %v6938_v38  ;;  %v19120_v51 = vsub.s32 3, %v22709_v12 }
 0x46b   : > { %v19021_v4 = vpop.xlane.xlu1 %6483  ;;  %v6948_v14 = vsel %vm6891_vm15, %v6947_v17, %v6943_v0  ;;  %v6994_v0 = vrot.slane %v18922_v60, %v18858_v49  ;;  %v19146_v17 = vsub.s32 4, %v22709_v12 }
 0x46c   : > { %v6391_v35 = vpop.xlane.xlu0 %6390  ;;  %v6915_v2 = vsel %vm6557_vm7, %v6914_v24, %v6910_v20  ;;  %22840 = vst [vmem:[#allocation16_spill] sm:$0xff] %v19120_v51 }
 0x46d   : > { %v6933_v50 = vrot.slane %v6391_v35, %v19035_v7  ;;  %v6920_v62 = vsel %vm6891_vm15, %v6919_v3, %v6915_v2  ;;  %v22837_v35 = vld [vmem:[#allocation79_spill] sm:$0xff]  ;;  %v19115_v3 = vsub.s32 2, %v22709_v12  ;;  %22841 = vst [vmem:[#allocation101_spill] sm:$0xff] %v19146_v17 }
 0x46e   : > { %6798 = vxpose.xlu1.b32.cont [2/3] (short) (narrow) %v6786_v53, 16 }
 0x46f   : > { %22839 = vst [vmem:[#allocation66_spill] sm:$0xff] %v19115_v3 }
 0x470   : > { %v6409_v36 = vpop.xlane.xlu1 %6408  ;;  %v6385_v43 = vpop.xlane.xlu0 %6384 }
 0x471   : > { %v6924_v54 = vrot.slane %v6385_v43, %v18858_v49  ;;  %v6961_v13 = vrot.slane %v6409_v36, %v19035_v7 }
 0x472   : > { %6799 = vxpose.xlu1.b32.end [3/3] (short) (narrow) %v6793_v25, 16  ;;  %v7104_v25 = vsel %vm6768_vm9, %v6920_v62, %v7103_v37 }
 0x473   : > { %v6929_v22 = vsel %vm6557_vm7, %v6928_v11, %v6924_v54  ;;  %v6975_v11 = vrot.slane %v22838_v48, %v19035_v7 }
 0x474   : > { %v6406_v26 = vpop.xlane.xlu1 %6405  ;;  %v19037_v21 = vpop.xlane.xlu0 %6486  ;;  %v6934_v33 = vsel %vm6891_vm15, %v6933_v50, %v6929_v22 }
 0x475   : > { %v6956_v27 = vrot.slane %v6406_v26, %v18852_v28  ;;  %v7105_v42 = vsel %vm6770_vm10, %v6934_v33, %v7104_v25 }
 0x476   : > { %v7106_v23 = vsel %vm6772_vm11, %v6948_v14, %v7105_v42  ;;  %v7050_v42 = vrot.slane %v19013_v41, %v18858_v49 }
 0x478   : > { %v6403_v44 = vpop.xlane.xlu0 %6402 }
 0x479   : > { %v6952_v46 = vrot.slane %v6403_v44, %v18858_v49 }
 0x47b   : > { %v6957_v29 = vsel %vm6557_vm7, %v6956_v27, %v6952_v46 }
 0x47c   : > { %v6962_v43 = vsel %vm6891_vm15, %v6961_v13, %v6957_v29 }
 0x47d   : > { %v7107_v5 = vsel %vm6774_vm12, %v6962_v43, %v7106_v23  ;;  %v7054_v43 = vrot.slane %v19025_v40, %v18852_v28 }
 0x480   : > { %v6427_v56 = vpop.xlane.xlu1 %6426 }
 0x481   : > { %v6421_v53 = vpop.xlane.xlu0 %6420  ;;  %v6989_v59 = vrot.slane %v6427_v56, %v19035_v7 }
 0x482   : > { %v6980_v47 = vrot.slane %v6421_v53, %v18858_v49  ;;  %v6998_v53 = vrot.slane %v18906_v58, %v18852_v28  ;;  %v7022_v58 = vrot.slane %v19017_v55, %v18858_v49 }
 0x484   : > { %v6424_v63 = vpop.xlane.xlu1 %6423  ;;  %v6999_v13 = vsel %vm6557_vm7, %v6998_v53, %v6994_v0 }
 0x485   : > { %v6984_v8 = vrot.slane %v6424_v63, %v18852_v28  ;;  %v6966_v63 = vrot.slane %v22837_v35, %v18858_v49  ;;  %v7004_v35 = vsel %vm6891_vm15, %v7003_v61, %v6999_v13 }
 0x487   : > { %v6985_v39 = vsel %vm6557_vm7, %v6984_v8, %v6980_v47  ;;  %v6971_v36 = vsel %vm6557_vm7, %v6970_v16, %v6966_v63 }
 0x488   : > { %v6990_v1 = vsel %vm6891_vm15, %v6989_v59, %v6985_v39  ;;  %v6976_v54 = vsel %vm6891_vm15, %v6975_v11, %v6971_v36  ;;  %v19167_v59 = vsub.s32 5, %v22709_v12 }
 0x489   : > { %v7108_v10 = vsel %vm6776_vm13, %v6976_v54, %v7107_v5 }
 0x48a   : > { %v7109_v56 = vsel %vm6778_vm14, %v6990_v1, %v7108_v10  ;;  %22842 = vst [vmem:[#allocation78_spill] sm:$0xff] %v19167_v59  ;;  %v7059_v1 = vrot.slane %v19023_v45, %v19035_v7 }
 0x490   : > { %v19029_v57 = vpop.xlane.xlu1 %6444 }
 0x491   : > { %v6439_v6 = vpop.xlane.xlu0 %6438  ;;  %v7017_v25 = vrot.slane %v19029_v57, %v19035_v7  ;;  %v7027_v57 = vsel %vm6557_vm7, %v7026_v32, %v7022_v58 }
 0x492   : > { %v7008_v62 = vrot.slane %v6439_v6, %v18858_v49  ;;  %v7055_v6 = vsel %vm6557_vm7, %v7054_v43, %v7050_v42 }
 0x494   : > { %v19048_v19 = vpop.xlane.xlu1 %6441 }
 0x495   : > { %v7012_v33 = vrot.slane %v19048_v19, %v18852_v28 }
 0x497   : > { %v7013_v16 = vsel %vm6557_vm7, %v7012_v33, %v7008_v62 }
 0x498   : > { %v7018_v18 = vsel %vm6891_vm15, %v7017_v25, %v7013_v16 }
 0x499   : > { %v7110_v14 = vsel %vm6766_vm8, %v7018_v18, %v7004_v35 }
 0x4a1   : > { %v6463_v24 = vpop.xlane.xlu0 %6462 }
 0x4a2   : > { %v19066_v15 = vpop.xlane.xlu1 %6456  ;;  %v7045_v30 = vrot.slane %v6463_v24, %v19035_v7  ;;  %v7082_v24 = vrot.slane %v19037_v21, %v18852_v28  ;;  %v7087_v21 = vrot.slane %v19019_v52, %v19035_v7 }
 0x4a3   : > { %v7036_v60 = vrot.slane %v19066_v15, %v18858_v49  ;;  %v7031_v15 = vrot.slane %v19015_v9, %v19035_v7 }
 0x4a5   : > { %v6460_v2 = vpop.xlane.xlu0 %6459  ;;  %v7032_v39 = vsel %vm6891_vm15, %v7031_v15, %v7027_v57 }
 0x4a6   : > { %v7040_v19 = vrot.slane %v6460_v2, %v18852_v28  ;;  %v7111_v11 = vsel %vm6768_vm9, %v7032_v39, %v7110_v14 }
 0x4a8   : > { %v7041_v55 = vsel %vm6557_vm7, %v7040_v19, %v7036_v60 }
 0x4a9   : > { %v7046_v36 = vsel %vm6891_vm15, %v7045_v30, %v7041_v55 }
 0x4aa   : > { %v7112_v54 = vsel %vm6770_vm10, %v7046_v36, %v7111_v11  ;;  %v22845_v36 = vld [vmem:[#allocation75_spill] sm:$0xff] }
 0x4b1   : > { %v6481_v50 = vpop.xlane.xlu0 %6480 }
 0x4b2   : > { %v19083_v26 = vpop.xlane.xlu1 %6474  ;;  %v7073_v5 = vrot.slane %v6481_v50, %v19035_v7 }
 0x4b3   : > { %v7064_v41 = vrot.slane %v19083_v26, %v18858_v49  ;;  %v7078_v26 = vrot.slane %v19021_v4, %v18858_v49  ;;  %v19187_v4 = vsub.s32 6, %v22709_v12 }
 0x4b5   : > { %v6478_v37 = vpop.xlane.xlu0 %6477  ;;  %22843 = vst [vmem:[#allocation116_spill] sm:$0xff] %v19187_v4 }
 0x4b6   : > { %v7068_v47 = vrot.slane %v6478_v37, %v18852_v28 }
 0x4b8   : > { %v7069_v23 = vsel %vm6557_vm7, %v7068_v47, %v7064_v41 }
 0x4c1   : > { %v6499_v29 = vpop.xlane.xlu0 %6498 }
 0x4c2   : > { %v7101_v45 = vrot.slane %v6499_v29, %v19035_v7 }
 0x4c4   : > { %v19095_v20 = vpop.xlane.xlu1 %6495 }
 0x4c5   : > { %v6493_v63 = vpop.xlane.xlu0 %6492  ;;  %v7096_v40 = vrot.slane %v19095_v20, %v18852_v28  ;;  %v7074_v20 = vsel %vm6891_vm15, %v7073_v5, %v7069_v23 }
 0x4c6   : > { %v7092_v48 = vrot.slane %v6493_v63, %v18858_v49 }
 0x4ea   : > { %v6813_v44 = vpop.trf.xlu1 }
 0x4eb   : > { %v19105_v22 = vmax.f32 %v6813_v44, %v7109_v56  ;;  %v7060_v56 = vsel %vm6891_vm15, %v7059_v1, %v7055_v6  ;;  %v7097_v44 = vsel %vm6557_vm7, %v7096_v40, %v7092_v48 }
 0x4ec   : > { %v7113_v2 = vsel %vm6772_vm11, %v7060_v56, %v7112_v54  ;;  %v7102_v50 = vsel %vm6891_vm15, %v7101_v45, %v7097_v44 }
 0x4ed   : > { %v7564_v27 = vrot.slane %v19105_v22, %v19102_v34  ;;  %v7579_v38 = vrot.slane %v19105_v22, %v19110_v31  ;;  %v7594_v46 = vrot.slane %v19105_v22, %v19115_v3  ;;  %v7609_v8 = vrot.slane %v19105_v22, %v19120_v51 }
 0x4ee   : > { %v7624_v9 = vrot.slane %v19105_v22, %v19146_v17  ;;  %v7639_v10 = vrot.slane %v19105_v22, %v19167_v59  ;;  %v7654_v37 = vrot.slane %v19105_v22, %v19187_v4  ;;  %v6814_v53 = vpop.trf.xlu1 }
 0x4ef   : > { %7570 = vbcast.lane.b32.xlu1 %v7564_v27, 264  ;;  %7566 = vbcast.lane.b32.xlu0 %v7564_v27, 256 }
 0x4f3   : > { %7585 = vbcast.lane.b32.xlu1 %v7579_v38, 264  ;;  %7581 = vbcast.lane.b32.xlu0 %v7579_v38, 256 }
 0x4f7   : > { %7589 = vbcast.lane.b32.xlu1 %v7579_v38, 272  ;;  %7574 = vbcast.lane.b32.xlu0 %v7564_v27, 272  ;;  %v7083_v27 = vsel %vm6557_vm7, %v7082_v24, %v7078_v26  ;;  %v7114_v38 = vsel %vm6774_vm12, %v7074_v20, %v7113_v2 }
 0x4f8   : > { %v7088_v33 = vsel %vm6891_vm15, %v7087_v21, %v7083_v27 }
 0x4f9   : > { %v7115_v62 = vsel %vm6776_vm13, %v7088_v33, %v7114_v38  ;;  %v22846_v38 = vld [vmem:[#allocation72_spill] sm:$0xff]  ;;  %v22847_v33 = vld [vmem:[#allocation11_spill] sm:$0xff] }
 0x4fa   : > { %v7116_v29 = vsel %vm6778_vm14, %v7102_v50, %v7115_v62 }
 0x4fb   : > { %7600 = vbcast.lane.b32.xlu1 %v7594_v46, 264  ;;  %7596 = vbcast.lane.b32.xlu0 %v7594_v46, 256  ;;  %v7120_v52 = vmax.f32 %v6814_v53, %v7116_v29  ;;  %v22848_v29 = vld [vmem:[#allocation138_spill] sm:$0xff] }
 0x4fd   : > { %v7684_v0 = vrot.slane %v7120_v52, %v19102_v34  ;;  %v7714_v32 = vrot.slane %v7120_v52, %v19115_v3  ;;  %v7729_v16 = vrot.slane %v7120_v52, %v19120_v51  ;;  %v7744_v19 = vrot.slane %v7120_v52, %v19146_v17 }
 0x4fe   : > { %v7759_v25 = vrot.slane %v7120_v52, %v19167_v59  ;;  %v7774_v58 = vrot.slane %v7120_v52, %v19187_v4 }
 0x4ff   : > { %7611 = vbcast.lane.b32.xlu1 %v7609_v8, 256  ;;  %7604 = vbcast.lane.b32.xlu0 %v7594_v46, 272  ;;  %v19201_v46 = vsub.s32 7, %v22709_v12  ;;  %v7699_v12 = vrot.slane %v7120_v52, %v19110_v31 }
 0x501   : > { %22844 = vst [vmem:[#allocation100_spill] sm:$0xff] %v19201_v46  ;;  %v7789_v13 = vrot.slane %v7120_v52, %v19201_v46 }
 0x503   : > { %7619 = vbcast.lane.b32.xlu1 %v7609_v8, 272  ;;  %7615 = vbcast.lane.b32.xlu0 %v7609_v8, 264  ;;  %v7669_v8 = vrot.slane %v19105_v22, %v19201_v46 }
 0x507   : > { %7630 = vbcast.lane.b32.xlu1 %v7624_v9, 264  ;;  %7626 = vbcast.lane.b32.xlu0 %v7624_v9, 256 }
 0x50b   : > { %7641 = vbcast.lane.b32.xlu1 %v7639_v10, 256  ;;  %7634 = vbcast.lane.b32.xlu0 %v7624_v9, 272 }
 0x50f   : > { %7656 = vbcast.lane.b32.xlu1 %v7654_v37, 256  ;;  %7645 = vbcast.lane.b32.xlu0 %v7639_v10, 264 }
 0x513   : > { %7671 = vbcast.lane.b32.xlu1 %v7669_v8, 256  ;;  %7649 = vbcast.lane.b32.xlu0 %v7639_v10, 272 }
 0x517   : > { %7660 = vbcast.lane.b32.xlu0 %v7654_v37, 264  ;;  %7686 = vbcast.lane.b32.xlu1 %v7684_v0, 256 }
 0x51b   : > { %7664 = vbcast.lane.b32.xlu0 %v7654_v37, 272  ;;  %7701 = vbcast.lane.b32.xlu1 %v7699_v12, 256 }
 0x51f   : > { %7675 = vbcast.lane.b32.xlu0 %v7669_v8, 264  ;;  %7709 = vbcast.lane.b32.xlu1 %v7699_v12, 272 }
 0x523   : > { %7679 = vbcast.lane.b32.xlu0 %v7669_v8, 272  ;;  %7720 = vbcast.lane.b32.xlu1 %v7714_v32, 264 }
 0x527   : > { %7724 = vbcast.lane.b32.xlu1 %v7714_v32, 272 }
 0x52b   : > { %7735 = vbcast.lane.b32.xlu1 %v7729_v16, 264 }
 0x52f   : > { %7739 = vbcast.lane.b32.xlu1 %v7729_v16, 272 }
 0x533   : > { %7750 = vbcast.lane.b32.xlu1 %v7744_v19, 264 }
 0x537   : > { %7754 = vbcast.lane.b32.xlu1 %v7744_v19, 272 }
 0x53b   : > { %7765 = vbcast.lane.b32.xlu1 %v7759_v25, 264 }
 0x53f   : > { %7769 = vbcast.lane.b32.xlu1 %v7759_v25, 272 }
 0x541   : > { %7121 = vxpose.xlu0.b32.start [1/2] (short) (narrow) %v19105_v22, 24 }
 0x543   : > { %7780 = vbcast.lane.b32.xlu1 %v7774_v58, 264 }
 0x545   : > { %7122 = vxpose.xlu0.b32.end [2/2] (short) (narrow) %v7120_v52, 24 }
 0x547   : > { %7791 = vbcast.lane.b32.xlu1 %v7789_v13, 256 }
 0x54b   : > { %7799 = vbcast.lane.b32.xlu1 %v7789_v13, 272 }
 0x561   : > { %v7571_v60 = vpop.permute.xlu1 %7570  ;;  %v19223_v42 = vpop.permute.xlu0 %7566 }
 0x562   : > { %v7802_v50 = vsub.f32 %v22846_v38, %v7571_v60  ;;  %v22852_v60 = vld [vmem:[#allocation14_spill] sm:$0xff] }
 0x564   : > { %v7851_v37 = vmul.f32 1.442695, %v7802_v50 }
 0x565   : > { %v19217_v61 = vpop.permute.xlu1 %7585  ;;  %v19227_v22 = vpop.permute.xlu0 %7581 }
 0x566   : > { %v7805_v53 = vsub.f32 %v22847_v33, %v19217_v61  ;;  %14323 = vpow2.f32 %v7851_v37  ;;  %v7804_v61 = vsub.f32 %v22852_v60, %v19227_v22  ;;  %v22860_v37 = vld [vmem:[#allocation128_spill] sm:$0xff]  ;;  %v22868_v60 = vld [vmem:[#allocation189_spill] sm:$0xff] }
 0x568   : > { %v7857_v62 = vmul.f32 1.442695, %v7805_v53 }
 0x569   : > { %v19219_v18 = vpop.permute.xlu1 %7589  ;;  %v19233_v35 = vpop.permute.xlu0 %7574 }
 0x56a   : > { %v7806_v52 = vsub.f32 %v22848_v29, %v19219_v18  ;;  %14325 = vpow2.f32 %v7857_v62 }
 0x56c   : > { %v7859_v8 = vmul.f32 1.442695, %v7806_v52 }
 0x56d   : > { %v19221_v57 = vpop.permute.xlu1 %7600  ;;  %v19237_v63 = vpop.permute.xlu0 %7596 }
 0x56e   : > { %14327 = vpow2.f32 %v7859_v8 }
 0x571   : > { %v19225_v55 = vpop.permute.xlu1 %7611  ;;  %v19243_v41 = vpop.permute.xlu0 %7604 }
 0x572   : > { %7690 = vbcast.lane.b32.xlu0 %v7684_v0, 264 }
 0x575   : > { %v19229_v47 = vpop.permute.xlu1 %7619  ;;  %v19249_v6 = vpop.permute.xlu0 %7615 }
 0x576   : > { %7705 = vbcast.lane.b32.xlu0 %v7699_v12, 264 }
 0x579   : > { %v19231_v15 = vpop.permute.xlu1 %7630  ;;  %v19251_v23 = vpop.permute.xlu0 %7626 }
 0x57a   : > { %7694 = vbcast.lane.b32.xlu0 %v7684_v0, 272  ;;  %v22849_v0 = vld [vmem:[#allocation33_spill] sm:$0xff] }
 0x57b   : > { %v7808_v12 = vsub.f32 %v22849_v0, %v19221_v57  ;;  %v7855_v57 = vmul.f32 1.442695, %v7804_v61  ;;  %v22864_v0 = vld [vmem:[#allocation32_spill] sm:$0xff]  ;;  %v7813_v61 = vsub.f32 %v22868_v60, %v19251_v23 }
 0x57d   : > { %v19235_v30 = vpop.permute.xlu1 %7641  ;;  %v19253_v40 = vpop.permute.xlu0 %7634 }
 0x57e   : > { %7716 = vbcast.lane.b32.xlu0 %v7714_v32, 256  ;;  %v22850_v32 = vld [vmem:[#allocation108_spill] sm:$0xff]  ;;  %v7816_v33 = vsub.f32 %v22860_v37, %v19235_v30 }
 0x580   : > { %v7879_v8 = vmul.f32 1.442695, %v7816_v33 }
 0x581   : > { %v19239_v43 = vpop.permute.xlu1 %7656  ;;  %v19255_v48 = vpop.permute.xlu0 %7645 }
 0x582   : > { %7731 = vbcast.lane.b32.xlu0 %v7729_v16, 256  ;;  %v7801_v16 = vsub.f32 %v22850_v32, %v19223_v42  ;;  %v22855_v42 = vld [vmem:[#allocation186_spill] sm:$0xff] }
 0x583   : > { %v22865_v32 = vld [vmem:[#allocation54_spill] sm:$0xff] }
 0x585   : > { %v19241_v14 = vpop.permute.xlu1 %7671  ;;  %v19257_v26 = vpop.permute.xlu0 %7649 }
 0x586   : > { %7746 = vbcast.lane.b32.xlu0 %v7744_v19, 256  ;;  %v7863_v19 = vmul.f32 1.442695, %v7808_v12  ;;  %v7819_v12 = vsub.f32 %v22864_v0, %v19239_v43 }
 0x588   : > { %14329 = vpow2.f32 %v7863_v19 }
 0x589   : > { %v19245_v39 = vpop.permute.xlu1 %7686  ;;  %v19259_v11 = vpop.permute.xlu0 %7660 }
 0x58a   : > { %7761 = vbcast.lane.b32.xlu0 %v7759_v25, 256  ;;  %v22851_v25 = vld [vmem:[#allocation150_spill] sm:$0xff] }
 0x58d   : > { %v19261_v5 = vpop.permute.xlu0 %7664  ;;  %v19358_v37 = vpop.permute.xlu1 %7701 }
 0x58e   : > { %7776 = vbcast.lane.b32.xlu0 %v7774_v58, 256 }
 0x591   : > { %v19263_v1 = vpop.permute.xlu0 %7675 }
 0x592   : > { %7784 = vbcast.lane.b32.xlu0 %v7774_v58, 272  ;;  %v7810_v58 = vsub.f32 %v22851_v25, %v19225_v55 }
 0x594   : > { %v7867_v18 = vmul.f32 1.442695, %v7810_v58 }
 0x595   : > { %v19265_v54 = vpop.permute.xlu0 %7679 }
 0x596   : > { %7795 = vbcast.lane.b32.xlu0 %v7789_v13, 264  ;;  %v7849_v13 = vmul.f32 1.442695, %v7801_v16  ;;  %v7811_v16 = vsub.f32 %v22865_v32, %v19249_v6 }
 0x598   : > { %14331 = vpow2.f32 %v7849_v13  ;;  %v7885_v13 = vmul.f32 1.442695, %v7819_v12  ;;  %v7869_v43 = vmul.f32 1.442695, %v7811_v16  ;;  %v22880_v12 = vld [vmem:[#allocation99_spill] sm:$0xff]  ;;  %v19374_v16 = vpop.permute.xlu1 %7709 }
 0x599   : > { %14333 = vpow2.f32 %v7867_v18 }
 0x59a   : > { %14335 = vpow2.f32 %v7855_v57  ;;  %v7873_v57 = vmul.f32 1.442695, %v7813_v61 }
 0x59c   : > { %v19386_v61 = vpop.permute.xlu1 %7720 }
 0x5c1   : > { %v7137_v24 = vpop.trf.xlu0 }
 0x5c2   : > { %v7156_v20 = vrot.slane %v7137_v24, %v19102_v34  ;;  %v7178_v10 = vrot.slane %v7137_v24, %v19115_v3  ;;  %v7167_v56 = vrot.slane %v7137_v24, %v19110_v31  ;;  %v7189_v44 = vrot.slane %v7137_v24, %v19120_v51 }
 0x5c3   : > { %v7200_v27 = vrot.slane %v7137_v24, %v19146_v17  ;;  %v7211_v45 = vrot.slane %v7137_v24, %v19167_v59  ;;  %v7222_v2 = vrot.slane %v7137_v24, %v19187_v4  ;;  %v7233_v21 = vrot.slane %v7137_v24, %v19201_v46  ;;  %v19288_v24 = vpop.eup %14323 }
 0x5c4   : > { %7158 = vbcast.lane.b32.xlu0 %v7156_v20, 256  ;;  %7162 = vbcast.lane.b32.xlu1 %v7156_v20, 264  ;;  %22853 = vst [vmem:[#allocation98_spill] sm:$0xff] %v19288_v24  ;;  %v22854_v20 = vld [vmem:[#allocation110_spill] sm:$0xff]  ;;  %v19296_v55 = vpop.eup %14325 }
 0x5c5   : > { %22856 = vst [vmem:[#allocation125_spill] sm:$0xff] %v19296_v55  ;;  %v8101_v38 = vsel %vm6355_vm6, %v19296_v55, 0.0  ;;  %v7138_v32 = vpop.trf.xlu0 }
 0x5c6   : > { %v7321_v9 = vrot.slane %v7138_v32, %v19201_v46 }
 0x5c8   : > { %7180 = vbcast.lane.b32.xlu0 %v7178_v10, 256  ;;  %7169 = vbcast.lane.b32.xlu1 %v7167_v56, 256 }
 0x5cc   : > { %7191 = vbcast.lane.b32.xlu0 %v7189_v44, 256  ;;  %7173 = vbcast.lane.b32.xlu1 %v7167_v56, 264  ;;  %v7803_v56 = vsub.f32 %v22855_v42, %v19233_v35  ;;  %v19304_v35 = vpop.eup %14327  ;;  %v22871_v42 = vld [vmem:[#allocation69_spill] sm:$0xff] }
 0x5cd   : > { %22859 = vst [vmem:[#allocation115_spill] sm:$0xff] %v19304_v35  ;;  %v8104_v29 = vsel %vm6355_vm6, %v19304_v35, 0.0 }
 0x5d0   : > { %7202 = vbcast.lane.b32.xlu0 %v7200_v27, 256  ;;  %7184 = vbcast.lane.b32.xlu1 %v7178_v10, 264  ;;  %v7812_v10 = vsub.f32 %v22854_v20, %v19229_v47  ;;  %v22858_v47 = vld [vmem:[#allocation199_spill] sm:$0xff] }
 0x5d2   : > { %v7871_v22 = vmul.f32 1.442695, %v7812_v10 }
 0x5d4   : > { %7213 = vbcast.lane.b32.xlu0 %v7211_v45, 256  ;;  %7195 = vbcast.lane.b32.xlu1 %v7189_v44, 264  ;;  %v8092_v44 = vsel %vm6355_vm6, %v19288_v24, 0.0  ;;  %14337 = vpow2.f32 %v7871_v22 }
 0x5d8   : > { %7224 = vbcast.lane.b32.xlu0 %v7222_v2, 256  ;;  %7206 = vbcast.lane.b32.xlu1 %v7200_v27, 264  ;;  %v22857_v27 = vld [vmem:[#allocation191_spill] sm:$0xff] }
 0x5dc   : > { %7235 = vbcast.lane.b32.xlu0 %v7233_v21, 256  ;;  %7217 = vbcast.lane.b32.xlu1 %v7211_v45, 264  ;;  %v7814_v45 = vsub.f32 %v22857_v27, %v19231_v15  ;;  %v22861_v15 = vld [vmem:[#allocation61_spill] sm:$0xff] }
 0x5dd   : > { %v7809_v62 = vsub.f32 %v22861_v15, %v19243_v41 }
 0x5de   : > { %v7875_v50 = vmul.f32 1.442695, %v7814_v45 }
 0x5df   : > { %v7865_v30 = vmul.f32 1.442695, %v7809_v62 }
 0x5e0   : > { %7228 = vbcast.lane.b32.xlu1 %v7222_v2, 264  ;;  %v7853_v2 = vmul.f32 1.442695, %v7803_v56  ;;  %v7815_v56 = vsub.f32 %v22871_v42, %v19253_v40  ;;  %v19394_v42 = vpop.permute.xlu1 %7724 }
 0x5e2   : > { %14339 = vpow2.f32 %v7853_v2  ;;  %v7877_v45 = vmul.f32 1.442695, %v7815_v56  ;;  %v22874_v2 = vld [vmem:[#allocation38_spill] sm:$0xff] }
 0x5e3   : > { %14341 = vpow2.f32 %v7875_v50 }
 0x5e4   : > { %7239 = vbcast.lane.b32.xlu1 %v7233_v21, 264  ;;  %v7807_v21 = vsub.f32 %v22858_v47, %v19237_v63  ;;  %v19312_v63 = vpop.eup %14329  ;;  %v7817_v47 = vsub.f32 %v22874_v2, %v19255_v48 }
 0x5e5   : > { %22862 = vst [vmem:[#allocation117_spill] sm:$0xff] %v19312_v63  ;;  %v19314_v52 = vpop.eup %14331  ;;  %v8110_v41 = vsel %vm6355_vm6, %v19312_v63, 0.0 }
 0x5e6   : > { %v7861_v53 = vmul.f32 1.442695, %v7807_v21  ;;  %22863 = vst [vmem:[#allocation118_spill] sm:$0xff] %v19314_v52  ;;  %v19322_v19 = vpop.eup %14333  ;;  %v8089_v25 = vsel %vm6355_vm6, %v19314_v52, 0.0  ;;  %v7881_v33 = vmul.f32 1.442695, %v7817_v47  ;;  %v19406_v47 = vpop.permute.xlu1 %7735 }
 0x5e7   : > { %22866 = vst [vmem:[#allocation104_spill] sm:$0xff] %v19322_v19  ;;  %v19326_v58 = vpop.eup %14335  ;;  %v8116_v6 = vsel %vm6355_vm6, %v19322_v19, 0.0  ;;  %v22887_v52 = vld [vmem:[#allocation31_spill] sm:$0xff] }
 0x5e8   : > { %14343 = vpow2.f32 %v7861_v53  ;;  %22867 = vst [vmem:[#allocation143_spill] sm:$0xff] %v19326_v58  ;;  %v19332_v18 = vpop.eup %14337  ;;  %v8098_v20 = vsel %vm6355_vm6, %v19326_v58, 0.0  ;;  %v22877_v53 = vld [vmem:[#allocation126_spill] sm:$0xff] }
 0x5e9   : > { %14345 = vpow2.f32 %v7879_v8  ;;  %22869 = vst [vmem:[#allocation114_spill] sm:$0xff] %v19332_v18  ;;  %v8122_v23 = vsel %vm6355_vm6, %v19332_v18, 0.0  ;;  %v7818_v15 = vsub.f32 %v22877_v53, %v19257_v26 }
 0x5ea   : > { %14347 = vpow2.f32 %v7865_v30  ;;  %v7820_v30 = vsub.f32 %v22880_v12, %v19259_v11  ;;  %v19384_v11 = vpop.trf.xlu0  ;;  %v7277_v12 = vrot.slane %v7138_v32, %v19120_v51 }
 0x5eb   : > { %14349 = vpow2.f32 %v7885_v13  ;;  %v7883_v0 = vmul.f32 1.442695, %v7818_v15  ;;  %v19414_v15 = vpop.permute.xlu1 %7739 }
 0x5ec   : > { %v19336_v10 = vpop.eup %14339  ;;  %14351 = vpow2.f32 %v7869_v43  ;;  %v7887_v13 = vmul.f32 1.442695, %v7820_v30 }
 0x5ed   : > { %22870 = vst [vmem:[#allocation162_spill] sm:$0xff] %v19336_v10  ;;  %v8095_v22 = vsel %vm6355_vm6, %v19336_v10, 0.0  ;;  %14353 = vpow2.f32 %v7873_v57 }
 0x5ee   : > { %14355 = vpow2.f32 %v7877_v45  ;;  %v19392_v57 = vpop.permute.xlu0 %7690 }
 0x5ef   : > { %14357 = vpow2.f32 %v7881_v33  ;;  %v7255_v33 = vrot.slane %v7138_v32, %v19110_v31 }
 0x5f0   : > { %14359 = vpow2.f32 %v7883_v0  ;;  %v19419_v0 = vpop.permute.xlu1 %7750 }
 0x5f1   : > { %14361 = vpow2.f32 %v7887_v13  ;;  %v7299_v13 = vrot.slane %v7138_v32, %v19167_v59 }
 0x5f2   : > { %v19404_v2 = vpop.permute.xlu0 %7705 }
 0x5f6   : > { %v19412_v53 = vpop.permute.xlu0 %7694 }
 0x5fb   : > { %8093 = vadd.xlane.f32.xlu0 %v8092_v44  ;;  %v19342_v44 = vpop.eup %14341 }
 0x5fc   : > { %22872 = vst [vmem:[#allocation135_spill] sm:$0xff] %v19342_v44  ;;  %v19346_v27 = vpop.eup %14343  ;;  %v8128_v40 = vsel %vm6355_vm6, %v19342_v44, 0.0  ;;  %v7409_v44 = vrot.slane %v19384_v11, %v19201_v46  ;;  %v7828_v46 = vsub.f32 %v22887_v52, %v19358_v37 }
 0x5fd   : > { %22873 = vst [vmem:[#allocation134_spill] sm:$0xff] %v19346_v27  ;;  %v19352_v21 = vpop.eup %14345 }
 0x5fe   : > { %22875 = vst [vmem:[#allocation175_spill] sm:$0xff] %v19352_v21  ;;  %v19356_v50 = vpop.eup %14347  ;;  %v8134_v48 = vsel %vm6355_vm6, %v19352_v21, 0.0 }
 0x5ff   : > { %8102 = vadd.xlane.f32.xlu0 %v8101_v38  ;;  %v8107_v38 = vsel %vm6355_vm6, %v19346_v27, 0.0  ;;  %22876 = vst [vmem:[#allocation152_spill] sm:$0xff] %v19356_v50  ;;  %v19364_v62 = vpop.eup %14349  ;;  %v22940_v27 = vld [vmem:[#allocation192_spill] sm:$0xff] }
 0x600   : > { %22878 = vst [vmem:[#allocation163_spill] sm:$0xff] %v19364_v62  ;;  %v19368_v8 = vpop.eup %14351  ;;  %v8143_v26 = vsel %vm6355_vm6, %v19364_v62, 0.0 }
 0x601   : > { %22879 = vst [vmem:[#allocation164_spill] sm:$0xff] %v19368_v8 }
 0x603   : > { %8105 = vadd.xlane.f32.xlu0 %v8104_v29  ;;  %v8113_v29 = vsel %vm6355_vm6, %v19356_v50, 0.0 }
 0x607   : > { %8111 = vadd.xlane.f32.xlu0 %v8110_v41  ;;  %v8119_v41 = vsel %vm6355_vm6, %v19368_v8, 0.0 }
 0x608   : > { %8090 = vadd.xlane.f32.xlu1 %v8089_v25  ;;  %v19378_v25 = vpop.eup %14353 }
 0x609   : > { %22881 = vst [vmem:[#allocation145_spill] sm:$0xff] %v19378_v25  ;;  %v8125_v43 = vsel %vm6355_vm6, %v19378_v25, 0.0  ;;  %v19382_v60 = vpop.eup %14355 }
 0x60a   : > { %22882 = vst [vmem:[#allocation160_spill] sm:$0xff] %v19382_v60 }
 0x60b   : > { %8117 = vadd.xlane.f32.xlu0 %v8116_v6  ;;  %v8131_v6 = vsel %vm6355_vm6, %v19382_v60, 0.0 }
 0x60c   : > { %8099 = vadd.xlane.f32.xlu1 %v8098_v20  ;;  %v19390_v20 = vpop.eup %14357 }
 0x60d   : > { %22883 = vst [vmem:[#allocation82_spill] sm:$0xff] %v19390_v20  ;;  %v8137_v56 = vsel %vm6355_vm6, %v19390_v20, 0.0 }
 0x60f   : > { %8123 = vadd.xlane.f32.xlu0 %v8122_v23  ;;  %v19398_v23 = vpop.eup %14359 }
 0x610   : > { %8096 = vadd.xlane.f32.xlu1 %v8095_v22  ;;  %22884 = vst [vmem:[#allocation154_spill] sm:$0xff] %v19398_v23  ;;  %v8140_v22 = vsel %vm6355_vm6, %v19398_v23, 0.0  ;;  %v19402_v45 = vpop.eup %14361 }
 0x611   : > { %22885 = vst [vmem:[#allocation79_spill] sm:$0xff] %v19402_v45 }
 0x613   : > { %8129 = vadd.xlane.f32.xlu0 %v8128_v40  ;;  %v7244_v40 = vrot.slane %v7138_v32, %v19102_v34 }
 0x614   : > { %8108 = vadd.xlane.f32.xlu1 %v8107_v38  ;;  %v8146_v38 = vsel %vm6355_vm6, %v19402_v45, 0.0  ;;  %v7365_v45 = vrot.slane %v19384_v11, %v19120_v51  ;;  %v22942_v51 = vld [vmem:[#allocation171_spill] sm:$0xff] }
 0x617   : > { %8135 = vadd.xlane.f32.xlu0 %v8134_v48  ;;  %v7266_v48 = vrot.slane %v7138_v32, %v19115_v3 }
 0x618   : > { %8114 = vadd.xlane.f32.xlu1 %v8113_v29  ;;  %v19417_v29 = vpop.permute.xlu0 %7716 }
 0x61b   : > { %8144 = vadd.xlane.f32.xlu0 %v8143_v26  ;;  %v19424_v26 = vpop.permute.xlu1 %7754 }
 0x61c   : > { %8120 = vadd.xlane.f32.xlu1 %v8119_v41  ;;  %v19422_v30 = vpop.permute.xlu0 %7731  ;;  %v7288_v41 = vrot.slane %v7138_v32, %v19146_v17 }
 0x620   : > { %8126 = vadd.xlane.f32.xlu1 %v8125_v43  ;;  %v19428_v43 = vpop.permute.xlu0 %7746 }
 0x624   : > { %8132 = vadd.xlane.f32.xlu1 %v8131_v6  ;;  %v19430_v6 = vpop.permute.xlu1 %7765 }
 0x628   : > { %8138 = vadd.xlane.f32.xlu1 %v8137_v56  ;;  %v7310_v56 = vrot.slane %v7138_v32, %v19187_v4 }
 0x62c   : > { %8141 = vadd.xlane.f32.xlu1 %v8140_v22  ;;  %v19433_v22 = vpop.permute.xlu0 %7761 }
 0x630   : > { %8147 = vadd.xlane.f32.xlu1 %v8146_v38  ;;  %v19435_v38 = vpop.permute.xlu1 %7769  ;;  %v19440_v23 = vpop.permute.xlu0 %7776 }
 0x631   : > { %7246 = vbcast.lane.b32.xlu0 %v7244_v40, 256 }
 0x634   : > { %v19442_v62 = vpop.permute.xlu1 %7780  ;;  %v19448_v32 = vpop.permute.xlu0 %7784 }
 0x635   : > { %7257 = vbcast.lane.b32.xlu0 %v7255_v33, 256 }
 0x638   : > { %v19454_v20 = vpop.permute.xlu0 %7795 }
 0x639   : > { %7268 = vbcast.lane.b32.xlu0 %v7266_v48, 256 }
 0x63c   : > { %v7159_v60 = vpop.permute.xlu0 %7158 }
 0x63d   : > { %7279 = vbcast.lane.b32.xlu0 %v7277_v12, 256 }
 0x640   : > { %v19464_v25 = vpop.permute.xlu0 %7180 }
 0x641   : > { %7250 = vbcast.lane.b32.xlu1 %v7244_v40, 264  ;;  %7290 = vbcast.lane.b32.xlu0 %v7288_v41, 256  ;;  %v7332_v40 = vrot.slane %v19384_v11, %v19102_v34 }
 0x644   : > { %v19472_v50 = vpop.permute.xlu0 %7191 }
 0x645   : > { %7261 = vbcast.lane.b32.xlu1 %v7255_v33, 264  ;;  %7301 = vbcast.lane.b32.xlu0 %v7299_v13, 256  ;;  %v7343_v33 = vrot.slane %v19384_v11, %v19110_v31 }
 0x649   : > { %7272 = vbcast.lane.b32.xlu1 %v7266_v48, 264  ;;  %7312 = vbcast.lane.b32.xlu0 %v7310_v56, 256  ;;  %v7354_v48 = vrot.slane %v19384_v11, %v19115_v3  ;;  %v22946_v3 = vld [vmem:[#allocation62_spill] sm:$0xff] }
 0x64d   : > { %7283 = vbcast.lane.b32.xlu1 %v7277_v12, 264  ;;  %7323 = vbcast.lane.b32.xlu0 %v7321_v9, 256  ;;  %v19450_v12 = vpop.permute.xlu1 %7791 }
 0x651   : > { %7294 = vbcast.lane.b32.xlu1 %v7288_v41, 264  ;;  %7334 = vbcast.lane.b32.xlu0 %v7332_v40, 256  ;;  %v19456_v41 = vpop.permute.xlu1 %7799 }
 0x655   : > { %7305 = vbcast.lane.b32.xlu1 %v7299_v13, 264  ;;  %7345 = vbcast.lane.b32.xlu0 %v7343_v33, 256  ;;  %v7376_v13 = vrot.slane %v19384_v11, %v19146_v17  ;;  %v19460_v21 = vpop.permute.xlu1 %7162 }
 0x659   : > { %7316 = vbcast.lane.b32.xlu1 %v7310_v56, 264  ;;  %7356 = vbcast.lane.b32.xlu0 %v7354_v48, 256  ;;  %v7387_v56 = vrot.slane %v19384_v11, %v19167_v59  ;;  %v19466_v18 = vpop.permute.xlu1 %7169 }
 0x65d   : > { %7327 = vbcast.lane.b32.xlu1 %v7321_v9, 264  ;;  %7367 = vbcast.lane.b32.xlu0 %v7365_v45, 256  ;;  %v7398_v9 = vrot.slane %v19384_v11, %v19187_v4  ;;  %v22886_v11 = vsub.f32 %v22845_v36, %v19245_v39 }
 0x661   : > { %7338 = vbcast.lane.b32.xlu1 %v7332_v40, 264  ;;  %7378 = vbcast.lane.b32.xlu0 %v7376_v13, 256  ;;  %v19474_v40 = vpop.permute.xlu1 %7173 }
 0x665   : > { %7349 = vbcast.lane.b32.xlu1 %v7343_v33, 264  ;;  %7389 = vbcast.lane.b32.xlu0 %v7387_v56, 256  ;;  %v19476_v33 = vpop.permute.xlu0 %7202  ;;  %v19478_v35 = vpop.permute.xlu1 %7184 }
 0x669   : > { %7360 = vbcast.lane.b32.xlu1 %v7354_v48, 264  ;;  %7400 = vbcast.lane.b32.xlu0 %v7398_v9, 256  ;;  %v19480_v10 = vpop.permute.xlu0 %7213  ;;  %v19482_v24 = vpop.permute.xlu1 %7195  ;;  %v7897_v48 = vmul.f32 1.442695, %v22886_v11 }
 0x66b   : > { %14363 = vpow2.f32 %v7897_v48 }
 0x66d   : > { %7371 = vbcast.lane.b32.xlu1 %v7365_v45, 264  ;;  %7411 = vbcast.lane.b32.xlu0 %v7409_v44, 256  ;;  %v7903_v45 = vmul.f32 1.442695, %v7828_v46  ;;  %v19491_v59 = vpop.permute.xlu0 %7224  ;;  %v22890_v46 = vld [vmem:[#allocation182_spill] sm:$0xff] }
 0x66f   : > { %14365 = vpow2.f32 %v7903_v45 }
 0x671   : > { %7382 = vbcast.lane.b32.xlu1 %v7376_v13, 264  ;;  %v22888_v13 = vld [vmem:[#allocation149_spill] sm:$0xff]  ;;  %v19497_v39 = vpop.permute.xlu0 %7235 }
 0x672   : > { %v7830_v4 = vsub.f32 %v22888_v13, %v19374_v16 }
 0x674   : > { %v7907_v17 = vmul.f32 1.442695, %v7830_v4  ;;  %v22892_v4 = vld [vmem:[#allocation144_spill] sm:$0xff] }
 0x675   : > { %7393 = vbcast.lane.b32.xlu1 %v7387_v56, 264  ;;  %v19493_v56 = vpop.permute.xlu1 %7206  ;;  %v19503_v37 = vpop.eup %14363  ;;  %v7835_v48 = vsub.f32 %v22892_v4, %v19406_v47  ;;  %v22896_v47 = vld [vmem:[#allocation21_spill] sm:$0xff] }
 0x676   : > { %14367 = vpow2.f32 %v7907_v17  ;;  %22891 = vst [vmem:[#allocation63_spill] sm:$0xff] %v19503_v37  ;;  %v8161_v17 = vsel %vm6355_vm6, %v19503_v37, 0.0  ;;  %v7829_v4 = vsub.f32 %v22896_v47, %v19404_v2 }
 0x679   : > { %7404 = vbcast.lane.b32.xlu1 %v7398_v9, 264  ;;  %v22889_v9 = vld [vmem:[#allocation102_spill] sm:$0xff]  ;;  %v19499_v36 = vpop.permute.xlu1 %7217 }
 0x67a   : > { %v7832_v8 = vsub.f32 %v22889_v9, %v19386_v61  ;;  %v22893_v61 = vld [vmem:[#allocation84_spill] sm:$0xff]  ;;  %v7917_v9 = vmul.f32 1.442695, %v7835_v48 }
 0x67b   : > { %v7826_v45 = vsub.f32 %v22893_v61, %v19392_v57 }
 0x67c   : > { %v7911_v52 = vmul.f32 1.442695, %v7832_v8  ;;  %v19515_v8 = vpop.eup %14365 }
 0x67d   : > { %7415 = vbcast.lane.b32.xlu1 %v7409_v44, 264  ;;  %v7833_v44 = vsub.f32 %v22890_v46, %v19394_v42  ;;  %v19511_v13 = vpop.permute.xlu1 %7228  ;;  %22894 = vst [vmem:[#allocation75_spill] sm:$0xff] %v19515_v8  ;;  %v8170_v57 = vsel %vm6355_vm6, %v19515_v8, 0.0 }
 0x67e   : > { %14369 = vpow2.f32 %v7911_v52  ;;  %v22895_v52 = vld [vmem:[#allocation43_spill] sm:$0xff] }
 0x67f   : > { %v7913_v11 = vmul.f32 1.442695, %v7833_v44  ;;  %v7417_v46 = vsub.f32 %v22895_v52, %v7159_v60  ;;  %v7899_v44 = vmul.f32 1.442695, %v7826_v45  ;;  %v7905_v60 = vmul.f32 1.442695, %v7829_v4 }
 0x680   : > { %v19524_v61 = vpop.eup %14367  ;;  %v22899_v45 = vld [vmem:[#allocation196_spill] sm:$0xff] }
 0x681   : > { %14371 = vpow2.f32 %v7913_v11  ;;  %22897 = vst [vmem:[#allocation72_spill] sm:$0xff] %v19524_v61  ;;  %v19528_v37 = vpop.permute.xlu1 %7239  ;;  %v22898_v11 = vld [vmem:[#allocation96_spill] sm:$0xff]  ;;  %v7827_v2 = vsub.f32 %v22899_v45, %v19412_v53  ;;  %v8176_v52 = vsel %vm6355_vm6, %v19524_v61, 0.0 }
 0x682   : > { %14373 = vpow2.f32 %v7917_v9  ;;  %v7419_v48 = vsub.f32 %v22898_v11, %v19466_v18  ;;  %v22902_v4 = vld [vmem:[#allocation112_spill] sm:$0xff] }
 0x683   : > { %14375 = vpow2.f32 %v7899_v44  ;;  %v7901_v44 = vmul.f32 1.442695, %v7827_v2  ;;  %v7831_v53 = vsub.f32 %v22902_v4, %v19417_v29  ;;  %v22905_v2 = vld [vmem:[#allocation139_spill] sm:$0xff] }
 0x684   : > { %v7469_v9 = vmul.f32 1.442695, %v7419_v48  ;;  %v22904_v48 = vld [vmem:[#allocation50_spill] sm:$0xff]  ;;  %v7834_v29 = vsub.f32 %v22905_v2, %v19422_v30  ;;  %v22909_v30 = vld [vmem:[#allocation23_spill] sm:$0xff] }
 0x688   : > { %v19505_v16 = vpop.xlane.xlu0 %8093  ;;  %v19536_v47 = vpop.eup %14369 }
 0x689   : > { %22900 = vst [vmem:[#allocation11_spill] sm:$0xff] %v19536_v47  ;;  %v8182_v11 = vsel %vm6355_vm6, %v19536_v47, 0.0 }
 0x68b   : > { %v19548_v45 = vpop.eup %14371 }
 0x68c   : > { %v19517_v42 = vpop.xlane.xlu0 %8102  ;;  %8162 = vadd.xlane.f32.xlu0 %v8161_v17  ;;  %v7465_v17 = vmul.f32 1.442695, %v7417_v46  ;;  %v22901_v46 = vld [vmem:[#allocation174_spill] sm:$0xff]  ;;  %22903 = vst [vmem:[#allocation138_spill] sm:$0xff] %v19548_v45  ;;  %v19560_v4 = vpop.eup %14373 }
 0x68d   : > { %v7420_v18 = vsub.f32 %v22901_v46, %v19474_v40  ;;  %v7422_v40 = vsub.f32 %v22904_v48, %v19478_v35  ;;  %v8185_v46 = vsel %vm6355_vm6, %v19548_v45, 0.0  ;;  %22906 = vst [vmem:[#allocation33_spill] sm:$0xff] %v19560_v4  ;;  %v22908_v35 = vld [vmem:[#allocation87_spill] sm:$0xff]  ;;  %v7418_v48 = vsub.f32 %v22909_v30, %v19460_v21  ;;  %v22912_v21 = vld [vmem:[#allocation81_spill] sm:$0xff]  ;;  %v22913_v30 = vld [vmem:[#allocation42_spill] sm:$0xff] }
 0x68e   : > { %14377 = vpow2.f32 %v7465_v17  ;;  %v8191_v2 = vsel %vm6355_vm6, %v19560_v4, 0.0  ;;  %v7421_v4 = vsub.f32 %v22913_v30, %v19464_v25  ;;  %v22916_v25 = vld [vmem:[#allocation39_spill] sm:$0xff] }
 0x68f   : > { %14379 = vpow2.f32 %v7905_v60  ;;  %v7471_v17 = vmul.f32 1.442695, %v7420_v18  ;;  %v7909_v60 = vmul.f32 1.442695, %v7831_v53  ;;  %v7475_v18 = vmul.f32 1.442695, %v7422_v40 }
 0x690   : > { %v19526_v19 = vpop.xlane.xlu0 %8105  ;;  %8171 = vadd.xlane.f32.xlu0 %v8170_v57  ;;  %14381 = vpow2.f32 %v7469_v9  ;;  %v7915_v53 = vmul.f32 1.442695, %v7834_v29  ;;  %v7426_v29 = vsub.f32 %v22912_v21, %v19493_v56  ;;  %v22917_v21 = vld [vmem:[#allocation167_spill] sm:$0xff] }
 0x691   : > { %14383 = vpow2.f32 %v7901_v44  ;;  %v7424_v44 = vsub.f32 %v22908_v35, %v19482_v24  ;;  %v7467_v35 = vmul.f32 1.442695, %v7418_v48  ;;  %v7428_v48 = vsub.f32 %v22916_v25, %v19499_v36  ;;  %v22921_v25 = vld [vmem:[#allocation168_spill] sm:$0xff] }
 0x692   : > { %14385 = vpow2.f32 %v7471_v17  ;;  %v7423_v30 = vsub.f32 %v22917_v21, %v19472_v50  ;;  %v22920_v50 = vld [vmem:[#allocation65_spill] sm:$0xff]  ;;  %v7425_v21 = vsub.f32 %v22921_v25, %v19476_v33 }
 0x693   : > { %14387 = vpow2.f32 %v7909_v60  ;;  %v7479_v60 = vmul.f32 1.442695, %v7424_v44 }
 0x694   : > { %v19538_v8 = vpop.xlane.xlu0 %8111  ;;  %8177 = vadd.xlane.f32.xlu0 %v8176_v52  ;;  %14389 = vpow2.f32 %v7475_v18 }
 0x695   : > { %v19540_v57 = vpop.xlane.xlu1 %8090  ;;  %14391 = vpow2.f32 %v7915_v53  ;;  %v7483_v53 = vmul.f32 1.442695, %v7426_v29 }
 0x696   : > { %14393 = vpow2.f32 %v7479_v60 }
 0x697   : > { %14395 = vpow2.f32 %v7467_v35  ;;  %v7430_v35 = vsub.f32 %v22920_v50, %v19511_v13  ;;  %v22925_v50 = vld [vmem:[#allocation113_spill] sm:$0xff] }
 0x698   : > { %v19550_v61 = vpop.xlane.xlu0 %8117  ;;  %8183 = vadd.xlane.f32.xlu0 %v8182_v11  ;;  %v19564_v11 = vpop.eup %14375  ;;  %14397 = vpow2.f32 %v7483_v53  ;;  %v7427_v25 = vsub.f32 %v22925_v50, %v19480_v10  ;;  %v22928_v10 = vld [vmem:[#allocation185_spill] sm:$0xff] }
 0x699   : > { %v19552_v52 = vpop.xlane.xlu1 %8099  ;;  %22907 = vst [vmem:[#allocation108_spill] sm:$0xff] %v19564_v11  ;;  %v19574_v45 = vpop.eup %14377  ;;  %v8164_v17 = vsel %vm6355_vm6, %v19564_v11, 0.0  ;;  %v7491_v13 = vmul.f32 1.442695, %v7430_v35 }
 0x69a   : > { %22910 = vst [vmem:[#allocation150_spill] sm:$0xff] %v19574_v45  ;;  %v19580_v40 = vpop.eup %14379 }
 0x69b   : > { %22911 = vst [vmem:[#allocation14_spill] sm:$0xff] %v19580_v40  ;;  %v19590_v63 = vpop.eup %14381  ;;  %v8173_v18 = vsel %vm6355_vm6, %v19580_v40, 0.0 }
 0x69c   : > { %v19562_v47 = vpop.xlane.xlu0 %8123  ;;  %8186 = vadd.xlane.f32.xlu0 %v8185_v46  ;;  %22914 = vst [vmem:[#allocation110_spill] sm:$0xff] %v19590_v63  ;;  %v19596_v44 = vpop.eup %14383 }
 0x69d   : > { %v19566_v9 = vpop.xlane.xlu1 %8096  ;;  %22915 = vst [vmem:[#allocation186_spill] sm:$0xff] %v19596_v44  ;;  %v8167_v60 = vsel %vm6355_vm6, %v19596_v44, 0.0 }
 0x6a0   : > { %v19576_v46 = vpop.xlane.xlu0 %8129  ;;  %8192 = vadd.xlane.f32.xlu0 %v8191_v2  ;;  %v7945_v2 = vsel %vm6210_vm5, %v19574_v45, 0.0  ;;  %v19606_v45 = vpop.eup %14385 }
 0x6a1   : > { %8165 = vadd.xlane.f32.xlu1 %v8164_v17  ;;  %v19582_v24 = vpop.xlane.xlu1 %8108  ;;  %v7473_v17 = vmul.f32 1.442695, %v7421_v4  ;;  %22918 = vst [vmem:[#allocation191_spill] sm:$0xff] %v19606_v45  ;;  %v19612_v29 = vpop.eup %14387  ;;  %v7487_v4 = vmul.f32 1.442695, %v7428_v48 }
 0x6a2   : > { %22919 = vst [vmem:[#allocation199_spill] sm:$0xff] %v19612_v29 }
 0x6a3   : > { %14399 = vpow2.f32 %v7473_v17  ;;  %v22924_v17 = vld [vmem:[#allocation193_spill] sm:$0xff] }
 0x6a4   : > { %v19592_v11 = vpop.xlane.xlu0 %8135  ;;  %7946 = vadd.xlane.f32.xlu0 %v7945_v2  ;;  %v7951_v2 = vsel %vm6210_vm5, %v19590_v63, 0.0  ;;  %v19622_v63 = vpop.eup %14389  ;;  %14401 = vpow2.f32 %v7487_v4  ;;  %v7432_v33 = vsub.f32 %v22924_v17, %v19528_v37 }
 0x6a5   : > { %8174 = vadd.xlane.f32.xlu1 %v8173_v18  ;;  %v19598_v56 = vpop.xlane.xlu1 %8114  ;;  %v7477_v18 = vmul.f32 1.442695, %v7423_v30  ;;  %22922 = vst [vmem:[#allocation128_spill] sm:$0xff] %v19622_v63  ;;  %v19626_v53 = vpop.eup %14391  ;;  %v7481_v30 = vmul.f32 1.442695, %v7425_v21  ;;  %v7429_v21 = vsub.f32 %v22928_v10, %v19491_v59  ;;  %v22931_v59 = vld [vmem:[#allocation194_spill] sm:$0xff] }
 0x6a6   : > { %22923 = vst [vmem:[#allocation61_spill] sm:$0xff] %v19626_v53  ;;  %v7495_v37 = vmul.f32 1.442695, %v7432_v33 }
 0x6a7   : > { %14403 = vpow2.f32 %v7477_v18  ;;  %v7485_v18 = vmul.f32 1.442695, %v7427_v25  ;;  %v7489_v33 = vmul.f32 1.442695, %v7429_v21 }
 0x6a8   : > { %v19608_v40 = vpop.xlane.xlu0 %8144  ;;  %7952 = vadd.xlane.f32.xlu0 %v7951_v2  ;;  %v7954_v2 = vsel %vm6210_vm5, %v19606_v45, 0.0  ;;  %v19636_v45 = vpop.eup %14393  ;;  %14405 = vpow2.f32 %v7491_v13 }
 0x6a9   : > { %8168 = vadd.xlane.f32.xlu1 %v8167_v60  ;;  %v19614_v36 = vpop.xlane.xlu1 %8120  ;;  %v8179_v60 = vsel %vm6355_vm6, %v19612_v29, 0.0  ;;  %22926 = vst [vmem:[#allocation32_spill] sm:$0xff] %v19636_v45  ;;  %v19640_v4 = vpop.eup %14395  ;;  %14407 = vpow2.f32 %v7481_v30  ;;  %v7966_v17 = vsel %vm6210_vm5, %v19636_v45, 0.0  ;;  %v7431_v30 = vsub.f32 %v22931_v59, %v19497_v39 }
 0x6aa   : > { %22927 = vst [vmem:[#allocation54_spill] sm:$0xff] %v19640_v4  ;;  %v19648_v50 = vpop.eup %14397  ;;  %14409 = vpow2.f32 %v7495_v37 }
 0x6ab   : > { %22929 = vst [vmem:[#allocation189_spill] sm:$0xff] %v19648_v50  ;;  %14411 = vpow2.f32 %v7485_v18  ;;  %v7972_v25 = vsel %vm6210_vm5, %v19648_v50, 0.0  ;;  %v7493_v37 = vmul.f32 1.442695, %v7431_v30  ;;  %v22934_v18 = vld [vmem:[#allocation35_spill] sm:$0xff]  ;;  %v22937_v30 = vld [vmem:[#allocation188_spill] sm:$0xff] }
 0x6ac   : > { %v7247_v44 = vpop.permute.xlu0 %7246  ;;  %7955 = vadd.xlane.f32.xlu0 %v7954_v2  ;;  %v7960_v2 = vsel %vm6210_vm5, %v19622_v63, 0.0  ;;  %14413 = vpow2.f32 %v7489_v33 }
 0x6ad   : > { %8180 = vadd.xlane.f32.xlu1 %v8179_v60  ;;  %v19628_v48 = vpop.xlane.xlu1 %8126  ;;  %v8188_v60 = vsel %vm6355_vm6, %v19626_v53, 0.0  ;;  %v7948_v53 = vsel %vm6210_vm5, %v19640_v4, 0.0  ;;  %v7433_v21 = vsub.f32 %v22934_v18, %v7247_v44  ;;  %14415 = vpow2.f32 %v7493_v37 }
 0x6af   : > { %v7497_v33 = vmul.f32 1.442695, %v7433_v21  ;;  %v22941_v21 = vld [vmem:[#allocation58_spill] sm:$0xff] }
 0x6b0   : > { %v7258_v29 = vpop.permute.xlu0 %7257  ;;  %7961 = vadd.xlane.f32.xlu0 %v7960_v2 }
 0x6b1   : > { %8189 = vadd.xlane.f32.xlu1 %v8188_v60  ;;  %v19642_v35 = vpop.xlane.xlu1 %8132  ;;  %v19652_v60 = vpop.eup %14399  ;;  %v7435_v4 = vsub.f32 %v22937_v30, %v7258_v29  ;;  %14417 = vpow2.f32 %v7497_v33  ;;  %v22943_v33 = vld [vmem:[#allocation80_spill] sm:$0xff] }
 0x6b2   : > { %22930 = vst [vmem:[#allocation69_spill] sm:$0xff] %v19652_v60  ;;  %v19660_v10 = vpop.eup %14401  ;;  %v7957_v45 = vsel %vm6210_vm5, %v19652_v60, 0.0 }
 0x6b3   : > { %22932 = vst [vmem:[#allocation38_spill] sm:$0xff] %v19660_v10  ;;  %v19664_v63 = vpop.eup %14403  ;;  %v7978_v39 = vsel %vm6210_vm5, %v19660_v10, 0.0  ;;  %v7501_v37 = vmul.f32 1.442695, %v7435_v4 }
 0x6b4   : > { %v7269_v2 = vpop.permute.xlu0 %7268  ;;  %7967 = vadd.xlane.f32.xlu0 %v7966_v17  ;;  %22933 = vst [vmem:[#allocation126_spill] sm:$0xff] %v19664_v63  ;;  %v19671_v59 = vpop.eup %14405 }
 0x6b5   : > { %7949 = vadd.xlane.f32.xlu1 %v7948_v53  ;;  %v19654_v13 = vpop.xlane.xlu1 %8138  ;;  %22935 = vst [vmem:[#allocation99_spill] sm:$0xff] %v19671_v59  ;;  %v19675_v60 = vpop.eup %14407  ;;  %v7984_v44 = vsel %vm6210_vm5, %v19671_v59, 0.0  ;;  %v7437_v29 = vsub.f32 %v22941_v21, %v7269_v2 }
 0x6b6   : > { %22936 = vst [vmem:[#allocation31_spill] sm:$0xff] %v19675_v60  ;;  %v19682_v18 = vpop.eup %14409 }
 0x6b7   : > { %22938 = vst [vmem:[#allocation149_spill] sm:$0xff] %v19682_v18  ;;  %v7990_v30 = vsel %vm6210_vm5, %v19682_v18, 0.0  ;;  %v7505_v4 = vmul.f32 1.442695, %v7437_v29 }
 0x6b8   : > { %v7280_v17 = vpop.permute.xlu0 %7279  ;;  %7973 = vadd.xlane.f32.xlu0 %v7972_v25  ;;  %v7963_v25 = vsel %vm6210_vm5, %v19664_v63, 0.0  ;;  %v19686_v63 = vpop.eup %14411 }
 0x6b9   : > { %7958 = vadd.xlane.f32.xlu1 %v7957_v45  ;;  %v19666_v53 = vpop.xlane.xlu1 %8141  ;;  %22939 = vst [vmem:[#allocation102_spill] sm:$0xff] %v19686_v63  ;;  %v7439_v2 = vsub.f32 %v22943_v33, %v7280_v17  ;;  %v22948_v33 = vld [vmem:[#allocation190_spill] sm:$0xff] }
 0x6bc   : > { %v7291_v50 = vpop.permute.xlu0 %7290  ;;  %7979 = vadd.xlane.f32.xlu0 %v7978_v39  ;;  %v7969_v39 = vsel %vm6210_vm5, %v19675_v60, 0.0  ;;  %v19694_v60 = vpop.eup %14413 }
 0x6bd   : > { %7964 = vadd.xlane.f32.xlu1 %v7963_v25  ;;  %v19677_v45 = vpop.xlane.xlu1 %8147 }
 0x6c0   : > { %v7302_v10 = vpop.permute.xlu0 %7301  ;;  %7985 = vadd.xlane.f32.xlu0 %v7984_v44  ;;  %v7975_v44 = vsel %vm6210_vm5, %v19686_v63, 0.0  ;;  %v22945_v63 = vld [vmem:[#allocation187_spill] sm:$0xff] }
 0x6c1   : > { %7970 = vadd.xlane.f32.xlu1 %v7969_v39  ;;  %v7251_v25 = vpop.permute.xlu1 %7250 }
 0x6c2   : > { %v7434_v55 = vsub.f32 %v22940_v27, %v7251_v25 }
 0x6c4   : > { %v7499_v59 = vmul.f32 1.442695, %v7434_v55  ;;  %v7313_v58 = vpop.permute.xlu0 %7312  ;;  %7991 = vadd.xlane.f32.xlu0 %v7990_v30  ;;  %v7981_v55 = vsel %vm6210_vm5, %v19694_v60, 0.0  ;;  %v19700_v30 = vpop.eup %14415 }
 0x6c5   : > { %7976 = vadd.xlane.f32.xlu1 %v7975_v44  ;;  %v7262_v39 = vpop.permute.xlu1 %7261  ;;  %22944 = vst [vmem:[#allocation182_spill] sm:$0xff] %v19700_v30  ;;  %v7987_v17 = vsel %vm6210_vm5, %v19700_v30, 0.0 }
 0x6c6   : > { %14419 = vpow2.f32 %v7499_v59  ;;  %v7436_v27 = vsub.f32 %v22942_v51, %v7262_v39  ;;  %v7509_v59 = vmul.f32 1.442695, %v7439_v2  ;;  %v7441_v51 = vsub.f32 %v22946_v3, %v7291_v50  ;;  %v19708_v39 = vpop.eup %14417 }
 0x6c7   : > { %14421 = vpow2.f32 %v7501_v37  ;;  %22947 = vst [vmem:[#allocation144_spill] sm:$0xff] %v19708_v39  ;;  %v7993_v2 = vsel %vm6210_vm5, %v19708_v39, 0.0 }
 0x6c8   : > { %v7503_v25 = vmul.f32 1.442695, %v7436_v27  ;;  %v7324_v21 = vpop.permute.xlu0 %7323 }
 0x6c9   : > { %7982 = vadd.xlane.f32.xlu1 %v7981_v55  ;;  %v7273_v18 = vpop.permute.xlu1 %7272 }
 0x6ca   : > { %14423 = vpow2.f32 %v7503_v25  ;;  %v7438_v44 = vsub.f32 %v22945_v63, %v7273_v18  ;;  %v7513_v25 = vmul.f32 1.442695, %v7441_v51  ;;  %v22949_v63 = vld [vmem:[#allocation197_spill] sm:$0xff] }
 0x6cb   : > { %14425 = vpow2.f32 %v7505_v4  ;;  %v7443_v18 = vsub.f32 %v22949_v63, %v7302_v10 }
 0x6cc   : > { %v7507_v37 = vmul.f32 1.442695, %v7438_v44  ;;  %v19704_v29 = vpop.permute.xlu0 %7334 }
 0x6cd   : > { %7988 = vadd.xlane.f32.xlu1 %v7987_v17  ;;  %v7284_v27 = vpop.permute.xlu1 %7283  ;;  %v7517_v10 = vmul.f32 1.442695, %v7443_v18  ;;  %v22956_v18 = vld [vmem:[#allocation106_spill] sm:$0xff] }
 0x6ce   : > { %14427 = vpow2.f32 %v7507_v37  ;;  %v7440_v55 = vsub.f32 %v22948_v33, %v7284_v27  ;;  %v22953_v27 = vld [vmem:[#allocation181_spill] sm:$0xff] }
 0x6cf   : > { %14429 = vpow2.f32 %v7509_v59  ;;  %v22952_v59 = vld [vmem:[#allocation60_spill] sm:$0xff]  ;;  %v7445_v33 = vsub.f32 %v22953_v27, %v7313_v58 }
 0x6d0   : > { %v19712_v4 = vpop.eup %14419  ;;  %v7511_v3 = vmul.f32 1.442695, %v7440_v55  ;;  %v19714_v50 = vpop.permute.xlu0 %7345 }
 0x6d1   : > { %22950 = vst [vmem:[#allocation84_spill] sm:$0xff] %v19712_v4  ;;  %v19718_v44 = vpop.eup %14421  ;;  %7994 = vadd.xlane.f32.xlu1 %v7993_v2  ;;  %v7295_v17 = vpop.permute.xlu1 %7294  ;;  %v7996_v37 = vsel %vm6210_vm5, %v19712_v4, 0.0  ;;  %v7521_v58 = vmul.f32 1.442695, %v7445_v33 }
 0x6d2   : > { %22951 = vst [vmem:[#allocation43_spill] sm:$0xff] %v19718_v44  ;;  %14431 = vpow2.f32 %v7511_v3  ;;  %v7442_v51 = vsub.f32 %v22952_v59, %v7295_v17  ;;  %7997 = vadd.xlane.f32.xlu0 %v7996_v37  ;;  %v7999_v39 = vsel %vm6210_vm5, %v19718_v44, 0.0  ;;  %v22955_v37 = vld [vmem:[#allocation55_spill] sm:$0xff]  ;;  %v7447_v59 = vsub.f32 %v22956_v18, %v7324_v21  ;;  %v22960_v21 = vld [vmem:[#allocation132_spill] sm:$0xff] }
 0x6d3   : > { %14433 = vpow2.f32 %v7513_v25  ;;  %v7449_v33 = vsub.f32 %v22960_v21, %v19704_v29 }
 0x6d4   : > { %v19724_v55 = vpop.eup %14423  ;;  %v7515_v63 = vmul.f32 1.442695, %v7442_v51  ;;  %v7357_v17 = vpop.permute.xlu0 %7356 }
 0x6d5   : > { %v19728_v30 = vpop.eup %14425  ;;  %8000 = vadd.xlane.f32.xlu1 %v7999_v39  ;;  %v7306_v2 = vpop.permute.xlu1 %7305  ;;  %v8002_v3 = vsel %vm6210_vm5, %v19724_v55, 0.0  ;;  %v7529_v29 = vmul.f32 1.442695, %v7449_v33 }
 0x6d6   : > { %22954 = vst [vmem:[#allocation21_spill] sm:$0xff] %v19728_v30  ;;  %14435 = vpow2.f32 %v7515_v63  ;;  %v7444_v25 = vsub.f32 %v22955_v37, %v7306_v2  ;;  %8003 = vadd.xlane.f32.xlu0 %v8002_v3  ;;  %v8005_v44 = vsel %vm6210_vm5, %v19728_v30, 0.0  ;;  %v22959_v2 = vld [vmem:[#allocation40_spill] sm:$0xff] }
 0x6d7   : > { %14437 = vpow2.f32 %v7517_v10  ;;  %v7525_v10 = vmul.f32 1.442695, %v7447_v59 }
 0x6d8   : > { %v19734_v51 = vpop.eup %14427  ;;  %v7519_v27 = vmul.f32 1.442695, %v7444_v25  ;;  %v7368_v25 = vpop.permute.xlu0 %7367 }
 0x6d9   : > { %22957 = vst [vmem:[#allocation96_spill] sm:$0xff] %v19734_v51  ;;  %v19738_v39 = vpop.eup %14429  ;;  %8006 = vadd.xlane.f32.xlu1 %v8005_v44  ;;  %v7317_v4 = vpop.permute.xlu1 %7316  ;;  %v8008_v63 = vsel %vm6210_vm5, %v19734_v51, 0.0 }
 0x6da   : > { %22958 = vst [vmem:[#allocation196_spill] sm:$0xff] %v19738_v39  ;;  %14439 = vpow2.f32 %v7519_v27  ;;  %v7446_v3 = vsub.f32 %v22959_v2, %v7317_v4  ;;  %8009 = vadd.xlane.f32.xlu0 %v8008_v63  ;;  %v8011_v44 = vsel %vm6210_vm5, %v19738_v39, 0.0  ;;  %v22964_v27 = vld [vmem:[#allocation195_spill] sm:$0xff] }
 0x6db   : > { %14441 = vpow2.f32 %v7521_v58  ;;  %v22963_v58 = vld [vmem:[#allocation34_spill] sm:$0xff]  ;;  %v7451_v63 = vsub.f32 %v22964_v27, %v19714_v50 }
 0x6dc   : > { %v19745_v37 = vpop.eup %14431  ;;  %v7523_v18 = vmul.f32 1.442695, %v7446_v3 }
 0x6dd   : > { %22961 = vst [vmem:[#allocation174_spill] sm:$0xff] %v19745_v37  ;;  %v19749_v30 = vpop.eup %14433  ;;  %8012 = vadd.xlane.f32.xlu1 %v8011_v44  ;;  %v7328_v51 = vpop.permute.xlu1 %7327  ;;  %v8014_v4 = vsel %vm6210_vm5, %v19745_v37, 0.0  ;;  %v7533_v50 = vmul.f32 1.442695, %v7451_v63 }
 0x6de   : > { %22962 = vst [vmem:[#allocation112_spill] sm:$0xff] %v19749_v30  ;;  %14443 = vpow2.f32 %v7523_v18  ;;  %v7448_v59 = vsub.f32 %v22963_v58, %v7328_v51  ;;  %8015 = vadd.xlane.f32.xlu0 %v8014_v4  ;;  %v8017_v21 = vsel %vm6210_vm5, %v19749_v30, 0.0  ;;  %v7379_v51 = vpop.permute.xlu0 %7378  ;;  %v22968_v4 = vld [vmem:[#allocation137_spill] sm:$0xff] }
 0x6df   : > { %14445 = vpow2.f32 %v7525_v10  ;;  %v22967_v10 = vld [vmem:[#allocation86_spill] sm:$0xff]  ;;  %v7453_v58 = vsub.f32 %v22968_v4, %v7357_v17  ;;  %v22971_v17 = vld [vmem:[#allocation107_spill] sm:$0xff] }
 0x6e0   : > { %v19756_v2 = vpop.eup %14435  ;;  %v7527_v3 = vmul.f32 1.442695, %v7448_v59  ;;  %v7455_v63 = vsub.f32 %v22971_v17, %v7368_v25 }
 0x6e1   : > { %22965 = vst [vmem:[#allocation50_spill] sm:$0xff] %v19756_v2  ;;  %v19760_v44 = vpop.eup %14437  ;;  %8018 = vadd.xlane.f32.xlu1 %v8017_v21  ;;  %v7339_v39 = vpop.permute.xlu1 %7338  ;;  %v8020_v18 = vsel %vm6210_vm5, %v19756_v2, 0.0 }
 0x6e2   : > { %22966 = vst [vmem:[#allocation139_spill] sm:$0xff] %v19760_v44  ;;  %14447 = vpow2.f32 %v7527_v3  ;;  %v7450_v33 = vsub.f32 %v22967_v10, %v7339_v39  ;;  %8021 = vadd.xlane.f32.xlu0 %v8020_v18  ;;  %v8023_v30 = vsel %vm6210_vm5, %v19760_v44, 0.0  ;;  %v22970_v39 = vld [vmem:[#allocation67_spill] sm:$0xff]  ;;  %v7541_v25 = vmul.f32 1.442695, %v7455_v63 }
 0x6e3   : > { %14449 = vpow2.f32 %v7529_v29  ;;  %v7537_v29 = vmul.f32 1.442695, %v7453_v58  ;;  %v22975_v58 = vld [vmem:[#allocation88_spill] sm:$0xff]  ;;  %v22979_v63 = vld [vmem:[#allocation103_spill] sm:$0xff] }
 0x6e4   : > { %v19766_v59 = vpop.eup %14439  ;;  %v7531_v27 = vmul.f32 1.442695, %v7450_v33  ;;  %v7390_v33 = vpop.permute.xlu0 %7389 }
 0x6e5   : > { %v19770_v21 = vpop.eup %14441  ;;  %8024 = vadd.xlane.f32.xlu1 %v8023_v30  ;;  %v7350_v37 = vpop.permute.xlu1 %7349  ;;  %v8026_v3 = vsel %vm6210_vm5, %v19766_v59, 0.0 }
 0x6e6   : > { %22969 = vst [vmem:[#allocation87_spill] sm:$0xff] %v19770_v21  ;;  %14451 = vpow2.f32 %v7531_v27  ;;  %v7452_v18 = vsub.f32 %v22970_v39, %v7350_v37  ;;  %8027 = vadd.xlane.f32.xlu0 %v8026_v3  ;;  %v8029_v44 = vsel %vm6210_vm5, %v19770_v21, 0.0  ;;  %v22974_v37 = vld [vmem:[#allocation51_spill] sm:$0xff]  ;;  %v7457_v3 = vsub.f32 %v22975_v58, %v7379_v51 }
 0x6e7   : > { %14453 = vpow2.f32 %v7533_v50 }
 0x6e8   : > { %v19776_v10 = vpop.eup %14443  ;;  %v7535_v4 = vmul.f32 1.442695, %v7452_v18  ;;  %v7545_v51 = vmul.f32 1.442695, %v7457_v3 }
 0x6e9   : > { %22972 = vst [vmem:[#allocation23_spill] sm:$0xff] %v19776_v10  ;;  %v19780_v30 = vpop.eup %14445  ;;  %8030 = vadd.xlane.f32.xlu1 %v8029_v44  ;;  %v7361_v2 = vpop.permute.xlu1 %7360  ;;  %v8032_v27 = vsel %vm6210_vm5, %v19776_v10, 0.0 }
 0x6ea   : > { %22973 = vst [vmem:[#allocation81_spill] sm:$0xff] %v19780_v30  ;;  %14455 = vpow2.f32 %v7535_v4  ;;  %v7454_v50 = vsub.f32 %v22974_v37, %v7361_v2  ;;  %8033 = vadd.xlane.f32.xlu0 %v8032_v27  ;;  %v8035_v17 = vsel %vm6210_vm5, %v19780_v30, 0.0  ;;  %v7401_v10 = vpop.permute.xlu0 %7400  ;;  %v22978_v2 = vld [vmem:[#allocation121_spill] sm:$0xff]  ;;  %v7459_v27 = vsub.f32 %v22979_v63, %v7390_v33  ;;  %v22982_v33 = vld [vmem:[#allocation91_spill] sm:$0xff] }
 0x6eb   : > { %14457 = vpow2.f32 %v7537_v29  ;;  %v7461_v3 = vsub.f32 %v22982_v33, %v7401_v10 }
 0x6ec   : > { %v19786_v39 = vpop.eup %14447  ;;  %v7539_v18 = vmul.f32 1.442695, %v7454_v50 }
 0x6ed   : > { %22976 = vst [vmem:[#allocation42_spill] sm:$0xff] %v19786_v39  ;;  %v19790_v21 = vpop.eup %14449  ;;  %8036 = vadd.xlane.f32.xlu1 %v8035_v17  ;;  %v7372_v44 = vpop.permute.xlu1 %7371  ;;  %v8038_v4 = vsel %vm6210_vm5, %v19786_v39, 0.0  ;;  %v7553_v10 = vmul.f32 1.442695, %v7461_v3 }
 0x6ee   : > { %22977 = vst [vmem:[#allocation39_spill] sm:$0xff] %v19790_v21  ;;  %14459 = vpow2.f32 %v7539_v18  ;;  %v7456_v29 = vsub.f32 %v22978_v2, %v7372_v44  ;;  %8039 = vadd.xlane.f32.xlu0 %v8038_v4  ;;  %v8041_v58 = vsel %vm6210_vm5, %v19790_v21, 0.0  ;;  %v22981_v44 = vld [vmem:[#allocation85_spill] sm:$0xff] }
 0x6ef   : > { %14461 = vpow2.f32 %v7541_v25  ;;  %v7549_v25 = vmul.f32 1.442695, %v7459_v27  ;;  %v22986_v27 = vld [vmem:[#allocation53_spill] sm:$0xff] }
 0x6f0   : > { %v19796_v37 = vpop.eup %14451  ;;  %v7543_v50 = vmul.f32 1.442695, %v7456_v29  ;;  %v7412_v29 = vpop.permute.xlu0 %7411 }
 0x6f1   : > { %v19800_v17 = vpop.eup %14453  ;;  %8042 = vadd.xlane.f32.xlu1 %v8041_v58  ;;  %v7383_v30 = vpop.permute.xlu1 %7382  ;;  %v8044_v18 = vsel %vm6210_vm5, %v19796_v37, 0.0 }
 0x6f2   : > { %22980 = vst [vmem:[#allocation167_spill] sm:$0xff] %v19800_v17  ;;  %14463 = vpow2.f32 %v7543_v50  ;;  %v7458_v4 = vsub.f32 %v22981_v44, %v7383_v30  ;;  %8045 = vadd.xlane.f32.xlu0 %v8044_v18  ;;  %v8047_v21 = vsel %vm6210_vm5, %v19800_v17, 0.0  ;;  %v22985_v30 = vld [vmem:[#allocation97_spill] sm:$0xff]  ;;  %v7463_v18 = vsub.f32 %v22986_v27, %v7412_v29 }
 0x6f3   : > { %14465 = vpow2.f32 %v7545_v51 }
 0x6f4   : > { %v19806_v2 = vpop.eup %14455  ;;  %v7547_v63 = vmul.f32 1.442695, %v7458_v4  ;;  %v7557_v29 = vmul.f32 1.442695, %v7463_v18  ;;  %v22995_v18 = vld [vmem:[#allocation83_spill] sm:$0xff] }
 0x6f5   : > { %22983 = vst [vmem:[#allocation65_spill] sm:$0xff] %v19806_v2  ;;  %v19810_v58 = vpop.eup %14457  ;;  %8048 = vadd.xlane.f32.xlu1 %v8047_v21  ;;  %v7394_v39 = vpop.permute.xlu1 %7393  ;;  %v8050_v50 = vsel %vm6210_vm5, %v19806_v2, 0.0 }
 0x6f6   : > { %22984 = vst [vmem:[#allocation168_spill] sm:$0xff] %v19810_v58  ;;  %14467 = vpow2.f32 %v7547_v63  ;;  %v7460_v51 = vsub.f32 %v22985_v30, %v7394_v39  ;;  %8051 = vadd.xlane.f32.xlu0 %v8050_v50  ;;  %v8053_v33 = vsel %vm6210_vm5, %v19810_v58, 0.0  ;;  %v22989_v39 = vld [vmem:[#allocation156_spill] sm:$0xff] }
 0x6f7   : > { %14469 = vpow2.f32 %v7549_v25  ;;  %v22990_v25 = vld [vmem:[#allocation133_spill] sm:$0xff] }
 0x6f8   : > { %v19816_v44 = vpop.eup %14459  ;;  %v7551_v4 = vmul.f32 1.442695, %v7460_v51  ;;  %v7837_v3 = vsub.f32 %v22990_v25, %v19428_v43  ;;  %v22992_v51 = vld [vmem:[#allocation155_spill] sm:$0xff]  ;;  %v22994_v43 = vld [vmem:[#allocation105_spill] sm:$0xff]  ;;  %v22997_v25 = vld [vmem:[#allocation28_spill] sm:$0xff] }
 0x6f9   : > { %22987 = vst [vmem:[#allocation193_spill] sm:$0xff] %v19816_v44  ;;  %v19820_v17 = vpop.eup %14461  ;;  %8054 = vadd.xlane.f32.xlu1 %v8053_v33  ;;  %v7405_v21 = vpop.permute.xlu1 %7404  ;;  %v8056_v63 = vsel %vm6210_vm5, %v19816_v44, 0.0  ;;  %v7836_v27 = vsub.f32 %v22992_v51, %v19414_v15  ;;  %v7838_v51 = vsub.f32 %v22997_v25, %v19419_v0  ;;  %v23001_v0 = vld [vmem:[#allocation27_spill] sm:$0xff] }
 0x6fa   : > { %22988 = vst [vmem:[#allocation113_spill] sm:$0xff] %v19820_v17  ;;  %14471 = vpow2.f32 %v7551_v4  ;;  %v7462_v50 = vsub.f32 %v22989_v39, %v7405_v21  ;;  %8057 = vadd.xlane.f32.xlu0 %v8056_v63  ;;  %v8059_v33 = vsel %vm6210_vm5, %v19820_v17, 0.0  ;;  %v7821_v63 = vsub.f32 %v22995_v18, %v19261_v5  ;;  %v23003_v18 = vld [vmem:[#allocation29_spill] sm:$0xff] }
 0x6fb   : > { %14473 = vpow2.f32 %v7553_v10  ;;  %v7921_v39 = vmul.f32 1.442695, %v7837_v3  ;;  %v22999_v3 = vld [vmem:[#allocation30_spill] sm:$0xff] }
 0x6fc   : > { %v19827_v30 = vpop.eup %14463  ;;  %v7555_v58 = vmul.f32 1.442695, %v7462_v50  ;;  %v7919_v50 = vmul.f32 1.442695, %v7836_v27  ;;  %v7889_v5 = vmul.f32 1.442695, %v7821_v63  ;;  %v7840_v63 = vsub.f32 %v23003_v18, %v19433_v22 }
 0x6fd   : > { %22991 = vst [vmem:[#allocation185_spill] sm:$0xff] %v19827_v30  ;;  %v19833_v2 = vpop.eup %14465  ;;  %8060 = vadd.xlane.f32.xlu1 %v8059_v33  ;;  %v7416_v4 = vpop.permute.xlu1 %7415  ;;  %v8062_v21 = vsel %vm6210_vm5, %v19827_v30, 0.0  ;;  %v23007_v22 = vld [vmem:[#allocation151_spill] sm:$0xff]  ;;  %v23012_v18 = vld [vmem:[#allocation13_spill] sm:$0xff] }
 0x6fe   : > { %22993 = vst [vmem:[#allocation194_spill] sm:$0xff] %v19833_v2  ;;  %14475 = vpow2.f32 %v7555_v58  ;;  %v7464_v10 = vsub.f32 %v22994_v43, %v7416_v4  ;;  %8063 = vadd.xlane.f32.xlu0 %v8062_v21  ;;  %v8065_v17 = vsel %vm6210_vm5, %v19833_v2, 0.0  ;;  %v7822_v4 = vsub.f32 %v23001_v0, %v19241_v14 }
 0x6ff   : > { %14477 = vpow2.f32 %v7557_v29  ;;  %v7823_v29 = vsub.f32 %v22999_v3, %v19263_v1  ;;  %v7923_v21 = vmul.f32 1.442695, %v7838_v51  ;;  %v7927_v3 = vmul.f32 1.442695, %v7840_v63 }
 0x700   : > { %v19840_v15 = vpop.eup %14467  ;;  %v7559_v33 = vmul.f32 1.442695, %v7464_v10  ;;  %v7891_v14 = vmul.f32 1.442695, %v7822_v4  ;;  %v7843_v63 = vsub.f32 %v23012_v18, %v19440_v23  ;;  %v23016_v23 = vld [vmem:[#allocation169_spill] sm:$0xff] }
 0x701   : > { %22996 = vst [vmem:[#allocation35_spill] sm:$0xff] %v19840_v15  ;;  %v19846_v30 = vpop.eup %14469  ;;  %8066 = vadd.xlane.f32.xlu1 %v8065_v17  ;;  %v8068_v58 = vsel %vm6210_vm5, %v19840_v15, 0.0  ;;  %v7893_v1 = vmul.f32 1.442695, %v7823_v29 }
 0x702   : > { %22998 = vst [vmem:[#allocation188_spill] sm:$0xff] %v19846_v30  ;;  %14479 = vpow2.f32 %v7559_v33  ;;  %8069 = vadd.xlane.f32.xlu0 %v8068_v58  ;;  %v8071_v17 = vsel %vm6210_vm5, %v19846_v30, 0.0 }
 0x703   : > { %14481 = vpow2.f32 %v7921_v39 }
 0x704   : > { %v19852_v27 = vpop.eup %14471  ;;  %14483 = vpow2.f32 %v7919_v50  ;;  %v23005_v50 = vld [vmem:[#allocation158_spill] sm:$0xff] }
 0x705   : > { %23000 = vst [vmem:[#allocation192_spill] sm:$0xff] %v19852_v27  ;;  %v19858_v43 = vpop.eup %14473  ;;  %8072 = vadd.xlane.f32.xlu1 %v8071_v17  ;;  %v8074_v10 = vsel %vm6210_vm5, %v19852_v27, 0.0  ;;  %14485 = vpow2.f32 %v7889_v5  ;;  %v7839_v25 = vsub.f32 %v23005_v50, %v19424_v26  ;;  %v7824_v5 = vsub.f32 %v23007_v22, %v19265_v54  ;;  %v23009_v26 = vld [vmem:[#allocation64_spill] sm:$0xff] }
 0x706   : > { %23002 = vst [vmem:[#allocation58_spill] sm:$0xff] %v19858_v43  ;;  %8075 = vadd.xlane.f32.xlu0 %v8074_v10  ;;  %14487 = vpow2.f32 %v7923_v21  ;;  %v8077_v51 = vsel %vm6210_vm5, %v19858_v43, 0.0  ;;  %v7841_v4 = vsub.f32 %v23009_v26, %v19430_v6  ;;  %v23013_v6 = vld [vmem:[#allocation52_spill] sm:$0xff] }
 0x707   : > { %14489 = vpow2.f32 %v7893_v1  ;;  %v7925_v0 = vmul.f32 1.442695, %v7839_v25  ;;  %v7895_v54 = vmul.f32 1.442695, %v7824_v5  ;;  %v7842_v50 = vsub.f32 %v23013_v6, %v19435_v38  ;;  %v23017_v38 = vld [vmem:[#allocation12_spill] sm:$0xff] }
 0x708   : > { %v19864_v39 = vpop.eup %14475  ;;  %14491 = vpow2.f32 %v7891_v14  ;;  %v7929_v14 = vmul.f32 1.442695, %v7841_v4  ;;  %v7933_v5 = vmul.f32 1.442695, %v7843_v63  ;;  %v7844_v26 = vsub.f32 %v23017_v38, %v19442_v62  ;;  %v23021_v62 = vld [vmem:[#allocation45_spill] sm:$0xff] }
 0x709   : > { %23004 = vst [vmem:[#allocation171_spill] sm:$0xff] %v19864_v39  ;;  %v19870_v33 = vpop.eup %14477  ;;  %8078 = vadd.xlane.f32.xlu1 %v8077_v51  ;;  %v8080_v58 = vsel %vm6210_vm5, %v19864_v39, 0.0  ;;  %14493 = vpow2.f32 %v7927_v3  ;;  %v7845_v3 = vsub.f32 %v23016_v23, %v19448_v32  ;;  %v23020_v32 = vld [vmem:[#allocation92_spill] sm:$0xff]  ;;  %v7846_v6 = vsub.f32 %v23021_v62, %v19450_v12  ;;  %v23024_v12 = vld [vmem:[#allocation46_spill] sm:$0xff] }
 0x70a   : > { %23006 = vst [vmem:[#allocation80_spill] sm:$0xff] %v19870_v33  ;;  %8081 = vadd.xlane.f32.xlu0 %v8080_v58  ;;  %v8083_v21 = vsel %vm6210_vm5, %v19870_v33, 0.0  ;;  %14495 = vpow2.f32 %v7925_v0  ;;  %v7931_v0 = vmul.f32 1.442695, %v7842_v50  ;;  %v7847_v63 = vsub.f32 %v23020_v32, %v19454_v20 }
 0x70b   : > { %14497 = vpow2.f32 %v7895_v54  ;;  %v7937_v54 = vmul.f32 1.442695, %v7845_v3  ;;  %v7939_v3 = vmul.f32 1.442695, %v7846_v6 }
 0x70c   : > { %v19876_v29 = vpop.eup %14479  ;;  %14499 = vpow2.f32 %v7929_v14  ;;  %v7935_v14 = vmul.f32 1.442695, %v7844_v26  ;;  %v7941_v20 = vmul.f32 1.442695, %v7847_v63 }
 0x70d   : > { %23008 = vst [vmem:[#allocation187_spill] sm:$0xff] %v19876_v29  ;;  %v19882_v17 = vpop.eup %14481  ;;  %8084 = vadd.xlane.f32.xlu1 %v8083_v21  ;;  %v8086_v10 = vsel %vm6210_vm5, %v19876_v29, 0.0  ;;  %14501 = vpow2.f32 %v7933_v5 }
 0x70e   : > { %23010 = vst [vmem:[#allocation62_spill] sm:$0xff] %v19882_v17  ;;  %v19886_v1 = vpop.eup %14483  ;;  %8087 = vadd.xlane.f32.xlu0 %v8086_v10  ;;  %v8197_v25 = vsel %vm6355_vm6, %v19882_v17, 0.0  ;;  %14503 = vpow2.f32 %v7931_v0  ;;  %v7848_v0 = vsub.f32 %v23024_v12, %v19456_v41 }
 0x70f   : > { %23011 = vst [vmem:[#allocation190_spill] sm:$0xff] %v19886_v1  ;;  %v19894_v51 = vpop.eup %14485  ;;  %v8194_v58 = vsel %vm6355_vm6, %v19886_v1, 0.0  ;;  %14505 = vpow2.f32 %v7937_v54 }
 0x710   : > { %23014 = vst [vmem:[#allocation197_spill] sm:$0xff] %v19894_v51  ;;  %v19898_v22 = vpop.eup %14487  ;;  %v8149_v4 = vsel %vm6355_vm6, %v19894_v51, 0.0  ;;  %14507 = vpow2.f32 %v7935_v14  ;;  %v7943_v54 = vmul.f32 1.442695, %v7848_v0 }
 0x711   : > { %8198 = vadd.xlane.f32.xlu1 %v8197_v25  ;;  %23015 = vst [vmem:[#allocation60_spill] sm:$0xff] %v19898_v22  ;;  %v19906_v21 = vpop.eup %14489  ;;  %v8200_v10 = vsel %vm6355_vm6, %v19898_v22, 0.0  ;;  %14509 = vpow2.f32 %v7941_v20 }
 0x712   : > { %8195 = vadd.xlane.f32.xlu0 %v8194_v58  ;;  %23018 = vst [vmem:[#allocation181_spill] sm:$0xff] %v19906_v21  ;;  %v19910_v18 = vpop.eup %14491  ;;  %v8155_v50 = vsel %vm6355_vm6, %v19906_v21, 0.0  ;;  %14511 = vpow2.f32 %v7939_v3 }
 0x713   : > { %23019 = vst [vmem:[#allocation55_spill] sm:$0xff] %v19910_v18  ;;  %v19918_v25 = vpop.eup %14493  ;;  %v8152_v5 = vsel %vm6355_vm6, %v19910_v18, 0.0  ;;  %14513 = vpow2.f32 %v7943_v54 }
 0x714   : > { %23022 = vst [vmem:[#allocation106_spill] sm:$0xff] %v19918_v25  ;;  %v19924_v23 = vpop.eup %14495  ;;  %v8206_v38 = vsel %vm6355_vm6, %v19918_v25, 0.0 }
 0x715   : > { %8150 = vadd.xlane.f32.xlu1 %v8149_v4  ;;  %23023 = vst [vmem:[#allocation40_spill] sm:$0xff] %v19924_v23  ;;  %v19930_v26 = vpop.eup %14497 }
 0x716   : > { %8201 = vadd.xlane.f32.xlu0 %v8200_v10  ;;  %23025 = vst [vmem:[#allocation132_spill] sm:$0xff] %v19930_v26  ;;  %v8203_v10 = vsel %vm6355_vm6, %v19924_v23, 0.0  ;;  %v19936_v32 = vpop.eup %14499  ;;  %v8158_v41 = vsel %vm6355_vm6, %v19930_v26, 0.0 }
 0x717   : > { %23026 = vst [vmem:[#allocation34_spill] sm:$0xff] %v19936_v32  ;;  %v19940_v63 = vpop.eup %14501  ;;  %v8209_v62 = vsel %vm6355_vm6, %v19936_v32, 0.0 }
 0x718   : > { %23027 = vst [vmem:[#allocation195_spill] sm:$0xff] %v19940_v63  ;;  %v19946_v6 = vpop.eup %14503 }
 0x719   : > { %v19920_v58 = vpop.xlane.xlu0 %8162  ;;  %8156 = vadd.xlane.f32.xlu1 %v8155_v50  ;;  %23028 = vst [vmem:[#allocation86_spill] sm:$0xff] %v19946_v6  ;;  %v8215_v50 = vsel %vm6355_vm6, %v19940_v63, 0.0  ;;  %v8212_v3 = vsel %vm6355_vm6, %v19946_v6, 0.0 }
 0x71a   : > { %8153 = vadd.xlane.f32.xlu0 %v8152_v5  ;;  %v19950_v5 = vpop.eup %14505 }
 0x71b   : > { %23029 = vst [vmem:[#allocation137_spill] sm:$0xff] %v19950_v5  ;;  %v19956_v12 = vpop.eup %14507  ;;  %v8221_v0 = vsel %vm6355_vm6, %v19950_v5, 0.0 }
 0x71c   : > { %23030 = vst [vmem:[#allocation67_spill] sm:$0xff] %v19956_v12  ;;  %v8218_v54 = vsel %vm6355_vm6, %v19956_v12, 0.0 }
 0x71d   : > { %v19932_v4 = vpop.xlane.xlu0 %8171  ;;  %8207 = vadd.xlane.f32.xlu1 %v8206_v38  ;;  %v19960_v38 = vpop.eup %14509 }
 0x71e   : > { %8204 = vadd.xlane.f32.xlu0 %v8203_v10  ;;  %23031 = vst [vmem:[#allocation107_spill] sm:$0xff] %v19960_v38 }
 0x721   : > { %v19942_v14 = vpop.xlane.xlu0 %8177  ;;  %8159 = vadd.xlane.f32.xlu1 %v8158_v41  ;;  %v19966_v41 = vpop.eup %14511 }
 0x722   : > { %8210 = vadd.xlane.f32.xlu0 %v8209_v62  ;;  %23032 = vst [vmem:[#allocation51_spill] sm:$0xff] %v19966_v41  ;;  %v8227_v62 = vsel %vm6355_vm6, %v19960_v38, 0.0  ;;  %v19974_v63 = vpop.eup %14513 }
 0x723   : > { %23033 = vst [vmem:[#allocation88_spill] sm:$0xff] %v19974_v63  ;;  %v8230_v12 = vsel %vm6355_vm6, %v19974_v63, 0.0 }
 0x725   : > { %v19952_v20 = vpop.xlane.xlu0 %8183  ;;  %8216 = vadd.xlane.f32.xlu1 %v8215_v50 }
 0x726   : > { %8213 = vadd.xlane.f32.xlu0 %v8212_v3  ;;  %v8224_v3 = vsel %vm6355_vm6, %v19966_v41, 0.0 }
 0x729   : > { %v19962_v10 = vpop.xlane.xlu0 %8186  ;;  %8222 = vadd.xlane.f32.xlu1 %v8221_v0 }
 0x72a   : > { %8219 = vadd.xlane.f32.xlu0 %v8218_v54 }
 0x72d   : > { %v19970_v50 = vpop.xlane.xlu0 %8192  ;;  %8228 = vadd.xlane.f32.xlu1 %v8227_v62 }
 0x72e   : > { %8225 = vadd.xlane.f32.xlu0 %v8224_v3  ;;  %v19976_v5 = vpop.xlane.xlu1 %8165 }
 0x731   : > { %v7947_v0 = vpop.xlane.xlu0 %7946 }
 0x732   : > { %8231 = vadd.xlane.f32.xlu0 %v8230_v12  ;;  %v19980_v54 = vpop.xlane.xlu1 %8174  ;;  %v8284_v29 = vrot.slane %v7947_v0, %v18858_v49 }
 0x735   : > { %v7953_v6 = vpop.xlane.xlu0 %7952 }
 0x736   : > { %v19982_v38 = vpop.xlane.xlu1 %8168  ;;  %v8293_v30 = vrot.slane %v7953_v6, %v18858_v49 }
 0x739   : > { %v7956_v25 = vpop.xlane.xlu0 %7955 }
 0x73a   : > { %v19984_v62 = vpop.xlane.xlu1 %8180  ;;  %v8297_v33 = vrot.slane %v7956_v25, %v18852_v28 }
 0x73c   : > { %v8298_v25 = vsel %vm6557_vm7, %v8297_v33, %v8293_v30 }
 0x73d   : > { %v7962_v32 = vpop.xlane.xlu0 %7961 }
 0x73e   : > { %v19986_v41 = vpop.xlane.xlu1 %8189  ;;  %v8306_v43 = vrot.slane %v7962_v32, %v18852_v28 }
 0x741   : > { %v7968_v22 = vpop.xlane.xlu0 %7967 }
 0x742   : > { %v7950_v3 = vpop.xlane.xlu1 %7949  ;;  %v8315_v15 = vrot.slane %v7968_v22, %v18852_v28 }
 0x743   : > { %v8288_v12 = vrot.slane %v7950_v3, %v18852_v28 }
 0x745   : > { %v7974_v17 = vpop.xlane.xlu0 %7973  ;;  %v8289_v3 = vsel %vm6557_vm7, %v8288_v12, %v8284_v29 }
 0x746   : > { %v7959_v23 = vpop.xlane.xlu1 %7958  ;;  %v8324_v2 = vrot.slane %v7974_v17, %v18852_v28  ;;  %v8497_v6 = vsel %vm6766_vm8, %v8298_v25, %v8289_v3 }
 0x747   : > { %v8302_v63 = vrot.slane %v7959_v23, %v18858_v49 }
 0x749   : > { %v7980_v26 = vpop.xlane.xlu0 %7979  ;;  %v8307_v0 = vsel %vm6557_vm7, %v8306_v43, %v8302_v63 }
 0x74a   : > { %v7965_v1 = vpop.xlane.xlu1 %7964  ;;  %v8498_v17 = vsel %vm6768_vm9, %v8307_v0, %v8497_v6 }
 0x74b   : > { %v8311_v39 = vrot.slane %v7965_v1, %v18858_v49  ;;  %v8333_v1 = vrot.slane %v7980_v26, %v18852_v28 }
 0x74d   : > { %v7986_v51 = vpop.xlane.xlu0 %7985  ;;  %v8316_v32 = vsel %vm6557_vm7, %v8315_v15, %v8311_v39 }
 0x74e   : > { %v7971_v21 = vpop.xlane.xlu1 %7970  ;;  %v8342_v22 = vrot.slane %v7986_v51, %v18852_v28  ;;  %v8499_v63 = vsel %vm6770_vm10, %v8316_v32, %v8498_v17 }
 0x74f   : > { %v8320_v27 = vrot.slane %v7971_v21, %v18858_v49 }
 0x751   : > { %v8325_v29 = vsel %vm6557_vm7, %v8324_v2, %v8320_v27 }
 0x752   : > { %v7977_v18 = vpop.xlane.xlu1 %7976  ;;  %v8500_v15 = vsel %vm6772_vm11, %v8325_v29, %v8499_v63 }
 0x753   : > { %v8329_v23 = vrot.slane %v7977_v18, %v18858_v49  ;;  %v7992_v18 = vpop.xlane.xlu0 %7991 }
 0x755   : > { %v8334_v43 = vsel %vm6557_vm7, %v8333_v1, %v8329_v23 }
 0x756   : > { %v7983_v44 = vpop.xlane.xlu1 %7982  ;;  %v8501_v51 = vsel %vm6774_vm12, %v8334_v43, %v8500_v15 }
 0x757   : > { %v8338_v21 = vrot.slane %v7983_v44, %v18858_v49  ;;  %v8351_v44 = vrot.slane %v7992_v18, %v18852_v28 }
 0x759   : > { %v8343_v30 = vsel %vm6557_vm7, %v8342_v22, %v8338_v21 }
 0x75a   : > { %v7989_v33 = vpop.xlane.xlu1 %7988  ;;  %v8502_v27 = vsel %vm6776_vm13, %v8343_v30, %v8501_v51 }
 0x75b   : > { %v8347_v39 = vrot.slane %v7989_v33, %v18858_v49 }
 0x75d   : > { %v8352_v2 = vsel %vm6557_vm7, %v8351_v44, %v8347_v39 }
 0x75e   : > { %v7995_v26 = vpop.xlane.xlu1 %7994  ;;  %v8503_v12 = vsel %vm6778_vm14, %v8352_v2, %v8502_v27 }
 0x75f   : > { %v7998_v3 = vpop.xlane.xlu0 %7997  ;;  %v8356_v33 = vrot.slane %v7995_v26, %v18858_v49 }
 0x760   : > { %8521 = vxpose.xlu1.b32.start [1/3] (short) (narrow) %v8503_v12, 16  ;;  %v8360_v15 = vrot.slane %v7998_v3, %v18852_v28 }
 0x762   : > { %v8001_v23 = vpop.xlane.xlu1 %8000 }
 0x763   : > { %v8004_v0 = vpop.xlane.xlu0 %8003  ;;  %v8365_v29 = vrot.slane %v8001_v23, %v18858_v49 }
 0x764   : > { %v8369_v18 = vrot.slane %v8004_v0, %v18852_v28 }
 0x766   : > { %v8007_v25 = vpop.xlane.xlu1 %8006  ;;  %v8370_v27 = vsel %vm6557_vm7, %v8369_v18, %v8365_v29 }
 0x767   : > { %v8010_v1 = vpop.xlane.xlu0 %8009  ;;  %v8374_v43 = vrot.slane %v8007_v25, %v18858_v49 }
 0x768   : > { %v8378_v63 = vrot.slane %v8010_v1, %v18852_v28  ;;  %v8361_v1 = vsel %vm6557_vm7, %v8360_v15, %v8356_v33 }
 0x76a   : > { %v8013_v32 = vpop.xlane.xlu1 %8012  ;;  %v8379_v25 = vsel %vm6557_vm7, %v8378_v63, %v8374_v43 }
 0x76b   : > { %v8016_v21 = vpop.xlane.xlu0 %8015  ;;  %v8383_v44 = vrot.slane %v8013_v32, %v18858_v49 }
 0x76c   : > { %v8387_v39 = vrot.slane %v8016_v21, %v18852_v28 }
 0x76e   : > { %v8019_v6 = vpop.xlane.xlu1 %8018  ;;  %v8388_v32 = vsel %vm6557_vm7, %v8387_v39, %v8383_v44 }
 0x76f   : > { %v8022_v22 = vpop.xlane.xlu0 %8021  ;;  %v8392_v51 = vrot.slane %v8019_v6, %v18858_v49  ;;  %v8504_v6 = vsel %vm6766_vm8, %v8370_v27, %v8361_v1 }
 0x770   : > { %v8396_v2 = vrot.slane %v8022_v22, %v18852_v28  ;;  %v8505_v29 = vsel %vm6768_vm9, %v8379_v25, %v8504_v6 }
 0x771   : > { %v8506_v43 = vsel %vm6770_vm10, %v8388_v32, %v8505_v29 }
 0x772   : > { %v8025_v17 = vpop.xlane.xlu1 %8024  ;;  %v8397_v22 = vsel %vm6557_vm7, %v8396_v2, %v8392_v51 }
 0x773   : > { %v8028_v30 = vpop.xlane.xlu0 %8027  ;;  %v8401_v12 = vrot.slane %v8025_v17, %v18858_v49  ;;  %v8507_v15 = vsel %vm6772_vm11, %v8397_v22, %v8506_v43 }
 0x774   : > { %v8405_v23 = vrot.slane %v8028_v30, %v18852_v28 }
 0x776   : > { %v8031_v0 = vpop.xlane.xlu1 %8030  ;;  %v8406_v18 = vsel %vm6557_vm7, %v8405_v23, %v8401_v12 }
 0x777   : > { %v8410_v26 = vrot.slane %v8031_v0, %v18858_v49  ;;  %v8034_v3 = vpop.xlane.xlu0 %8033  ;;  %v8508_v39 = vsel %vm6774_vm12, %v8406_v18, %v8507_v15 }
 0x778   : > { %v8414_v21 = vrot.slane %v8034_v3, %v18852_v28 }
 0x77a   : > { %v8037_v17 = vpop.xlane.xlu1 %8036  ;;  %v8415_v63 = vsel %vm6557_vm7, %v8414_v21, %v8410_v26 }
 0x77b   : > { %v8419_v30 = vrot.slane %v8037_v17, %v18858_v49  ;;  %v8040_v33 = vpop.xlane.xlu0 %8039  ;;  %v8509_v2 = vsel %vm6776_vm13, %v8415_v63, %v8508_v39 }
 0x77c   : > { %v8423_v44 = vrot.slane %v8040_v33, %v18852_v28 }
 0x77e   : > { %v8043_v27 = vpop.xlane.xlu1 %8042  ;;  %v8424_v51 = vsel %vm6557_vm7, %v8423_v44, %v8419_v30 }
 0x77f   : > { %v8046_v12 = vpop.xlane.xlu0 %8045  ;;  %v8510_v23 = vsel %vm6778_vm14, %v8424_v51, %v8509_v2  ;;  %v8428_v30 = vrot.slane %v8043_v27, %v18858_v49 }
 0x780   : > { %8522 = vxpose.xlu1.b32.cont [2/3] (short) (narrow) %v8510_v23, 16  ;;  %v8432_v33 = vrot.slane %v8046_v12, %v18852_v28 }
 0x782   : > { %v8049_v0 = vpop.xlane.xlu1 %8048 }
 0x783   : > { %v8052_v25 = vpop.xlane.xlu0 %8051  ;;  %v8437_v22 = vrot.slane %v8049_v0, %v18858_v49 }
 0x784   : > { %v8441_v29 = vrot.slane %v8052_v25, %v18852_v28 }
 0x786   : > { %v8055_v26 = vpop.xlane.xlu1 %8054  ;;  %v8442_v2 = vsel %vm6557_vm7, %v8441_v29, %v8437_v22 }
 0x787   : > { %v8058_v3 = vpop.xlane.xlu0 %8057  ;;  %v8446_v17 = vrot.slane %v8055_v26, %v18858_v49 }
 0x788   : > { %v8450_v43 = vrot.slane %v8058_v3, %v18852_v28  ;;  %v8433_v3 = vsel %vm6557_vm7, %v8432_v33, %v8428_v30 }
 0x78a   : > { %v8061_v1 = vpop.xlane.xlu1 %8060  ;;  %v8451_v26 = vsel %vm6557_vm7, %v8450_v43, %v8446_v17 }
 0x78b   : > { %v8064_v32 = vpop.xlane.xlu0 %8063  ;;  %v8455_v15 = vrot.slane %v8061_v1, %v18858_v49 }
 0x78c   : > { %v8459_v44 = vrot.slane %v8064_v32, %v18852_v28 }
 0x78e   : > { %v8067_v21 = vpop.xlane.xlu1 %8066  ;;  %v8460_v1 = vsel %vm6557_vm7, %v8459_v44, %v8455_v15 }
 0x78f   : > { %v8070_v6 = vpop.xlane.xlu0 %8069  ;;  %v8464_v39 = vrot.slane %v8067_v21, %v18858_v49  ;;  %v8511_v21 = vsel %vm6766_vm8, %v8442_v2, %v8433_v3  ;;  %v8618_v3 = vrot.slane %v19552_v52, %v18858_v49  ;;  %v8650_v52 = vrot.slane %v19614_v36, %v18852_v28 }
 0x790   : > { %v8468_v51 = vrot.slane %v8070_v6, %v18852_v28  ;;  %v8512_v22 = vsel %vm6768_vm9, %v8451_v26, %v8511_v21  ;;  %v8604_v21 = vrot.slane %v19540_v57, %v18858_v49  ;;  %v8636_v57 = vrot.slane %v19538_v8, %v18852_v28 }
 0x791   : > { %v8513_v17 = vsel %vm6770_vm10, %v8460_v1, %v8512_v22  ;;  %v8613_v22 = vrot.slane %v19566_v9, %v19035_v7  ;;  %v8646_v9 = vrot.slane %v19550_v61, %v18858_v49  ;;  %v8655_v36 = vrot.slane %v19562_v47, %v19035_v7 }
 0x792   : > { %v8073_v18 = vpop.xlane.xlu1 %8072  ;;  %v8469_v6 = vsel %vm6557_vm7, %v8468_v51, %v8464_v39  ;;  %v8664_v8 = vrot.slane %v19576_v46, %v18852_v28  ;;  %v8669_v61 = vrot.slane %v19642_v35, %v19035_v7  ;;  %v8692_v46 = vrot.slane %v19677_v45, %v18852_v28 }
 0x793   : > { %v8076_v63 = vpop.xlane.xlu0 %8075  ;;  %v8473_v23 = vrot.slane %v8073_v18, %v18858_v49  ;;  %v8514_v33 = vsel %vm6772_vm11, %v8469_v6, %v8513_v17  ;;  %v8627_v17 = vrot.slane %v19526_v19, %v19035_v7 }
 0x794   : > { %v8477_v0 = vrot.slane %v8076_v63, %v18852_v28 }
 0x796   : > { %v8079_v25 = vpop.xlane.xlu1 %8078  ;;  %v8478_v29 = vsel %vm6557_vm7, %v8477_v0, %v8473_v23 }
 0x797   : > { %v8482_v27 = vrot.slane %v8079_v25, %v18858_v49  ;;  %v8082_v12 = vpop.xlane.xlu0 %8081  ;;  %v8515_v44 = vsel %vm6774_vm12, %v8478_v29, %v8514_v33  ;;  %v8608_v29 = vrot.slane %v19505_v16, %v18852_v28  ;;  %v8641_v16 = vrot.slane %v19598_v56, %v19035_v7 }
 0x798   : > { %v8486_v32 = vrot.slane %v8082_v12, %v18852_v28  ;;  %v8651_v33 = vsel %vm6557_vm7, %v8650_v52, %v8646_v9  ;;  %v8678_v56 = vrot.slane %v19654_v13, %v18852_v28 }
 0x79a   : > { %v8085_v18 = vpop.xlane.xlu1 %8084  ;;  %v8487_v43 = vsel %vm6557_vm7, %v8486_v32, %v8482_v27  ;;  %v8622_v32 = vrot.slane %v19517_v42, %v18852_v28  ;;  %v8632_v42 = vrot.slane %v19582_v24, %v18858_v49  ;;  %v8660_v24 = vrot.slane %v19628_v48, %v18858_v49 }
 0x79b   : > { %v8491_v63 = vrot.slane %v8085_v18, %v18858_v49  ;;  %v8088_v30 = vpop.xlane.xlu0 %8087  ;;  %v8516_v51 = vsel %vm6776_vm13, %v8487_v43, %v8515_v44  ;;  %v8609_v43 = vsel %vm6557_vm7, %v8608_v29, %v8604_v21  ;;  %v8674_v44 = vrot.slane %v19592_v11, %v18858_v49 }
 0x79c   : > { %v8495_v15 = vrot.slane %v8088_v30, %v18852_v28  ;;  %v8623_v18 = vsel %vm6557_vm7, %v8622_v32, %v8618_v3  ;;  %v8614_v19 = vsel %vm6891_vm15, %v8613_v22, %v8609_v43  ;;  %v8637_v47 = vsel %vm6557_vm7, %v8636_v57, %v8632_v42 }
 0x79d   : > { %v8683_v48 = vrot.slane %v19666_v53, %v19035_v7  ;;  %v8656_v3 = vsel %vm6891_vm15, %v8655_v36, %v8651_v33  ;;  %v8665_v11 = vsel %vm6557_vm7, %v8664_v8, %v8660_v24  ;;  %v8679_v21 = vsel %vm6557_vm7, %v8678_v56, %v8674_v44  ;;  %v23034_v33 = vld [vmem:[#allocation66_spill] sm:$0xff]  ;;  %v23035_v56 = vld [vmem:[#allocation16_spill] sm:$0xff] }
 0x79e   : > { %v8496_v39 = vsel %vm6557_vm7, %v8495_v15, %v8491_v63  ;;  %v20081_v23 = vpop.xlane.xlu1 %8198  ;;  %v8628_v63 = vsel %vm6891_vm15, %v8627_v17, %v8623_v18  ;;  %v8670_v45 = vsel %vm6891_vm15, %v8669_v61, %v8665_v11 }
 0x79f   : > { %v8517_v2 = vsel %vm6778_vm14, %v8496_v39, %v8516_v51  ;;  %v20085_v27 = vpop.xlane.xlu0 %8195  ;;  %v8642_v39 = vsel %vm6891_vm15, %v8641_v16, %v8637_v47  ;;  %v8825_v32 = vsel %vm6766_vm8, %v8628_v63, %v8614_v19 }
 0x7a0   : > { %8523 = vxpose.xlu1.b32.end [3/3] (short) (narrow) %v8517_v2, 16  ;;  %v8688_v2 = vrot.slane %v19608_v40, %v18858_v49 }
 0x7a2   : > { %v8151_v0 = vpop.xlane.xlu1 %8150  ;;  %v8693_v22 = vsel %vm6557_vm7, %v8692_v46, %v8688_v2  ;;  %v8744_v46 = vrot.slane %v19984_v62, %v18858_v49  ;;  %v8725_v2 = vrot.slane %v19982_v38, %v19035_v7 }
 0x7a3   : > { %v20089_v1 = vpop.xlane.xlu0 %8201  ;;  %v8697_v35 = vrot.slane %v8151_v0, %v19035_v7  ;;  %v8826_v0 = vsel %vm6768_vm9, %v8642_v39, %v8825_v32 }
 0x7a4   : > { %v8827_v40 = vsel %vm6770_vm10, %v8656_v3, %v8826_v0  ;;  %v8716_v3 = vrot.slane %v19920_v58, %v18858_v49  ;;  %v8767_v58 = vrot.slane %v20085_v27, %v19035_v7  ;;  %v8772_v0 = vrot.slane %v20081_v23, %v18858_v49 }
 0x7a5   : > { %v8698_v29 = vsel %vm6891_vm15, %v8697_v35, %v8693_v22  ;;  %v8730_v35 = vrot.slane %v19932_v4, %v18858_v49  ;;  %v8753_v4 = vrot.slane %v19962_v10, %v19035_v7 }
 0x7a6   : > { %v8157_v25 = vpop.xlane.xlu1 %8156 }
 0x7a7   : > { %v8154_v30 = vpop.xlane.xlu0 %8153  ;;  %v8706_v51 = vrot.slane %v8157_v25, %v18852_v28  ;;  %v8684_v25 = vsel %vm6891_vm15, %v8683_v48, %v8679_v21  ;;  %v8734_v48 = vrot.slane %v19980_v54, %v18852_v28  ;;  %v8739_v54 = vrot.slane %v19942_v14, %v19035_v7 }
 0x7a8   : > { %v8702_v13 = vrot.slane %v8154_v30, %v18858_v49  ;;  %v8776_v14 = vrot.slane %v20089_v1, %v18852_v28 }
 0x7a9   : > { %v8735_v62 = vsel %vm6557_vm7, %v8734_v48, %v8730_v35  ;;  %v23036_v35 = vld [vmem:[#allocation143_spill] sm:$0xff] }
 0x7aa   : > { %v20083_v26 = vpop.xlane.xlu1 %8207  ;;  %v8707_v18 = vsel %vm6557_vm7, %v8706_v51, %v8702_v13  ;;  %v8720_v51 = vrot.slane %v19976_v5, %v18852_v28  ;;  %v8748_v13 = vrot.slane %v19952_v20, %v18852_v28  ;;  %v8762_v5 = vrot.slane %v19970_v50, %v18852_v28 }
 0x7ab   : > { %v8205_v36 = vpop.xlane.xlu0 %8204  ;;  %v8758_v20 = vrot.slane %v19986_v41, %v18858_v49  ;;  %v8740_v10 = vsel %vm6891_vm15, %v8739_v54, %v8735_v62  ;;  %v8786_v22 = vrot.slane %v20083_v26, %v18858_v49 }
 0x7ac   : > { %v8749_v11 = vsel %vm6557_vm7, %v8748_v13, %v8744_v46  ;;  %v8721_v38 = vsel %vm6557_vm7, %v8720_v51, %v8716_v3  ;;  %v8781_v50 = vrot.slane %v8205_v36, %v19035_v7  ;;  %v23037_v13 = vld [vmem:[#allocation125_spill] sm:$0xff] }
 0x7ad   : > { %v8726_v32 = vsel %vm6891_vm15, %v8725_v2, %v8721_v38  ;;  %v8754_v41 = vsel %vm6891_vm15, %v8753_v4, %v8749_v11  ;;  %v23038_v4 = vld [vmem:[#allocation134_spill] sm:$0xff]  ;;  %v23039_v11 = vld [vmem:[#allocation117_spill] sm:$0xff] }
 0x7ae   : > { %v8160_v12 = vpop.xlane.xlu1 %8159 }
 0x7af   : > { %v8711_v53 = vrot.slane %v8160_v12, %v19035_v7  ;;  %v8828_v12 = vsel %vm6772_vm11, %v8670_v45, %v8827_v40  ;;  %v8211_v30 = vpop.xlane.xlu0 %8210 }
 0x7b0   : > { %v8829_v42 = vsel %vm6774_vm12, %v8684_v25, %v8828_v12  ;;  %v8790_v45 = vrot.slane %v8211_v30, %v18852_v28  ;;  %v8763_v25 = vsel %vm6557_vm7, %v8762_v5, %v8758_v20  ;;  %v8777_v12 = vsel %vm6557_vm7, %v8776_v14, %v8772_v0 }
 0x7b1   : > { %v8712_v17 = vsel %vm6891_vm15, %v8711_v53, %v8707_v18  ;;  %v8830_v57 = vsel %vm6776_vm13, %v8698_v29, %v8829_v42  ;;  %v8768_v18 = vsel %vm6891_vm15, %v8767_v58, %v8763_v25  ;;  %v8782_v42 = vsel %vm6891_vm15, %v8781_v50, %v8777_v12  ;;  %v23042_v50 = vld [vmem:[#allocation164_spill] sm:$0xff] }
 0x7b2   : > { %v20095_v6 = vpop.xlane.xlu1 %8216  ;;  %v8831_v43 = vsel %vm6778_vm14, %v8712_v17, %v8830_v57  ;;  %v8832_v17 = vsel %vm6766_vm8, %v8740_v10, %v8726_v32  ;;  %v8791_v57 = vsel %vm6557_vm7, %v8790_v45, %v8786_v22  ;;  %v23040_v10 = vld [vmem:[#allocation104_spill] sm:$0xff]  ;;  %v23043_v22 = vld [vmem:[#allocation101_spill] sm:$0xff] }
 0x7b3   : > { %v8214_v8 = vpop.xlane.xlu0 %8213  ;;  %v8800_v27 = vrot.slane %v20095_v6, %v18858_v49  ;;  %v23045_v12 = vld [vmem:[#allocation116_spill] sm:$0xff] }
 0x7b4   : > { %v8795_v1 = vrot.slane %v8214_v8, %v19035_v7 }
 0x7b6   : > { %v20128_v15 = vpop.xlane.xlu1 %8222 }
 0x7b7   : > { %v8220_v44 = vpop.xlane.xlu0 %8219  ;;  %v8809_v26 = vrot.slane %v20128_v15, %v19035_v7 }
 0x7b8   : > { %v8804_v53 = vrot.slane %v8220_v44, %v18852_v28 }
 0x7ba   : > { %v20155_v52 = vpop.xlane.xlu1 %8228  ;;  %v8805_v23 = vsel %vm6557_vm7, %v8804_v53, %v8800_v27 }
 0x7bb   : > { %v8226_v39 = vpop.xlane.xlu0 %8225  ;;  %v8818_v40 = vrot.slane %v20155_v52, %v18852_v28  ;;  %v8833_v28 = vsel %vm6768_vm9, %v8754_v41, %v8832_v17  ;;  %v23046_v17 = vld [vmem:[#allocation100_spill] sm:$0xff] }
 0x7bc   : > { %v8814_v29 = vrot.slane %v8226_v39, %v18858_v49  ;;  %v8796_v49 = vsel %vm6891_vm15, %v8795_v1, %v8791_v57  ;;  %v8834_v52 = vsel %vm6770_vm10, %v8768_v18, %v8833_v28 }
 0x7bf   : > { %v8232_v21 = vpop.xlane.xlu0 %8231 }
 0x7c0   : > { %v8823_v6 = vrot.slane %v8232_v21, %v19035_v7 }
 0x818   : > { %v8537_v9 = vpop.trf.xlu1 }
 0x819   : > { %v8841_v16 = vadd.f32 %v8831_v43, %v8537_v9  ;;  %v8819_v43 = vsel %vm6557_vm7, %v8818_v40, %v8814_v29  ;;  %v8810_v9 = vsel %vm6891_vm15, %v8809_v26, %v8805_v23  ;;  %v23044_v29 = vld [vmem:[#allocation78_spill] sm:$0xff] }
 0x81a   : > { %v8824_v36 = vsel %vm6891_vm15, %v8823_v6, %v8819_v43 }
 0x81b   : > { %14515 = vrcp.f32 %v8841_v16  ;;  %v8835_v16 = vsel %vm6772_vm11, %v8782_v42, %v8834_v52 }
 0x825   : > { %v20162_v63 = vpop.eup %14515 }
 0x826   : > { %v9216_v19 = vrot.slane %v20162_v63, %v19102_v34  ;;  %v9231_v24 = vrot.slane %v20162_v63, %v19110_v31  ;;  %v9246_v61 = vrot.slane %v20162_v63, %v23034_v33  ;;  %v9261_v47 = vrot.slane %v20162_v63, %v23035_v56 }
 0x828   : > { %9222 = vbcast.lane.b32.xlu1 %v9216_v19, 264  ;;  %9218 = vbcast.lane.b32.xlu0 %v9216_v19, 256 }
 0x82c   : > { %9233 = vbcast.lane.b32.xlu1 %v9231_v24, 256  ;;  %9226 = vbcast.lane.b32.xlu0 %v9216_v19, 272  ;;  %v8836_v19 = vsel %vm6774_vm12, %v8796_v49, %v8835_v16 }
 0x82d   : > { %v8837_v30 = vsel %vm6776_vm13, %v8810_v9, %v8836_v19 }
 0x82e   : > { %v8838_v7 = vsel %vm6778_vm14, %v8824_v36, %v8837_v30 }
 0x830   : > { %9241 = vbcast.lane.b32.xlu1 %v9231_v24, 272  ;;  %9237 = vbcast.lane.b32.xlu0 %v9231_v24, 264  ;;  %v8538_v24 = vpop.trf.xlu1 }
 0x831   : > { %v8842_v15 = vadd.f32 %v8838_v7, %v8538_v24 }
 0x833   : > { %14517 = vrcp.f32 %v8842_v15 }
 0x834   : > { %9252 = vbcast.lane.b32.xlu1 %v9246_v61, 264  ;;  %9248 = vbcast.lane.b32.xlu0 %v9246_v61, 256 }
 0x838   : > { %9263 = vbcast.lane.b32.xlu1 %v9261_v47, 256  ;;  %9256 = vbcast.lane.b32.xlu0 %v9246_v61, 272 }
 0x83c   : > { %9271 = vbcast.lane.b32.xlu1 %v9261_v47, 272  ;;  %9267 = vbcast.lane.b32.xlu0 %v9261_v47, 264 }
 0x83d   : > { %v20238_v8 = vpop.eup %14517 }
 0x85a   : > { %8845 = vxpose.xlu0.b32.start [1/2] (short) (narrow) %v20162_v63, 24 }
 0x85e   : > { %8846 = vxpose.xlu0.b32.end [2/2] (short) (narrow) %v20238_v8, 24 }
 0x89a   : > { %v20241_v61 = vpop.permute.xlu0 %9218  ;;  %v20243_v47 = vpop.permute.xlu1 %9222 }
 0x89e   : > { %v20245_v44 = vpop.permute.xlu0 %9226  ;;  %v9234_v48 = vpop.permute.xlu1 %9233 }
 0x89f   : > { %v20250_v51 = vmul.f32 %v23036_v35, %v9234_v48 }
 0x8a2   : > { %v9238_v46 = vpop.permute.xlu0 %9237  ;;  %v20247_v39 = vpop.permute.xlu1 %9241 }
 0x8a3   : > { %v20253_v2 = vmul.f32 %v23037_v13, %v9238_v46  ;;  %v9276_v13 = vrot.slane %v20162_v63, %v23043_v22 }
 0x8a6   : > { %v9249_v54 = vpop.permute.xlu0 %9248  ;;  %v9253_v62 = vpop.permute.xlu1 %9252 }
 0x8a7   : > { %v20258_v5 = vmul.f32 %v23038_v4, %v9249_v54  ;;  %v20261_v20 = vmul.f32 %v23039_v11, %v9253_v62  ;;  %v9291_v54 = vrot.slane %v20162_v63, %v23044_v29  ;;  %v9306_v62 = vrot.slane %v20162_v63, %v23045_v12 }
 0x8a8   : > { %v9321_v11 = vrot.slane %v20162_v63, %v23046_v17 }
 0x8aa   : > { %v20265_v58 = vpop.permute.xlu0 %9256  ;;  %v9264_v14 = vpop.permute.xlu1 %9263 }
 0x8ab   : > { %v20268_v32 = vmul.f32 %v23040_v10, %v9264_v14  ;;  %v23047_v14 = vld [vmem:[#allocation198_spill] sm:$0xff] }
 0x8ad   : > { %23041 = vst [vmem:[#allocation121_spill] sm:$0xff] %v20268_v32 }
 0x8ae   : > { %v9268_v53 = vpop.permute.xlu0 %9267  ;;  %v20305_v4 = vpop.permute.xlu1 %9271 }
 0x8af   : > { %v20271_v45 = vmul.f32 %v23042_v50, %v9268_v53  ;;  %v23048_v53 = vld [vmem:[#allocation26_spill] sm:$0xff]  ;;  %v23049_v50 = vld [vmem:[#allocation183_spill] sm:$0xff] }
 0x8b0   : > { %v3242_v10 = vcombine.high %v23048_v53, %v23047_v14  ;;  %v23073_v14 = vld [vmem:[#allocation124_spill] sm:$0xff] }
 0x8da   : > { %v8861_v41 = vpop.trf.xlu0 }
 0x8db   : > { %v8880_v0 = vrot.slane %v8861_v41, %v19102_v34  ;;  %v8891_v27 = vrot.slane %v8861_v41, %v19110_v31  ;;  %v8902_v1 = vrot.slane %v8861_v41, %v23034_v33  ;;  %v8913_v25 = vrot.slane %v8861_v41, %v23035_v56 }
 0x8dc   : > { %v8924_v40 = vrot.slane %v8861_v41, %v23043_v22  ;;  %v8935_v18 = vrot.slane %v8861_v41, %v23044_v29  ;;  %v8946_v23 = vrot.slane %v8861_v41, %v23045_v12  ;;  %v8957_v42 = vrot.slane %v8861_v41, %v23046_v17  ;;  %v23050_v41 = vld [vmem:[#allocation41_spill] sm:$0xff] }
 0x8dd   : > { %8886 = vbcast.lane.b32.xlu1 %v8880_v0, 264  ;;  %8882 = vbcast.lane.b32.xlu0 %v8880_v0, 256  ;;  %v3210_v0 = vcombine.high %v23050_v41, %v23049_v50 }
 0x8de   : > { %v8862_v6 = vpop.trf.xlu0 }
 0x8df   : > { %v8968_v57 = vrot.slane %v8862_v6, %v19102_v34  ;;  %v8979_v26 = vrot.slane %v8862_v6, %v19110_v31  ;;  %v8990_v28 = vrot.slane %v8862_v6, %v23034_v33  ;;  %v9001_v49 = vrot.slane %v8862_v6, %v23035_v56 }
 0x8e0   : > { %v9012_v52 = vrot.slane %v8862_v6, %v23043_v22  ;;  %v9023_v43 = vrot.slane %v8862_v6, %v23044_v29  ;;  %v9034_v9 = vrot.slane %v8862_v6, %v23045_v12  ;;  %v9045_v36 = vrot.slane %v8862_v6, %v23046_v17  ;;  %v23053_v6 = vld [vmem:[#allocation150_spill] sm:$0xff] }
 0x8e1   : > { %8893 = vbcast.lane.b32.xlu1 %v8891_v27, 256  ;;  %8904 = vbcast.lane.b32.xlu0 %v8902_v1, 256 }
 0x8e2   : > { %v8863_v16 = vpop.trf.xlu0 }
 0x8e3   : > { %v9056_v19 = vrot.slane %v8863_v16, %v19102_v34  ;;  %v9067_v24 = vrot.slane %v8863_v16, %v19110_v31  ;;  %v9078_v30 = vrot.slane %v8863_v16, %v23034_v33  ;;  %v9089_v7 = vrot.slane %v8863_v16, %v23035_v56 }
 0x8e4   : > { %v9100_v15 = vrot.slane %v8863_v16, %v23043_v22  ;;  %v9111_v48 = vrot.slane %v8863_v16, %v23044_v29  ;;  %v9122_v46 = vrot.slane %v8863_v16, %v23045_v12  ;;  %v9133_v35 = vrot.slane %v8863_v16, %v23046_v17 }
 0x8e5   : > { %8897 = vbcast.lane.b32.xlu1 %v8891_v27, 264  ;;  %8915 = vbcast.lane.b32.xlu0 %v8913_v25, 256  ;;  %v23051_v27 = vld [vmem:[#allocation119_spill] sm:$0xff] }
 0x8e9   : > { %8908 = vbcast.lane.b32.xlu1 %v8902_v1, 264  ;;  %8926 = vbcast.lane.b32.xlu0 %v8924_v40, 256  ;;  %v23052_v1 = vld [vmem:[#allocation47_spill] sm:$0xff] }
 0x8ed   : > { %8919 = vbcast.lane.b32.xlu1 %v8913_v25, 264  ;;  %8937 = vbcast.lane.b32.xlu0 %v8935_v18, 256  ;;  %v3226_v25 = vcombine.high %v23052_v1, %v23051_v27 }
 0x8f1   : > { %8930 = vbcast.lane.b32.xlu1 %v8924_v40, 264  ;;  %8948 = vbcast.lane.b32.xlu0 %v8946_v23, 256 }
 0x8f5   : > { %8941 = vbcast.lane.b32.xlu1 %v8935_v18, 264  ;;  %8959 = vbcast.lane.b32.xlu0 %v8957_v42, 256 }
 0x8f9   : > { %8952 = vbcast.lane.b32.xlu1 %v8946_v23, 264  ;;  %8970 = vbcast.lane.b32.xlu0 %v8968_v57, 256  ;;  %v9336_v23 = vrot.slane %v20238_v8, %v19102_v34 }
 0x8fd   : > { %8963 = vbcast.lane.b32.xlu1 %v8957_v42, 264  ;;  %8981 = vbcast.lane.b32.xlu0 %v8979_v26, 256 }
 0x901   : > { %8974 = vbcast.lane.b32.xlu1 %v8968_v57, 264  ;;  %8992 = vbcast.lane.b32.xlu0 %v8990_v28, 256  ;;  %v23054_v57 = vld [vmem:[#allocation54_spill] sm:$0xff] }
 0x905   : > { %8985 = vbcast.lane.b32.xlu1 %v8979_v26, 264  ;;  %9003 = vbcast.lane.b32.xlu0 %v9001_v49, 256  ;;  %v23055_v26 = vld [vmem:[#allocation70_spill] sm:$0xff] }
 0x909   : > { %8996 = vbcast.lane.b32.xlu1 %v8990_v28, 264  ;;  %9014 = vbcast.lane.b32.xlu0 %v9012_v52, 256  ;;  %v23056_v28 = vld [vmem:[#allocation111_spill] sm:$0xff] }
 0x90d   : > { %9007 = vbcast.lane.b32.xlu1 %v9001_v49, 264  ;;  %9025 = vbcast.lane.b32.xlu0 %v9023_v43, 256  ;;  %v3194_v49 = vcombine.high %v23056_v28, %v23055_v26 }
 0x911   : > { %9018 = vbcast.lane.b32.xlu1 %v9012_v52, 264  ;;  %9036 = vbcast.lane.b32.xlu0 %v9034_v9, 256  ;;  %v23057_v52 = vld [vmem:[#allocation18_spill] sm:$0xff] }
 0x912   : > { %v20323_v16 = vrot.slane %v3210_v0, %v23057_v52  ;;  %v3208_v34 = vrot.slane %v3194_v49, %v23057_v52  ;;  %v9351_v0 = vrot.slane %v20238_v8, %v19110_v31 }
 0x915   : > { %9029 = vbcast.lane.b32.xlu1 %v9023_v43, 264  ;;  %9047 = vbcast.lane.b32.xlu0 %v9045_v36, 256  ;;  %v3256_v43 = vrot.slane %v3242_v10, %v23057_v52 }
 0x919   : > { %9040 = vbcast.lane.b32.xlu1 %v9034_v9, 264  ;;  %9058 = vbcast.lane.b32.xlu0 %v9056_v19, 256 }
 0x91d   : > { %9051 = vbcast.lane.b32.xlu1 %v9045_v36, 264  ;;  %9069 = vbcast.lane.b32.xlu0 %v9067_v24, 256  ;;  %v3240_v36 = vrot.slane %v3226_v25, %v23057_v52  ;;  %v23062_v25 = vld [vmem:[#allocation44_spill] sm:$0xff] }
 0x921   : > { %9062 = vbcast.lane.b32.xlu1 %v9056_v19, 264  ;;  %9080 = vbcast.lane.b32.xlu0 %v9078_v30, 256 }
 0x925   : > { %9073 = vbcast.lane.b32.xlu1 %v9067_v24, 264  ;;  %9091 = vbcast.lane.b32.xlu0 %v9089_v7, 256 }
 0x929   : > { %9084 = vbcast.lane.b32.xlu1 %v9078_v30, 264  ;;  %9102 = vbcast.lane.b32.xlu0 %v9100_v15, 256  ;;  %v3305_v30 = vcombine.low %v3240_v36, %v3256_v43 }
 0x92d   : > { %9095 = vbcast.lane.b32.xlu1 %v9089_v7, 264  ;;  %9113 = vbcast.lane.b32.xlu0 %v9111_v48, 256  ;;  %v23058_v7 = vld [vmem:[#allocation176_spill] sm:$0xff] }
 0x931   : > { %9106 = vbcast.lane.b32.xlu1 %v9100_v15, 264  ;;  %9124 = vbcast.lane.b32.xlu0 %v9122_v46, 256  ;;  %v23059_v15 = vmov 0.0  }
 0x935   : > { %9117 = vbcast.lane.b32.xlu1 %v9111_v48, 264  ;;  %9135 = vbcast.lane.b32.xlu0 %v9133_v35, 256  ;;  %v3273_v48 = vcombine.low %v3208_v34, %v20323_v16 }
 0x937   : > { %v3281_v31 = vrot.slane %v3273_v48, %v23062_v25  ;;  %v9366_v48 = vrot.slane %v20238_v8, %v23034_v33 }
 0x939   : > { %9128 = vbcast.lane.b32.xlu1 %v9122_v46, 264  ;;  %9278 = vbcast.lane.b32.xlu0 %v9276_v13, 256 }
 0x93d   : > { %9139 = vbcast.lane.b32.xlu1 %v9133_v35, 264  ;;  %9286 = vbcast.lane.b32.xlu0 %v9276_v13, 272 }
 0x941   : > { %9282 = vbcast.lane.b32.xlu1 %v9276_v13, 264  ;;  %9297 = vbcast.lane.b32.xlu0 %v9291_v54, 264  ;;  %v23060_v13 = vld [vmem:[#allocation110_spill] sm:$0xff] }
 0x945   : > { %9293 = vbcast.lane.b32.xlu1 %v9291_v54, 256  ;;  %9308 = vbcast.lane.b32.xlu0 %v9306_v62, 256 }
 0x949   : > { %9301 = vbcast.lane.b32.xlu1 %v9291_v54, 272  ;;  %9316 = vbcast.lane.b32.xlu0 %v9306_v62, 272 }
 0x94d   : > { %9312 = vbcast.lane.b32.xlu1 %v9306_v62, 264  ;;  %9327 = vbcast.lane.b32.xlu0 %v9321_v11, 264  ;;  %v23061_v62 = vld [vmem:[#allocation191_spill] sm:$0xff] }
 0x94f   : > { %v8883_v40 = vpop.permute.xlu0 %8882  ;;  %v8887_v18 = vpop.permute.xlu1 %8886 }
 0x950   : > { %v9141_v42 = vmul.f32 %v23053_v6, %v8883_v40  ;;  %v9142_v63 = vmul.f32 %v23054_v57, %v8887_v18  ;;  %v3313_v40 = vrot.slane %v3305_v30, %v23062_v25  ;;  %v23063_v18 = vld [vmem:[#allocation73_spill] sm:$0xff] }
 0x951   : > { %9323 = vbcast.lane.b32.xlu1 %v9321_v11, 256  ;;  %9338 = vbcast.lane.b32.xlu0 %v9336_v23, 256 }
 0x952   : > { %v9189_v9 = vpack.c.bf16 %v9142_v63, %v9141_v42  ;;  %v23064_v42 = vld [vmem:[#allocation140_spill] sm:$0xff]  ;;  %v23065_v63 = vld [vmem:[#allocation146_spill] sm:$0xff]  ;;  %v3325_v3 = vcombine.low %v3281_v31, %v3313_v40  ;;  %v3326_v32 = vcombine.high %v3281_v31, %v3313_v40  ;;  %v23080_v40 = vld [vmem:[#allocation31_spill] sm:$0xff] }
 0x953   : > { %v8905_v19 = vpop.permute.xlu0 %8904  ;;  %v8894_v24 = vpop.permute.xlu1 %8893 }
 0x954   : > { %13900 = vmatmul.mubr.msk.bf16.vlgmr.msra.gmra.mrb[152].mxu0 %vm6210_vm5, %v9189_v9  ;;  %v9143_v54 = vmul.f32 %v23060_v13, %v8894_v24  ;;  %v23066_v24 = vld [vmem:[#allocation159_spill] sm:$0xff]  ;;  %v23068_v13 = vld [vmem:[#allocation173_spill] sm:$0xff] }
 0x955   : > { %13910 = vmatpush3.bf16.msra.mxu0 %v23058_v7  ;;  %9331 = vbcast.lane.b32.xlu1 %v9321_v11, 272  ;;  %v14521_v11 = vld [vmem:[%s21503_s6] ss:$0 sm:$0xff]  ;;  %v23067_v7 = vld [vmem:[#allocation172_spill] sm:$0xff] }
 0x956   : > { %9346 = vbcast.lane.b32.xlu0 %v9336_v23, 272  ;;  %13911 = vmatprep.mubr.msk.bf16.mxu0 %vm14650_vm1, %v23059_v15  ;;  %v20342_v6 = vadd.f32 %v14521_v11, %v23063_v18  ;;  %v20345_v57 = vadd.f32 %v14521_v11, %v23064_v42  ;;  %v20348_v49 = vadd.f32 %v14521_v11, %v23065_v63  ;;  %v23069_v42 = vld [vmem:[#allocation161_spill] sm:$0xff] }
 0x957   : > { %v8916_v46 = vpop.permute.xlu0 %8915  ;;  %v8898_v35 = vpop.permute.xlu1 %8897  ;;  %13921 = vmatprep.subr.bf16.mxu0 %v23059_v15  ;;  %v20352_v30 = vadd.f32 %v14521_v11, %v23066_v24  ;;  %v20361_v21 = vadd.f32 %v14521_v11, %v23069_v42  ;;  %v23070_v63 = vld [vmem:[#allocation69_spill] sm:$0xff]  ;;  %v3306_v24 = vcombine.high %v3240_v36, %v3256_v43  ;;  %v20372_v42 = vadd.f32 %v14521_v11, %v23073_v14 }
 0x958   : > { %v9144_v10 = vmul.f32 %v23061_v62, %v8898_v35  ;;  %v20355_v35 = vadd.f32 %v14521_v11, %v23067_v7  ;;  %v20358_v62 = vadd.f32 %v14521_v11, %v23068_v13  ;;  %v9145_v38 = vmul.f32 %v23070_v63, %v8905_v19  ;;  %v23072_v13 = vld [vmem:[#allocation19_spill] sm:$0xff]  ;;  %v23077_v11 = vld [vmem:[#allocation126_spill] sm:$0xff] }
 0x959   : > { %9342 = vbcast.lane.b32.xlu1 %v9336_v23, 264  ;;  %v3274_v19 = vcombine.high %v3208_v34, %v20323_v16  ;;  %v3481_v33 = vcombine.low %v20345_v57, %v20352_v30  ;;  %v23075_v63 = vld [vmem:[#allocation127_spill] sm:$0xff]  ;;  %v23078_v16 = vld [vmem:[#allocation32_spill] sm:$0xff] }
 0x95a   : > { %v9190_v9 = vpack.c.bf16 %v9144_v10, %v9143_v54  ;;  %9357 = vbcast.lane.b32.xlu0 %v9351_v0, 264  ;;  %v23071_v54 = vld [vmem:[#allocation128_spill] sm:$0xff]  ;;  %v3513_v7 = vcombine.low %v20355_v35, %v20342_v6  ;;  %v3497_v43 = vcombine.low %v20361_v21, %v20358_v62 }
 0x95b   : > { %v8927_v23 = vpop.permute.xlu0 %8926  ;;  %v8909_v18 = vpop.permute.xlu1 %8908 }
 0x95c   : > { %v9146_v10 = vmul.f32 %v23071_v54, %v8909_v18  ;;  %13906 = vmatmul.mubr.msk.bf16.vlgmr.msra.gmra.mrb[152].mxu1 %vm6210_vm5, %v9190_v9  ;;  %v23074_v18 = vld [vmem:[#allocation37_spill] sm:$0xff]  ;;  %v20392_v53 = vrot.slane %v3513_v7, %v23057_v52  ;;  %v9149_v31 = vmul.f32 %v23080_v40, %v8927_v23 }
 0x95d   : > { %13916 = vmatpush3.bf16.msra.mxu1 %v23072_v13  ;;  %9353 = vbcast.lane.b32.xlu1 %v9351_v0, 256  ;;  %v23076_v54 = vcombine.low %v23074_v18, %v23075_v63  ;;  %v3320_v13 = vrot.slane %v3306_v24, %v23062_v25  ;;  %v23079_v7 = vcombine.high %v23074_v18, %v23075_v63 }
 0x95e   : > { %v9191_v27 = vpack.c.bf16 %v9146_v10, %v9145_v38  ;;  %9368 = vbcast.lane.b32.xlu0 %v9366_v48, 256  ;;  %13917 = vmatprep.mubr.msk.bf16.mxu1 %vm14650_vm1, %v23059_v15  ;;  %v3465_v38 = vcombine.low %v20372_v42, %v20348_v49  ;;  %v9147_v10 = vmul.f32 %v23077_v11, %v8916_v46 }
 0x95f   : > { %v8938_v36 = vpop.permute.xlu0 %8937  ;;  %v8920_v9 = vpop.permute.xlu1 %8919  ;;  %v9537_v14 = vpack.c.bf16 %v23076_v54, %v3325_v3  ;;  %13927 = vmatprep.subr.bf16.mxu1 %v23059_v15  ;;  %v3288_v54 = vrot.slane %v3274_v19, %v23062_v25  ;;  %v20398_v46 = vrot.slane %v3481_v33, %v23057_v52  ;;  %v9381_v19 = vrot.slane %v20238_v8, %v23035_v56 }
 0x960   : > { %v9148_v34 = vmul.f32 %v23078_v16, %v8920_v9  ;;  %13912 = vmatmul.mubr.msk.bf16.vlgmr.msra.gmra.mrb[156].mxu0 %vm6210_vm5, %v9191_v27  ;;  %v20401_v27 = vrot.slane %v3497_v43, %v23057_v52  ;;  %v3473_v33 = vrot.slane %v3465_v38, %v23057_v52  ;;  %v23082_v16 = vld [vmem:[#allocation123_spill] sm:$0xff]  ;;  %v23085_v38 = vld [vmem:[#allocation102_spill] sm:$0xff] }
 0x961   : > { %13922 = vmatpush3.bf16.msra.mxu0 %v9537_v14  ;;  %9361 = vbcast.lane.b32.xlu1 %v9351_v0, 272  ;;  %v9538_v0 = vpack.c.bf16 %v23079_v7, %v3326_v32  ;;  %v23081_v14 = vld [vmem:[#allocation189_spill] sm:$0xff]  ;;  %v3327_v18 = vcombine.low %v3288_v54, %v3320_v13  ;;  %v23086_v7 = vld [vmem:[#allocation38_spill] sm:$0xff] }
 0x962   : > { %v9192_v3 = vpack.c.bf16 %v9148_v34, %v9147_v10  ;;  %9376 = vbcast.lane.b32.xlu0 %v9366_v48, 272  ;;  %13923 = vmatprep.mubr.msk.bf16.mxu0 %vm14650_vm1, %v23059_v15  ;;  %v3561_v43 = vcombine.low %v20401_v27, %v20392_v53  ;;  %v3529_v23 = vcombine.low %v3473_v33, %v20398_v46  ;;  %v23083_v34 = vld [vmem:[#allocation178_spill] sm:$0xff] }
 0x963   : > { %v8949_v24 = vpop.permute.xlu0 %8948  ;;  %v8931_v9 = vpop.permute.xlu1 %8930  ;;  %13933 = vmatprep.subr.bf16.mxu0 %v23059_v15  ;;  %v23084_v56 = vcombine.low %v23082_v16, %v23083_v34 }
 0x964   : > { %v9150_v11 = vmul.f32 %v23081_v14, %v8931_v9  ;;  %13918 = vmatmul.mubr.msk.bf16.vlgmr.msra.gmra.mrb[156].mxu1 %vm6210_vm5, %v9192_v3  ;;  %v9151_v9 = vmul.f32 %v23085_v38, %v8938_v36  ;;  %v3569_v40 = vrot.slane %v3561_v43, %v23062_v25  ;;  %v23088_v43 = vld [vmem:[#allocation99_spill] sm:$0xff] }
 0x965   : > { %13928 = vmatpush3.bf16.msra.mxu1 %v9538_v0  ;;  %9372 = vbcast.lane.b32.xlu1 %v9366_v48, 264  ;;  %v9539_v3 = vpack.c.bf16 %v23084_v56, %v3327_v18  ;;  %v9396_v0 = vrot.slane %v20238_v8, %v23043_v22  ;;  %v9153_v22 = vmul.f32 %v19694_v60, %v8949_v24 }
 0x966   : > { %v9193_v32 = vpack.c.bf16 %v9150_v11, %v9149_v31  ;;  %9387 = vbcast.lane.b32.xlu0 %v9381_v19, 264  ;;  %13929 = vmatprep.mubr.msk.bf16.mxu1 %vm14650_vm1, %v23059_v15  ;;  %v3328_v31 = vcombine.high %v3288_v54, %v3320_v13  ;;  %v3537_v11 = vrot.slane %v3529_v23, %v23062_v25 }
 0x967   : > { %v8960_v63 = vpop.permute.xlu0 %8959  ;;  %v8942_v10 = vpop.permute.xlu1 %8941  ;;  %13939 = vmatprep.subr.bf16.mxu1 %v23059_v15  ;;  %v3514_v13 = vcombine.high %v20355_v35, %v20342_v6  ;;  %v3562_v54 = vcombine.high %v20401_v27, %v20392_v53  ;;  %v3482_v60 = vcombine.high %v20345_v57, %v20352_v30  ;;  %v3530_v24 = vcombine.high %v3473_v33, %v20398_v46  ;;  %v23090_v53 = vld [vmem:[#allocation20_spill] sm:$0xff] }
 0x968   : > { %v9152_v48 = vmul.f32 %v23086_v7, %v8942_v10  ;;  %13924 = vmatmul.mubr.msk.bf16.vlgmr.msra.gmra.mrb[160].mxu0 %vm6210_vm5, %v9193_v32  ;;  %v23087_v32 = vcombine.high %v23082_v16, %v23083_v34  ;;  %v3593_v23 = vcombine.low %v3537_v11, %v3569_v40  ;;  %v3498_v16 = vcombine.high %v20361_v21, %v20358_v62 }
 0x969   : > { %13934 = vmatpush3.bf16.msra.mxu0 %v9539_v3  ;;  %9383 = vbcast.lane.b32.xlu1 %v9381_v19, 256  ;;  %v3466_v7 = vcombine.high %v20372_v42, %v20348_v49  ;;  %v9411_v46 = vrot.slane %v20238_v8, %v23044_v29  ;;  %v20461_v33 = vrot.slane %v3514_v13, %v23057_v52 }
 0x96a   : > { %v9194_v14 = vpack.c.bf16 %v9152_v48, %v9151_v9  ;;  %9398 = vbcast.lane.b32.xlu0 %v9396_v0, 256  ;;  %13935 = vmatprep.mubr.msk.bf16.mxu0 %vm14650_vm1, %v23059_v15  ;;  %v9540_v10 = vpack.c.bf16 %v23087_v32, %v3328_v31  ;;  %v23089_v9 = vld [vmem:[#allocation179_spill] sm:$0xff]  ;;  %v23092_v48 = vld [vmem:[#allocation182_spill] sm:$0xff]  ;;  %v3576_v32 = vrot.slane %v3562_v54, %v23062_v25 }
 0x96b   : > { %v8971_v36 = vpop.permute.xlu0 %8970  ;;  %v8953_v18 = vpop.permute.xlu1 %8952  ;;  %13945 = vmatprep.subr.bf16.mxu0 %v23059_v15  ;;  %v23091_v27 = vcombine.low %v23089_v9, %v23090_v53  ;;  %v9155_v31 = vmul.f32 %v23092_v48, %v8960_v63  ;;  %v20467_v63 = vrot.slane %v3482_v60, %v23057_v52  ;;  %v3512_v29 = vrot.slane %v3498_v16, %v23057_v52  ;;  %v23098_v48 = vld [vmem:[#allocation56_spill] sm:$0xff] }
 0x96c   : > { %v9154_v56 = vmul.f32 %v23088_v43, %v8953_v18  ;;  %13930 = vmatmul.mubr.msk.bf16.vlgmr.msra.gmra.mrb[160].mxu1 %vm6210_vm5, %v9194_v14  ;;  %v23093_v14 = vld [vmem:[#allocation149_spill] sm:$0xff]  ;;  %v3544_v43 = vrot.slane %v3530_v24, %v23062_v25  ;;  %v23094_v54 = vcombine.high %v23089_v9, %v23090_v53  ;;  %v9426_v60 = vrot.slane %v20238_v8, %v23045_v12 }
 0x96d   : > { %13940 = vmatpush3.bf16.msra.mxu1 %v9540_v10  ;;  %9391 = vbcast.lane.b32.xlu1 %v9381_v19, 272  ;;  %v9541_v19 = vpack.c.bf16 %v23091_v27, %v3593_v23  ;;  %v3594_v10 = vcombine.high %v3537_v11, %v3569_v40  ;;  %v23096_v11 = vld [vmem:[#allocation84_spill] sm:$0xff]  ;;  %v3480_v24 = vrot.slane %v3466_v7, %v23057_v52  ;;  %v23100_v7 = vld [vmem:[#allocation43_spill] sm:$0xff] }
 0x96e   : > { %v9195_v3 = vpack.c.bf16 %v9154_v56, %v9153_v22  ;;  %9406 = vbcast.lane.b32.xlu0 %v9396_v0, 272  ;;  %13941 = vmatprep.mubr.msk.bf16.mxu1 %vm14650_vm1, %v23059_v15  ;;  %v3577_v16 = vcombine.low %v3512_v29, %v20461_v33 }
 0x96f   : > { %v8982_v34 = vpop.permute.xlu0 %8981  ;;  %v8964_v38 = vpop.permute.xlu1 %8963  ;;  %13951 = vmatprep.subr.bf16.mxu1 %v23059_v15  ;;  %v9542_v23 = vpack.c.bf16 %v23094_v54, %v3594_v10 }
 0x970   : > { %v9156_v18 = vmul.f32 %v23093_v14, %v8964_v38  ;;  %13936 = vmatmul.mubr.msk.bf16.vlgmr.msra.gmra.mrb[164].mxu0 %vm6210_vm5, %v9195_v3  ;;  %v3595_v38 = vcombine.low %v3544_v43, %v3576_v32  ;;  %v9159_v14 = vmul.f32 %v23100_v7, %v8982_v34  ;;  %v3585_v10 = vrot.slane %v3577_v16, %v23062_v25 }
 0x971   : > { %13946 = vmatpush3.bf16.msra.mxu0 %v9541_v19  ;;  %9402 = vbcast.lane.b32.xlu1 %v9396_v0, 264  ;;  %v23095_v0 = vld [vmem:[#allocation144_spill] sm:$0xff] }
 0x972   : > { %v9196_v22 = vpack.c.bf16 %v9156_v18, %v9155_v31  ;;  %9417 = vbcast.lane.b32.xlu0 %v9411_v46, 264  ;;  %13947 = vmatprep.mubr.msk.bf16.mxu0 %vm14650_vm1, %v23059_v15  ;;  %v9157_v40 = vmul.f32 %v23095_v0, %v8971_v36  ;;  %v3545_v36 = vcombine.low %v3480_v24, %v20467_v63  ;;  %v23097_v19 = vld [vmem:[#allocation24_spill] sm:$0xff] }
 0x973   : > { %v8993_v56 = vpop.permute.xlu0 %8992  ;;  %v8975_v13 = vpop.permute.xlu1 %8974  ;;  %13957 = vmatprep.subr.bf16.mxu0 %v23059_v15  ;;  %v23099_v31 = vcombine.low %v23097_v19, %v23098_v48  ;;  %v23101_v34 = vcombine.high %v23097_v19, %v23098_v48  ;;  %v23105_v19 = vld [vmem:[#allocation93_spill] sm:$0xff] }
 0x974   : > { %v9158_v3 = vmul.f32 %v23096_v11, %v8975_v13  ;;  %13942 = vmatmul.mubr.msk.bf16.vlgmr.msra.gmra.mrb[164].mxu1 %vm6210_vm5, %v9196_v22  ;;  %v3596_v22 = vcombine.high %v3544_v43, %v3576_v32  ;;  %v3553_v54 = vrot.slane %v3545_v36, %v23062_v25  ;;  %v9441_v32 = vrot.slane %v20238_v8, %v23046_v17  ;;  %v23107_v8 = vld [vmem:[#allocation196_spill] sm:$0xff] }
 0x975   : > { %13952 = vmatpush3.bf16.msra.mxu1 %v9542_v23  ;;  %9413 = vbcast.lane.b32.xlu1 %v9411_v46, 256  ;;  %v9543_v12 = vpack.c.bf16 %v23099_v31, %v3595_v38  ;;  %v3578_v43 = vcombine.high %v3512_v29, %v20461_v33  ;;  %v23108_v33 = vld [vmem:[#allocation174_spill] sm:$0xff] }
 0x976   : > { %v9197_v9 = vpack.c.bf16 %v9158_v3, %v9157_v40  ;;  %9428 = vbcast.lane.b32.xlu0 %v9426_v60, 256  ;;  %13953 = vmatprep.mubr.msk.bf16.mxu1 %vm14650_vm1, %v23059_v15  ;;  %v23102_v40 = vld [vmem:[#allocation21_spill] sm:$0xff]  ;;  %v23103_v3 = vld [vmem:[#allocation96_spill] sm:$0xff]  ;;  %v3597_v16 = vcombine.low %v3553_v54, %v3585_v10 }
 0x977   : > { %v9004_v53 = vpop.permute.xlu0 %9003  ;;  %v8986_v27 = vpop.permute.xlu1 %8985  ;;  %13963 = vmatprep.subr.bf16.mxu1 %v23059_v15  ;;  %v9161_v11 = vmul.f32 %v23102_v40, %v8993_v56 }
 0x978   : > { %v9160_v18 = vmul.f32 %v19724_v55, %v8986_v27  ;;  %13948 = vmatmul.mubr.msk.bf16.vlgmr.msra.gmra.mrb[168].mxu0 %vm6210_vm5, %v9197_v9  ;;  %v9544_v55 = vpack.c.bf16 %v23101_v34, %v3596_v22  ;;  %v3546_v9 = vcombine.high %v3480_v24, %v20467_v63  ;;  %v23104_v27 = vld [vmem:[#allocation15_spill] sm:$0xff]  ;;  %v9163_v17 = vmul.f32 %v23107_v8, %v9004_v53  ;;  %v23110_v22 = vld [vmem:[#allocation112_spill] sm:$0xff] }
 0x979   : > { %13958 = vmatpush3.bf16.msra.mxu0 %v9543_v12  ;;  %9421 = vbcast.lane.b32.xlu1 %v9411_v46, 272  ;;  %v23106_v48 = vcombine.low %v23104_v27, %v23105_v19  ;;  %v3598_v12 = vcombine.high %v3553_v54, %v3585_v10  ;;  %v23109_v53 = vcombine.high %v23104_v27, %v23105_v19  ;;  %v23118_v8 = vld [vmem:[#allocation23_spill] sm:$0xff] }
 0x97a   : > { %v9198_v13 = vpack.c.bf16 %v9160_v18, %v9159_v14  ;;  %9436 = vbcast.lane.b32.xlu0 %v9426_v60, 272  ;;  %13959 = vmatprep.mubr.msk.bf16.mxu0 %vm14650_vm1, %v23059_v15  ;;  %v3560_v24 = vrot.slane %v3546_v9, %v23062_v25 }
 0x97b   : > { %v9015_v23 = vpop.permute.xlu0 %9014  ;;  %v8997_v0 = vpop.permute.xlu1 %8996  ;;  %13969 = vmatprep.subr.bf16.mxu0 %v23059_v15  ;;  %v9545_v31 = vpack.c.bf16 %v23106_v48, %v3597_v16  ;;  %v9546_v18 = vpack.c.bf16 %v23109_v53, %v3598_v12 }
 0x97c   : > { %v9162_v46 = vmul.f32 %v23103_v3, %v8997_v0  ;;  %13954 = vmatmul.mubr.msk.bf16.vlgmr.msra.gmra.mrb[168].mxu1 %vm6210_vm5, %v9198_v13  ;;  %v9165_v13 = vmul.f32 %v23110_v22, %v9015_v23  ;;  %v23111_v0 = vld [vmem:[#allocation50_spill] sm:$0xff]  ;;  %v23115_v23 = vld [vmem:[#allocation139_spill] sm:$0xff] }
 0x97d   : > { %13964 = vmatpush3.bf16.msra.mxu1 %v9544_v55  ;;  %9432 = vbcast.lane.b32.xlu1 %v9426_v60, 264  ;;  %v3592_v60 = vrot.slane %v3578_v43, %v23062_v25  ;;  %v23113_v3 = vld [vmem:[#allocation142_spill] sm:$0xff]  ;;  %v23122_v22 = vld [vmem:[#allocation39_spill] sm:$0xff] }
 0x97e   : > { %v9199_v38 = vpack.c.bf16 %v9162_v46, %v9161_v11  ;;  %9447 = vbcast.lane.b32.xlu0 %v9441_v32, 264  ;;  %13965 = vmatprep.mubr.msk.bf16.mxu1 %vm14650_vm1, %v23059_v15  ;;  %v23112_v11 = vld [vmem:[#allocation17_spill] sm:$0xff] }
 0x97f   : > { %v9026_v56 = vpop.permute.xlu0 %9025  ;;  %v9008_v36 = vpop.permute.xlu1 %9007  ;;  %13975 = vmatprep.subr.bf16.mxu1 %v23059_v15  ;;  %v3599_v10 = vcombine.low %v3560_v24, %v3592_v60  ;;  %v23114_v46 = vcombine.low %v23112_v11, %v23113_v3  ;;  %v23116_v19 = vcombine.high %v23112_v11, %v23113_v3  ;;  %v23125_v3 = vld [vmem:[#allocation65_spill] sm:$0xff] }
 0x980   : > { %v9164_v29 = vmul.f32 %v23108_v33, %v9008_v36  ;;  %13960 = vmatmul.mubr.msk.bf16.vlgmr.msra.gmra.mrb[172].mxu0 %vm6210_vm5, %v9199_v38  ;;  %v9167_v16 = vmul.f32 %v23115_v23, %v9026_v56 }
 0x981   : > { %13970 = vmatpush3.bf16.msra.mxu0 %v9545_v31  ;;  %9443 = vbcast.lane.b32.xlu1 %v9441_v32, 256  ;;  %v9547_v43 = vpack.c.bf16 %v23114_v46, %v3599_v10  ;;  %v23117_v31 = vld [vmem:[#allocation87_spill] sm:$0xff] }
 0x982   : > { %v9200_v63 = vpack.c.bf16 %v9164_v29, %v9163_v17  ;;  %13971 = vmatprep.mubr.msk.bf16.mxu0 %vm14650_vm1, %v23059_v15  ;;  %13981 = vmatprep.subr.bf16.mxu0 %v23059_v15 }
 0x983   : > { %v9037_v7 = vpop.permute.xlu0 %9036  ;;  %v9019_v14 = vpop.permute.xlu1 %9018 }
 0x984   : > { %v9166_v34 = vmul.f32 %v23111_v0, %v9019_v14  ;;  %13966 = vmatmul.mubr.msk.bf16.vlgmr.msra.gmra.mrb[172].mxu1 %vm6210_vm5, %v9200_v63  ;;  %v9169_v56 = vmul.f32 %v23117_v31, %v9037_v7  ;;  %v23120_v63 = vld [vmem:[#allocation42_spill] sm:$0xff]  ;;  %v23121_v7 = vld [vmem:[#allocation57_spill] sm:$0xff] }
 0x985   : > { %13976 = vmatpush3.bf16.msra.mxu1 %v9546_v18  ;;  %9451 = vbcast.lane.b32.xlu1 %v9441_v32, 272  ;;  %v3600_v32 = vcombine.high %v3560_v24, %v3592_v60  ;;  %v23119_v60 = vld [vmem:[#allocation81_spill] sm:$0xff] }
 0x986   : > { %v9201_v54 = vpack.c.bf16 %v9166_v34, %v9165_v13  ;;  %13977 = vmatprep.mubr.msk.bf16.mxu1 %vm14650_vm1, %v23059_v15  ;;  %13987 = vmatprep.subr.bf16.mxu1 %v23059_v15  ;;  %v23123_v34 = vld [vmem:[#allocation94_spill] sm:$0xff] }
 0x987   : > { %v9048_v55 = vpop.permute.xlu0 %9047  ;;  %v9030_v40 = vpop.permute.xlu1 %9029  ;;  %v9548_v48 = vpack.c.bf16 %v23116_v19, %v3600_v32 }
 0x988   : > { %v9168_v38 = vmul.f32 %v19766_v59, %v9030_v40  ;;  %13972 = vmatmul.mubr.msk.bf16.vlgmr.msra.gmra.mrb[176].mxu0 %vm6210_vm5, %v9201_v54  ;;  %v9171_v12 = vmul.f32 %v23119_v60, %v9048_v55  ;;  %v23124_v40 = vld [vmem:[#allocation167_spill] sm:$0xff] }
 0x989   : > { %13982 = vmatpush3.bf16.msra.mxu0 %v9547_v43  ;;  %13983 = vmatprep.mubr.msk.bf16.mxu0 %vm14650_vm1, %v23059_v15  ;;  %v23126_v43 = vld [vmem:[#allocation147_spill] sm:$0xff] }
 0x98a   : > { %v9202_v9 = vpack.c.bf16 %v9168_v38, %v9167_v16  ;;  %13993 = vmatprep.subr.bf16.mxu0 %v23059_v15  ;;  %v23127_v38 = vld [vmem:[#allocation168_spill] sm:$0xff] }
 0x98b   : > { %v9059_v36 = vpop.permute.xlu0 %9058  ;;  %v9041_v27 = vpop.permute.xlu1 %9040 }
 0x98c   : > { %v9170_v59 = vmul.f32 %v23118_v8, %v9041_v27  ;;  %13978 = vmatmul.mubr.msk.bf16.vlgmr.msra.gmra.mrb[176].mxu1 %vm6210_vm5, %v9202_v9  ;;  %v9173_v13 = vmul.f32 %v23122_v22, %v9059_v36  ;;  %v23128_v9 = vld [vmem:[#allocation193_spill] sm:$0xff] }
 0x98d   : > { %13988 = vmatpush3.bf16.msra.mxu1 %v9548_v48  ;;  %13989 = vmatprep.mubr.msk.bf16.mxu1 %vm14650_vm1, %v23059_v15  ;;  %v23129_v27 = vld [vmem:[#allocation177_spill] sm:$0xff] }
 0x98e   : > { %v9203_v17 = vpack.c.bf16 %v9170_v59, %v9169_v56  ;;  %13999 = vmatprep.subr.bf16.mxu1 %v23059_v15  ;;  %v23130_v56 = vld [vmem:[#allocation113_spill] sm:$0xff] }
 0x98f   : > { %v9070_v33 = vpop.permute.xlu0 %9069  ;;  %v9052_v29 = vpop.permute.xlu1 %9051  ;;  %v23131_v59 = vld [vmem:[#allocation185_spill] sm:$0xff] }
 0x990   : > { %v9172_v24 = vmul.f32 %v23120_v63, %v9052_v29  ;;  %13984 = vmatmul.mubr.msk.bf16.vlgmr.msra.gmra.mrb[180].mxu0 %vm6210_vm5, %v9203_v17  ;;  %v9175_v11 = vmul.f32 %v23124_v40, %v9070_v33  ;;  %v23132_v33 = vld [vmem:[#allocation59_spill] sm:$0xff]  ;;  %v23133_v63 = vld [vmem:[#allocation194_spill] sm:$0xff]  ;;  %v23138_v40 = vld [vmem:[#allocation148_spill] sm:$0xff] }
 0x991   : > { %13994 = vmatpush3.bf16.msra.mxu0 %v23121_v7  ;;  %13995 = vmatprep.mubr.msk.bf16.mxu0 %vm14650_vm1, %v23059_v15  ;;  %v23134_v7 = vld [vmem:[#allocation35_spill] sm:$0xff] }
 0x992   : > { %v9204_v14 = vpack.c.bf16 %v9172_v24, %v9171_v12  ;;  %14005 = vmatprep.subr.bf16.mxu0 %v23059_v15 }
 0x993   : > { %v9081_v53 = vpop.permute.xlu0 %9080  ;;  %v9063_v18 = vpop.permute.xlu1 %9062 }
 0x994   : > { %v9174_v0 = vmul.f32 %v19796_v37, %v9063_v18  ;;  %13990 = vmatmul.mubr.msk.bf16.vlgmr.msra.gmra.mrb[180].mxu1 %vm6210_vm5, %v9204_v14  ;;  %v9177_v32 = vmul.f32 %v23127_v38, %v9081_v53  ;;  %v23135_v53 = vld [vmem:[#allocation95_spill] sm:$0xff]  ;;  %v23141_v38 = vld [vmem:[#allocation58_spill] sm:$0xff] }
 0x995   : > { %14000 = vmatpush3.bf16.msra.mxu1 %v23123_v34  ;;  %14001 = vmatprep.mubr.msk.bf16.mxu1 %vm14650_vm1, %v23059_v15 }
 0x996   : > { %v9205_v10 = vpack.c.bf16 %v9174_v0, %v9173_v13  ;;  %14011 = vmatprep.subr.bf16.mxu1 %v23059_v15  ;;  %v23136_v0 = vld [vmem:[#allocation188_spill] sm:$0xff] }
 0x997   : > { %v9092_v54 = vpop.permute.xlu0 %9091  ;;  %v9074_v55 = vpop.permute.xlu1 %9073 }
 0x998   : > { %v9176_v46 = vmul.f32 %v23125_v3, %v9074_v55  ;;  %13996 = vmatmul.mubr.msk.bf16.vlgmr.msra.gmra.mrb[184].mxu0 %vm6210_vm5, %v9205_v10  ;;  %v9179_v8 = vmul.f32 %v23130_v56, %v9092_v54  ;;  %v23137_v10 = vld [vmem:[#allocation192_spill] sm:$0xff]  ;;  %v10613_v55 = vpack.c.bf16 %v20372_v42, %v23056_v28  ;;  %v23139_v3 = vld [vmem:[#allocation118_spill] sm:$0xff]  ;;  %v10615_v28 = vpack.c.bf16 %v20345_v57, %v23050_v41 }
 0x999   : > { %14006 = vmatpush3.bf16.msra.mxu0 %v23126_v43  ;;  %14007 = vmatprep.mubr.msk.bf16.mxu0 %vm14650_vm1, %v23059_v15  ;;  %v23140_v43 = vld [vmem:[#allocation98_spill] sm:$0xff]  ;;  %v23143_v42 = vld [vmem:[#allocation180_spill] sm:$0xff] }
 0x99a   : > { %v9206_v37 = vpack.c.bf16 %v9176_v46, %v9175_v11  ;;  %14017 = vmatprep.subr.bf16.mxu0 %v23059_v15  ;;  %v9453_v46 = vmul.f32 %v23139_v3, %v20241_v61  ;;  %v23145_v56 = vld [vmem:[#allocation80_spill] sm:$0xff]  ;;  %v23147_v41 = vld [vmem:[#allocation162_spill] sm:$0xff] }
 0x99b   : > { %v9103_v23 = vpop.permute.xlu0 %9102  ;;  %v9085_v16 = vpop.permute.xlu1 %9084 }
 0x99c   : > { %v9178_v36 = vmul.f32 %v23128_v9, %v9085_v16  ;;  %14002 = vmatmul.mubr.msk.bf16.vlgmr.msra.gmra.mrb[184].mxu1 %vm6210_vm5, %v9206_v37  ;;  %v9181_v24 = vmul.f32 %v23133_v63, %v9103_v23  ;;  %v9454_v37 = vmul.f32 %v23140_v43, %v20243_v47  ;;  %v23142_v9 = vld [vmem:[#allocation171_spill] sm:$0xff] }
 0x99d   : > { %14012 = vmatpush3.bf16.msra.mxu1 %v23129_v27  ;;  %14013 = vmatprep.mubr.msk.bf16.mxu1 %vm14650_vm1, %v23059_v15 }
 0x99e   : > { %v9207_v19 = vpack.c.bf16 %v9178_v36, %v9177_v32  ;;  %14023 = vmatprep.subr.bf16.mxu1 %v23059_v15  ;;  %v9501_v27 = vpack.c.bf16 %v9454_v37, %v9453_v46  ;;  %v23157_v46 = vld [vmem:[#allocation145_spill] sm:$0xff] }
 0x99f   : > { %v9114_v48 = vpop.permute.xlu0 %9113  ;;  %v9096_v31 = vpop.permute.xlu1 %9095  ;;  %v23158_v37 = vld [vmem:[#allocation121_spill] sm:$0xff] }
 0x9a0   : > { %v9180_v17 = vmul.f32 %v23131_v59, %v9096_v31  ;;  %14008 = vmatmul.mubr.msk.bf16.vlgmr.msra.gmra.mrb[188].mxu0 %vm6210_vm5, %v9207_v19  ;;  %v9183_v34 = vmul.f32 %v23136_v0, %v9114_v48  ;;  %v23144_v48 = vld [vmem:[#allocation130_spill] sm:$0xff]  ;;  %v23146_v59 = vld [vmem:[#allocation187_spill] sm:$0xff] }
 0x9a1   : > { %14018 = vmatpush3.bf16.msra.mxu0 %v23132_v33  ;;  %14019 = vmatprep.mubr.msk.bf16.mxu0 %vm14650_vm1, %v23059_v15  ;;  %v10614_v31 = vpack.c.bf16 %v23144_v48, %v23144_v48 }
 0x9a2   : > { %v9208_v29 = vpack.c.bf16 %v9180_v17, %v9179_v8  ;;  %14029 = vmatprep.subr.bf16.mxu0 %v23059_v15 }
 0x9a3   : > { %v9125_v60 = vpop.permute.xlu0 %9124  ;;  %v9107_v12 = vpop.permute.xlu1 %9106  ;;  %v10653_v63 = vsel %vm10651_vm0, %v10614_v31, 0 }
 0x9a4   : > { %v9182_v14 = vmul.f32 %v23134_v7, %v9107_v12  ;;  %14014 = vmatmul.mubr.msk.bf16.vlgmr.msra.gmra.mrb[188].mxu1 %vm6210_vm5, %v9208_v29  ;;  %v9185_v32 = vmul.f32 %v23141_v38, %v9125_v60  ;;  %v23148_v60 = vld [vmem:[#allocation136_spill] sm:$0xff] }
 0x9a5   : > { %14024 = vmatpush3.bf16.msra.mxu1 %v23135_v53  ;;  %14025 = vmatprep.mubr.msk.bf16.mxu1 %vm14650_vm1, %v23059_v15  ;;  %v10616_v12 = vpack.c.bf16 %v23148_v60, %v23148_v60  ;;  %v23150_v53 = vpack.c.bf16 %v20253_v2, %v20250_v51  ;;  %v23152_v51 = vld [vmem:[#allocation152_spill] sm:$0xff] }
 0x9a6   : > { %v9209_v18 = vpack.c.bf16 %v9182_v14, %v9181_v24  ;;  %14035 = vmatprep.subr.bf16.mxu1 %v23059_v15  ;;  %v10617_v24 = vpack.c.bf16 %v20348_v49, %v23055_v26  ;;  %v9461_v2 = vmul.f32 %v23152_v51, %v20265_v58  ;;  %v10621_v58 = vpack.c.bf16 %v20361_v21, %v23052_v1  ;;  %v23161_v1 = vld [vmem:[#allocation175_spill] sm:$0xff]  ;;  %v23174_v51 = vld [vmem:[#allocation181_spill] sm:$0xff] }
 0x9a7   : > { %v9136_v22 = vpop.permute.xlu0 %9135  ;;  %v9118_v13 = vpop.permute.xlu1 %9117  ;;  %v10710_v26 = vsel %vm10651_vm0, %v10616_v12, 0 }
 0x9a8   : > { %v9184_v54 = vmul.f32 %v23137_v10, %v9118_v13  ;;  %14020 = vmatmul.mubr.msk.bf16.vlgmr.msra.gmra.mrb[192].mxu0 %vm6210_vm5, %v9209_v18  ;;  %v9187_v8 = vmul.f32 %v23145_v56, %v9136_v22  ;;  %v23151_v13 = vld [vmem:[#allocation153_spill] sm:$0xff] }
 0x9a9   : > { %14030 = vmatpush3.bf16.msra.mxu0 %v23138_v40  ;;  %14031 = vmatprep.mubr.msk.bf16.mxu0 %vm14650_vm1, %v23059_v15  ;;  %v10618_v0 = vpack.c.bf16 %v23151_v13, %v23151_v13 }
 0x9aa   : > { %v9210_v11 = vpack.c.bf16 %v9184_v54, %v9183_v34  ;;  %14041 = vmatprep.subr.bf16.mxu0 %v10613_v55  ;;  %v23153_v34 = vpack.c.bf16 %v20261_v20, %v20258_v5  ;;  %v9506_v5 = vpack.c.bf16 %v9461_v2, %v9461_v2  ;;  %v23156_v20 = vld [vmem:[#allocation114_spill] sm:$0xff] }
 0x9ab   : > { %v9279_v23 = vpop.permute.xlu0 %9278  ;;  %v9129_v16 = vpop.permute.xlu1 %9128 }
 0x9ac   : > { %v9186_v36 = vmul.f32 %v23142_v9, %v9129_v16  ;;  %14026 = vmatmul.mubr.msk.bf16.vlgmr.msra.gmra.mrb[192].mxu1 %vm6210_vm5, %v9210_v11  ;;  %v23155_v11 = vld [vmem:[#allocation135_spill] sm:$0xff]  ;;  %v9465_v43 = vmul.f32 %v23157_v46, %v9279_v23  ;;  %v23159_v16 = vpack.c.bf16 %v20271_v45, %v23158_v37  ;;  %v23160_v9 = vld [vmem:[#allocation25_spill] sm:$0xff]  ;;  %v23162_v23 = vld [vmem:[#allocation26_spill] sm:$0xff] }
 0x9ad   : > { %14036 = vmatpush3.bf16.msra.mxu1 %v23143_v42  ;;  %14037 = vmatprep.mubr.msk.bf16.mxu1 %vm14650_vm1, %v23059_v15  ;;  %v9455_v15 = vmul.f32 %v23147_v41, %v20245_v44  ;;  %v23149_v44 = vld [vmem:[#allocation115_spill] sm:$0xff]  ;;  %v10623_v45 = vpack.c.bf16 %v20355_v35, %v23162_v23 }
 0x9ae   : > { %v9211_v61 = vpack.c.bf16 %v9186_v36, %v9185_v32  ;;  %14049 = vmatprep.subr.bf16.mxu1 %v10615_v28  ;;  %v9458_v14 = vmul.f32 %v23149_v44, %v20247_v39  ;;  %v10619_v39 = vpack.c.bf16 %v20352_v30, %v23049_v50  ;;  %v10767_v50 = vsel %vm10651_vm0, %v10618_v0, 0  ;;  %v23166_v41 = vld [vmem:[#allocation79_spill] sm:$0xff] }
 0x9af   : > { %v20610_v47 = vpop.permute.xlu0 %9286  ;;  %v9140_v19 = vpop.permute.xlu1 %9139  ;;  %v9502_v7 = vpack.c.bf16 %v9455_v15, %v9455_v15  ;;  %v9464_v30 = vmul.f32 %v23156_v20, %v20305_v4  ;;  %v10622_v36 = vpack.c.bf16 %v23160_v9, %v23160_v9  ;;  %v23179_v20 = vld [vmem:[#allocation90_spill] sm:$0xff] }
 0x9b0   : > { %v9188_v17 = vmul.f32 %v23146_v59, %v9140_v19  ;;  %14032 = vmatmul.mubr.msk.bf16.vlgmr.msra.gmra.mrb[196].mxu0 %vm6210_vm5, %v9211_v61  ;;  %v9504_v49 = vpack.c.bf16 %v9458_v14, %v9458_v14  ;;  %v23163_v61 = vld [vmem:[#allocation160_spill] sm:$0xff]  ;;  %v23164_v19 = vld [vmem:[#allocation82_spill] sm:$0xff] }
 0x9b1   : > { %14042 = vmatpush3.bf16.msra.mxu0 %v10613_v55  ;;  %14045 = vmatprep.mubr.msk.bf16.mxu0 %vm6355_vm6, %v9501_v27  ;;  %v23154_v55 = vld [vmem:[#allocation184_spill] sm:$0xff]  ;;  %v9508_v42 = vpack.c.bf16 %v9464_v30, %v9464_v30  ;;  %v9467_v27 = vmul.f32 %v23163_v61, %v20610_v47  ;;  %v10881_v35 = vsel %vm10651_vm0, %v10622_v36, 0  ;;  %v23167_v47 = vld [vmem:[#allocation119_spill] sm:$0xff] }
 0x9b2   : > { %v9212_v57 = vpack.c.bf16 %v9188_v17, %v9187_v8  ;;  %14249 = vmatprep.subr.msk.bf16.mxu0 %vm10651_vm0, %v10614_v31  ;;  %v10620_v40 = vpack.c.bf16 %v23154_v55, %v23154_v55  ;;  %v23165_v8 = vld [vmem:[#allocation109_spill] sm:$0xff] }
 0x9b3   : > { %v9298_v33 = vpop.permute.xlu0 %9297  ;;  %v9283_v29 = vpop.permute.xlu1 %9282  ;;  %v10624_v59 = vpack.c.bf16 %v23165_v8, %v23165_v8 }
 0x9b4   : > { %14038 = vmatmul.mubr.msk.bf16.vlgmr.msra.gmra.mrb[196].mxu1 %vm6210_vm5, %v9212_v57  ;;  %v9466_v3 = vmul.f32 %v23155_v11, %v9283_v29  ;;  %v10824_v4 = vsel %vm10651_vm0, %v10620_v40, 0  ;;  %v9469_v48 = vmul.f32 %v23164_v19, %v9298_v33  ;;  %v10625_v57 = vpack.c.bf16 %v20358_v62, %v23167_v47  ;;  %v23168_v29 = vld [vmem:[#allocation163_spill] sm:$0xff]  ;;  %v23185_v19 = vld [vmem:[#allocation22_spill] sm:$0xff]  ;;  %v23189_v47 = vld [vmem:[#allocation72_spill] sm:$0xff] }
 0x9b5   : > { %14044 = vmatpush3.bf16.msra.mxu0 %v10653_v63  ;;  %14050 = vmatpush3.bf16.msra.mxu1 %v10615_v28  ;;  %v9510_v33 = vpack.c.bf16 %v9467_v27, %v9467_v27  ;;  %v10938_v62 = vsel %vm10651_vm0, %v10624_v59, 0 }
 0x9b6   : > { %14250 = vmatprep.subr.msk.bf16.mxu1 %vm10651_vm0, %v10616_v12  ;;  %14053 = vmatprep.mubr.msk.bf16.mxu1 %vm6355_vm6, %v23150_v53  ;;  %v9509_v21 = vpack.c.bf16 %v9466_v3, %v9465_v43  ;;  %v23169_v12 = vld [vmem:[#allocation154_spill] sm:$0xff]  ;;  %v23171_v53 = vld [vmem:[#allocation55_spill] sm:$0xff]  ;;  %v23180_v43 = vld [vmem:[#allocation132_spill] sm:$0xff] }
 0x9b7   : > { %14057 = vmatprep.subr.bf16.mxu0 %v10617_v24  ;;  %v9309_v18 = vpop.permute.xlu0 %9308  ;;  %v9294_v22 = vpop.permute.xlu1 %9293 }
 0x9b8   : > { %14046 = vmatmul.mubr.msk.bf16.vlgmr.msra.gmra.mrb[200].mxu0 %vm6355_vm6, %v9502_v7  ;;  %v9468_v28 = vmul.f32 %v23161_v1, %v9294_v22  ;;  %v9471_v60 = vmul.f32 %v23168_v29, %v9309_v18  ;;  %v23170_v7 = vld [vmem:[#allocation74_spill] sm:$0xff] }
 0x9b9   : > { %14052 = vmatpush3.bf16.msra.mxu1 %v10710_v26  ;;  %14058 = vmatpush3.bf16.msra.mxu0 %v10617_v24  ;;  %v10626_v44 = vpack.c.bf16 %v23170_v7, %v23170_v7  ;;  %v23172_v18 = vld [vmem:[#allocation198_spill] sm:$0xff]  ;;  %v23173_v26 = vld [vmem:[#allocation197_spill] sm:$0xff]  ;;  %v23192_v7 = vld [vmem:[#allocation11_spill] sm:$0xff] }
 0x9ba   : > { %14251 = vmatprep.subr.msk.bf16.mxu0 %vm10651_vm0, %v10618_v0  ;;  %14061 = vmatprep.mubr.msk.bf16.mxu0 %vm6355_vm6, %v23153_v34  ;;  %v9511_v17 = vpack.c.bf16 %v9469_v48, %v9468_v28  ;;  %v10627_v0 = vpack.c.bf16 %v20342_v6, %v23172_v18  ;;  %v23175_v34 = vld [vmem:[#allocation71_spill] sm:$0xff] }
 0x9bb   : > { %14065 = vmatprep.subr.bf16.mxu1 %v10619_v39  ;;  %v9317_v10 = vpop.permute.xlu0 %9316  ;;  %v9302_v54 = vpop.permute.xlu1 %9301  ;;  %v23183_v28 = vld [vmem:[#allocation75_spill] sm:$0xff] }
 0x9bc   : > { %14054 = vmatmul.mubr.msk.bf16.vlgmr.msra.gmra.mrb[200].mxu1 %vm6355_vm6, %v9504_v49  ;;  %v9470_v63 = vmul.f32 %v23169_v12, %v9302_v54  ;;  %v10628_v54 = vpack.c.bf16 %v23175_v34, %v23175_v34  ;;  %v23191_v12 = vld [vmem:[#allocation199_spill] sm:$0xff] }
 0x9bd   : > { %14060 = vmatpush3.bf16.msra.mxu0 %v10767_v50  ;;  %14066 = vmatpush3.bf16.msra.mxu1 %v10619_v39  ;;  %v9473_v39 = vmul.f32 %v23173_v26, %v9317_v10  ;;  %v10995_v10 = vsel %vm10651_vm0, %v10626_v44, 0 }
 0x9be   : > { %14252 = vmatprep.subr.msk.bf16.mxu1 %vm10651_vm0, %v10620_v40  ;;  %14069 = vmatprep.mubr.msk.bf16.mxu1 %vm6355_vm6, %v23159_v16  ;;  %v9512_v49 = vpack.c.bf16 %v9470_v63, %v9470_v63  ;;  %v23176_v40 = vld [vmem:[#allocation63_spill] sm:$0xff]  ;;  %v11052_v23 = vsel %vm10651_vm0, %v10628_v54, 0 }
 0x9bf   : > { %14073 = vmatprep.subr.bf16.mxu0 %v10621_v58  ;;  %v9328_v38 = vpop.permute.xlu0 %9327  ;;  %v9313_v32 = vpop.permute.xlu1 %9312  ;;  %v9514_v46 = vpack.c.bf16 %v9473_v39, %v9473_v39 }
 0x9c0   : > { %14062 = vmatmul.mubr.msk.bf16.vlgmr.msra.gmra.mrb[204].mxu0 %vm6355_vm6, %v9506_v5  ;;  %v9472_v15 = vmul.f32 %v23166_v41, %v9313_v32  ;;  %v9475_v2 = vmul.f32 %v23174_v51, %v9328_v38  ;;  %v23178_v5 = vld [vmem:[#allocation120_spill] sm:$0xff]  ;;  %v23181_v32 = vld [vmem:[#allocation166_spill] sm:$0xff] }
 0x9c1   : > { %14068 = vmatpush3.bf16.msra.mxu1 %v10824_v4  ;;  %14074 = vmatpush3.bf16.msra.mxu0 %v10621_v58  ;;  %v23177_v58 = vld [vmem:[#allocation108_spill] sm:$0xff]  ;;  %v10629_v30 = vpack.c.bf16 %v23179_v20, %v23178_v5  ;;  %v10630_v9 = vpack.c.bf16 %v23181_v32, %v23181_v32  ;;  %v23188_v41 = vld [vmem:[#allocation10_spill] sm:$0xff] }
 0x9c2   : > { %14253 = vmatprep.subr.msk.bf16.mxu0 %vm10651_vm0, %v10622_v36  ;;  %14077 = vmatprep.mubr.msk.bf16.mxu0 %vm6355_vm6, %v9509_v21  ;;  %v9513_v14 = vpack.c.bf16 %v9472_v15, %v9471_v60  ;;  %v23182_v36 = vld [vmem:[#allocation14_spill] sm:$0xff] }
 0x9c3   : > { %14081 = vmatprep.subr.bf16.mxu1 %v10623_v45  ;;  %v9339_v31 = vpop.permute.xlu0 %9338  ;;  %v9324_v56 = vpop.permute.xlu1 %9323 }
 0x9c4   : > { %14070 = vmatmul.mubr.msk.bf16.vlgmr.msra.gmra.mrb[204].mxu1 %vm6355_vm6, %v9508_v42  ;;  %v9474_v22 = vmul.f32 %v23171_v53, %v9324_v56  ;;  %v9477_v11 = vmul.f32 %v23176_v40, %v9339_v31  ;;  %v23186_v31 = vld [vmem:[#allocation157_spill] sm:$0xff] }
 0x9c5   : > { %14076 = vmatpush3.bf16.msra.mxu0 %v10881_v35  ;;  %14082 = vmatpush3.bf16.msra.mxu1 %v10623_v45  ;;  %v23184_v45 = vld [vmem:[#allocation186_spill] sm:$0xff]  ;;  %v10632_v56 = vpack.c.bf16 %v23186_v31, %v23186_v31  ;;  %v23193_v53 = vld [vmem:[#allocation165_spill] sm:$0xff] }
 0x9c6   : > { %14254 = vmatprep.subr.msk.bf16.mxu1 %vm10651_vm0, %v10624_v59  ;;  %14085 = vmatprep.mubr.msk.bf16.mxu1 %vm6355_vm6, %v9511_v17  ;;  %v9515_v3 = vpack.c.bf16 %v9475_v2, %v9474_v22  ;;  %v11109_v59 = vsel %vm10651_vm0, %v10630_v9, 0  ;;  %v23187_v17 = vld [vmem:[#allocation122_spill] sm:$0xff]  ;;  %v23194_v22 = vld [vmem:[#allocation129_spill] sm:$0xff] }
 0x9c7   : > { %14089 = vmatprep.subr.bf16.mxu0 %v10625_v57  ;;  %v9332_v24 = vpop.permute.xlu1 %9331  ;;  %v10633_v15 = vpack.c.bf16 %v23188_v41, %v23187_v17  ;;  %v23197_v2 = vld [vmem:[#allocation33_spill] sm:$0xff]  ;;  %v23208_v31 = vld [vmem:[#allocation34_spill] sm:$0xff] }
 0x9c8   : > { %v9347_v13 = vpop.permute.xlu0 %9346  ;;  %14078 = vmatmul.mubr.msk.bf16.vlgmr.msra.gmra.mrb[208].mxu0 %vm6355_vm6, %v9510_v33  ;;  %v9476_v37 = vmul.f32 %v23180_v43, %v9332_v24  ;;  %v23190_v33 = vld [vmem:[#allocation48_spill] sm:$0xff] }
 0x9c9   : > { %14084 = vmatpush3.bf16.msra.mxu1 %v10938_v62  ;;  %14090 = vmatpush3.bf16.msra.mxu0 %v10625_v57  ;;  %v9479_v42 = vmul.f32 %v23184_v45, %v9347_v13  ;;  %v10634_v29 = vpack.c.bf16 %v23190_v33, %v23190_v33  ;;  %v10635_v13 = vpack.c.bf16 %v23194_v22, %v23193_v53  ;;  %v23195_v62 = vld [vmem:[#allocation138_spill] sm:$0xff] }
 0x9ca   : > { %14255 = vmatprep.subr.msk.bf16.mxu0 %vm10651_vm0, %v10626_v44  ;;  %14093 = vmatprep.mubr.msk.bf16.mxu0 %vm6355_vm6, %v9513_v14  ;;  %v9516_v61 = vpack.c.bf16 %v9476_v37, %v9476_v37  ;;  %v11166_v14 = vsel %vm10651_vm0, %v10632_v56, 0 }
 0x9cb   : > { %14097 = vmatprep.subr.bf16.mxu1 %v10627_v0  ;;  %v9343_v55 = vpop.permute.xlu1 %9342  ;;  %v9518_v35 = vpack.c.bf16 %v9479_v42, %v9479_v42 }
 0x9cc   : > { %v9358_v50 = vpop.permute.xlu0 %9357  ;;  %v9478_v6 = vmul.f32 %v23177_v58, %v9343_v55  ;;  %14086 = vmatmul.mubr.msk.bf16.vlgmr.msra.gmra.mrb[208].mxu1 %vm6355_vm6, %v9512_v49  ;;  %v23196_v49 = vld [vmem:[#allocation76_spill] sm:$0xff]  ;;  %v23198_v55 = vld [vmem:[#allocation61_spill] sm:$0xff] }
 0x9cd   : > { %14092 = vmatpush3.bf16.msra.mxu0 %v10995_v10  ;;  %14098 = vmatpush3.bf16.msra.mxu1 %v10627_v0  ;;  %v9481_v21 = vmul.f32 %v23182_v36, %v9358_v50  ;;  %v10636_v51 = vpack.c.bf16 %v23196_v49, %v23196_v49  ;;  %v23199_v58 = vld [vmem:[#allocation9_spill] sm:$0xff] }
 0x9ce   : > { %v9517_v16 = vpack.c.bf16 %v9478_v6, %v9477_v11  ;;  %14256 = vmatprep.subr.msk.bf16.mxu1 %vm10651_vm0, %v10628_v54  ;;  %14101 = vmatprep.mubr.msk.bf16.mxu1 %vm6355_vm6, %v9515_v3  ;;  %v11223_v11 = vsel %vm10651_vm0, %v10634_v29, 0  ;;  %v23200_v10 = vld [vmem:[#allocation141_spill] sm:$0xff] }
 0x9cf   : > { %14105 = vmatprep.subr.bf16.mxu0 %v10629_v30  ;;  %v9354_v38 = vpop.permute.xlu1 %9353  ;;  %v10638_v5 = vpack.c.bf16 %v23200_v10, %v23200_v10  ;;  %v11280_v43 = vsel %vm10651_vm0, %v10636_v51, 0  ;;  %v23204_v36 = vld [vmem:[#allocation49_spill] sm:$0xff] }
 0x9d0   : > { %v9369_v1 = vpop.permute.xlu0 %9368  ;;  %v9480_v4 = vmul.f32 %v23183_v28, %v9354_v38  ;;  %14094 = vmatmul.mubr.msk.bf16.vlgmr.msra.gmra.mrb[212].mxu0 %vm6355_vm6, %v9514_v46  ;;  %v23203_v38 = vld [vmem:[#allocation40_spill] sm:$0xff] }
 0x9d1   : > { %14100 = vmatpush3.bf16.msra.mxu1 %v11052_v23  ;;  %14106 = vmatpush3.bf16.msra.mxu0 %v10629_v30  ;;  %v9483_v63 = vmul.f32 %v23191_v12, %v9369_v1  ;;  %v23201_v30 = vld [vmem:[#allocation190_spill] sm:$0xff]  ;;  %v23206_v23 = vld [vmem:[#allocation60_spill] sm:$0xff]  ;;  %v11337_v42 = vsel %vm10651_vm0, %v10638_v5, 0 }
 0x9d2   : > { %v9519_v27 = vpack.c.bf16 %v9481_v21, %v9480_v4  ;;  %14257 = vmatprep.subr.msk.bf16.mxu0 %vm10651_vm0, %v10630_v9  ;;  %14109 = vmatprep.mubr.msk.bf16.mxu0 %vm6355_vm6, %v9517_v16  ;;  %v23202_v16 = vld [vmem:[#allocation68_spill] sm:$0xff]  ;;  %v10640_v21 = vpack.c.bf16 %v23204_v36, %v23204_v36  ;;  %v23205_v1 = vld [vmem:[#allocation62_spill] sm:$0xff] }
 0x9d3   : > { %14113 = vmatprep.subr.bf16.mxu1 %v23185_v19  ;;  %v9362_v48 = vpop.permute.xlu1 %9361 }
 0x9d4   : > { %v9377_v8 = vpop.permute.xlu0 %9376  ;;  %14102 = vmatmul.mubr.msk.bf16.vlgmr.msra.gmra.mrb[212].mxu1 %vm6355_vm6, %v9516_v61  ;;  %v9482_v57 = vmul.f32 %v23189_v47, %v9362_v48  ;;  %v11394_v41 = vsel %vm10651_vm0, %v10640_v21, 0 }
 0x9d5   : > { %14108 = vmatpush3.bf16.msra.mxu0 %v11109_v59  ;;  %14114 = vmatpush3.bf16.msra.mxu1 %v23185_v19  ;;  %v9485_v18 = vmul.f32 %v23195_v62, %v9377_v8  ;;  %v23209_v59 = vld [vmem:[#allocation106_spill] sm:$0xff] }
 0x9d6   : > { %14258 = vmatprep.subr.msk.bf16.mxu1 %vm10651_vm0, %v10632_v56  ;;  %14117 = vmatprep.mubr.msk.bf16.mxu1 %vm6355_vm6, %v9519_v27  ;;  %v9520_v0 = vpack.c.bf16 %v9482_v57, %v9482_v57  ;;  %v23207_v27 = vld [vmem:[#allocation36_spill] sm:$0xff]  ;;  %v23212_v57 = vld [vmem:[#allocation170_spill] sm:$0xff] }
 0x9d7   : > { %14121 = vmatprep.subr.bf16.mxu0 %v10633_v15  ;;  %v9373_v60 = vpop.permute.xlu1 %9372  ;;  %v9522_v3 = vpack.c.bf16 %v9485_v18, %v9485_v18  ;;  %v10642_v33 = vpack.c.bf16 %v23212_v57, %v23212_v57  ;;  %v23216_v18 = vld [vmem:[#allocation195_spill] sm:$0xff] }
 0x9d8   : > { %v9388_v24 = vpop.permute.xlu0 %9387  ;;  %v9484_v44 = vmul.f32 %v23192_v7, %v9373_v60  ;;  %14110 = vmatmul.mubr.msk.bf16.vlgmr.msra.gmra.mrb[216].mxu0 %vm6355_vm6, %v9518_v35  ;;  %v23211_v35 = vld [vmem:[#allocation131_spill] sm:$0xff] }
 0x9d9   : > { %14116 = vmatpush3.bf16.msra.mxu1 %v11166_v14  ;;  %14122 = vmatpush3.bf16.msra.mxu0 %v10633_v15  ;;  %v9487_v34 = vmul.f32 %v23197_v2, %v9388_v24  ;;  %v23210_v15 = vld [vmem:[#allocation89_spill] sm:$0xff]  ;;  %v11451_v7 = vsel %vm10651_vm0, %v10642_v33, 0 }
 0x9da   : > { %v9521_v26 = vpack.c.bf16 %v9484_v44, %v9483_v63  ;;  %14259 = vmatprep.subr.msk.bf16.mxu0 %vm10651_vm0, %v10634_v29  ;;  %14129 = vmatprep.subr.bf16.mxu1 %v10635_v13  ;;  %v10643_v47 = vpack.c.bf16 %v23211_v35, %v23210_v15  ;;  %v23213_v63 = vld [vmem:[#allocation86_spill] sm:$0xff]  ;;  %v23214_v14 = vld [vmem:[#allocation137_spill] sm:$0xff] }
 0x9db   : > { %v9384_v39 = vpop.permute.xlu1 %9383 }
 0x9dc   : > { %v9399_v54 = vpop.permute.xlu0 %9398  ;;  %v9486_v40 = vmul.f32 %v23198_v55, %v9384_v39  ;;  %14118 = vmatmul.mubr.msk.bf16.vlgmr.msra.gmra.mrb[216].mxu1 %vm6355_vm6, %v9520_v0  ;;  %14125 = vmatprep.mubr.msk.bf16.mxu0 %vm6355_vm6, %v9521_v26  ;;  %v23217_v26 = vld [vmem:[#allocation67_spill] sm:$0xff] }
 0x9dd   : > { %14124 = vmatpush3.bf16.msra.mxu0 %v11223_v11  ;;  %14130 = vmatpush3.bf16.msra.mxu1 %v10635_v13  ;;  %v9489_v28 = vmul.f32 %v23205_v1, %v9399_v54  ;;  %v23215_v13 = vld [vmem:[#allocation77_spill] sm:$0xff]  ;;  %v23218_v54 = vld [vmem:[#allocation107_spill] sm:$0xff] }
 0x9de   : > { %v9523_v50 = vpack.c.bf16 %v9487_v34, %v9486_v40  ;;  %14260 = vmatprep.subr.msk.bf16.mxu1 %vm10651_vm0, %v10636_v51  ;;  %14137 = vmatprep.subr.bf16.mxu0 %v23199_v58  ;;  %v10644_v62 = vpack.c.bf16 %v23215_v13, %v23215_v13  ;;  %v23219_v40 = vld [vmem:[#allocation51_spill] sm:$0xff] }
 0x9df   : > { %v9392_v6 = vpop.permute.xlu1 %9391 }
 0x9e0   : > { %v9407_v20 = vpop.permute.xlu0 %9406  ;;  %v9488_v46 = vmul.f32 %v23201_v30, %v9392_v6  ;;  %14126 = vmatmul.mubr.msk.bf16.vlgmr.msra.gmra.mrb[220].mxu0 %vm6355_vm6, %v9522_v3  ;;  %14133 = vmatprep.mubr.msk.bf16.mxu1 %vm6355_vm6, %v9523_v50  ;;  %v11508_v3 = vsel %vm10651_vm0, %v10644_v62, 0  ;;  %v23220_v6 = vld [vmem:[#allocation88_spill] sm:$0xff] }
 0x9e1   : > { %14132 = vmatpush3.bf16.msra.mxu1 %v11280_v43  ;;  %14138 = vmatpush3.bf16.msra.mxu0 %v23199_v58  ;;  %v9491_v32 = vmul.f32 %v23203_v38, %v9407_v20 }
 0x9e2   : > { %v9524_v37 = vpack.c.bf16 %v9488_v46, %v9488_v46  ;;  %14261 = vmatprep.subr.msk.bf16.mxu0 %vm10651_vm0, %v10638_v5  ;;  %14145 = vmatprep.subr.bf16.mxu1 %v23202_v16 }
 0x9e3   : > { %v9403_v9 = vpop.permute.xlu1 %9402  ;;  %v9526_v19 = vpack.c.bf16 %v9491_v32, %v9491_v32 }
 0x9e4   : > { %v9418_v4 = vpop.permute.xlu0 %9417  ;;  %v9490_v45 = vmul.f32 %v23206_v23, %v9403_v9  ;;  %14134 = vmatmul.mubr.msk.bf16.vlgmr.msra.gmra.mrb[220].mxu1 %vm6355_vm6, %v9524_v37 }
 0x9e5   : > { %14140 = vmatpush3.bf16.msra.mxu0 %v11337_v42  ;;  %14146 = vmatpush3.bf16.msra.mxu1 %v23202_v16  ;;  %v9493_v56 = vmul.f32 %v23208_v31, %v9418_v4 }
 0x9e6   : > { %v9525_v61 = vpack.c.bf16 %v9490_v45, %v9489_v28  ;;  %14262 = vmatprep.subr.msk.bf16.mxu1 %vm10651_vm0, %v10640_v21  ;;  %14153 = vmatprep.subr.bf16.mxu0 %v23207_v27 }
 0x9e7   : > { %v9414_v48 = vpop.permute.xlu1 %9413 }
 0x9e8   : > { %v9429_v8 = vpop.permute.xlu0 %9428  ;;  %v9492_v17 = vmul.f32 %v23209_v59, %v9414_v48  ;;  %14141 = vmatprep.mubr.msk.bf16.mxu0 %vm6355_vm6, %v9525_v61 }
 0x9e9   : > { %14148 = vmatpush3.bf16.msra.mxu1 %v11394_v41  ;;  %14142 = vmatmul.mubr.msk.bf16.vlgmr.msra.gmra.mrb[224].mxu0 %vm6355_vm6, %v9526_v19  ;;  %v9495_v0 = vmul.f32 %v23216_v18, %v9429_v8 }
 0x9ea   : > { %v9527_v29 = vpack.c.bf16 %v9493_v56, %v9492_v17  ;;  %14154 = vmatpush3.bf16.msra.mxu0 %v23207_v27  ;;  %14161 = vmatprep.subr.bf16.mxu1 %v10643_v47 }
 0x9eb   : > { %14263 = vmatprep.subr.msk.bf16.mxu0 %vm10651_vm0, %v10642_v33  ;;  %v9422_v60 = vpop.permute.xlu1 %9421 }
 0x9ec   : > { %v9437_v12 = vpop.permute.xlu0 %9436  ;;  %v9494_v24 = vmul.f32 %v23213_v63, %v9422_v60  ;;  %14149 = vmatprep.mubr.msk.bf16.mxu1 %vm6355_vm6, %v9527_v29 }
 0x9ed   : > { %v9497_v53 = vmul.f32 %v23214_v14, %v9437_v12 }
 0x9ee   : > { %v9528_v44 = vpack.c.bf16 %v9494_v24, %v9494_v24  ;;  %14156 = vmatpush3.bf16.msra.mxu0 %v11451_v7 }
 0x9ef   : > { %v9433_v22 = vpop.permute.xlu1 %9432  ;;  %v9530_v2 = vpack.c.bf16 %v9497_v53, %v9497_v53 }
 0x9f0   : > { %v9496_v39 = vmul.f32 %v23217_v26, %v9433_v22  ;;  %14150 = vmatmul.mubr.msk.bf16.vlgmr.msra.gmra.mrb[224].mxu1 %vm6355_vm6, %v9528_v44  ;;  %v9448_v49 = vpop.permute.xlu0 %9447 }
 0x9f1   : > { %14162 = vmatpush3.bf16.msra.mxu1 %v10643_v47  ;;  %v9499_v55 = vmul.f32 %v23218_v54, %v9448_v49 }
 0x9f2   : > { %v9529_v51 = vpack.c.bf16 %v9496_v39, %v9495_v0  ;;  %14264 = vmatprep.subr.msk.bf16.mxu1 %vm10651_vm0, %v10644_v62 }
 0x9f3   : > { %v9444_v34 = vpop.permute.xlu1 %9443 }
 0x9f4   : > { %v9498_v11 = vmul.f32 %v23219_v40, %v9444_v34  ;;  %14157 = vmatprep.mubr.msk.bf16.mxu0 %vm6355_vm6, %v9529_v51 }
 0x9f5   : > { %14164 = vmatpush3.bf16.msra.mxu1 %v11508_v3  ;;  %14158 = vmatmul.mubr.msk.bf16.vlgmr.msra.gmra.mrb[228].mxu0 %vm6355_vm6, %v9530_v2 }
 0x9f6   : > { %v9531_v50 = vpack.c.bf16 %v9499_v55, %v9498_v11 }
 0x9f7   : > { %v9452_v58 = vpop.permute.xlu1 %9451 }
 0x9f8   : > { %v9500_v10 = vmul.f32 %v23220_v6, %v9452_v58  ;;  %14165 = vmatprep.mubr.msk.bf16.mxu1 %vm6355_vm6, %v9531_v50 }
 0x9fa   : > { %v9532_v5 = vpack.c.bf16 %v9500_v10, %v9500_v10 }
 0x9fc   : > { %14166 = vmatmul.mubr.msk.bf16.vlgmr.msra.gmra.mrb[228].mxu1 %vm6355_vm6, %v9532_v5 }
 0xa27   : > { %v9594_v20 = vpop.f32.mrb[152].mxu0 }
 0xa28   : > { %v13901_v30 = vpop.f32.mrb[153].mxu0 }
 0xa29   : > { %v9597_v46 = vpop.f32.mrb[154].mxu0 }
 0xa2a   : > { %v13902_v43 = vpop.f32.mrb[155].mxu0 }
 0xa2f   : > { %v9638_v37 = vpop.f32.mrb[152].mxu1 }
 0xa30   : > { %v13907_v16 = vpop.f32.mrb[153].mxu1 }
 0xa31   : > { %v9641_v38 = vpop.f32.mrb[154].mxu1 }
 0xa32   : > { %v13908_v32 = vpop.f32.mrb[155].mxu1 }
 0xa33   : > { %v9682_v9 = vpop.f32.mrb[156].mxu0 }
 0xa34   : > { %v11558_v36 = vcombine.low %v9594_v20, %v9682_v9  ;;  %v11559_v21 = vcombine.high %v9594_v20, %v9682_v9  ;;  %v13913_v1 = vpop.f32.mrb[157].mxu0 }
 0xa35   : > { %v9685_v28 = vpop.f32.mrb[158].mxu0 }
 0xa36   : > { %v11966_v4 = vcombine.low %v9597_v46, %v9685_v28  ;;  %v11967_v23 = vcombine.high %v9597_v46, %v9685_v28  ;;  %v13914_v45 = vpop.f32.mrb[159].mxu0  ;;  %v11566_v48 = vrot.slane %v11558_v36, %v23057_v52  ;;  %v11573_v31 = vrot.slane %v11559_v21, %v23057_v52 }
 0xa37   : > { %v9726_v42 = vpop.f32.mrb[156].mxu1 }
 0xa38   : > { %v11574_v61 = vcombine.low %v9638_v37, %v9726_v42  ;;  %v11575_v27 = vcombine.high %v9638_v37, %v9726_v42  ;;  %v13919_v19 = vpop.f32.mrb[157].mxu1  ;;  %v20799_v12 = vrot.slane %v11966_v4, %v23057_v52  ;;  %v20802_v63 = vrot.slane %v11967_v23, %v23057_v52 }
 0xa39   : > { %v9729_v56 = vpop.f32.mrb[158].mxu1 }
 0xa3a   : > { %v11582_v8 = vrot.slane %v11574_v61, %v23057_v52  ;;  %v11589_v59 = vrot.slane %v11575_v27, %v23057_v52  ;;  %v11982_v17 = vcombine.low %v9641_v38, %v9729_v56  ;;  %v11983_v41 = vcombine.high %v9641_v38, %v9729_v56  ;;  %v13920_v15 = vpop.f32.mrb[159].mxu1 }
 0xa3b   : > { %v9770_v35 = vpop.f32.mrb[160].mxu0 }
 0xa3c   : > { %v11622_v47 = vcombine.low %v11566_v48, %v11582_v8  ;;  %v11623_v57 = vcombine.high %v11566_v48, %v11582_v8  ;;  %v11638_v33 = vcombine.low %v11573_v31, %v11589_v59  ;;  %v11639_v29 = vcombine.high %v11573_v31, %v11589_v59  ;;  %v13925_v60 = vpop.f32.mrb[161].mxu0 }
 0xa3d   : > { %v20805_v24 = vrot.slane %v11982_v17, %v23057_v52  ;;  %v20808_v7 = vrot.slane %v11983_v41, %v23057_v52  ;;  %v9773_v44 = vpop.f32.mrb[162].mxu0 }
 0xa3e   : > { %v13926_v14 = vpop.f32.mrb[163].mxu0  ;;  %v20825_v32 = vrot.slane %v11622_v47, %v23062_v25  ;;  %v20828_v9 = vrot.slane %v11623_v57, %v23062_v25  ;;  %v20831_v36 = vrot.slane %v11638_v33, %v23062_v25  ;;  %v20834_v21 = vrot.slane %v11639_v29, %v23062_v25 }
 0xa3f   : > { %v12030_v53 = vcombine.low %v20799_v12, %v20805_v24  ;;  %v12031_v22 = vcombine.high %v20799_v12, %v20805_v24  ;;  %v12046_v13 = vcombine.low %v20802_v63, %v20808_v7  ;;  %v12047_v62 = vcombine.high %v20802_v63, %v20808_v7  ;;  %v9814_v18 = vpop.f32.mrb[160].mxu1 }
 0xa40   : > { %v13931_v0 = vpop.f32.mrb[161].mxu1 }
 0xa41   : > { %v9817_v26 = vpop.f32.mrb[162].mxu1 }
 0xa42   : > { %v13932_v39 = vpop.f32.mrb[163].mxu1 }
 0xa43   : > { %v9858_v49 = vpop.f32.mrb[164].mxu0 }
 0xa44   : > { %v11590_v51 = vcombine.low %v9770_v35, %v9858_v49  ;;  %v11591_v2 = vcombine.high %v9770_v35, %v9858_v49  ;;  %v13937_v34 = vpop.f32.mrb[165].mxu0 }
 0xa45   : > { %v9861_v54 = vpop.f32.mrb[166].mxu0 }
 0xa46   : > { %v11998_v55 = vcombine.low %v9773_v44, %v9861_v54  ;;  %v11999_v40 = vcombine.high %v9773_v44, %v9861_v54  ;;  %v13938_v11 = vpop.f32.mrb[167].mxu0  ;;  %v11598_v10 = vrot.slane %v11590_v51, %v23057_v52  ;;  %v11605_v5 = vrot.slane %v11591_v2, %v23057_v52 }
 0xa47   : > { %v9902_v3 = vpop.f32.mrb[164].mxu1  ;;  %v20874_v2 = vrot.slane %v12030_v53, %v23062_v25  ;;  %v20889_v11 = vrot.slane %v12031_v22, %v23062_v25  ;;  %v20895_v53 = vrot.slane %v12046_v13, %v23062_v25 }
 0xa48   : > { %v11606_v50 = vcombine.low %v9814_v18, %v9902_v3  ;;  %v11607_v58 = vcombine.high %v9814_v18, %v9902_v3  ;;  %v13943_v6 = vpop.f32.mrb[165].mxu1  ;;  %v12006_v42 = vrot.slane %v11998_v55, %v23057_v52  ;;  %v12013_v61 = vrot.slane %v11999_v40, %v23057_v52 }
 0xa49   : > { %v9905_v20 = vpop.f32.mrb[166].mxu1  ;;  %v20901_v3 = vrot.slane %v12047_v62, %v23062_v25 }
 0xa4a   : > { %v11614_v30 = vrot.slane %v11606_v50, %v23057_v52  ;;  %v11621_v46 = vrot.slane %v11607_v58, %v23057_v52  ;;  %v12014_v43 = vcombine.low %v9817_v26, %v9905_v20  ;;  %v12015_v37 = vcombine.high %v9817_v26, %v9905_v20  ;;  %v13944_v16 = vpop.f32.mrb[167].mxu1 }
 0xa4b   : > { %v20822_v38 = vpop.f32.mrb[168].mxu0  ;;  %23221 = vst [vmem:[#allocation103_spill] sm:$0xff] %v20901_v3 }
 0xa4c   : > { %v11654_v1 = vcombine.low %v11598_v10, %v11614_v30  ;;  %v11655_v28 = vcombine.high %v11598_v10, %v11614_v30  ;;  %v11670_v4 = vcombine.low %v11605_v5, %v11621_v46  ;;  %v11671_v23 = vcombine.high %v11605_v5, %v11621_v46  ;;  %v13949_v45 = vpop.f32.mrb[169].mxu0 }
 0xa4d   : > { %v12022_v27 = vrot.slane %v12014_v43, %v23057_v52  ;;  %v12029_v19 = vrot.slane %v12015_v37, %v23057_v52  ;;  %v20840_v48 = vpop.f32.mrb[170].mxu0 }
 0xa4e   : > { %v13950_v31 = vpop.f32.mrb[171].mxu0  ;;  %v20843_v56 = vrot.slane %v11654_v1, %v23062_v25  ;;  %v20846_v8 = vrot.slane %v11655_v28, %v23062_v25  ;;  %v20849_v59 = vrot.slane %v11670_v4, %v23062_v25  ;;  %v20852_v17 = vrot.slane %v11671_v23, %v23062_v25 }
 0xa4f   : > { %v12062_v41 = vcombine.low %v12006_v42, %v12022_v27  ;;  %v12063_v15 = vcombine.high %v12006_v42, %v12022_v27  ;;  %v12078_v35 = vcombine.low %v12013_v61, %v12029_v19  ;;  %v12079_v47 = vcombine.high %v12013_v61, %v12029_v19  ;;  %v9990_v57 = vpop.f32.mrb[168].mxu1 }
 0xa50   : > { %v13955_v33 = vpop.f32.mrb[169].mxu1 }
 0xa51   : > { %v9993_v18 = vpop.f32.mrb[170].mxu1  ;;  %v20877_v34 = vrot.slane %v12062_v41, %v23062_v25  ;;  %v20880_v54 = vrot.slane %v12063_v15, %v23062_v25  ;;  %v20883_v55 = vrot.slane %v12078_v35, %v23062_v25  ;;  %v20904_v50 = vrot.slane %v12079_v47, %v23062_v25 }
 0xa52   : > { %v13956_v51 = vpop.f32.mrb[171].mxu1 }
 0xa53   : > { %v10034_v40 = vpop.f32.mrb[172].mxu0  ;;  %23222 = vst [vmem:[#allocation85_spill] sm:$0xff] %v20904_v50 }
 0xa54   : > { %v11694_v58 = vcombine.low %v20822_v38, %v10034_v40  ;;  %v11695_v12 = vcombine.high %v20822_v38, %v10034_v40  ;;  %v13961_v24 = vpop.f32.mrb[173].mxu0 }
 0xa55   : > { %v10037_v6 = vpop.f32.mrb[174].mxu0 }
 0xa56   : > { %v12102_v5 = vcombine.low %v20840_v48, %v10037_v6  ;;  %v12103_v20 = vcombine.high %v20840_v48, %v10037_v6  ;;  %v13962_v30 = vpop.f32.mrb[175].mxu0  ;;  %v11702_v28 = vrot.slane %v11694_v58, %v23057_v52  ;;  %v11709_v4 = vrot.slane %v11695_v12, %v23057_v52 }
 0xa57   : > { %v10078_v46 = vpop.f32.mrb[172].mxu1 }
 0xa58   : > { %v11710_v16 = vcombine.low %v9990_v57, %v10078_v46  ;;  %v11711_v38 = vcombine.high %v9990_v57, %v10078_v46  ;;  %v13967_v1 = vpop.f32.mrb[173].mxu1  ;;  %v20931_v57 = vrot.slane %v12102_v5, %v23057_v52  ;;  %v20934_v33 = vrot.slane %v12103_v20, %v23057_v52 }
 0xa59   : > { %v10081_v23 = vpop.f32.mrb[174].mxu1 }
 0xa5a   : > { %v11718_v45 = vrot.slane %v11710_v16, %v23057_v52  ;;  %v11725_v42 = vrot.slane %v11711_v38, %v23057_v52  ;;  %v12118_v61 = vcombine.low %v9993_v18, %v10081_v23  ;;  %v12119_v27 = vcombine.high %v9993_v18, %v10081_v23  ;;  %v13968_v19 = vpop.f32.mrb[175].mxu1 }
 0xa5b   : > { %v10122_v48 = vpop.f32.mrb[176].mxu0 }
 0xa5c   : > { %v11758_v31 = vcombine.low %v11702_v28, %v11718_v45  ;;  %v11759_v41 = vcombine.high %v11702_v28, %v11718_v45  ;;  %v11774_v15 = vcombine.low %v11709_v4, %v11725_v42  ;;  %v11775_v35 = vcombine.high %v11709_v4, %v11725_v42  ;;  %v13973_v47 = vpop.f32.mrb[177].mxu0 }
 0xa5d   : > { %v20937_v51 = vrot.slane %v12118_v61, %v23057_v52  ;;  %v20940_v40 = vrot.slane %v12119_v27, %v23057_v52  ;;  %v10125_v18 = vpop.f32.mrb[178].mxu0 }
 0xa5e   : > { %v13974_v58 = vpop.f32.mrb[179].mxu0 }
 0xa5f   : > { %v12166_v12 = vcombine.low %v20931_v57, %v20937_v51  ;;  %v12167_v24 = vcombine.high %v20931_v57, %v20937_v51  ;;  %v12182_v6 = vcombine.low %v20934_v33, %v20940_v40  ;;  %v12183_v5 = vcombine.high %v20934_v33, %v20940_v40  ;;  %v10166_v20 = vpop.f32.mrb[176].mxu1 }
 0xa60   : > { %v13979_v30 = vpop.f32.mrb[177].mxu1 }
 0xa61   : > { %v10169_v46 = vpop.f32.mrb[178].mxu1 }
 0xa62   : > { %v13980_v16 = vpop.f32.mrb[179].mxu1 }
 0xa63   : > { %v10210_v38 = vpop.f32.mrb[180].mxu0 }
 0xa64   : > { %v11726_v1 = vcombine.low %v10122_v48, %v10210_v38  ;;  %v11727_v28 = vcombine.high %v10122_v48, %v10210_v38  ;;  %v13985_v4 = vpop.f32.mrb[181].mxu0 }
 0xa65   : > { %v10213_v23 = vpop.f32.mrb[182].mxu0 }
 0xa66   : > { %v12134_v45 = vcombine.low %v10125_v18, %v10213_v23  ;;  %v12135_v42 = vcombine.high %v10125_v18, %v10213_v23  ;;  %v13986_v61 = vpop.f32.mrb[183].mxu0  ;;  %v11734_v37 = vrot.slane %v11726_v1, %v23057_v52  ;;  %v11741_v43 = vrot.slane %v11727_v28, %v23057_v52 }
 0xa67   : > { %v10254_v27 = vpop.f32.mrb[180].mxu1  ;;  %v20957_v18 = vrot.slane %v11758_v31, %v23062_v25  ;;  %v20963_v1 = vrot.slane %v11774_v15, %v23062_v25  ;;  %v20966_v28 = vrot.slane %v11775_v35, %v23062_v25 }
 0xa68   : > { %v11742_v19 = vcombine.low %v10166_v20, %v10254_v27  ;;  %v11743_v47 = vcombine.high %v10166_v20, %v10254_v27  ;;  %v13991_v58 = vpop.f32.mrb[181].mxu1  ;;  %v20960_v20 = vrot.slane %v11759_v41, %v23062_v25 }
 0xa69   : > { %v10257_v10 = vpop.f32.mrb[182].mxu1 }
 0xa6a   : > { %v11750_v30 = vrot.slane %v11742_v19, %v23057_v52  ;;  %v11757_v16 = vrot.slane %v11743_v47, %v23057_v52  ;;  %v12150_v62 = vcombine.low %v10169_v46, %v10257_v10  ;;  %v12151_v48 = vcombine.high %v10169_v46, %v10257_v10  ;;  %v13992_v38 = vpop.f32.mrb[183].mxu1 }
 0xa6b   : > { %v20954_v4 = vpop.f32.mrb[184].mxu0  ;;  %v12142_v46 = vrot.slane %v12134_v45, %v23057_v52  ;;  %v12149_v47 = vrot.slane %v12135_v42, %v23057_v52 }
 0xa6c   : > { %v11790_v23 = vcombine.low %v11734_v37, %v11750_v30  ;;  %v11791_v61 = vcombine.high %v11734_v37, %v11750_v30  ;;  %v11806_v27 = vcombine.low %v11741_v43, %v11757_v16  ;;  %v11807_v19 = vcombine.high %v11741_v43, %v11757_v16  ;;  %v13997_v10 = vpop.f32.mrb[185].mxu0 }
 0xa6d   : > { %v12158_v31 = vrot.slane %v12150_v62, %v23057_v52  ;;  %v12165_v41 = vrot.slane %v12151_v48, %v23057_v52  ;;  %v20972_v58 = vpop.f32.mrb[186].mxu0 }
 0xa6e   : > { %v13998_v15 = vpop.f32.mrb[187].mxu0  ;;  %v20975_v38 = vrot.slane %v11790_v23, %v23062_v25  ;;  %v20978_v35 = vrot.slane %v11791_v61, %v23062_v25  ;;  %v20981_v43 = vrot.slane %v11806_v27, %v23062_v25  ;;  %v20984_v37 = vrot.slane %v11807_v19, %v23062_v25 }
 0xa6f   : > { %v12198_v45 = vcombine.low %v12142_v46, %v12158_v31  ;;  %v12199_v42 = vcombine.high %v12142_v46, %v12158_v31  ;;  %v12214_v62 = vcombine.low %v12149_v47, %v12165_v41  ;;  %v12215_v30 = vcombine.high %v12149_v47, %v12165_v41  ;;  %v10342_v16 = vpop.f32.mrb[184].mxu1 }
 0xa70   : > { %v14003_v48 = vpop.f32.mrb[185].mxu1 }
 0xa71   : > { %v10345_v19 = vpop.f32.mrb[186].mxu1  ;;  %v21006_v48 = vrot.slane %v12166_v12, %v23062_v25  ;;  %v21009_v7 = vrot.slane %v12198_v45, %v23062_v25  ;;  %v21012_v63 = vrot.slane %v12199_v42, %v23062_v25  ;;  %v21015_v13 = vrot.slane %v12214_v62, %v23062_v25 }
 0xa72   : > { %v14004_v15 = vpop.f32.mrb[187].mxu1  ;;  %v21027_v12 = vrot.slane %v12182_v6, %v23062_v25  ;;  %v21033_v45 = vrot.slane %v12183_v5, %v23062_v25  ;;  %v21036_v42 = vrot.slane %v12215_v30, %v23062_v25 }
 0xa73   : > { %v10386_v22 = vpop.f32.mrb[188].mxu0  ;;  %v21021_v15 = vrot.slane %v12167_v24, %v23062_v25 }
 0xa74   : > { %23223 = vst [vmem:[#allocation91_spill] sm:$0xff] %v21033_v45  ;;  %23224 = vst [vmem:[#allocation97_spill] sm:$0xff] %v21036_v42  ;;  %v11830_v62 = vcombine.low %v20954_v4, %v10386_v22  ;;  %v11831_v57 = vcombine.high %v20954_v4, %v10386_v22  ;;  %v14009_v51 = vpop.f32.mrb[189].mxu0 }
 0xa75   : > { %v10389_v41 = vpop.f32.mrb[190].mxu0 }
 0xa76   : > { %v12238_v4 = vcombine.low %v20972_v58, %v10389_v41  ;;  %v12239_v30 = vcombine.high %v20972_v58, %v10389_v41  ;;  %v14010_v51 = vpop.f32.mrb[191].mxu0  ;;  %v11838_v5 = vrot.slane %v11830_v62, %v23057_v52  ;;  %v11845_v39 = vrot.slane %v11831_v57, %v23057_v52 }
 0xa77   : > { %v10430_v24 = vpop.f32.mrb[188].mxu1 }
 0xa78   : > { %v11846_v49 = vcombine.low %v10342_v16, %v10430_v24  ;;  %v11847_v40 = vcombine.high %v10342_v16, %v10430_v24  ;;  %v14015_v31 = vpop.f32.mrb[189].mxu1  ;;  %v21063_v16 = vrot.slane %v12238_v4, %v23057_v52 }
 0xa79   : > { %v10433_v22 = vpop.f32.mrb[190].mxu1  ;;  %v21066_v31 = vrot.slane %v12239_v30, %v23057_v52 }
 0xa7a   : > { %v11854_v47 = vrot.slane %v11846_v49, %v23057_v52  ;;  %v11861_v58 = vrot.slane %v11847_v40, %v23057_v52  ;;  %v12254_v41 = vcombine.low %v10345_v19, %v10433_v22  ;;  %v12255_v51 = vcombine.high %v10345_v19, %v10433_v22  ;;  %v14016_v26 = vpop.f32.mrb[191].mxu1 }
 0xa7b   : > { %v10474_v46 = vpop.f32.mrb[192].mxu0 }
 0xa7c   : > { %v11894_v6 = vcombine.low %v11838_v5, %v11854_v47  ;;  %v11895_v0 = vcombine.high %v11838_v5, %v11854_v47  ;;  %v11910_v27 = vcombine.low %v11845_v39, %v11861_v58  ;;  %v11911_v33 = vcombine.high %v11845_v39, %v11861_v58  ;;  %v14021_v14 = vpop.f32.mrb[193].mxu0 }
 0xa7d   : > { %v21069_v62 = vrot.slane %v12254_v41, %v23057_v52  ;;  %v21072_v49 = vrot.slane %v12255_v51, %v23057_v52  ;;  %v10477_v19 = vpop.f32.mrb[194].mxu0 }
 0xa7e   : > { %v14022_v26 = vpop.f32.mrb[195].mxu0  ;;  %v11902_v10 = vrot.slane %v11894_v6, %v23062_v25  ;;  %v21097_v6 = vrot.slane %v11911_v33, %v23062_v25 }
 0xa7f   : > { %v10518_v24 = vpop.f32.mrb[192].mxu1 }
 0xa80   : > { %v14027_v40 = vpop.f32.mrb[193].mxu1 }
 0xa81   : > { %v10521_v5 = vpop.f32.mrb[194].mxu1 }
 0xa82   : > { %v14028_v22 = vpop.f32.mrb[195].mxu1 }
 0xa83   : > { %v10562_v4 = vpop.f32.mrb[196].mxu0  ;;  %v21085_v22 = vstv %s353_s21 }
 0xa84   : > { %v11862_v30 = vcombine.low %v10474_v46, %v10562_v4  ;;  %v11863_v58 = vcombine.high %v10474_v46, %v10562_v4  ;;  %v14033_v41 = vpop.f32.mrb[197].mxu0 }
 0xa85   : > { %v10565_v51 = vpop.f32.mrb[198].mxu0 }
 0xa86   : > { %v12270_v26 = vcombine.low %v10477_v19, %v10565_v51  ;;  %v12271_v61 = vcombine.high %v10477_v19, %v10565_v51  ;;  %v14034_v44 = vpop.f32.mrb[199].mxu0  ;;  %v11870_v60 = vrot.slane %v11862_v30, %v23057_v52  ;;  %v11877_v57 = vrot.slane %v11863_v58, %v23057_v52 }
 0xa87   : > { %v10606_v14 = vpop.f32.mrb[196].mxu1 }
 0xa88   : > { %v11878_v47 = vcombine.low %v10518_v24, %v10606_v14  ;;  %v11879_v23 = vcombine.high %v10518_v24, %v10606_v14  ;;  %v14039_v39 = vpop.f32.mrb[197].mxu1  ;;  %v12278_v51 = vrot.slane %v12270_v26, %v23057_v52  ;;  %v21094_v24 = vrot.slane %v11910_v27, %v23062_v25 }
 0xa89   : > { %v10609_v40 = vpop.f32.mrb[198].mxu1  ;;  %v21091_v39 = vrot.slane %v11895_v0, %v23062_v25  ;;  %v23225_v0 = vcombine.low %v20825_v32, %v20843_v56 }
 0xa8a   : > { %v11886_v46 = vrot.slane %v11878_v47, %v23057_v52  ;;  %v11893_v4 = vrot.slane %v11879_v23, %v23057_v52  ;;  %v12286_v41 = vcombine.low %v10521_v5, %v10609_v40  ;;  %v12287_v19 = vcombine.high %v10521_v5, %v10609_v40  ;;  %v14040_v44 = vpop.f32.mrb[199].mxu1 }
 0xa8b   : > { %v14047_v14 = vpop.f32.mrb[200].mxu0  ;;  %v12285_v5 = vrot.slane %v12271_v61, %v23057_v52 }
 0xa8c   : > { %v11926_v30 = vcombine.low %v11870_v60, %v11886_v46  ;;  %v11927_v58 = vcombine.high %v11870_v60, %v11886_v46  ;;  %v11942_v47 = vcombine.low %v11877_v57, %v11893_v4  ;;  %v11943_v29 = vcombine.high %v11877_v57, %v11893_v4  ;;  %v10689_v23 = vpop.f32.mrb[201].mxu0 }
 0xa8d   : > { %v12294_v40 = vrot.slane %v12286_v41, %v23057_v52  ;;  %v12301_v26 = vrot.slane %v12287_v19, %v23057_v52  ;;  %v12374_v44 = vadd.f32 %v23225_v0, %v10689_v23  ;;  %v14048_v27 = vpop.f32.mrb[202].mxu0 }
 0xa8e   : > { %v11934_v42 = vrot.slane %v11926_v30, %v23062_v25  ;;  %v10692_v33 = vpop.f32.mrb[203].mxu0  ;;  %v11941_v45 = vrot.slane %v11927_v58, %v23062_v25  ;;  %v21108_v60 = vrot.slane %v11942_v47, %v23062_v25  ;;  %v21111_v57 = vrot.slane %v11943_v29, %v23062_v25 }
 0xa8f   : > { %v12334_v61 = vcombine.low %v12278_v51, %v12294_v40  ;;  %v12335_v46 = vcombine.high %v12278_v51, %v12294_v40  ;;  %v12350_v4 = vcombine.low %v12285_v5, %v12301_v26  ;;  %v12351_v52 = vcombine.high %v12285_v5, %v12301_v26  ;;  %v14055_v41 = vpop.f32.mrb[200].mxu1 }
 0xa90   : > { %v11958_v19 = vcombine.low %v11902_v10, %v11934_v42  ;;  %v12423_v23 = vmul.f32 %v21085_v22, %v12374_v44  ;;  %v23226_v30 = vcombine.low %v20957_v18, %v20975_v38  ;;  %v11959_v27 = vcombine.high %v11902_v10, %v11934_v42  ;;  %v10746_v58 = vpop.f32.mrb[201].mxu1 }
 0xa91   : > { %v23227_v47 = vcombine.high %v20825_v32, %v20843_v56  ;;  %v14056_v29 = vpop.f32.mrb[202].mxu1  ;;  %v11960_v3 = vcombine.low %v21091_v39, %v11941_v45  ;;  %v11961_v51 = vcombine.high %v21091_v39, %v11941_v45  ;;  %v11962_v5 = vcombine.low %v21094_v24, %v21108_v60 }
 0xa92   : > { %v12375_v0 = vadd.f32 %v23226_v30, %v10692_v33  ;;  %v12376_v40 = vadd.f32 %v14047_v14, %v11958_v19  ;;  %v12379_v26 = vadd.f32 %v14055_v41, %v11959_v27  ;;  %12471 = vxpose.xlu0.b32.start [1/16] (narrow) %v12423_v23, 64  ;;  %v10749_v44 = vpop.f32.mrb[203].mxu1  ;;  %v11963_v10 = vcombine.high %v21094_v24, %v21108_v60 }
 0xa93   : > { %v12377_v50 = vadd.f32 %v23227_v47, %v10746_v58  ;;  %v23228_v42 = vcombine.high %v20957_v18, %v20975_v38  ;;  %v14063_v56 = vpop.f32.mrb[204].mxu0  ;;  %v11964_v33 = vcombine.low %v21097_v6, %v21111_v57  ;;  %v11965_v45 = vcombine.high %v21097_v6, %v21111_v57 }
 0xa94   : > { %v23229_v14 = vcombine.low %v21063_v16, %v21069_v62  ;;  %v12424_v41 = vmul.f32 %v21085_v22, %v12375_v0  ;;  %v21140_v24 = vadd.f32 %v14063_v56, %v11960_v3  ;;  %v10803_v60 = vpop.f32.mrb[205].mxu0  ;;  %v21143_v18 = vrot.slane %v12334_v61, %v23062_v25 }
 0xa95   : > { %v12378_v32 = vadd.f32 %v23228_v42, %v10749_v44  ;;  %v23230_v38 = vcombine.high %v21063_v16, %v21069_v62  ;;  %v23231_v23 = vcombine.low %v20828_v9, %v20846_v8  ;;  %v14064_v27 = vpop.f32.mrb[206].mxu0  ;;  %v21155_v58 = vrot.slane %v12335_v46, %v23062_v25 }
 0xa96   : > { %v21137_v39 = vrot.slane %v23229_v14, %v23062_v25  ;;  %v23232_v3 = vcombine.low %v21066_v31, %v21072_v49  ;;  %v21164_v0 = vrot.slane %v12350_v4, %v23062_v25  ;;  %12472 = vxpose.xlu0.b32.cont [2/16] (narrow) %v12424_v41, 64  ;;  %v10806_v16 = vpop.f32.mrb[207].mxu0  ;;  %v23233_v46 = vcombine.high %v21066_v31, %v21072_v49 }
 0xa97   : > { %v21149_v19 = vrot.slane %v23230_v38, %v23062_v25  ;;  %v12380_v30 = vadd.f32 %v23231_v23, %v10803_v60  ;;  %v21177_v44 = vrot.slane %v12351_v52, %v23062_v25  ;;  %v12425_v4 = vmul.f32 %v21085_v22, %v12376_v40  ;;  %v14071_v14 = vpop.f32.mrb[204].mxu1 }
 0xa98   : > { %v21161_v61 = vrot.slane %v23232_v3, %v23062_v25  ;;  %v12366_v62 = vcombine.low %v21137_v39, %v21143_v18  ;;  %v12367_v47 = vcombine.high %v21137_v39, %v21143_v18  ;;  %v21174_v29 = vrot.slane %v23233_v46, %v23062_v25  ;;  %v10860_v31 = vpop.f32.mrb[205].mxu1 }
 0xa99   : > { %v23234_v42 = vcombine.low %v20960_v20, %v20978_v35  ;;  %v12368_v41 = vcombine.low %v21149_v19, %v21155_v58  ;;  %v12369_v60 = vcombine.high %v21149_v19, %v21155_v58  ;;  %v21187_v38 = vadd.f32 %v14071_v14, %v11961_v51  ;;  %v14072_v27 = vpop.f32.mrb[206].mxu1 }
 0xa9a   : > { %v12370_v25 = vcombine.low %v21161_v61, %v21164_v0  ;;  %v23235_v40 = vcombine.high %v20828_v9, %v20846_v8  ;;  %12473 = vxpose.xlu0.b32.cont [3/16] (narrow) %v12425_v4, 64  ;;  %v10863_v3 = vpop.f32.mrb[207].mxu1  ;;  %v12426_v14 = vmul.f32 %v21085_v22, %v12377_v50  ;;  %v23237_v9 = vcombine.low %v20831_v36, %v20849_v59 }
 0xa9b   : > { %v12381_v56 = vadd.f32 %v23234_v42, %v10806_v16  ;;  %v23236_v16 = vcombine.high %v20960_v20, %v20978_v35  ;;  %v14079_v42 = vpop.f32.mrb[208].mxu0  ;;  %v12427_v27 = vmul.f32 %v21085_v22, %v12378_v32  ;;  %v23241_v32 = vcombine.low %v20834_v21, %v20852_v17 }
 0xa9c   : > { %v21198_v23 = vadd.f32 %v23235_v40, %v10860_v31  ;;  %v21208_v52 = vadd.f32 %v14079_v42, %v11962_v5  ;;  %v10917_v49 = vpop.f32.mrb[209].mxu0  ;;  %v23238_v40 = vcombine.low %v20963_v1, %v20981_v43  ;;  %v12434_v19 = vmul.f32 %v21085_v22, %v21187_v38 }
 0xa9d   : > { %v21205_v46 = vadd.f32 %v23236_v16, %v10863_v3  ;;  %v21213_v8 = vadd.f32 %v23237_v9, %v10917_v49  ;;  %v14080_v31 = vpop.f32.mrb[210].mxu0  ;;  %v23239_v3 = vcombine.high %v20831_v36, %v20849_v59  ;;  %v12430_v6 = vmul.f32 %v21085_v22, %v12381_v56 }
 0xa9e   : > { %12474 = vxpose.xlu0.b32.cont [4/16] (narrow) %v12426_v14, 64  ;;  %v10920_v4 = vpop.f32.mrb[211].mxu0  ;;  %v23240_v14 = vcombine.high %v20963_v1, %v20981_v43  ;;  %v12429_v43 = vmul.f32 %v21085_v22, %v12380_v30  ;;  %v12432_v18 = vmul.f32 %v21085_v22, %v21198_v23 }
 0xa9f   : > { %v21218_v20 = vadd.f32 %v23238_v40, %v10920_v4  ;;  %v14087_v35 = vpop.f32.mrb[208].mxu1  ;;  %v12428_v4 = vmul.f32 %v21085_v22, %v12379_v26  ;;  %v12435_v38 = vmul.f32 %v21085_v22, %v21213_v8 }
 0xaa0   : > { %v12391_v50 = vadd.f32 %v14087_v35, %v11963_v10  ;;  %v10974_v5 = vpop.f32.mrb[209].mxu1 }
 0xaa1   : > { %v21224_v16 = vadd.f32 %v23239_v3, %v10974_v5  ;;  %v14088_v49 = vpop.f32.mrb[210].mxu1 }
 0xaa2   : > { %12475 = vxpose.xlu0.b32.cont [5/16] (narrow) %v12427_v27, 64  ;;  %v10977_v42 = vpop.f32.mrb[211].mxu1  ;;  %v23242_v27 = vcombine.low %v20966_v28, %v20984_v37  ;;  %v12440_v3 = vmul.f32 %v21085_v22, %v12391_v50 }
 0xaa3   : > { %v12390_v9 = vadd.f32 %v23240_v14, %v10977_v42  ;;  %v14095_v31 = vpop.f32.mrb[212].mxu0 }
 0xaa4   : > { %v12394_v40 = vadd.f32 %v14095_v31, %v11964_v33  ;;  %v11031_v51 = vpop.f32.mrb[213].mxu0 }
 0xaa5   : > { %v12439_v10 = vmul.f32 %v21085_v22, %v12390_v9  ;;  %v12392_v36 = vadd.f32 %v23241_v32, %v11031_v51  ;;  %v14096_v59 = vpop.f32.mrb[214].mxu0  ;;  %v23243_v51 = vcombine.high %v20834_v21, %v20852_v17  ;;  %v23244_v9 = vcombine.high %v20966_v28, %v20984_v37 }
 0xaa6   : > { %12476 = vxpose.xlu0.b32.cont [6/16] (narrow) %v12428_v4, 64  ;;  %v11034_v35 = vpop.f32.mrb[215].mxu0  ;;  %v23245_v21 = vcombine.low %v20874_v2, %v20877_v34  ;;  %v23246_v28 = vcombine.low %v21006_v48, %v21009_v7 }
 0xaa7   : > { %v12393_v5 = vadd.f32 %v23242_v27, %v11034_v35  ;;  %12503 = vxpose.xlu1.b32.start [1/16] (narrow) %v12439_v10, 64  ;;  %v14103_v1 = vpop.f32.mrb[212].mxu1  ;;  %v12441_v50 = vmul.f32 %v21085_v22, %v12392_v36  ;;  %v23247_v35 = vcombine.high %v20874_v2, %v20877_v34  ;;  %v12443_v34 = vmul.f32 %v21085_v22, %v12394_v40 }
 0xaa8   : > { %v21241_v26 = vadd.f32 %v14103_v1, %v11965_v45  ;;  %v11088_v33 = vpop.f32.mrb[213].mxu1 }
 0xaa9   : > { %v12395_v49 = vadd.f32 %v23243_v51, %v11088_v33  ;;  %v14104_v42 = vpop.f32.mrb[214].mxu1  ;;  %v12442_v59 = vmul.f32 %v21085_v22, %v12393_v5  ;;  %v23248_v33 = vcombine.high %v21006_v48, %v21009_v7  ;;  %v23249_v5 = vcombine.low %v20889_v11, %v20880_v54 }
 0xaaa   : > { %12477 = vxpose.xlu0.b32.cont [7/16] (narrow) %v12429_v43, 64  ;;  %v11091_v14 = vpop.f32.mrb[215].mxu1  ;;  %v23250_v51 = vcombine.low %v21021_v15, %v21012_v63 }
 0xaab   : > { %v12396_v31 = vadd.f32 %v23244_v9, %v11091_v14  ;;  %12504 = vxpose.xlu1.b32.cont [2/16] (narrow) %v12440_v3, 64  ;;  %v14111_v30 = vpop.f32.mrb[216].mxu0  ;;  %v12444_v9 = vmul.f32 %v21085_v22, %v12395_v49 }
 0xaac   : > { %v21251_v57 = vadd.f32 %v14111_v30, %v12366_v62  ;;  %v11145_v45 = vpop.f32.mrb[217].mxu0  ;;  %v12431_v62 = vmul.f32 %v21085_v22, %v21140_v24  ;;  %v23251_v30 = vcombine.high %v20889_v11, %v20880_v54  ;;  %v23253_v11 = vcombine.low %v20895_v53, %v20883_v55 }
 0xaad   : > { %v12398_v17 = vadd.f32 %v23245_v21, %v11145_v45  ;;  %v14112_v4 = vpop.f32.mrb[218].mxu0  ;;  %v23252_v21 = vcombine.high %v21021_v15, %v21012_v63 }
 0xaae   : > { %12478 = vxpose.xlu0.b32.cont [8/16] (narrow) %v12430_v6, 64  ;;  %v11148_v10 = vpop.f32.mrb[219].mxu0 }
 0xaaf   : > { %v21260_v37 = vadd.f32 %v23246_v28, %v11148_v10  ;;  %12505 = vxpose.xlu1.b32.cont [3/16] (narrow) %v12441_v50, 64  ;;  %v14119_v32 = vpop.f32.mrb[216].mxu1  ;;  %v12447_v8 = vmul.f32 %v21085_v22, %v12398_v17  ;;  %v23258_v17 = vcombine.low %v21174_v29, %v21177_v44 }
 0xab0   : > { %v21267_v56 = vadd.f32 %v14119_v32, %v12367_v47  ;;  %v11202_v36 = vpop.f32.mrb[217].mxu1  ;;  %v12436_v32 = vmul.f32 %v21085_v22, %v21218_v20  ;;  %v12437_v20 = vmul.f32 %v21085_v22, %v21208_v52  ;;  %v12438_v52 = vmul.f32 %v21085_v22, %v21224_v16 }
 0xab1   : > { %v21273_v27 = vadd.f32 %v23247_v35, %v11202_v36  ;;  %v14120_v1 = vpop.f32.mrb[218].mxu1  ;;  %v23256_v35 = vcombine.high %v20895_v53, %v20883_v55 }
 0xab2   : > { %12479 = vxpose.xlu0.b32.cont [9/16] (narrow) %v12431_v62, 64  ;;  %v11205_v43 = vpop.f32.mrb[219].mxu1  ;;  %v23255_v62 = vcombine.high %v21161_v61, %v21164_v0  ;;  %v12448_v0 = vmul.f32 %v21085_v22, %v21260_v37 }
 0xab3   : > { %v21278_v24 = vadd.f32 %v23248_v33, %v11205_v43  ;;  %12506 = vxpose.xlu1.b32.cont [4/16] (narrow) %v12442_v59, 64  ;;  %v14127_v39 = vpop.f32.mrb[220].mxu0  ;;  %v23257_v33 = vcombine.high %v21027_v12, %v21015_v13  ;;  %v12450_v16 = vmul.f32 %v21085_v22, %v21273_v27  ;;  %v12452_v27 = vmul.f32 %v21085_v22, %v21267_v56 }
 0xab4   : > { %v12406_v47 = vadd.f32 %v14127_v39, %v12368_v41  ;;  %v11259_v2 = vpop.f32.mrb[221].mxu0  ;;  %v12433_v41 = vmul.f32 %v21085_v22, %v21205_v46 }
 0xab5   : > { %v21289_v3 = vadd.f32 %v23249_v5, %v11259_v2  ;;  %v14128_v7 = vpop.f32.mrb[222].mxu0  ;;  %v23260_v2 = vld [vmem:[#allocation85_spill] sm:$0xff] }
 0xab6   : > { %12480 = vxpose.xlu0.b32.cont [10/16] (narrow) %v12432_v18, 64  ;;  %v11262_v48 = vpop.f32.mrb[223].mxu0  ;;  %v23259_v18 = vld [vmem:[#allocation103_spill] sm:$0xff] }
 0xab7   : > { %v21294_v42 = vadd.f32 %v23250_v51, %v11262_v48  ;;  %12507 = vxpose.xlu1.b32.cont [5/16] (narrow) %v12443_v34, 64  ;;  %v14135_v23 = vpop.f32.mrb[220].mxu1  ;;  %v23261_v34 = vcombine.low %v23259_v18, %v23260_v2  ;;  %v23262_v7 = vld [vmem:[#allocation91_spill] sm:$0xff]  ;;  %v23263_v48 = vld [vmem:[#allocation97_spill] sm:$0xff] }
 0xab8   : > { %v21301_v40 = vadd.f32 %v14135_v23, %v12369_v60  ;;  %v11316_v14 = vpop.f32.mrb[221].mxu1  ;;  %v12445_v60 = vmul.f32 %v21085_v22, %v12396_v31  ;;  %v23254_v31 = vcombine.low %v21027_v12, %v21015_v13  ;;  %v23264_v51 = vcombine.low %v23262_v7, %v23263_v48 }
 0xab9   : > { %v12407_v6 = vadd.f32 %v23251_v30, %v11316_v14  ;;  %v14136_v45 = vpop.f32.mrb[222].mxu1  ;;  %v12449_v23 = vmul.f32 %v21085_v22, %v21251_v57  ;;  %v12455_v14 = vmul.f32 %v21085_v22, %v12406_v47 }
 0xaba   : > { %12481 = vxpose.xlu0.b32.cont [11/16] (narrow) %v12433_v41, 64  ;;  %v11319_v50 = vpop.f32.mrb[223].mxu1 }
 0xabb   : > { %v12408_v4 = vadd.f32 %v23252_v21, %v11319_v50  ;;  %12508 = vxpose.xlu1.b32.cont [6/16] (narrow) %v12444_v9, 64  ;;  %v23265_v9 = vcombine.high %v21174_v29, %v21177_v44  ;;  %v23266_v50 = vcombine.high %v23259_v18, %v23260_v2  ;;  %v12456_v47 = vmul.f32 %v21085_v22, %v12407_v6  ;;  %v14529_v2 = vld [vmem:[%s14806_s19 + $0x90] sm:$0xff] }
 0xabc   : > { %v14143_v58 = vpop.f32.mrb[224].mxu0  ;;  %v12451_v29 = vmul.f32 %v21085_v22, %v21278_v24  ;;  %v12454_v24 = vmul.f32 %v21085_v22, %v21294_v42 }
 0xabd   : > { %v21316_v46 = vadd.f32 %v14143_v58, %v12370_v25  ;;  %v11373_v54 = vpop.f32.mrb[225].mxu0  ;;  %v12446_v25 = vmul.f32 %v21085_v22, %v21241_v26  ;;  %v23267_v58 = vcombine.high %v23262_v7, %v23263_v48  ;;  %v12457_v44 = vmul.f32 %v21085_v22, %v12408_v4  ;;  %v14531_v7 = vld [vmem:[%s14806_s19 + $0xa8] sm:$0xff] }
 0xabe   : > { %12482 = vxpose.xlu0.b32.cont [12/16] (narrow) %v12434_v19, 64  ;;  %v12410_v49 = vadd.f32 %v23253_v11, %v11373_v54  ;;  %v14144_v63 = vpop.f32.mrb[226].mxu0  ;;  %v12458_v54 = vmul.f32 %v21085_v22, %v21301_v40  ;;  %v12453_v11 = vmul.f32 %v21085_v22, %v21289_v3 }
 0xabf   : > { %12509 = vxpose.xlu1.b32.cont [7/16] (narrow) %v12445_v60, 64  ;;  %v11376_v15 = vpop.f32.mrb[227].mxu0  ;;  %v12461_v56 = vmul.f32 %v21085_v22, %v21316_v46 }
 0xac0   : > { %v12411_v10 = vadd.f32 %v23254_v31, %v11376_v15  ;;  %v12459_v6 = vmul.f32 %v21085_v22, %v12410_v49 }
 0xac2   : > { %12483 = vxpose.xlu0.b32.cont [13/16] (narrow) %v12435_v38, 64  ;;  %v12460_v4 = vmul.f32 %v21085_v22, %v12411_v10 }
 0xac3   : > { %12510 = vxpose.xlu1.b32.cont [8/16] (narrow) %v12446_v25, 64  ;;  %v14151_v28 = vpop.f32.mrb[224].mxu1  ;;  %v14522_v25 = vld [vmem:[%s14806_s19] sm:$0xff] }
 0xac4   : > { %v12415_v36 = vadd.f32 %v14151_v28, %v23255_v62  ;;  %v11430_v59 = vpop.f32.mrb[225].mxu1  ;;  %v14523_v62 = vld [vmem:[%s14806_s19 + $0x18] sm:$0xff] }
 0xac5   : > { %v12413_v1 = vadd.f32 %v23256_v35, %v11430_v59  ;;  %v14152_v43 = vpop.f32.mrb[226].mxu1  ;;  %v14524_v59 = vld [vmem:[%s14806_s19 + $0x30] sm:$0xff] }
 0xac6   : > { %12484 = vxpose.xlu0.b32.cont [14/16] (narrow) %v12436_v32, 64  ;;  %v11433_v26 = vpop.f32.mrb[227].mxu1  ;;  %v12464_v49 = vmul.f32 %v21085_v22, %v12415_v36 }
 0xac7   : > { %v12414_v39 = vadd.f32 %v23257_v33, %v11433_v26  ;;  %12511 = vxpose.xlu1.b32.cont [9/16] (narrow) %v12447_v8, 64  ;;  %v12462_v40 = vmul.f32 %v21085_v22, %v12413_v1  ;;  %v14525_v1 = vld [vmem:[%s14806_s19 + $0x48] sm:$0xff]  ;;  %v14526_v33 = vld [vmem:[%s14806_s19 + $0x60] sm:$0xff] }
 0xac8   : > { %v14159_v61 = vpop.f32.mrb[228].mxu0 }
 0xac9   : > { %v12418_v55 = vadd.f32 %v14159_v61, %v23258_v17  ;;  %v11487_v53 = vpop.f32.mrb[229].mxu0  ;;  %v12463_v3 = vmul.f32 %v21085_v22, %v12414_v39  ;;  %v14527_v61 = vld [vmem:[%s14806_s19 + $0x78] sm:$0xff] }
 0xaca   : > { %12485 = vxpose.xlu0.b32.cont [15/16] (narrow) %v12437_v20, 64  ;;  %v12416_v5 = vadd.f32 %v23261_v34, %v11487_v53  ;;  %v14160_v13 = vpop.f32.mrb[230].mxu0 }
 0xacb   : > { %12512 = vxpose.xlu1.b32.cont [10/16] (narrow) %v12448_v0, 64  ;;  %v11490_v12 = vpop.f32.mrb[231].mxu0  ;;  %v12467_v46 = vmul.f32 %v21085_v22, %v12418_v55  ;;  %v14528_v55 = vld [vmem:[%s14806_s19 + $0x8] sm:$0xff]  ;;  %v14530_v13 = vld [vmem:[%s14806_s19 + $0x20] sm:$0xff] }
 0xacc   : > { %v12417_v37 = vadd.f32 %v23264_v51, %v11490_v12  ;;  %v12465_v42 = vmul.f32 %v21085_v22, %v12416_v5 }
 0xace   : > { %12486 = vxpose.xlu0.b32.end [16/16] (narrow) %v12438_v52, 64  ;;  %v12466_v63 = vmul.f32 %v21085_v22, %v12417_v37  ;;  %v14532_v37 = vld [vmem:[%s14806_s19 + $0x38] sm:$0xff] }
 0xacf   : > { %12513 = vxpose.xlu1.b32.cont [11/16] (narrow) %v12449_v23, 64  ;;  %v14167_v41 = vpop.f32.mrb[228].mxu1 }
 0xad0   : > { %v12421_v30 = vadd.f32 %v14167_v41, %v23265_v9  ;;  %v11544_v45 = vpop.f32.mrb[229].mxu1 }
 0xad1   : > { %v12419_v21 = vadd.f32 %v23266_v50, %v11544_v45  ;;  %v14168_v19 = vpop.f32.mrb[230].mxu1  ;;  %v14534_v45 = vld [vmem:[%s14806_s19 + $0x68] sm:$0xff] }
 0xad2   : > { %12535 = vxpose.xlu0.b32.start [1/16] (narrow) %v12455_v14, 64  ;;  %v11547_v57 = vpop.f32.mrb[231].mxu1  ;;  %v12470_v31 = vmul.f32 %v21085_v22, %v12421_v30  ;;  %v14533_v14 = vld [vmem:[%s14806_s19 + $0x50] sm:$0xff] }
 0xad3   : > { %v12420_v60 = vadd.f32 %v23267_v58, %v11547_v57  ;;  %12514 = vxpose.xlu1.b32.cont [12/16] (narrow) %v12450_v16, 64  ;;  %v12468_v15 = vmul.f32 %v21085_v22, %v12419_v21  ;;  %v14535_v21 = vld [vmem:[%s14806_s19 + $0x80] sm:$0xff]  ;;  %v14536_v58 = vld [vmem:[%s14806_s19 + $0x98] sm:$0xff] }
 0xad5   : > { %v12469_v38 = vmul.f32 %v21085_v22, %v12420_v60 }
 0xad6   : > { %12536 = vxpose.xlu0.b32.cont [2/16] (narrow) %v12456_v47, 64 }
 0xad7   : > { %12515 = vxpose.xlu1.b32.cont [13/16] (narrow) %v12451_v29, 64  ;;  %v14537_v29 = vld [vmem:[%s14806_s19 + $0xb0] sm:$0xff] }
 0xada   : > { %12537 = vxpose.xlu0.b32.cont [3/16] (narrow) %v12457_v44, 64 }
 0xadb   : > { %12516 = vxpose.xlu1.b32.cont [14/16] (narrow) %v12452_v27, 64 }
 0xade   : > { %12538 = vxpose.xlu0.b32.cont [4/16] (narrow) %v12458_v54, 64  ;;  %v14538_v54 = vld [vmem:[%s14806_s19 + $0x10] sm:$0xff] }
 0xadf   : > { %12517 = vxpose.xlu1.b32.cont [15/16] (narrow) %v12453_v11, 64 }
 0xae2   : > { %12539 = vxpose.xlu0.b32.cont [5/16] (narrow) %v12459_v6, 64 }
 0xae3   : > { %12518 = vxpose.xlu1.b32.end [16/16] (narrow) %v12454_v24, 64  ;;  %v14539_v24 = vld [vmem:[%s14806_s19 + $0x28] sm:$0xff] }
 0xae6   : > { %12540 = vxpose.xlu0.b32.cont [6/16] (narrow) %v12460_v4, 64 }
 0xaea   : > { %12541 = vxpose.xlu0.b32.cont [7/16] (narrow) %v12461_v56, 64 }
 0xaee   : > { %12542 = vxpose.xlu0.b32.cont [8/16] (narrow) %v12462_v40, 64  ;;  %v14540_v40 = vld [vmem:[%s14806_s19 + $0x40] sm:$0xff] }
 0xaf2   : > { %12543 = vxpose.xlu0.b32.cont [9/16] (narrow) %v12463_v3, 64 }
 0xaf6   : > { %12544 = vxpose.xlu0.b32.cont [10/16] (narrow) %v12464_v49, 64 }
 0xafa   : > { %12545 = vxpose.xlu0.b32.cont [11/16] (narrow) %v12465_v42, 64  ;;  %v14541_v42 = vld [vmem:[%s14806_s19 + $0x58] sm:$0xff] }
 0xafe   : > { %12546 = vxpose.xlu0.b32.cont [12/16] (narrow) %v12466_v63, 64 }
 0xb02   : > { %12547 = vxpose.xlu0.b32.cont [13/16] (narrow) %v12467_v46, 64 }
 0xb06   : > { %12548 = vxpose.xlu0.b32.cont [14/16] (narrow) %v12468_v15, 64  ;;  %v14542_v15 = vld [vmem:[%s14806_s19 + $0x70] sm:$0xff] }
 0xb0a   : > { %12549 = vxpose.xlu0.b32.cont [15/16] (narrow) %v12469_v38, 64 }
 0xb0e   : > { %12550 = vxpose.xlu0.b32.end [16/16] (narrow) %v12470_v31, 64 }
 0xb12   : > { %v12487_v10 = vpop.trf.xlu0 }
 0xb13   : > { %v12567_v28 = vadd.f32 %v14522_v25, %v12487_v10  ;;  %v14543_v10 = vld [vmem:[%s14806_s19 + $0x88] sm:$0xff] }
 0xb15   : > { %12591 = vst [vmem:[%s21397_s26] sm:$0xff] %v12567_v28 }
 0xb16   : > { %v12488_v32 = vpop.trf.xlu0 }
 0xb17   : > { %v12570_v36 = vadd.f32 %v14523_v62, %v12488_v32  ;;  %v14544_v32 = vld [vmem:[%s14806_s19 + $0xa0] sm:$0xff] }
 0xb19   : > { %12594 = vst [vmem:[%s21397_s26 + $0x18] sm:$0xff] %v12570_v36 }
 0xb1a   : > { %v12489_v22 = vpop.trf.xlu0 }
 0xb1b   : > { %v12573_v8 = vadd.f32 %v14524_v59, %v12489_v22  ;;  %v14545_v22 = vld [vmem:[%s14806_s19 + $0xb8] sm:$0xff] }
 0xb1d   : > { %12597 = vst [vmem:[%s21397_s26 + $0x30] sm:$0xff] %v12573_v8 }
 0xb1e   : > { %v12490_v35 = vpop.trf.xlu0 }
 0xb1f   : > { %v12576_v43 = vadd.f32 %v14525_v1, %v12490_v35 }
 0xb21   : > { %12600 = vst [vmem:[%s21397_s26 + $0x48] sm:$0xff] %v12576_v43 }
 0xb22   : > { %v12491_v26 = vpop.trf.xlu0 }
 0xb23   : > { %v12579_v39 = vadd.f32 %v14526_v33, %v12491_v26 }
 0xb25   : > { %12603 = vst [vmem:[%s21397_s26 + $0x60] sm:$0xff] %v12579_v39 }
 0xb26   : > { %v12492_v20 = vpop.trf.xlu0 }
 0xb27   : > { %v12582_v0 = vadd.f32 %v14527_v61, %v12492_v20  ;;  %v12519_v17 = vpop.trf.xlu1 }
 0xb28   : > { %v12568_v53 = vadd.f32 %v14528_v55, %v12519_v17 }
 0xb29   : > { %12606 = vst [vmem:[%s21397_s26 + $0x78] sm:$0xff] %v12582_v0 }
 0xb2a   : > { %v12493_v18 = vpop.trf.xlu0  ;;  %12592 = vst [vmem:[%s21397_s26 + $0x8] sm:$0xff] %v12568_v53 }
 0xb2b   : > { %v12585_v34 = vadd.f32 %v14529_v2, %v12493_v18  ;;  %v12520_v5 = vpop.trf.xlu1 }
 0xb2c   : > { %v12571_v12 = vadd.f32 %v14530_v13, %v12520_v5 }
 0xb2d   : > { %12609 = vst [vmem:[%s21397_s26 + $0x90] sm:$0xff] %v12585_v34 }
 0xb2e   : > { %v12494_v52 = vpop.trf.xlu0  ;;  %12595 = vst [vmem:[%s21397_s26 + $0x20] sm:$0xff] %v12571_v12 }
 0xb2f   : > { %v12588_v48 = vadd.f32 %v14531_v7, %v12494_v52  ;;  %v12521_v51 = vpop.trf.xlu1 }
 0xb30   : > { %v12574_v23 = vadd.f32 %v14532_v37, %v12521_v51 }
 0xb31   : > { %12612 = vst [vmem:[%s21397_s26 + $0xa8] sm:$0xff] %v12588_v48 }
 0xb32   : > { %12598 = vst [vmem:[%s21397_s26 + $0x38] sm:$0xff] %v12574_v23 }
 0xb33   : > { %v12522_v41 = vpop.trf.xlu1 }
 0xb34   : > { %v12577_v9 = vadd.f32 %v14533_v14, %v12522_v41 }
 0xb36   : > { %12601 = vst [vmem:[%s21397_s26 + $0x50] sm:$0xff] %v12577_v9 }
 0xb37   : > { %v12523_v30 = vpop.trf.xlu1 }
 0xb38   : > { %v12580_v16 = vadd.f32 %v14534_v45, %v12523_v30 }
 0xb3a   : > { %12604 = vst [vmem:[%s21397_s26 + $0x68] sm:$0xff] %v12580_v16 }
 0xb3b   : > { %v12524_v50 = vpop.trf.xlu1 }
 0xb3c   : > { %v12583_v19 = vadd.f32 %v14535_v21, %v12524_v50 }
 0xb3e   : > { %12607 = vst [vmem:[%s21397_s26 + $0x80] sm:$0xff] %v12583_v19 }
 0xb3f   : > { %v12525_v57 = vpop.trf.xlu1 }
 0xb40   : > { %v12586_v60 = vadd.f32 %v14536_v58, %v12525_v57 }
 0xb42   : > { %12610 = vst [vmem:[%s21397_s26 + $0x98] sm:$0xff] %v12586_v60 }
 0xb43   : > { %v12526_v47 = vpop.trf.xlu1 }
 0xb44   : > { %v12589_v44 = vadd.f32 %v14537_v29, %v12526_v47 }
 0xb46   : > { %12613 = vst [vmem:[%s21397_s26 + $0xb0] sm:$0xff] %v12589_v44 }
 0xb52   : > { %v12551_v27 = vpop.trf.xlu0 }
 0xb53   : > { %v12569_v11 = vadd.f32 %v14538_v54, %v12551_v27 }
 0xb55   : > { %12593 = vst [vmem:[%s21397_s26 + $0x10] sm:$0xff] %v12569_v11 }
 0xb56   : > { %v12552_v6 = vpop.trf.xlu0 }
 0xb57   : > { %v12572_v4 = vadd.f32 %v14539_v24, %v12552_v6 }
 0xb59   : > { %12596 = vst [vmem:[%s21397_s26 + $0x28] sm:$0xff] %v12572_v4 }
 0xb5a   : > { %v12553_v56 = vpop.trf.xlu0 }
 0xb5b   : > { %v12575_v3 = vadd.f32 %v14540_v40, %v12553_v56 }
 0xb5d   : > { %12599 = vst [vmem:[%s21397_s26 + $0x40] sm:$0xff] %v12575_v3 }
 0xb5e   : > { %v12554_v49 = vpop.trf.xlu0 }
 0xb5f   : > { %v12578_v63 = vadd.f32 %v14541_v42, %v12554_v49 }
 0xb61   : > { %12602 = vst [vmem:[%s21397_s26 + $0x58] sm:$0xff] %v12578_v63 }
 0xb62   : > { %v12555_v46 = vpop.trf.xlu0 }
 0xb63   : > { %v12581_v38 = vadd.f32 %v14542_v15, %v12555_v46 }
 0xb65   : > { %12605 = vst [vmem:[%s21397_s26 + $0x70] sm:$0xff] %v12581_v38 }
 0xb66   : > { %v12556_v31 = vpop.trf.xlu0 }
 0xb67   : > { %v12584_v25 = vadd.f32 %v14543_v10, %v12556_v31 }
 0xb69   : > { %12608 = vst [vmem:[%s21397_s26 + $0x88] sm:$0xff] %v12584_v25 }
 0xb6a   : > { %v12557_v28 = vpop.trf.xlu0 }
 0xb6b   : > { %v12587_v62 = vadd.f32 %v14544_v32, %v12557_v28 }
 0xb6d   : > { %12611 = vst [vmem:[%s21397_s26 + $0xa0] sm:$0xff] %v12587_v62 }
 0xb6e   : > { %v12558_v36 = vpop.trf.xlu0 }
 0xb6f   : > { %v12590_v59 = vadd.f32 %v14545_v22, %v12558_v36 }
 0xb71   : > { %12614 = vst [vmem:[%s21397_s26 + $0xb8] sm:$0xff] %v12590_v59 }
 0xb72   : > { %14589 = shalt.err (!%p14586_p2)
}
 0xb73   : > { %s14590_s19 = scalar_lea.hbm %s21449_s23, 3072  ;;  %s14594_s26 = scalar_lea.hbm %s21505_s8, 6144 }
 0xb74   : > { %p14591_p4 = scmp.ne.s32.totalorder %s21449_s23, %s14590_s19  ;;  %p14595_p9 = scmp.lt.u32.totalorder %s21449_s23, %s21505_s8 }
 0xb75   : > { %p14596_p1 = scmp.lt.u32.totalorder %s14594_s26, %s14590_s19  ;;  %p14598_p6 = scmp.lt.u32.totalorder %s14590_s19, %s21449_s23 }
 0xb76   : > { %p14592_p5 = pnand %p14591_p4, %p23268_p11 }
 0xb77   : > { %p14597_p3 = por %p14596_p1, %p14595_p9 }
 0xb78   : > { %p14593_p7 = pneg %p14592_p5 }
 0xb79   : > { %p14599_p12 = por %p14598_p6, %p14597_p3 }
 0xb7b   : > { %p14600_p13 = pnand %p14599_p12, %p14593_p7 }
 0xb7d   : > { %14603 = shalt.err (!%p14600_p13)
}
 0xb7e   : > { %s14652_s14 = smov 384   ;;  %s14653_s7 = smov 24  }
 0xb7f   : > { %14271 = dma.vmem_to_hbm [thread:$0]  (%p23268_p11), %s21452_s13, 3072, %s21449_s23, %s12616_s16, %s14652_s14, %s14652_s14, %s14653_s7  }
 0xb80 PF: > { %s12644_s24 = sand.u32 1, %s14630_s29   ;;  %p23269_p8 = scmp.ne.s32.totalorder %s22082_s18, 0 }
 0xb81   : > { %p23270_p10 = scmp.ge.s32.totalorder %s14642_s10, 2  ;;  %s12645_s25 = scalar_lea.sflag [#allocation5], %s12644_s24 }
 0xb83   : > { %p14278_p0 = pnand %p23270_p10, %p23269_p8 }
 0xb85   : > { %14625 = dma.done.wait (!%p14278_p0), %s12645_s25, 3072  }
 0xb86   : > { %14627 = vsyncadd (!%p14278_p0), %s12645_s25, 4294964224  ;;  %p22_p2 = scmp.ge.s32.totalorder %s14727_s12, 4   ;;  %s23271_s29 = smov %s14634_s30 }
 0xb87   : > { %s23272_s30 = smov %s14638_s9  ;;  %s23273_s9 = smov %s14739_s15 }
 0xb88   : > { %s23274_s10 = smov %s14727_s12  ;;  %24 = sbr.rel (!%p22_p2) target bundleno = 7 (0x7), region = 97 }
 0xb8f   :  { %12650 = vsyncpa [#allocation4], 1 }
 0xb90   :  { %12652 = vsyncpa [#allocation4 + $0x1], 1 }
 0xb91   :  { %12653 = vsyncpa [#allocation5], 1 }
 0xb92   :  { %12655 = vsyncpa [#allocation5 + $0x1], 1 }

</bundles_post_ra>
